<compile_context>
chip_gen: v6e
topology: v6e:2x2x1
jax: 0.10.0
libtpu: 0.0.40
codegen_flags: <defaults>
</compile_context>

<pallas_src>
import functools

import jax
import jax.numpy as jnp
from jax.experimental import pallas as pl
from jax.experimental.pallas import tpu as pltpu


# ----------------------------------------------------------------------------
# Flat activation layout.
#
# All activations are kept as (rows, channels) "flat images" with a fixed row
# pitch of WPITCH = 11 columns.  Row p = h * 11 + w holds spatial position
# (h, w); columns beyond the valid width of a layer contain garbage that is
# provably never read by any *valid* downstream output (each layer only reads
# strictly smaller (h, w) windows).  Row counts are padded so every static
# in-kernel slice stays in bounds.
# ----------------------------------------------------------------------------
WPITCH = 11
P0 = 136   # space-to-depth-8 input rows (121 real = 11x11 super-pixels)
P1 = 120   # conv1 output rows (valid 10x10 super-grid == 20x20 pixels)
P2 = 104   # conv2 output rows (valid 9x9)
P3 = 80    # conv3 output rows (valid 7x7)


# ----------------------------------------------------------------------------
# Pallas kernel 1: fused conv1 + conv2 + conv3 (bias + ReLU), one sample per
# grid step.  Every conv is a sum over its (few) kernel taps of a single
# (rows, Cin) x (Cin, 128) MXU dot on a contiguous VMEM slice.
# ----------------------------------------------------------------------------
def _conv_stack_kernel(xs_ref, w1_ref, b1_ref, w2_ref, b2_ref, w3_ref, b3_ref,
                       o_ref, a1_ref, a2_ref, *, kc1):
    # conv1: 8x8/stride-4 conv expressed as a 2x2 stride-1 conv over the
    # space-to-depth-8 input; its 4 output phases are packed into 128 channels.
    acc = jnp.zeros((P1, 128), jnp.float32)
    for i in range(2):
        for j in range(2):
            acc = acc + jnp.dot(
                xs_ref[pl.ds(i * WPITCH + j, P1), :],
                w1_ref[pl.ds((i * 2 + j) * kc1, kc1), :],
                preferred_element_type=jnp.float32)
    a1_ref[...] = jnp.maximum(acc + b1_ref[...], 0.0)

    # conv2: 4x4/stride-2 conv == 2x2 stride-1 conv over conv1's phase-packed
    # output (contraction over all 128 channels per tap).
    acc = jnp.zeros((P2, 128), jnp.float32)
    for i in range(2):
        for j in range(2):
            acc = acc + jnp.dot(
                a1_ref[pl.ds(i * WPITCH + j, P2), :],
                w2_ref[pl.ds((i * 2 + j) * 128, 128), :],
                preferred_element_type=jnp.float32)
    a2_ref[...] = jnp.maximum(acc + b2_ref[...], 0.0)

    # conv3: plain 3x3 stride-1 conv (channels zero-padded 64 -> 128).
    acc = jnp.zeros((P3, 128), jnp.float32)
    for i in range(3):
        for j in range(3):
            acc = acc + jnp.dot(
                a2_ref[pl.ds(i * WPITCH + j, P3), :],
                w3_ref[pl.ds((i * 3 + j) * 128, 128), :],
                preferred_element_type=jnp.float32)
    o_ref[...] = jnp.maximum(acc + b3_ref[...], 0.0)


def conv_stack(xs, packed):
    B, _, kc1 = xs.shape
    w1, b1 = packed["w1"], packed["b1"]
    w2, b2 = packed["w2"], packed["b2"]
    w3, b3 = packed["w3"], packed["b3"]
    flops = 2 * B * (4 * P1 * kc1 * 128 + 4 * P2 * 128 * 128 + 9 * P3 * 128 * 128)
    bytes_acc = 4 * (xs.size + w1.size + w2.size + w3.size
                     + b1.size + b2.size + b3.size + B * P3 * 128)
    return pl.pallas_call(
        functools.partial(_conv_stack_kernel, kc1=kc1),
        out_shape=jax.ShapeDtypeStruct((B, P3, 128), jnp.float32),
        grid=(B,),
        in_specs=[
            pl.BlockSpec((None, P0, kc1), lambda b: (b, 0, 0)),
            pl.BlockSpec(w1.shape, lambda b: (0, 0)),
            pl.BlockSpec(b1.shape, lambda b: (0, 0)),
            pl.BlockSpec(w2.shape, lambda b: (0, 0)),
            pl.BlockSpec(b2.shape, lambda b: (0, 0)),
            pl.BlockSpec(w3.shape, lambda b: (0, 0)),
            pl.BlockSpec(b3.shape, lambda b: (0, 0)),
        ],
        out_specs=pl.BlockSpec((None, P3, 128), lambda b: (b, 0, 0)),
        scratch_shapes=[pltpu.VMEM((P1, 128), jnp.float32),
                        pltpu.VMEM((P2, 128), jnp.float32)],
        compiler_params=pltpu.CompilerParams(
            dimension_semantics=("parallel",)),
        cost_estimate=pl.CostEstimate(flops=flops, transcendentals=0,
                                      bytes_accessed=bytes_acc),
    )(xs, w1, b1, w2, b2, w3, b3)


# ----------------------------------------------------------------------------
# Pallas kernel 2: fused FC head.  Reads the valid 7x7x64 features straight
# out of conv3's flat block (49 contiguous (B,64) slices), streams the FC1
# weight as bf16 with f32 accumulation, then bias+ReLU+FC2(+bias).
# ----------------------------------------------------------------------------
def _fc_head_kernel(feat_ref, w1_ref, b1_ref, w2_ref, b2_ref, o_ref):
    nb = feat_ref.shape[0]
    hidden = jnp.zeros((nb, 512), jnp.float32)
    for oh in range(7):
        for ow in range(7):
            p = oh * WPITCH + ow          # flat row of feature pixel (oh, ow)
            blk = oh * 7 + ow             # matching 64-row block of fc1_w
            xr = feat_ref[:, p, :64].astype(jnp.bfloat16)
            hidden = hidden + jnp.dot(
                xr, w1_ref[pl.ds(blk * 64, 64), :],
                preferred_element_type=jnp.float32)
    h = jnp.maximum(hidden + b1_ref[...], 0.0)
    q = jnp.dot(h, w2_ref[...], preferred_element_type=jnp.float32) + b2_ref[...]
    o_ref[...] = q


def fc_head(feat, packed):
    B = feat.shape[0]
    bb = B if B <= 128 else 128
    Bp = ((B + bb - 1) // bb) * bb
    if Bp != B:
        feat = jnp.pad(feat, ((0, Bp - B), (0, 0), (0, 0)))
    w1, b1 = packed["fc1_w"], packed["fc1_b"]
    w2, b2 = packed["fc2_w"], packed["fc2_b"]
    flops = 2 * Bp * (w1.shape[0] * w1.shape[1] + 512 * 128)
    bytes_acc = (feat.size * 4 + w1.size * 2 + b1.size * 4
                 + w2.size * 4 + b2.size * 4 + Bp * 128 * 4)
    q = pl.pallas_call(
        _fc_head_kernel,
        out_shape=jax.ShapeDtypeStruct((Bp, 128), jnp.float32),
        grid=(Bp // bb,),
        in_specs=[
            pl.BlockSpec((bb, P3, 128), lambda i: (i, 0, 0)),
            pl.BlockSpec(w1.shape, lambda i: (0, 0)),
            pl.BlockSpec(b1.shape, lambda i: (0, 0)),
            pl.BlockSpec(w2.shape, lambda i: (0, 0)),
            pl.BlockSpec(b2.shape, lambda i: (0, 0)),
        ],
        out_specs=pl.BlockSpec((bb, 128), lambda i: (i, 0)),
        compiler_params=pltpu.CompilerParams(
            dimension_semantics=("parallel",)),
        cost_estimate=pl.CostEstimate(flops=flops, transcendentals=0,
                                      bytes_accessed=bytes_acc),
    )(feat, w1, b1, w2, b2)
    return q[:B] if Bp != B else q


# ----------------------------------------------------------------------------
# Parameter init (PyTorch-shaped) and one-time packing.
# ----------------------------------------------------------------------------
def init_params(key, input_dim, output_dim):
    ks = jax.random.split(key, 10)

    def u(k, shape, fan_in):
        bound = 1.0 / jnp.sqrt(jnp.float32(fan_in))
        return jax.random.uniform(k, shape, jnp.float32, -bound, bound)

    return {
        "c1_w": u(ks[0], (32, input_dim, 8, 8), input_dim * 8 * 8),
        "c1_b": u(ks[1], (32,), input_dim * 8 * 8),
        "c2_w": u(ks[2], (64, 32, 4, 4), 32 * 4 * 4),
        "c2_b": u(ks[3], (64,), 32 * 4 * 4),
        "c3_w": u(ks[4], (64, 64, 3, 3), 64 * 3 * 3),
        "c3_b": u(ks[5], (64,), 64 * 3 * 3),
        "f1_w": u(ks[6], (512, 3136), 3136),
        "f1_b": u(ks[7], (512,), 3136),
        "f2_w": u(ks[8], (output_dim, 512), 512),
        "f2_b": u(ks[9], (output_dim,), 512),
    }


def prepare_params(params):
    """One-time repack of PyTorch-shaped weights for the flat/phase layout."""
    f32 = jnp.float32

    # conv1 (32, cin, 8, 8): 8x8/stride-4 -> 2x2 stride-1 over s2d-8 input.
    w1 = params["c1_w"].astype(f32)
    cout1, cin = w1.shape[0], w1.shape[1]
    wt = jnp.transpose(w1, (2, 3, 1, 0))                        # (ki,kj,cin,co)
    canvas = jnp.zeros((16, 16, cin, 2, 2, cout1), f32)
    for pi in range(2):                                          # output phases
        for pj in range(2):
            canvas = canvas.at[4 * pi:4 * pi + 8,
                               4 * pj:4 * pj + 8, :, pi, pj, :].set(wt)
    w1p = canvas.reshape(2, 8, 2, 8, cin, 2, 2, cout1)           # (i,qi,j,qj,..)
    w1p = w1p.transpose(0, 2, 1, 3, 4, 5, 6, 7)                  # (i,j,qi,qj,cin,pi,pj,co)
    w1p = w1p.reshape(4 * 64 * cin, 4 * cout1)                   # (1024, 128)
    b1p = jnp.tile(params["c1_b"].astype(f32), 4).reshape(1, 4 * cout1)

    # conv2 (64, 32, 4, 4): 4x4/stride-2 -> 2x2 stride-1 over phase-packed in.
    w2t = jnp.transpose(params["c2_w"].astype(f32), (2, 3, 1, 0))  # (ki,kj,c,co)
    w2p = w2t.reshape(2, 2, 2, 2, 32, 64)                          # (ai,pi,aj,pj,c,co)
    w2p = w2p.transpose(0, 2, 1, 3, 4, 5)                          # (ai,aj,pi,pj,c,co)
    w2p = jnp.pad(w2p.reshape(4, 128, 64), ((0, 0), (0, 0), (0, 64)))
    w2p = w2p.reshape(512, 128)
    b2p = jnp.pad(params["c2_b"].astype(f32), (0, 64)).reshape(1, 128)

    # conv3 (64, 64, 3, 3): plain 3x3 stride-1, channels zero-padded to 128.
    w3t = jnp.transpose(params["c3_w"].astype(f32), (2, 3, 1, 0))  # (ki,kj,ci,co)
    w3p = jnp.pad(w3t, ((0, 0), (0, 0), (0, 64), (0, 64))).reshape(9 * 128, 128)
    b3p = jnp.pad(params["c3_b"].astype(f32), (0, 64)).reshape(1, 128)

    # fc1 (512, 3136): columns CHW -> rows ordered (oh, ow, c); bf16 stream.
    f1 = params["f1_w"].astype(f32).reshape(512, 64, 7, 7)         # (h,c,oh,ow)
    f1 = jnp.transpose(f1, (2, 3, 1, 0)).reshape(3136, 512)        # rows (oh,ow,c)
    f1b = params["f1_b"].astype(f32).reshape(1, 512)

    # fc2 (out_dim, 512): transpose + lane-dense padding of the action dim.
    out_dim = params["f2_w"].shape[0]
    f2 = jnp.pad(params["f2_w"].astype(f32).T, ((0, 0), (0, 128 - out_dim)))
    f2b = jnp.pad(params["f2_b"].astype(f32), (0, 128 - out_dim)).reshape(1, 128)

    return {
        "w1": w1p, "b1": b1p, "w2": w2p, "b2": b2p, "w3": w3p, "b3": b3p,
        "fc1_w": f1.astype(jnp.bfloat16), "fc1_b": f1b,
        "fc2_w": f2, "fc2_b": f2b,
    }


# ----------------------------------------------------------------------------
# Forward pass.  Only remaining XLA glue: one space-to-depth-8 repack of the
# (tiny) input and the final [:, :output_dim] slice.
# ----------------------------------------------------------------------------
@functools.partial(jax.jit, static_argnames=("output_dim",))
def conv_dqn_forward(packed, x, *, output_dim):
    B, cin, H, W = x.shape
    assert H == 84 and W == 84, "feature_dim=3136 implies 84x84 inputs"
    # NCHW -> space-to-depth-8 NHWC flat rows: (B, 11*11, 64*cin), row pitch 11.
    xp = jnp.pad(x, ((0, 0), (0, 0), (0, 88 - H), (0, 88 - W)))
    xp = xp.reshape(B, cin, 11, 8, 11, 8)
    xp = jnp.transpose(xp, (0, 2, 4, 3, 5, 1))                 # (B,11,11,8,8,cin)
    xs = xp.reshape(B, 121, 64 * cin)
    xs = jnp.pad(xs, ((0, 0), (0, P0 - 121), (0, 0)))          # slack rows

    feat = conv_stack(xs, packed)                              # (B, 80, 128)
    q = fc_head(feat, packed)                                  # (B, 128)
    return q[:, :output_dim]


# ----------------------------------------------------------------------------
# Pure-JAX reference (matches the kernel's bf16 FC1 streaming).
# ----------------------------------------------------------------------------
def reference_forward(params, x):
    dn = ("NCHW", "OIHW", "NCHW")
    h = jax.lax.conv_general_dilated(x, params["c1_w"], (4, 4), "VALID",
                                     dimension_numbers=dn)
    h = jax.nn.relu(h + params["c1_b"][None, :, None, None])
    h = jax.lax.conv_general_dilated(h, params["c2_w"], (2, 2), "VALID",
                                     dimension_numbers=dn)
    h = jax.nn.relu(h + params["c2_b"][None, :, None, None])
    h = jax.lax.conv_general_dilated(h, params["c3_w"], (1, 1), "VALID",
                                     dimension_numbers=dn)
    h = jax.nn.relu(h + params["c3_b"][None, :, None, None])
    feat = h.reshape(x.shape[0], -1)
    w1 = params["f1_w"].astype(jnp.bfloat16).astype(jnp.float32)
    fb = feat.astype(jnp.bfloat16).astype(jnp.float32)
    hid = jax.nn.relu(fb @ w1.T + params["f1_b"])
    return hid @ params["f2_w"].T + params["f2_b"]


if __name__ == "__main__":
    input_dim, output_dim = 4, 6          # 4 stacked Atari frames, 6 actions
    key = jax.random.PRNGKey(0)
    pkey, xkey = jax.random.split(key)
    params = init_params(pkey, input_dim, output_dim)
    packed = prepare_params(params)       # one-time weight repack
    x = jax.random.uniform(xkey, (2, input_dim, 84, 84), jnp.float32)

    q = conv_dqn_forward(packed, x, output_dim=output_dim)
    jax.block_until_ready(q)
    assert q.shape == (2, output_dim) and q.dtype == jnp.float32

    q_ref = reference_forward(params, x)
    max_err = float(jnp.max(jnp.abs(q - q_ref)))
    assert bool(jnp.allclose(q, q_ref, rtol=5e-2, atol=1e-2)), (
        f"kernel/reference mismatch, max abs err = {max_err}")
    print("KERNEL_OK")
</pallas_src>

<mosaic_0001>
module attributes {stable_mosaic.version = 11 : i64} {
  func.func @_conv_stack_kernel(%arg0: i32, %arg1: memref<1x136x256xf32, #tpu.memory_space<vmem>>, %arg2: memref<1024x128xf32, #tpu.memory_space<vmem>>, %arg3: memref<1x128xf32, #tpu.memory_space<vmem>>, %arg4: memref<512x128xf32, #tpu.memory_space<vmem>>, %arg5: memref<1x128xf32, #tpu.memory_space<vmem>>, %arg6: memref<1152x128xf32, #tpu.memory_space<vmem>>, %arg7: memref<1x128xf32, #tpu.memory_space<vmem>>, %arg8: memref<1x80x128xf32, #tpu.memory_space<vmem>>, %arg9: memref<120x128xf32, #tpu.memory_space<vmem>>, %arg10: memref<104x128xf32, #tpu.memory_space<vmem>>) attributes {dimension_semantics = [#tpu.dimension_semantics<parallel>], iteration_bounds = array<i64: 2>, scalar_prefetch = 0 : i64, scratch_operands = 2 : i64, tpu.core_type = #tpu.core_type<tc>, window_params = [{transform_indices = @transform_0, window_bounds = array<i64: 1, 136, 256>}, {pipeline_mode = #tpu.pipeline_mode<synchronous>, transform_indices = @transform_1, window_bounds = array<i64: 1024, 128>}, {pipeline_mode = #tpu.pipeline_mode<synchronous>, transform_indices = @transform_2, window_bounds = array<i64: 1, 128>}, {pipeline_mode = #tpu.pipeline_mode<synchronous>, transform_indices = @transform_3, window_bounds = array<i64: 512, 128>}, {pipeline_mode = #tpu.pipeline_mode<synchronous>, transform_indices = @transform_4, window_bounds = array<i64: 1, 128>}, {pipeline_mode = #tpu.pipeline_mode<synchronous>, transform_indices = @transform_5, window_bounds = array<i64: 1152, 128>}, {pipeline_mode = #tpu.pipeline_mode<synchronous>, transform_indices = @transform_6, window_bounds = array<i64: 1, 128>}, {transform_indices = @transform_7, window_bounds = array<i64: 1, 80, 128>}]} {
    %cst = arith.constant 0.000000e+00 : f32
    %0 = vector.broadcast %cst : f32 to vector<120x128xf32>
    %c0 = arith.constant 0 : index
    %c0_0 = arith.constant 0 : index
    %c0_1 = arith.constant 0 : index
    %1 = vector.load %arg1[%c0, %c0_0, %c0_1] : memref<1x136x256xf32, #tpu.memory_space<vmem>>, vector<1x120x256xf32>
    %2 = vector.shape_cast %1 : vector<1x120x256xf32> to vector<120x256xf32>
    %c0_2 = arith.constant 0 : index
    %c0_3 = arith.constant 0 : index
    %3 = vector.load %arg2[%c0_2, %c0_3] : memref<1024x128xf32, #tpu.memory_space<vmem>>, vector<256x128xf32>
    %cst_4 = arith.constant dense<0.000000e+00> : vector<120x128xf32>
    %4 = tpu.matmul %2, %3, %cst_4 {dimension_numbers = #tpu.dot_dimension_numbers<[1], [0], [0], [1], [0, 0, 1, 1], [], []>} : vector<120x256xf32>, vector<256x128xf32>, vector<120x128xf32> -> vector<120x128xf32>
    %5 = arith.addf %0, %4 : vector<120x128xf32>
    %c0_5 = arith.constant 0 : index
    %c1 = arith.constant 1 : index
    %c0_6 = arith.constant 0 : index
    %6 = vector.load %arg1[%c0_5, %c1, %c0_6] : memref<1x136x256xf32, #tpu.memory_space<vmem>>, vector<1x120x256xf32>
    %7 = vector.shape_cast %6 : vector<1x120x256xf32> to vector<120x256xf32>
    %c256 = arith.constant 256 : index
    %c0_7 = arith.constant 0 : index
    %8 = vector.load %arg2[%c256, %c0_7] : memref<1024x128xf32, #tpu.memory_space<vmem>>, vector<256x128xf32>
    %cst_8 = arith.constant dense<0.000000e+00> : vector<120x128xf32>
    %9 = tpu.matmul %7, %8, %cst_8 {dimension_numbers = #tpu.dot_dimension_numbers<[1], [0], [0], [1], [0, 0, 1, 1], [], []>} : vector<120x256xf32>, vector<256x128xf32>, vector<120x128xf32> -> vector<120x128xf32>
    %10 = arith.addf %5, %9 : vector<120x128xf32>
    %c0_9 = arith.constant 0 : index
    %c11 = arith.constant 11 : index
    %c0_10 = arith.constant 0 : index
    %11 = vector.load %arg1[%c0_9, %c11, %c0_10] : memref<1x136x256xf32, #tpu.memory_space<vmem>>, vector<1x120x256xf32>
    %12 = vector.shape_cast %11 : vector<1x120x256xf32> to vector<120x256xf32>
    %c512 = arith.constant 512 : index
    %c0_11 = arith.constant 0 : index
    %13 = vector.load %arg2[%c512, %c0_11] : memref<1024x128xf32, #tpu.memory_space<vmem>>, vector<256x128xf32>
    %cst_12 = arith.constant dense<0.000000e+00> : vector<120x128xf32>
    %14 = tpu.matmul %12, %13, %cst_12 {dimension_numbers = #tpu.dot_dimension_numbers<[1], [0], [0], [1], [0, 0, 1, 1], [], []>} : vector<120x256xf32>, vector<256x128xf32>, vector<120x128xf32> -> vector<120x128xf32>
    %15 = arith.addf %10, %14 : vector<120x128xf32>
    %c0_13 = arith.constant 0 : index
    %c12 = arith.constant 12 : index
    %c0_14 = arith.constant 0 : index
    %16 = vector.load %arg1[%c0_13, %c12, %c0_14] : memref<1x136x256xf32, #tpu.memory_space<vmem>>, vector<1x120x256xf32>
    %17 = vector.shape_cast %16 : vector<1x120x256xf32> to vector<120x256xf32>
    %c768 = arith.constant 768 : index
    %c0_15 = arith.constant 0 : index
    %18 = vector.load %arg2[%c768, %c0_15] : memref<1024x128xf32, #tpu.memory_space<vmem>>, vector<256x128xf32>
    %cst_16 = arith.constant dense<0.000000e+00> : vector<120x128xf32>
    %19 = tpu.matmul %17, %18, %cst_16 {dimension_numbers = #tpu.dot_dimension_numbers<[1], [0], [0], [1], [0, 0, 1, 1], [], []>} : vector<120x256xf32>, vector<256x128xf32>, vector<120x128xf32> -> vector<120x128xf32>
    %20 = arith.addf %15, %19 : vector<120x128xf32>
    %c0_17 = arith.constant 0 : index
    %c0_18 = arith.constant 0 : index
    %21 = vector.load %arg3[%c0_17, %c0_18] : memref<1x128xf32, #tpu.memory_space<vmem>>, vector<1x128xf32>
    %22 = vector.broadcast %21 : vector<1x128xf32> to vector<120x128xf32>
    %23 = arith.addf %20, %22 : vector<120x128xf32>
    %cst_19 = arith.constant 0.000000e+00 : f32
    %24 = vector.broadcast %cst_19 : f32 to vector<120x128xf32>
    %25 = arith.maximumf %23, %24 : vector<120x128xf32>
    %c0_20 = arith.constant 0 : index
    %c0_21 = arith.constant 0 : index
    %26 = vector.load %arg9[%c0_20, %c0_21] : memref<120x128xf32, #tpu.memory_space<vmem>>, vector<120x128xf32>
    tpu.vector_store %arg9[%c0_20, %c0_21], %25 {strides = array<i32>} : memref<120x128xf32, #tpu.memory_space<vmem>>, vector<120x128xf32>,
    %cst_22 = arith.constant 0.000000e+00 : f32
    %27 = vector.broadcast %cst_22 : f32 to vector<104x128xf32>
    %c0_23 = arith.constant 0 : index
    %c0_24 = arith.constant 0 : index
    %28 = vector.load %arg9[%c0_23, %c0_24] : memref<120x128xf32, #tpu.memory_space<vmem>>, vector<104x128xf32>
    %c0_25 = arith.constant 0 : index
    %c0_26 = arith.constant 0 : index
    %29 = vector.load %arg4[%c0_25, %c0_26] : memref<512x128xf32, #tpu.memory_space<vmem>>, vector<128x128xf32>
    %cst_27 = arith.constant dense<0.000000e+00> : vector<104x128xf32>
    %30 = tpu.matmul %28, %29, %cst_27 {dimension_numbers = #tpu.dot_dimension_numbers<[1], [0], [0], [1], [0, 0, 1, 1], [], []>} : vector<104x128xf32>, vector<128x128xf32>, vector<104x128xf32> -> vector<104x128xf32>
    %31 = arith.addf %27, %30 : vector<104x128xf32>
    %c1_28 = arith.constant 1 : index
    %c0_29 = arith.constant 0 : index
    %32 = vector.load %arg9[%c1_28, %c0_29] : memref<120x128xf32, #tpu.memory_space<vmem>>, vector<104x128xf32>
    %c128 = arith.constant 128 : index
    %c0_30 = arith.constant 0 : index
    %33 = vector.load %arg4[%c128, %c0_30] : memref<512x128xf32, #tpu.memory_space<vmem>>, vector<128x128xf32>
    %cst_31 = arith.constant dense<0.000000e+00> : vector<104x128xf32>
    %34 = tpu.matmul %32, %33, %cst_31 {dimension_numbers = #tpu.dot_dimension_numbers<[1], [0], [0], [1], [0, 0, 1, 1], [], []>} : vector<104x128xf32>, vector<128x128xf32>, vector<104x128xf32> -> vector<104x128xf32>
    %35 = arith.addf %31, %34 : vector<104x128xf32>
    %c11_32 = arith.constant 11 : index
    %c0_33 = arith.constant 0 : index
    %36 = vector.load %arg9[%c11_32, %c0_33] : memref<120x128xf32, #tpu.memory_space<vmem>>, vector<104x128xf32>
    %c256_34 = arith.constant 256 : index
    %c0_35 = arith.constant 0 : index
    %37 = vector.load %arg4[%c256_34, %c0_35] : memref<512x128xf32, #tpu.memory_space<vmem>>, vector<128x128xf32>
    %cst_36 = arith.constant dense<0.000000e+00> : vector<104x128xf32>
    %38 = tpu.matmul %36, %37, %cst_36 {dimension_numbers = #tpu.dot_dimension_numbers<[1], [0], [0], [1], [0, 0, 1, 1], [], []>} : vector<104x128xf32>, vector<128x128xf32>, vector<104x128xf32> -> vector<104x128xf32>
    %39 = arith.addf %35, %38 : vector<104x128xf32>
    %c12_37 = arith.constant 12 : index
    %c0_38 = arith.constant 0 : index
    %40 = vector.load %arg9[%c12_37, %c0_38] : memref<120x128xf32, #tpu.memory_space<vmem>>, vector<104x128xf32>
    %c384 = arith.constant 384 : index
    %c0_39 = arith.constant 0 : index
    %41 = vector.load %arg4[%c384, %c0_39] : memref<512x128xf32, #tpu.memory_space<vmem>>, vector<128x128xf32>
    %cst_40 = arith.constant dense<0.000000e+00> : vector<104x128xf32>
    %42 = tpu.matmul %40, %41, %cst_40 {dimension_numbers = #tpu.dot_dimension_numbers<[1], [0], [0], [1], [0, 0, 1, 1], [], []>} : vector<104x128xf32>, vector<128x128xf32>, vector<104x128xf32> -> vector<104x128xf32>
    %43 = arith.addf %39, %42 : vector<104x128xf32>
    %c0_41 = arith.constant 0 : index
    %c0_42 = arith.constant 0 : index
    %44 = vector.load %arg5[%c0_41, %c0_42] : memref<1x128xf32, #tpu.memory_space<vmem>>, vector<1x128xf32>
    %45 = vector.broadcast %44 : vector<1x128xf32> to vector<104x128xf32>
    %46 = arith.addf %43, %45 : vector<104x128xf32>
    %cst_43 = arith.constant 0.000000e+00 : f32
    %47 = vector.broadcast %cst_43 : f32 to vector<104x128xf32>
    %48 = arith.maximumf %46, %47 : vector<104x128xf32>
    %c0_44 = arith.constant 0 : index
    %c0_45 = arith.constant 0 : index
    %49 = vector.load %arg10[%c0_44, %c0_45] : memref<104x128xf32, #tpu.memory_space<vmem>>, vector<104x128xf32>
    tpu.vector_store %arg10[%c0_44, %c0_45], %48 {strides = array<i32>} : memref<104x128xf32, #tpu.memory_space<vmem>>, vector<104x128xf32>,
    %cst_46 = arith.constant 0.000000e+00 : f32
    %50 = vector.broadcast %cst_46 : f32 to vector<80x128xf32>
    %c0_47 = arith.constant 0 : index
    %c0_48 = arith.constant 0 : index
    %51 = vector.load %arg10[%c0_47, %c0_48] : memref<104x128xf32, #tpu.memory_space<vmem>>, vector<80x128xf32>
    %c0_49 = arith.constant 0 : index
    %c0_50 = arith.constant 0 : index
    %52 = vector.load %arg6[%c0_49, %c0_50] : memref<1152x128xf32, #tpu.memory_space<vmem>>, vector<128x128xf32>
    %cst_51 = arith.constant dense<0.000000e+00> : vector<80x128xf32>
    %53 = tpu.matmul %51, %52, %cst_51 {dimension_numbers = #tpu.dot_dimension_numbers<[1], [0], [0], [1], [0, 0, 1, 1], [], []>} : vector<80x128xf32>, vector<128x128xf32>, vector<80x128xf32> -> vector<80x128xf32>
    %54 = arith.addf %50, %53 : vector<80x128xf32>
    %c1_52 = arith.constant 1 : index
    %c0_53 = arith.constant 0 : index
    %55 = vector.load %arg10[%c1_52, %c0_53] : memref<104x128xf32, #tpu.memory_space<vmem>>, vector<80x128xf32>
    %c128_54 = arith.constant 128 : index
    %c0_55 = arith.constant 0 : index
    %56 = vector.load %arg6[%c128_54, %c0_55] : memref<1152x128xf32, #tpu.memory_space<vmem>>, vector<128x128xf32>
    %cst_56 = arith.constant dense<0.000000e+00> : vector<80x128xf32>
    %57 = tpu.matmul %55, %56, %cst_56 {dimension_numbers = #tpu.dot_dimension_numbers<[1], [0], [0], [1], [0, 0, 1, 1], [], []>} : vector<80x128xf32>, vector<128x128xf32>, vector<80x128xf32> -> vector<80x128xf32>
    %58 = arith.addf %54, %57 : vector<80x128xf32>
    %c2 = arith.constant 2 : index
    %c0_57 = arith.constant 0 : index
    %59 = vector.load %arg10[%c2, %c0_57] : memref<104x128xf32, #tpu.memory_space<vmem>>, vector<80x128xf32>
    %c256_58 = arith.constant 256 : index
    %c0_59 = arith.constant 0 : index
    %60 = vector.load %arg6[%c256_58, %c0_59] : memref<1152x128xf32, #tpu.memory_space<vmem>>, vector<128x128xf32>
    %cst_60 = arith.constant dense<0.000000e+00> : vector<80x128xf32>
    %61 = tpu.matmul %59, %60, %cst_60 {dimension_numbers = #tpu.dot_dimension_numbers<[1], [0], [0], [1], [0, 0, 1, 1], [], []>} : vector<80x128xf32>, vector<128x128xf32>, vector<80x128xf32> -> vector<80x128xf32>
    %62 = arith.addf %58, %61 : vector<80x128xf32>
    %c11_61 = arith.constant 11 : index
    %c0_62 = arith.constant 0 : index
    %63 = vector.load %arg10[%c11_61, %c0_62] : memref<104x128xf32, #tpu.memory_space<vmem>>, vector<80x128xf32>
    %c384_63 = arith.constant 384 : index
    %c0_64 = arith.constant 0 : index
    %64 = vector.load %arg6[%c384_63, %c0_64] : memref<1152x128xf32, #tpu.memory_space<vmem>>, vector<128x128xf32>
    %cst_65 = arith.constant dense<0.000000e+00> : vector<80x128xf32>
    %65 = tpu.matmul %63, %64, %cst_65 {dimension_numbers = #tpu.dot_dimension_numbers<[1], [0], [0], [1], [0, 0, 1, 1], [], []>} : vector<80x128xf32>, vector<128x128xf32>, vector<80x128xf32> -> vector<80x128xf32>
    %66 = arith.addf %62, %65 : vector<80x128xf32>
    %c12_66 = arith.constant 12 : index
    %c0_67 = arith.constant 0 : index
    %67 = vector.load %arg10[%c12_66, %c0_67] : memref<104x128xf32, #tpu.memory_space<vmem>>, vector<80x128xf32>
    %c512_68 = arith.constant 512 : index
    %c0_69 = arith.constant 0 : index
    %68 = vector.load %arg6[%c512_68, %c0_69] : memref<1152x128xf32, #tpu.memory_space<vmem>>, vector<128x128xf32>
    %cst_70 = arith.constant dense<0.000000e+00> : vector<80x128xf32>
    %69 = tpu.matmul %67, %68, %cst_70 {dimension_numbers = #tpu.dot_dimension_numbers<[1], [0], [0], [1], [0, 0, 1, 1], [], []>} : vector<80x128xf32>, vector<128x128xf32>, vector<80x128xf32> -> vector<80x128xf32>
    %70 = arith.addf %66, %69 : vector<80x128xf32>
    %c13 = arith.constant 13 : index
    %c0_71 = arith.constant 0 : index
    %71 = vector.load %arg10[%c13, %c0_71] : memref<104x128xf32, #tpu.memory_space<vmem>>, vector<80x128xf32>
    %c640 = arith.constant 640 : index
    %c0_72 = arith.constant 0 : index
    %72 = vector.load %arg6[%c640, %c0_72] : memref<1152x128xf32, #tpu.memory_space<vmem>>, vector<128x128xf32>
    %cst_73 = arith.constant dense<0.000000e+00> : vector<80x128xf32>
    %73 = tpu.matmul %71, %72, %cst_73 {dimension_numbers = #tpu.dot_dimension_numbers<[1], [0], [0], [1], [0, 0, 1, 1], [], []>} : vector<80x128xf32>, vector<128x128xf32>, vector<80x128xf32> -> vector<80x128xf32>
    %74 = arith.addf %70, %73 : vector<80x128xf32>
    %c22 = arith.constant 22 : index
    %c0_74 = arith.constant 0 : index
    %75 = vector.load %arg10[%c22, %c0_74] : memref<104x128xf32, #tpu.memory_space<vmem>>, vector<80x128xf32>
    %c768_75 = arith.constant 768 : index
    %c0_76 = arith.constant 0 : index
    %76 = vector.load %arg6[%c768_75, %c0_76] : memref<1152x128xf32, #tpu.memory_space<vmem>>, vector<128x128xf32>
    %cst_77 = arith.constant dense<0.000000e+00> : vector<80x128xf32>
    %77 = tpu.matmul %75, %76, %cst_77 {dimension_numbers = #tpu.dot_dimension_numbers<[1], [0], [0], [1], [0, 0, 1, 1], [], []>} : vector<80x128xf32>, vector<128x128xf32>, vector<80x128xf32> -> vector<80x128xf32>
    %78 = arith.addf %74, %77 : vector<80x128xf32>
    %c23 = arith.constant 23 : index
    %c0_78 = arith.constant 0 : index
    %79 = vector.load %arg10[%c23, %c0_78] : memref<104x128xf32, #tpu.memory_space<vmem>>, vector<80x128xf32>
    %c896 = arith.constant 896 : index
    %c0_79 = arith.constant 0 : index
    %80 = vector.load %arg6[%c896, %c0_79] : memref<1152x128xf32, #tpu.memory_space<vmem>>, vector<128x128xf32>
    %cst_80 = arith.constant dense<0.000000e+00> : vector<80x128xf32>
    %81 = tpu.matmul %79, %80, %cst_80 {dimension_numbers = #tpu.dot_dimension_numbers<[1], [0], [0], [1], [0, 0, 1, 1], [], []>} : vector<80x128xf32>, vector<128x128xf32>, vector<80x128xf32> -> vector<80x128xf32>
    %82 = arith.addf %78, %81 : vector<80x128xf32>
    %c24 = arith.constant 24 : index
    %c0_81 = arith.constant 0 : index
    %83 = vector.load %arg10[%c24, %c0_81] : memref<104x128xf32, #tpu.memory_space<vmem>>, vector<80x128xf32>
    %c1024 = arith.constant 1024 : index
    %c0_82 = arith.constant 0 : index
    %84 = vector.load %arg6[%c1024, %c0_82] : memref<1152x128xf32, #tpu.memory_space<vmem>>, vector<128x128xf32>
    %cst_83 = arith.constant dense<0.000000e+00> : vector<80x128xf32>
    %85 = tpu.matmul %83, %84, %cst_83 {dimension_numbers = #tpu.dot_dimension_numbers<[1], [0], [0], [1], [0, 0, 1, 1], [], []>} : vector<80x128xf32>, vector<128x128xf32>, vector<80x128xf32> -> vector<80x128xf32>
    %86 = arith.addf %82, %85 : vector<80x128xf32>
    %c0_84 = arith.constant 0 : index
    %c0_85 = arith.constant 0 : index
    %87 = vector.load %arg7[%c0_84, %c0_85] : memref<1x128xf32, #tpu.memory_space<vmem>>, vector<1x128xf32>
    %88 = vector.broadcast %87 : vector<1x128xf32> to vector<80x128xf32>
    %89 = arith.addf %86, %88 : vector<80x128xf32>
    %cst_86 = arith.constant 0.000000e+00 : f32
    %90 = vector.broadcast %cst_86 : f32 to vector<80x128xf32>
    %91 = arith.maximumf %89, %90 : vector<80x128xf32>
    %c0_87 = arith.constant 0 : index
    %c0_88 = arith.constant 0 : index
    %c0_89 = arith.constant 0 : index
    %92 = vector.load %arg8[%c0_87, %c0_88, %c0_89] : memref<1x80x128xf32, #tpu.memory_space<vmem>>, vector<1x80x128xf32>
    %93 = vector.shape_cast %92 : vector<1x80x128xf32> to vector<80x128xf32>
    %94 = vector.shape_cast %91 : vector<80x128xf32> to vector<1x80x128xf32>
    tpu.vector_store %arg8[%c0_87, %c0_88, %c0_89], %94 {strides = array<i32>} : memref<1x80x128xf32, #tpu.memory_space<vmem>>, vector<1x80x128xf32>,
    return
  }
  func.func @transform_0(%arg0: i32) -> (i32, i32, i32) {
    %c0_i32 = arith.constant 0 : i32
    %c0_i32_0 = arith.constant 0 : i32
    %c0_i32_1 = arith.constant 0 : i32
    return %arg0, %c0_i32, %c0_i32_0 : i32, i32, i32
  }
  func.func @transform_1(%arg0: i32) -> (i32, i32) {
    %c0_i32 = arith.constant 0 : i32
    %c0_i32_0 = arith.constant 0 : i32
    %c0_i32_1 = arith.constant 0 : i32
    return %c0_i32, %c0_i32_0 : i32, i32
  }
  func.func @transform_2(%arg0: i32) -> (i32, i32) {
    %c0_i32 = arith.constant 0 : i32
    %c0_i32_0 = arith.constant 0 : i32
    %c0_i32_1 = arith.constant 0 : i32
    return %c0_i32, %c0_i32_0 : i32, i32
  }
  func.func @transform_3(%arg0: i32) -> (i32, i32) {
    %c0_i32 = arith.constant 0 : i32
    %c0_i32_0 = arith.constant 0 : i32
    %c0_i32_1 = arith.constant 0 : i32
    return %c0_i32, %c0_i32_0 : i32, i32
  }
  func.func @transform_4(%arg0: i32) -> (i32, i32) {
    %c0_i32 = arith.constant 0 : i32
    %c0_i32_0 = arith.constant 0 : i32
    %c0_i32_1 = arith.constant 0 : i32
    return %c0_i32, %c0_i32_0 : i32, i32
  }
  func.func @transform_5(%arg0: i32) -> (i32, i32) {
    %c0_i32 = arith.constant 0 : i32
    %c0_i32_0 = arith.constant 0 : i32
    %c0_i32_1 = arith.constant 0 : i32
    return %c0_i32, %c0_i32_0 : i32, i32
  }
  func.func @transform_6(%arg0: i32) -> (i32, i32) {
    %c0_i32 = arith.constant 0 : i32
    %c0_i32_0 = arith.constant 0 : i32
    %c0_i32_1 = arith.constant 0 : i32
    return %c0_i32, %c0_i32_0 : i32, i32
  }
  func.func @transform_7(%arg0: i32) -> (i32, i32, i32) {
    %c0_i32 = arith.constant 0 : i32
    %c0_i32_0 = arith.constant 0 : i32
    %c0_i32_1 = arith.constant 0 : i32
    return %arg0, %c0_i32, %c0_i32_0 : i32, i32, i32
  }
}

module attributes {stable_mosaic.version = 11 : i64} {
  func.func @_fc_head_kernel(%arg0: i32, %arg1: memref<2x80x128xf32, #tpu.memory_space<vmem>>, %arg2: memref<3136x512xbf16, #tpu.memory_space<vmem>>, %arg3: memref<1x512xf32, #tpu.memory_space<vmem>>, %arg4: memref<512x128xf32, #tpu.memory_space<vmem>>, %arg5: memref<1x128xf32, #tpu.memory_space<vmem>>, %arg6: memref<2x128xf32, #tpu.memory_space<vmem>>) attributes {dimension_semantics = [#tpu.dimension_semantics<parallel>], iteration_bounds = array<i64: 1>, scalar_prefetch = 0 : i64, scratch_operands = 0 : i64, tpu.core_type = #tpu.core_type<tc>, window_params = [{transform_indices = @transform_0, window_bounds = array<i64: 2, 80, 128>}, {pipeline_mode = #tpu.pipeline_mode<synchronous>, transform_indices = @transform_1, window_bounds = array<i64: 3136, 512>}, {pipeline_mode = #tpu.pipeline_mode<synchronous>, transform_indices = @transform_2, window_bounds = array<i64: 1, 512>}, {pipeline_mode = #tpu.pipeline_mode<synchronous>, transform_indices = @transform_3, window_bounds = array<i64: 512, 128>}, {pipeline_mode = #tpu.pipeline_mode<synchronous>, transform_indices = @transform_4, window_bounds = array<i64: 1, 128>}, {transform_indices = @transform_5, window_bounds = array<i64: 2, 128>}]} {
    %cst = arith.constant 0.000000e+00 : f32
    %0 = vector.broadcast %cst : f32 to vector<2x512xf32>
    %c0 = arith.constant 0 : index
    %c0_0 = arith.constant 0 : index
    %c0_1 = arith.constant 0 : index
    %1 = vector.load %arg1[%c0, %c0_0, %c0_1] : memref<2x80x128xf32, #tpu.memory_space<vmem>>, vector<2x1x64xf32>
    %2 = vector.shape_cast %1 : vector<2x1x64xf32> to vector<2x64xf32>
    %3 = arith.truncf %2 : vector<2x64xf32> to vector<2x64xbf16>
    %c0_2 = arith.constant 0 : index
    %c0_3 = arith.constant 0 : index
    %4 = vector.load %arg2[%c0_2, %c0_3] : memref<3136x512xbf16, #tpu.memory_space<vmem>>, vector<64x512xbf16>
    %cst_4 = arith.constant dense<0.000000e+00> : vector<2x512xf32>
    %5 = tpu.matmul %3, %4, %cst_4 {dimension_numbers = #tpu.dot_dimension_numbers<[1], [0], [0], [1], [0, 0, 1, 1], [], []>} : vector<2x64xbf16>, vector<64x512xbf16>, vector<2x512xf32> -> vector<2x512xf32>
    %6 = arith.addf %0, %5 : vector<2x512xf32>
    %c0_5 = arith.constant 0 : index
    %c1 = arith.constant 1 : index
    %c0_6 = arith.constant 0 : index
    %7 = vector.load %arg1[%c0_5, %c1, %c0_6] : memref<2x80x128xf32, #tpu.memory_space<vmem>>, vector<2x1x64xf32>
    %8 = vector.shape_cast %7 : vector<2x1x64xf32> to vector<2x64xf32>
    %9 = arith.truncf %8 : vector<2x64xf32> to vector<2x64xbf16>
    %c64 = arith.constant 64 : index
    %c0_7 = arith.constant 0 : index
    %10 = vector.load %arg2[%c64, %c0_7] : memref<3136x512xbf16, #tpu.memory_space<vmem>>, vector<64x512xbf16>
    %cst_8 = arith.constant dense<0.000000e+00> : vector<2x512xf32>
    %11 = tpu.matmul %9, %10, %cst_8 {dimension_numbers = #tpu.dot_dimension_numbers<[1], [0], [0], [1], [0, 0, 1, 1], [], []>} : vector<2x64xbf16>, vector<64x512xbf16>, vector<2x512xf32> -> vector<2x512xf32>
    %12 = arith.addf %6, %11 : vector<2x512xf32>
    %c0_9 = arith.constant 0 : index
    %c2 = arith.constant 2 : index
    %c0_10 = arith.constant 0 : index
    %13 = vector.load %arg1[%c0_9, %c2, %c0_10] : memref<2x80x128xf32, #tpu.memory_space<vmem>>, vector<2x1x64xf32>
    %14 = vector.shape_cast %13 : vector<2x1x64xf32> to vector<2x64xf32>
    %15 = arith.truncf %14 : vector<2x64xf32> to vector<2x64xbf16>
    %c128 = arith.constant 128 : index
    %c0_11 = arith.constant 0 : index
    %16 = vector.load %arg2[%c128, %c0_11] : memref<3136x512xbf16, #tpu.memory_space<vmem>>, vector<64x512xbf16>
    %cst_12 = arith.constant dense<0.000000e+00> : vector<2x512xf32>
    %17 = tpu.matmul %15, %16, %cst_12 {dimension_numbers = #tpu.dot_dimension_numbers<[1], [0], [0], [1], [0, 0, 1, 1], [], []>} : vector<2x64xbf16>, vector<64x512xbf16>, vector<2x512xf32> -> vector<2x512xf32>
    %18 = arith.addf %12, %17 : vector<2x512xf32>
    %c0_13 = arith.constant 0 : index
    %c3 = arith.constant 3 : index
    %c0_14 = arith.constant 0 : index
    %19 = vector.load %arg1[%c0_13, %c3, %c0_14] : memref<2x80x128xf32, #tpu.memory_space<vmem>>, vector<2x1x64xf32>
    %20 = vector.shape_cast %19 : vector<2x1x64xf32> to vector<2x64xf32>
    %21 = arith.truncf %20 : vector<2x64xf32> to vector<2x64xbf16>
    %c192 = arith.constant 192 : index
    %c0_15 = arith.constant 0 : index
    %22 = vector.load %arg2[%c192, %c0_15] : memref<3136x512xbf16, #tpu.memory_space<vmem>>, vector<64x512xbf16>
    %cst_16 = arith.constant dense<0.000000e+00> : vector<2x512xf32>
    %23 = tpu.matmul %21, %22, %cst_16 {dimension_numbers = #tpu.dot_dimension_numbers<[1], [0], [0], [1], [0, 0, 1, 1], [], []>} : vector<2x64xbf16>, vector<64x512xbf16>, vector<2x512xf32> -> vector<2x512xf32>
    %24 = arith.addf %18, %23 : vector<2x512xf32>
    %c0_17 = arith.constant 0 : index
    %c4 = arith.constant 4 : index
    %c0_18 = arith.constant 0 : index
    %25 = vector.load %arg1[%c0_17, %c4, %c0_18] : memref<2x80x128xf32, #tpu.memory_space<vmem>>, vector<2x1x64xf32>
    %26 = vector.shape_cast %25 : vector<2x1x64xf32> to vector<2x64xf32>
    %27 = arith.truncf %26 : vector<2x64xf32> to vector<2x64xbf16>
    %c256 = arith.constant 256 : index
    %c0_19 = arith.constant 0 : index
    %28 = vector.load %arg2[%c256, %c0_19] : memref<3136x512xbf16, #tpu.memory_space<vmem>>, vector<64x512xbf16>
    %cst_20 = arith.constant dense<0.000000e+00> : vector<2x512xf32>
    %29 = tpu.matmul %27, %28, %cst_20 {dimension_numbers = #tpu.dot_dimension_numbers<[1], [0], [0], [1], [0, 0, 1, 1], [], []>} : vector<2x64xbf16>, vector<64x512xbf16>, vector<2x512xf32> -> vector<2x512xf32>
    %30 = arith.addf %24, %29 : vector<2x512xf32>
    %c0_21 = arith.constant 0 : index
    %c5 = arith.constant 5 : index
    %c0_22 = arith.constant 0 : index
    %31 = vector.load %arg1[%c0_21, %c5, %c0_22] : memref<2x80x128xf32, #tpu.memory_space<vmem>>, vector<2x1x64xf32>
    %32 = vector.shape_cast %31 : vector<2x1x64xf32> to vector<2x64xf32>
    %33 = arith.truncf %32 : vector<2x64xf32> to vector<2x64xbf16>
    %c320 = arith.constant 320 : index
    %c0_23 = arith.constant 0 : index
    %34 = vector.load %arg2[%c320, %c0_23] : memref<3136x512xbf16, #tpu.memory_space<vmem>>, vector<64x512xbf16>
    %cst_24 = arith.constant dense<0.000000e+00> : vector<2x512xf32>
    %35 = tpu.matmul %33, %34, %cst_24 {dimension_numbers = #tpu.dot_dimension_numbers<[1], [0], [0], [1], [0, 0, 1, 1], [], []>} : vector<2x64xbf16>, vector<64x512xbf16>, vector<2x512xf32> -> vector<2x512xf32>
    %36 = arith.addf %30, %35 : vector<2x512xf32>
    %c0_25 = arith.constant 0 : index
    %c6 = arith.constant 6 : index
    %c0_26 = arith.constant 0 : index
    %37 = vector.load %arg1[%c0_25, %c6, %c0_26] : memref<2x80x128xf32, #tpu.memory_space<vmem>>, vector<2x1x64xf32>
    %38 = vector.shape_cast %37 : vector<2x1x64xf32> to vector<2x64xf32>
    %39 = arith.truncf %38 : vector<2x64xf32> to vector<2x64xbf16>
    %c384 = arith.constant 384 : index
    %c0_27 = arith.constant 0 : index
    %40 = vector.load %arg2[%c384, %c0_27] : memref<3136x512xbf16, #tpu.memory_space<vmem>>, vector<64x512xbf16>
    %cst_28 = arith.constant dense<0.000000e+00> : vector<2x512xf32>
    %41 = tpu.matmul %39, %40, %cst_28 {dimension_numbers = #tpu.dot_dimension_numbers<[1], [0], [0], [1], [0, 0, 1, 1], [], []>} : vector<2x64xbf16>, vector<64x512xbf16>, vector<2x512xf32> -> vector<2x512xf32>
    %42 = arith.addf %36, %41 : vector<2x512xf32>
    %c0_29 = arith.constant 0 : index
    %c11 = arith.constant 11 : index
    %c0_30 = arith.constant 0 : index
    %43 = vector.load %arg1[%c0_29, %c11, %c0_30] : memref<2x80x128xf32, #tpu.memory_space<vmem>>, vector<2x1x64xf32>
    %44 = vector.shape_cast %43 : vector<2x1x64xf32> to vector<2x64xf32>
    %45 = arith.truncf %44 : vector<2x64xf32> to vector<2x64xbf16>
    %c448 = arith.constant 448 : index
    %c0_31 = arith.constant 0 : index
    %46 = vector.load %arg2[%c448, %c0_31] : memref<3136x512xbf16, #tpu.memory_space<vmem>>, vector<64x512xbf16>
    %cst_32 = arith.constant dense<0.000000e+00> : vector<2x512xf32>
    %47 = tpu.matmul %45, %46, %cst_32 {dimension_numbers = #tpu.dot_dimension_numbers<[1], [0], [0], [1], [0, 0, 1, 1], [], []>} : vector<2x64xbf16>, vector<64x512xbf16>, vector<2x512xf32> -> vector<2x512xf32>
    %48 = arith.addf %42, %47 : vector<2x512xf32>
    %c0_33 = arith.constant 0 : index
    %c12 = arith.constant 12 : index
    %c0_34 = arith.constant 0 : index
    %49 = vector.load %arg1[%c0_33, %c12, %c0_34] : memref<2x80x128xf32, #tpu.memory_space<vmem>>, vector<2x1x64xf32>
    %50 = vector.shape_cast %49 : vector<2x1x64xf32> to vector<2x64xf32>
    %51 = arith.truncf %50 : vector<2x64xf32> to vector<2x64xbf16>
    %c512 = arith.constant 512 : index
    %c0_35 = arith.constant 0 : index
    %52 = vector.load %arg2[%c512, %c0_35] : memref<3136x512xbf16, #tpu.memory_space<vmem>>, vector<64x512xbf16>
    %cst_36 = arith.constant dense<0.000000e+00> : vector<2x512xf32>
    %53 = tpu.matmul %51, %52, %cst_36 {dimension_numbers = #tpu.dot_dimension_numbers<[1], [0], [0], [1], [0, 0, 1, 1], [], []>} : vector<2x64xbf16>, vector<64x512xbf16>, vector<2x512xf32> -> vector<2x512xf32>
    %54 = arith.addf %48, %53 : vector<2x512xf32>
    %c0_37 = arith.constant 0 : index
    %c13 = arith.constant 13 : index
    %c0_38 = arith.constant 0 : index
    %55 = vector.load %arg1[%c0_37, %c13, %c0_38] : memref<2x80x128xf32, #tpu.memory_space<vmem>>, vector<2x1x64xf32>
    %56 = vector.shape_cast %55 : vector<2x1x64xf32> to vector<2x64xf32>
    %57 = arith.truncf %56 : vector<2x64xf32> to vector<2x64xbf16>
    %c576 = arith.constant 576 : index
    %c0_39 = arith.constant 0 : index
    %58 = vector.load %arg2[%c576, %c0_39] : memref<3136x512xbf16, #tpu.memory_space<vmem>>, vector<64x512xbf16>
    %cst_40 = arith.constant dense<0.000000e+00> : vector<2x512xf32>
    %59 = tpu.matmul %57, %58, %cst_40 {dimension_numbers = #tpu.dot_dimension_numbers<[1], [0], [0], [1], [0, 0, 1, 1], [], []>} : vector<2x64xbf16>, vector<64x512xbf16>, vector<2x512xf32> -> vector<2x512xf32>
    %60 = arith.addf %54, %59 : vector<2x512xf32>
    %c0_41 = arith.constant 0 : index
    %c14 = arith.constant 14 : index
    %c0_42 = arith.constant 0 : index
    %61 = vector.load %arg1[%c0_41, %c14, %c0_42] : memref<2x80x128xf32, #tpu.memory_space<vmem>>, vector<2x1x64xf32>
    %62 = vector.shape_cast %61 : vector<2x1x64xf32> to vector<2x64xf32>
    %63 = arith.truncf %62 : vector<2x64xf32> to vector<2x64xbf16>
    %c640 = arith.constant 640 : index
    %c0_43 = arith.constant 0 : index
    %64 = vector.load %arg2[%c640, %c0_43] : memref<3136x512xbf16, #tpu.memory_space<vmem>>, vector<64x512xbf16>
    %cst_44 = arith.constant dense<0.000000e+00> : vector<2x512xf32>
    %65 = tpu.matmul %63, %64, %cst_44 {dimension_numbers = #tpu.dot_dimension_numbers<[1], [0], [0], [1], [0, 0, 1, 1], [], []>} : vector<2x64xbf16>, vector<64x512xbf16>, vector<2x512xf32> -> vector<2x512xf32>
    %66 = arith.addf %60, %65 : vector<2x512xf32>
    %c0_45 = arith.constant 0 : index
    %c15 = arith.constant 15 : index
    %c0_46 = arith.constant 0 : index
    %67 = vector.load %arg1[%c0_45, %c15, %c0_46] : memref<2x80x128xf32, #tpu.memory_space<vmem>>, vector<2x1x64xf32>
    %68 = vector.shape_cast %67 : vector<2x1x64xf32> to vector<2x64xf32>
    %69 = arith.truncf %68 : vector<2x64xf32> to vector<2x64xbf16>
    %c704 = arith.constant 704 : index
    %c0_47 = arith.constant 0 : index
    %70 = vector.load %arg2[%c704, %c0_47] : memref<3136x512xbf16, #tpu.memory_space<vmem>>, vector<64x512xbf16>
    %cst_48 = arith.constant dense<0.000000e+00> : vector<2x512xf32>
    %71 = tpu.matmul %69, %70, %cst_48 {dimension_numbers = #tpu.dot_dimension_numbers<[1], [0], [0], [1], [0, 0, 1, 1], [], []>} : vector<2x64xbf16>, vector<64x512xbf16>, vector<2x512xf32> -> vector<2x512xf32>
    %72 = arith.addf %66, %71 : vector<2x512xf32>
    %c0_49 = arith.constant 0 : index
    %c16 = arith.constant 16 : index
    %c0_50 = arith.constant 0 : index
    %73 = vector.load %arg1[%c0_49, %c16, %c0_50] : memref<2x80x128xf32, #tpu.memory_space<vmem>>, vector<2x1x64xf32>
    %74 = vector.shape_cast %73 : vector<2x1x64xf32> to vector<2x64xf32>
    %75 = arith.truncf %74 : vector<2x64xf32> to vector<2x64xbf16>
    %c768 = arith.constant 768 : index
    %c0_51 = arith.constant 0 : index
    %76 = vector.load %arg2[%c768, %c0_51] : memref<3136x512xbf16, #tpu.memory_space<vmem>>, vector<64x512xbf16>
    %cst_52 = arith.constant dense<0.000000e+00> : vector<2x512xf32>
    %77 = tpu.matmul %75, %76, %cst_52 {dimension_numbers = #tpu.dot_dimension_numbers<[1], [0], [0], [1], [0, 0, 1, 1], [], []>} : vector<2x64xbf16>, vector<64x512xbf16>, vector<2x512xf32> -> vector<2x512xf32>
    %78 = arith.addf %72, %77 : vector<2x512xf32>
    %c0_53 = arith.constant 0 : index
    %c17 = arith.constant 17 : index
    %c0_54 = arith.constant 0 : index
    %79 = vector.load %arg1[%c0_53, %c17, %c0_54] : memref<2x80x128xf32, #tpu.memory_space<vmem>>, vector<2x1x64xf32>
    %80 = vector.shape_cast %79 : vector<2x1x64xf32> to vector<2x64xf32>
    %81 = arith.truncf %80 : vector<2x64xf32> to vector<2x64xbf16>
    %c832 = arith.constant 832 : index
    %c0_55 = arith.constant 0 : index
    %82 = vector.load %arg2[%c832, %c0_55] : memref<3136x512xbf16, #tpu.memory_space<vmem>>, vector<64x512xbf16>
    %cst_56 = arith.constant dense<0.000000e+00> : vector<2x512xf32>
    %83 = tpu.matmul %81, %82, %cst_56 {dimension_numbers = #tpu.dot_dimension_numbers<[1], [0], [0], [1], [0, 0, 1, 1], [], []>} : vector<2x64xbf16>, vector<64x512xbf16>, vector<2x512xf32> -> vector<2x512xf32>
    %84 = arith.addf %78, %83 : vector<2x512xf32>
    %c0_57 = arith.constant 0 : index
    %c22 = arith.constant 22 : index
    %c0_58 = arith.constant 0 : index
    %85 = vector.load %arg1[%c0_57, %c22, %c0_58] : memref<2x80x128xf32, #tpu.memory_space<vmem>>, vector<2x1x64xf32>
    %86 = vector.shape_cast %85 : vector<2x1x64xf32> to vector<2x64xf32>
    %87 = arith.truncf %86 : vector<2x64xf32> to vector<2x64xbf16>
    %c896 = arith.constant 896 : index
    %c0_59 = arith.constant 0 : index
    %88 = vector.load %arg2[%c896, %c0_59] : memref<3136x512xbf16, #tpu.memory_space<vmem>>, vector<64x512xbf16>
    %cst_60 = arith.constant dense<0.000000e+00> : vector<2x512xf32>
    %89 = tpu.matmul %87, %88, %cst_60 {dimension_numbers = #tpu.dot_dimension_numbers<[1], [0], [0], [1], [0, 0, 1, 1], [], []>} : vector<2x64xbf16>, vector<64x512xbf16>, vector<2x512xf32> -> vector<2x512xf32>
    %90 = arith.addf %84, %89 : vector<2x512xf32>
    %c0_61 = arith.constant 0 : index
    %c23 = arith.constant 23 : index
    %c0_62 = arith.constant 0 : index
    %91 = vector.load %arg1[%c0_61, %c23, %c0_62] : memref<2x80x128xf32, #tpu.memory_space<vmem>>, vector<2x1x64xf32>
    %92 = vector.shape_cast %91 : vector<2x1x64xf32> to vector<2x64xf32>
    %93 = arith.truncf %92 : vector<2x64xf32> to vector<2x64xbf16>
    %c960 = arith.constant 960 : index
    %c0_63 = arith.constant 0 : index
    %94 = vector.load %arg2[%c960, %c0_63] : memref<3136x512xbf16, #tpu.memory_space<vmem>>, vector<64x512xbf16>
    %cst_64 = arith.constant dense<0.000000e+00> : vector<2x512xf32>
    %95 = tpu.matmul %93, %94, %cst_64 {dimension_numbers = #tpu.dot_dimension_numbers<[1], [0], [0], [1], [0, 0, 1, 1], [], []>} : vector<2x64xbf16>, vector<64x512xbf16>, vector<2x512xf32> -> vector<2x512xf32>
    %96 = arith.addf %90, %95 : vector<2x512xf32>
    %c0_65 = arith.constant 0 : index
    %c24 = arith.constant 24 : index
    %c0_66 = arith.constant 0 : index
    %97 = vector.load %arg1[%c0_65, %c24, %c0_66] : memref<2x80x128xf32, #tpu.memory_space<vmem>>, vector<2x1x64xf32>
    %98 = vector.shape_cast %97 : vector<2x1x64xf32> to vector<2x64xf32>
    %99 = arith.truncf %98 : vector<2x64xf32> to vector<2x64xbf16>
    %c1024 = arith.constant 1024 : index
    %c0_67 = arith.constant 0 : index
    %100 = vector.load %arg2[%c1024, %c0_67] : memref<3136x512xbf16, #tpu.memory_space<vmem>>, vector<64x512xbf16>
    %cst_68 = arith.constant dense<0.000000e+00> : vector<2x512xf32>
    %101 = tpu.matmul %99, %100, %cst_68 {dimension_numbers = #tpu.dot_dimension_numbers<[1], [0], [0], [1], [0, 0, 1, 1], [], []>} : vector<2x64xbf16>, vector<64x512xbf16>, vector<2x512xf32> -> vector<2x512xf32>
    %102 = arith.addf %96, %101 : vector<2x512xf32>
    %c0_69 = arith.constant 0 : index
    %c25 = arith.constant 25 : index
    %c0_70 = arith.constant 0 : index
    %103 = vector.load %arg1[%c0_69, %c25, %c0_70] : memref<2x80x128xf32, #tpu.memory_space<vmem>>, vector<2x1x64xf32>
    %104 = vector.shape_cast %103 : vector<2x1x64xf32> to vector<2x64xf32>
    %105 = arith.truncf %104 : vector<2x64xf32> to vector<2x64xbf16>
    %c1088 = arith.constant 1088 : index
    %c0_71 = arith.constant 0 : index
    %106 = vector.load %arg2[%c1088, %c0_71] : memref<3136x512xbf16, #tpu.memory_space<vmem>>, vector<64x512xbf16>
    %cst_72 = arith.constant dense<0.000000e+00> : vector<2x512xf32>
    %107 = tpu.matmul %105, %106, %cst_72 {dimension_numbers = #tpu.dot_dimension_numbers<[1], [0], [0], [1], [0, 0, 1, 1], [], []>} : vector<2x64xbf16>, vector<64x512xbf16>, vector<2x512xf32> -> vector<2x512xf32>
    %108 = arith.addf %102, %107 : vector<2x512xf32>
    %c0_73 = arith.constant 0 : index
    %c26 = arith.constant 26 : index
    %c0_74 = arith.constant 0 : index
    %109 = vector.load %arg1[%c0_73, %c26, %c0_74] : memref<2x80x128xf32, #tpu.memory_space<vmem>>, vector<2x1x64xf32>
    %110 = vector.shape_cast %109 : vector<2x1x64xf32> to vector<2x64xf32>
    %111 = arith.truncf %110 : vector<2x64xf32> to vector<2x64xbf16>
    %c1152 = arith.constant 1152 : index
    %c0_75 = arith.constant 0 : index
    %112 = vector.load %arg2[%c1152, %c0_75] : memref<3136x512xbf16, #tpu.memory_space<vmem>>, vector<64x512xbf16>
    %cst_76 = arith.constant dense<0.000000e+00> : vector<2x512xf32>
    %113 = tpu.matmul %111, %112, %cst_76 {dimension_numbers = #tpu.dot_dimension_numbers<[1], [0], [0], [1], [0, 0, 1, 1], [], []>} : vector<2x64xbf16>, vector<64x512xbf16>, vector<2x512xf32> -> vector<2x512xf32>
    %114 = arith.addf %108, %113 : vector<2x512xf32>
    %c0_77 = arith.constant 0 : index
    %c27 = arith.constant 27 : index
    %c0_78 = arith.constant 0 : index
    %115 = vector.load %arg1[%c0_77, %c27, %c0_78] : memref<2x80x128xf32, #tpu.memory_space<vmem>>, vector<2x1x64xf32>
    %116 = vector.shape_cast %115 : vector<2x1x64xf32> to vector<2x64xf32>
    %117 = arith.truncf %116 : vector<2x64xf32> to vector<2x64xbf16>
    %c1216 = arith.constant 1216 : index
    %c0_79 = arith.constant 0 : index
    %118 = vector.load %arg2[%c1216, %c0_79] : memref<3136x512xbf16, #tpu.memory_space<vmem>>, vector<64x512xbf16>
    %cst_80 = arith.constant dense<0.000000e+00> : vector<2x512xf32>
    %119 = tpu.matmul %117, %118, %cst_80 {dimension_numbers = #tpu.dot_dimension_numbers<[1], [0], [0], [1], [0, 0, 1, 1], [], []>} : vector<2x64xbf16>, vector<64x512xbf16>, vector<2x512xf32> -> vector<2x512xf32>
    %120 = arith.addf %114, %119 : vector<2x512xf32>
    %c0_81 = arith.constant 0 : index
    %c28 = arith.constant 28 : index
    %c0_82 = arith.constant 0 : index
    %121 = vector.load %arg1[%c0_81, %c28, %c0_82] : memref<2x80x128xf32, #tpu.memory_space<vmem>>, vector<2x1x64xf32>
    %122 = vector.shape_cast %121 : vector<2x1x64xf32> to vector<2x64xf32>
    %123 = arith.truncf %122 : vector<2x64xf32> to vector<2x64xbf16>
    %c1280 = arith.constant 1280 : index
    %c0_83 = arith.constant 0 : index
    %124 = vector.load %arg2[%c1280, %c0_83] : memref<3136x512xbf16, #tpu.memory_space<vmem>>, vector<64x512xbf16>
    %cst_84 = arith.constant dense<0.000000e+00> : vector<2x512xf32>
    %125 = tpu.matmul %123, %124, %cst_84 {dimension_numbers = #tpu.dot_dimension_numbers<[1], [0], [0], [1], [0, 0, 1, 1], [], []>} : vector<2x64xbf16>, vector<64x512xbf16>, vector<2x512xf32> -> vector<2x512xf32>
    %126 = arith.addf %120, %125 : vector<2x512xf32>
    %c0_85 = arith.constant 0 : index
    %c33 = arith.constant 33 : index
    %c0_86 = arith.constant 0 : index
    %127 = vector.load %arg1[%c0_85, %c33, %c0_86] : memref<2x80x128xf32, #tpu.memory_space<vmem>>, vector<2x1x64xf32>
    %128 = vector.shape_cast %127 : vector<2x1x64xf32> to vector<2x64xf32>
    %129 = arith.truncf %128 : vector<2x64xf32> to vector<2x64xbf16>
    %c1344 = arith.constant 1344 : index
    %c0_87 = arith.constant 0 : index
    %130 = vector.load %arg2[%c1344, %c0_87] : memref<3136x512xbf16, #tpu.memory_space<vmem>>, vector<64x512xbf16>
    %cst_88 = arith.constant dense<0.000000e+00> : vector<2x512xf32>
    %131 = tpu.matmul %129, %130, %cst_88 {dimension_numbers = #tpu.dot_dimension_numbers<[1], [0], [0], [1], [0, 0, 1, 1], [], []>} : vector<2x64xbf16>, vector<64x512xbf16>, vector<2x512xf32> -> vector<2x512xf32>
    %132 = arith.addf %126, %131 : vector<2x512xf32>
    %c0_89 = arith.constant 0 : index
    %c34 = arith.constant 34 : index
    %c0_90 = arith.constant 0 : index
    %133 = vector.load %arg1[%c0_89, %c34, %c0_90] : memref<2x80x128xf32, #tpu.memory_space<vmem>>, vector<2x1x64xf32>
    %134 = vector.shape_cast %133 : vector<2x1x64xf32> to vector<2x64xf32>
    %135 = arith.truncf %134 : vector<2x64xf32> to vector<2x64xbf16>
    %c1408 = arith.constant 1408 : index
    %c0_91 = arith.constant 0 : index
    %136 = vector.load %arg2[%c1408, %c0_91] : memref<3136x512xbf16, #tpu.memory_space<vmem>>, vector<64x512xbf16>
    %cst_92 = arith.constant dense<0.000000e+00> : vector<2x512xf32>
    %137 = tpu.matmul %135, %136, %cst_92 {dimension_numbers = #tpu.dot_dimension_numbers<[1], [0], [0], [1], [0, 0, 1, 1], [], []>} : vector<2x64xbf16>, vector<64x512xbf16>, vector<2x512xf32> -> vector<2x512xf32>
    %138 = arith.addf %132, %137 : vector<2x512xf32>
    %c0_93 = arith.constant 0 : index
    %c35 = arith.constant 35 : index
    %c0_94 = arith.constant 0 : index
    %139 = vector.load %arg1[%c0_93, %c35, %c0_94] : memref<2x80x128xf32, #tpu.memory_space<vmem>>, vector<2x1x64xf32>
    %140 = vector.shape_cast %139 : vector<2x1x64xf32> to vector<2x64xf32>
    %141 = arith.truncf %140 : vector<2x64xf32> to vector<2x64xbf16>
    %c1472 = arith.constant 1472 : index
    %c0_95 = arith.constant 0 : index
    %142 = vector.load %arg2[%c1472, %c0_95] : memref<3136x512xbf16, #tpu.memory_space<vmem>>, vector<64x512xbf16>
    %cst_96 = arith.constant dense<0.000000e+00> : vector<2x512xf32>
    %143 = tpu.matmul %141, %142, %cst_96 {dimension_numbers = #tpu.dot_dimension_numbers<[1], [0], [0], [1], [0, 0, 1, 1], [], []>} : vector<2x64xbf16>, vector<64x512xbf16>, vector<2x512xf32> -> vector<2x512xf32>
    %144 = arith.addf %138, %143 : vector<2x512xf32>
    %c0_97 = arith.constant 0 : index
    %c36 = arith.constant 36 : index
    %c0_98 = arith.constant 0 : index
    %145 = vector.load %arg1[%c0_97, %c36, %c0_98] : memref<2x80x128xf32, #tpu.memory_space<vmem>>, vector<2x1x64xf32>
    %146 = vector.shape_cast %145 : vector<2x1x64xf32> to vector<2x64xf32>
    %147 = arith.truncf %146 : vector<2x64xf32> to vector<2x64xbf16>
    %c1536 = arith.constant 1536 : index
    %c0_99 = arith.constant 0 : index
    %148 = vector.load %arg2[%c1536, %c0_99] : memref<3136x512xbf16, #tpu.memory_space<vmem>>, vector<64x512xbf16>
    %cst_100 = arith.constant dense<0.000000e+00> : vector<2x512xf32>
    %149 = tpu.matmul %147, %148, %cst_100 {dimension_numbers = #tpu.dot_dimension_numbers<[1], [0], [0], [1], [0, 0, 1, 1], [], []>} : vector<2x64xbf16>, vector<64x512xbf16>, vector<2x512xf32> -> vector<2x512xf32>
    %150 = arith.addf %144, %149 : vector<2x512xf32>
    %c0_101 = arith.constant 0 : index
    %c37 = arith.constant 37 : index
    %c0_102 = arith.constant 0 : index
    %151 = vector.load %arg1[%c0_101, %c37, %c0_102] : memref<2x80x128xf32, #tpu.memory_space<vmem>>, vector<2x1x64xf32>
    %152 = vector.shape_cast %151 : vector<2x1x64xf32> to vector<2x64xf32>
    %153 = arith.truncf %152 : vector<2x64xf32> to vector<2x64xbf16>
    %c1600 = arith.constant 1600 : index
    %c0_103 = arith.constant 0 : index
    %154 = vector.load %arg2[%c1600, %c0_103] : memref<3136x512xbf16, #tpu.memory_space<vmem>>, vector<64x512xbf16>
    %cst_104 = arith.constant dense<0.000000e+00> : vector<2x512xf32>
    %155 = tpu.matmul %153, %154, %cst_104 {dimension_numbers = #tpu.dot_dimension_numbers<[1], [0], [0], [1], [0, 0, 1, 1], [], []>} : vector<2x64xbf16>, vector<64x512xbf16>, vector<2x512xf32> -> vector<2x512xf32>
    %156 = arith.addf %150, %155 : vector<2x512xf32>
    %c0_105 = arith.constant 0 : index
    %c38 = arith.constant 38 : index
    %c0_106 = arith.constant 0 : index
    %157 = vector.load %arg1[%c0_105, %c38, %c0_106] : memref<2x80x128xf32, #tpu.memory_space<vmem>>, vector<2x1x64xf32>
    %158 = vector.shape_cast %157 : vector<2x1x64xf32> to vector<2x64xf32>
    %159 = arith.truncf %158 : vector<2x64xf32> to vector<2x64xbf16>
    %c1664 = arith.constant 1664 : index
    %c0_107 = arith.constant 0 : index
    %160 = vector.load %arg2[%c1664, %c0_107] : memref<3136x512xbf16, #tpu.memory_space<vmem>>, vector<64x512xbf16>
    %cst_108 = arith.constant dense<0.000000e+00> : vector<2x512xf32>
    %161 = tpu.matmul %159, %160, %cst_108 {dimension_numbers = #tpu.dot_dimension_numbers<[1], [0], [0], [1], [0, 0, 1, 1], [], []>} : vector<2x64xbf16>, vector<64x512xbf16>, vector<2x512xf32> -> vector<2x512xf32>
    %162 = arith.addf %156, %161 : vector<2x512xf32>
    %c0_109 = arith.constant 0 : index
    %c39 = arith.constant 39 : index
    %c0_110 = arith.constant 0 : index
    %163 = vector.load %arg1[%c0_109, %c39, %c0_110] : memref<2x80x128xf32, #tpu.memory_space<vmem>>, vector<2x1x64xf32>
    %164 = vector.shape_cast %163 : vector<2x1x64xf32> to vector<2x64xf32>
    %165 = arith.truncf %164 : vector<2x64xf32> to vector<2x64xbf16>
    %c1728 = arith.constant 1728 : index
    %c0_111 = arith.constant 0 : index
    %166 = vector.load %arg2[%c1728, %c0_111] : memref<3136x512xbf16, #tpu.memory_space<vmem>>, vector<64x512xbf16>
    %cst_112 = arith.constant dense<0.000000e+00> : vector<2x512xf32>
    %167 = tpu.matmul %165, %166, %cst_112 {dimension_numbers = #tpu.dot_dimension_numbers<[1], [0], [0], [1], [0, 0, 1, 1], [], []>} : vector<2x64xbf16>, vector<64x512xbf16>, vector<2x512xf32> -> vector<2x512xf32>
    %168 = arith.addf %162, %167 : vector<2x512xf32>
    %c0_113 = arith.constant 0 : index
    %c44 = arith.constant 44 : index
    %c0_114 = arith.constant 0 : index
    %169 = vector.load %arg1[%c0_113, %c44, %c0_114] : memref<2x80x128xf32, #tpu.memory_space<vmem>>, vector<2x1x64xf32>
    %170 = vector.shape_cast %169 : vector<2x1x64xf32> to vector<2x64xf32>
    %171 = arith.truncf %170 : vector<2x64xf32> to vector<2x64xbf16>
    %c1792 = arith.constant 1792 : index
    %c0_115 = arith.constant 0 : index
    %172 = vector.load %arg2[%c1792, %c0_115] : memref<3136x512xbf16, #tpu.memory_space<vmem>>, vector<64x512xbf16>
    %cst_116 = arith.constant dense<0.000000e+00> : vector<2x512xf32>
    %173 = tpu.matmul %171, %172, %cst_116 {dimension_numbers = #tpu.dot_dimension_numbers<[1], [0], [0], [1], [0, 0, 1, 1], [], []>} : vector<2x64xbf16>, vector<64x512xbf16>, vector<2x512xf32> -> vector<2x512xf32>
    %174 = arith.addf %168, %173 : vector<2x512xf32>
    %c0_117 = arith.constant 0 : index
    %c45 = arith.constant 45 : index
    %c0_118 = arith.constant 0 : index
    %175 = vector.load %arg1[%c0_117, %c45, %c0_118] : memref<2x80x128xf32, #tpu.memory_space<vmem>>, vector<2x1x64xf32>
    %176 = vector.shape_cast %175 : vector<2x1x64xf32> to vector<2x64xf32>
    %177 = arith.truncf %176 : vector<2x64xf32> to vector<2x64xbf16>
    %c1856 = arith.constant 1856 : index
    %c0_119 = arith.constant 0 : index
    %178 = vector.load %arg2[%c1856, %c0_119] : memref<3136x512xbf16, #tpu.memory_space<vmem>>, vector<64x512xbf16>
    %cst_120 = arith.constant dense<0.000000e+00> : vector<2x512xf32>
    %179 = tpu.matmul %177, %178, %cst_120 {dimension_numbers = #tpu.dot_dimension_numbers<[1], [0], [0], [1], [0, 0, 1, 1], [], []>} : vector<2x64xbf16>, vector<64x512xbf16>, vector<2x512xf32> -> vector<2x512xf32>
    %180 = arith.addf %174, %179 : vector<2x512xf32>
    %c0_121 = arith.constant 0 : index
    %c46 = arith.constant 46 : index
    %c0_122 = arith.constant 0 : index
    %181 = vector.load %arg1[%c0_121, %c46, %c0_122] : memref<2x80x128xf32, #tpu.memory_space<vmem>>, vector<2x1x64xf32>
    %182 = vector.shape_cast %181 : vector<2x1x64xf32> to vector<2x64xf32>
    %183 = arith.truncf %182 : vector<2x64xf32> to vector<2x64xbf16>
    %c1920 = arith.constant 1920 : index
    %c0_123 = arith.constant 0 : index
    %184 = vector.load %arg2[%c1920, %c0_123] : memref<3136x512xbf16, #tpu.memory_space<vmem>>, vector<64x512xbf16>
    %cst_124 = arith.constant dense<0.000000e+00> : vector<2x512xf32>
    %185 = tpu.matmul %183, %184, %cst_124 {dimension_numbers = #tpu.dot_dimension_numbers<[1], [0], [0], [1], [0, 0, 1, 1], [], []>} : vector<2x64xbf16>, vector<64x512xbf16>, vector<2x512xf32> -> vector<2x512xf32>
    %186 = arith.addf %180, %185 : vector<2x512xf32>
    %c0_125 = arith.constant 0 : index
    %c47 = arith.constant 47 : index
    %c0_126 = arith.constant 0 : index
    %187 = vector.load %arg1[%c0_125, %c47, %c0_126] : memref<2x80x128xf32, #tpu.memory_space<vmem>>, vector<2x1x64xf32>
    %188 = vector.shape_cast %187 : vector<2x1x64xf32> to vector<2x64xf32>
    %189 = arith.truncf %188 : vector<2x64xf32> to vector<2x64xbf16>
    %c1984 = arith.constant 1984 : index
    %c0_127 = arith.constant 0 : index
    %190 = vector.load %arg2[%c1984, %c0_127] : memref<3136x512xbf16, #tpu.memory_space<vmem>>, vector<64x512xbf16>
    %cst_128 = arith.constant dense<0.000000e+00> : vector<2x512xf32>
    %191 = tpu.matmul %189, %190, %cst_128 {dimension_numbers = #tpu.dot_dimension_numbers<[1], [0], [0], [1], [0, 0, 1, 1], [], []>} : vector<2x64xbf16>, vector<64x512xbf16>, vector<2x512xf32> -> vector<2x512xf32>
    %192 = arith.addf %186, %191 : vector<2x512xf32>
    %c0_129 = arith.constant 0 : index
    %c48 = arith.constant 48 : index
    %c0_130 = arith.constant 0 : index
    %193 = vector.load %arg1[%c0_129, %c48, %c0_130] : memref<2x80x128xf32, #tpu.memory_space<vmem>>, vector<2x1x64xf32>
    %194 = vector.shape_cast %193 : vector<2x1x64xf32> to vector<2x64xf32>
    %195 = arith.truncf %194 : vector<2x64xf32> to vector<2x64xbf16>
    %c2048 = arith.constant 2048 : index
    %c0_131 = arith.constant 0 : index
    %196 = vector.load %arg2[%c2048, %c0_131] : memref<3136x512xbf16, #tpu.memory_space<vmem>>, vector<64x512xbf16>
    %cst_132 = arith.constant dense<0.000000e+00> : vector<2x512xf32>
    %197 = tpu.matmul %195, %196, %cst_132 {dimension_numbers = #tpu.dot_dimension_numbers<[1], [0], [0], [1], [0, 0, 1, 1], [], []>} : vector<2x64xbf16>, vector<64x512xbf16>, vector<2x512xf32> -> vector<2x512xf32>
    %198 = arith.addf %192, %197 : vector<2x512xf32>
    %c0_133 = arith.constant 0 : index
    %c49 = arith.constant 49 : index
    %c0_134 = arith.constant 0 : index
    %199 = vector.load %arg1[%c0_133, %c49, %c0_134] : memref<2x80x128xf32, #tpu.memory_space<vmem>>, vector<2x1x64xf32>
    %200 = vector.shape_cast %199 : vector<2x1x64xf32> to vector<2x64xf32>
    %201 = arith.truncf %200 : vector<2x64xf32> to vector<2x64xbf16>
    %c2112 = arith.constant 2112 : index
    %c0_135 = arith.constant 0 : index
    %202 = vector.load %arg2[%c2112, %c0_135] : memref<3136x512xbf16, #tpu.memory_space<vmem>>, vector<64x512xbf16>
    %cst_136 = arith.constant dense<0.000000e+00> : vector<2x512xf32>
    %203 = tpu.matmul %201, %202, %cst_136 {dimension_numbers = #tpu.dot_dimension_numbers<[1], [0], [0], [1], [0, 0, 1, 1], [], []>} : vector<2x64xbf16>, vector<64x512xbf16>, vector<2x512xf32> -> vector<2x512xf32>
    %204 = arith.addf %198, %203 : vector<2x512xf32>
    %c0_137 = arith.constant 0 : index
    %c50 = arith.constant 50 : index
    %c0_138 = arith.constant 0 : index
    %205 = vector.load %arg1[%c0_137, %c50, %c0_138] : memref<2x80x128xf32, #tpu.memory_space<vmem>>, vector<2x1x64xf32>
    %206 = vector.shape_cast %205 : vector<2x1x64xf32> to vector<2x64xf32>
    %207 = arith.truncf %206 : vector<2x64xf32> to vector<2x64xbf16>
    %c2176 = arith.constant 2176 : index
    %c0_139 = arith.constant 0 : index
    %208 = vector.load %arg2[%c2176, %c0_139] : memref<3136x512xbf16, #tpu.memory_space<vmem>>, vector<64x512xbf16>
    %cst_140 = arith.constant dense<0.000000e+00> : vector<2x512xf32>
    %209 = tpu.matmul %207, %208, %cst_140 {dimension_numbers = #tpu.dot_dimension_numbers<[1], [0], [0], [1], [0, 0, 1, 1], [], []>} : vector<2x64xbf16>, vector<64x512xbf16>, vector<2x512xf32> -> vector<2x512xf32>
    %210 = arith.addf %204, %209 : vector<2x512xf32>
    %c0_141 = arith.constant 0 : index
    %c55 = arith.constant 55 : index
    %c0_142 = arith.constant 0 : index
    %211 = vector.load %arg1[%c0_141, %c55, %c0_142] : memref<2x80x128xf32, #tpu.memory_space<vmem>>, vector<2x1x64xf32>
    %212 = vector.shape_cast %211 : vector<2x1x64xf32> to vector<2x64xf32>
    %213 = arith.truncf %212 : vector<2x64xf32> to vector<2x64xbf16>
    %c2240 = arith.constant 2240 : index
    %c0_143 = arith.constant 0 : index
    %214 = vector.load %arg2[%c2240, %c0_143] : memref<3136x512xbf16, #tpu.memory_space<vmem>>, vector<64x512xbf16>
    %cst_144 = arith.constant dense<0.000000e+00> : vector<2x512xf32>
    %215 = tpu.matmul %213, %214, %cst_144 {dimension_numbers = #tpu.dot_dimension_numbers<[1], [0], [0], [1], [0, 0, 1, 1], [], []>} : vector<2x64xbf16>, vector<64x512xbf16>, vector<2x512xf32> -> vector<2x512xf32>
    %216 = arith.addf %210, %215 : vector<2x512xf32>
    %c0_145 = arith.constant 0 : index
    %c56 = arith.constant 56 : index
    %c0_146 = arith.constant 0 : index
    %217 = vector.load %arg1[%c0_145, %c56, %c0_146] : memref<2x80x128xf32, #tpu.memory_space<vmem>>, vector<2x1x64xf32>
    %218 = vector.shape_cast %217 : vector<2x1x64xf32> to vector<2x64xf32>
    %219 = arith.truncf %218 : vector<2x64xf32> to vector<2x64xbf16>
    %c2304 = arith.constant 2304 : index
    %c0_147 = arith.constant 0 : index
    %220 = vector.load %arg2[%c2304, %c0_147] : memref<3136x512xbf16, #tpu.memory_space<vmem>>, vector<64x512xbf16>
    %cst_148 = arith.constant dense<0.000000e+00> : vector<2x512xf32>
    %221 = tpu.matmul %219, %220, %cst_148 {dimension_numbers = #tpu.dot_dimension_numbers<[1], [0], [0], [1], [0, 0, 1, 1], [], []>} : vector<2x64xbf16>, vector<64x512xbf16>, vector<2x512xf32> -> vector<2x512xf32>
    %222 = arith.addf %216, %221 : vector<2x512xf32>
    %c0_149 = arith.constant 0 : index
    %c57 = arith.constant 57 : index
    %c0_150 = arith.constant 0 : index
    %223 = vector.load %arg1[%c0_149, %c57, %c0_150] : memref<2x80x128xf32, #tpu.memory_space<vmem>>, vector<2x1x64xf32>
    %224 = vector.shape_cast %223 : vector<2x1x64xf32> to vector<2x64xf32>
    %225 = arith.truncf %224 : vector<2x64xf32> to vector<2x64xbf16>
    %c2368 = arith.constant 2368 : index
    %c0_151 = arith.constant 0 : index
    %226 = vector.load %arg2[%c2368, %c0_151] : memref<3136x512xbf16, #tpu.memory_space<vmem>>, vector<64x512xbf16>
    %cst_152 = arith.constant dense<0.000000e+00> : vector<2x512xf32>
    %227 = tpu.matmul %225, %226, %cst_152 {dimension_numbers = #tpu.dot_dimension_numbers<[1], [0], [0], [1], [0, 0, 1, 1], [], []>} : vector<2x64xbf16>, vector<64x512xbf16>, vector<2x512xf32> -> vector<2x512xf32>
    %228 = arith.addf %222, %227 : vector<2x512xf32>
    %c0_153 = arith.constant 0 : index
    %c58 = arith.constant 58 : index
    %c0_154 = arith.constant 0 : index
    %229 = vector.load %arg1[%c0_153, %c58, %c0_154] : memref<2x80x128xf32, #tpu.memory_space<vmem>>, vector<2x1x64xf32>
    %230 = vector.shape_cast %229 : vector<2x1x64xf32> to vector<2x64xf32>
    %231 = arith.truncf %230 : vector<2x64xf32> to vector<2x64xbf16>
    %c2432 = arith.constant 2432 : index
    %c0_155 = arith.constant 0 : index
    %232 = vector.load %arg2[%c2432, %c0_155] : memref<3136x512xbf16, #tpu.memory_space<vmem>>, vector<64x512xbf16>
    %cst_156 = arith.constant dense<0.000000e+00> : vector<2x512xf32>
    %233 = tpu.matmul %231, %232, %cst_156 {dimension_numbers = #tpu.dot_dimension_numbers<[1], [0], [0], [1], [0, 0, 1, 1], [], []>} : vector<2x64xbf16>, vector<64x512xbf16>, vector<2x512xf32> -> vector<2x512xf32>
    %234 = arith.addf %228, %233 : vector<2x512xf32>
    %c0_157 = arith.constant 0 : index
    %c59 = arith.constant 59 : index
    %c0_158 = arith.constant 0 : index
    %235 = vector.load %arg1[%c0_157, %c59, %c0_158] : memref<2x80x128xf32, #tpu.memory_space<vmem>>, vector<2x1x64xf32>
    %236 = vector.shape_cast %235 : vector<2x1x64xf32> to vector<2x64xf32>
    %237 = arith.truncf %236 : vector<2x64xf32> to vector<2x64xbf16>
    %c2496 = arith.constant 2496 : index
    %c0_159 = arith.constant 0 : index
    %238 = vector.load %arg2[%c2496, %c0_159] : memref<3136x512xbf16, #tpu.memory_space<vmem>>, vector<64x512xbf16>
    %cst_160 = arith.constant dense<0.000000e+00> : vector<2x512xf32>
    %239 = tpu.matmul %237, %238, %cst_160 {dimension_numbers = #tpu.dot_dimension_numbers<[1], [0], [0], [1], [0, 0, 1, 1], [], []>} : vector<2x64xbf16>, vector<64x512xbf16>, vector<2x512xf32> -> vector<2x512xf32>
    %240 = arith.addf %234, %239 : vector<2x512xf32>
    %c0_161 = arith.constant 0 : index
    %c60 = arith.constant 60 : index
    %c0_162 = arith.constant 0 : index
    %241 = vector.load %arg1[%c0_161, %c60, %c0_162] : memref<2x80x128xf32, #tpu.memory_space<vmem>>, vector<2x1x64xf32>
    %242 = vector.shape_cast %241 : vector<2x1x64xf32> to vector<2x64xf32>
    %243 = arith.truncf %242 : vector<2x64xf32> to vector<2x64xbf16>
    %c2560 = arith.constant 2560 : index
    %c0_163 = arith.constant 0 : index
    %244 = vector.load %arg2[%c2560, %c0_163] : memref<3136x512xbf16, #tpu.memory_space<vmem>>, vector<64x512xbf16>
    %cst_164 = arith.constant dense<0.000000e+00> : vector<2x512xf32>
    %245 = tpu.matmul %243, %244, %cst_164 {dimension_numbers = #tpu.dot_dimension_numbers<[1], [0], [0], [1], [0, 0, 1, 1], [], []>} : vector<2x64xbf16>, vector<64x512xbf16>, vector<2x512xf32> -> vector<2x512xf32>
    %246 = arith.addf %240, %245 : vector<2x512xf32>
    %c0_165 = arith.constant 0 : index
    %c61 = arith.constant 61 : index
    %c0_166 = arith.constant 0 : index
    %247 = vector.load %arg1[%c0_165, %c61, %c0_166] : memref<2x80x128xf32, #tpu.memory_space<vmem>>, vector<2x1x64xf32>
    %248 = vector.shape_cast %247 : vector<2x1x64xf32> to vector<2x64xf32>
    %249 = arith.truncf %248 : vector<2x64xf32> to vector<2x64xbf16>
    %c2624 = arith.constant 2624 : index
    %c0_167 = arith.constant 0 : index
    %250 = vector.load %arg2[%c2624, %c0_167] : memref<3136x512xbf16, #tpu.memory_space<vmem>>, vector<64x512xbf16>
    %cst_168 = arith.constant dense<0.000000e+00> : vector<2x512xf32>
    %251 = tpu.matmul %249, %250, %cst_168 {dimension_numbers = #tpu.dot_dimension_numbers<[1], [0], [0], [1], [0, 0, 1, 1], [], []>} : vector<2x64xbf16>, vector<64x512xbf16>, vector<2x512xf32> -> vector<2x512xf32>
    %252 = arith.addf %246, %251 : vector<2x512xf32>
    %c0_169 = arith.constant 0 : index
    %c66 = arith.constant 66 : index
    %c0_170 = arith.constant 0 : index
    %253 = vector.load %arg1[%c0_169, %c66, %c0_170] : memref<2x80x128xf32, #tpu.memory_space<vmem>>, vector<2x1x64xf32>
    %254 = vector.shape_cast %253 : vector<2x1x64xf32> to vector<2x64xf32>
    %255 = arith.truncf %254 : vector<2x64xf32> to vector<2x64xbf16>
    %c2688 = arith.constant 2688 : index
    %c0_171 = arith.constant 0 : index
    %256 = vector.load %arg2[%c2688, %c0_171] : memref<3136x512xbf16, #tpu.memory_space<vmem>>, vector<64x512xbf16>
    %cst_172 = arith.constant dense<0.000000e+00> : vector<2x512xf32>
    %257 = tpu.matmul %255, %256, %cst_172 {dimension_numbers = #tpu.dot_dimension_numbers<[1], [0], [0], [1], [0, 0, 1, 1], [], []>} : vector<2x64xbf16>, vector<64x512xbf16>, vector<2x512xf32> -> vector<2x512xf32>
    %258 = arith.addf %252, %257 : vector<2x512xf32>
    %c0_173 = arith.constant 0 : index
    %c67 = arith.constant 67 : index
    %c0_174 = arith.constant 0 : index
    %259 = vector.load %arg1[%c0_173, %c67, %c0_174] : memref<2x80x128xf32, #tpu.memory_space<vmem>>, vector<2x1x64xf32>
    %260 = vector.shape_cast %259 : vector<2x1x64xf32> to vector<2x64xf32>
    %261 = arith.truncf %260 : vector<2x64xf32> to vector<2x64xbf16>
    %c2752 = arith.constant 2752 : index
    %c0_175 = arith.constant 0 : index
    %262 = vector.load %arg2[%c2752, %c0_175] : memref<3136x512xbf16, #tpu.memory_space<vmem>>, vector<64x512xbf16>
    %cst_176 = arith.constant dense<0.000000e+00> : vector<2x512xf32>
    %263 = tpu.matmul %261, %262, %cst_176 {dimension_numbers = #tpu.dot_dimension_numbers<[1], [0], [0], [1], [0, 0, 1, 1], [], []>} : vector<2x64xbf16>, vector<64x512xbf16>, vector<2x512xf32> -> vector<2x512xf32>
    %264 = arith.addf %258, %263 : vector<2x512xf32>
    %c0_177 = arith.constant 0 : index
    %c68 = arith.constant 68 : index
    %c0_178 = arith.constant 0 : index
    %265 = vector.load %arg1[%c0_177, %c68, %c0_178] : memref<2x80x128xf32, #tpu.memory_space<vmem>>, vector<2x1x64xf32>
    %266 = vector.shape_cast %265 : vector<2x1x64xf32> to vector<2x64xf32>
    %267 = arith.truncf %266 : vector<2x64xf32> to vector<2x64xbf16>
    %c2816 = arith.constant 2816 : index
    %c0_179 = arith.constant 0 : index
    %268 = vector.load %arg2[%c2816, %c0_179] : memref<3136x512xbf16, #tpu.memory_space<vmem>>, vector<64x512xbf16>
    %cst_180 = arith.constant dense<0.000000e+00> : vector<2x512xf32>
    %269 = tpu.matmul %267, %268, %cst_180 {dimension_numbers = #tpu.dot_dimension_numbers<[1], [0], [0], [1], [0, 0, 1, 1], [], []>} : vector<2x64xbf16>, vector<64x512xbf16>, vector<2x512xf32> -> vector<2x512xf32>
    %270 = arith.addf %264, %269 : vector<2x512xf32>
    %c0_181 = arith.constant 0 : index
    %c69 = arith.constant 69 : index
    %c0_182 = arith.constant 0 : index
    %271 = vector.load %arg1[%c0_181, %c69, %c0_182] : memref<2x80x128xf32, #tpu.memory_space<vmem>>, vector<2x1x64xf32>
    %272 = vector.shape_cast %271 : vector<2x1x64xf32> to vector<2x64xf32>
    %273 = arith.truncf %272 : vector<2x64xf32> to vector<2x64xbf16>
    %c2880 = arith.constant 2880 : index
    %c0_183 = arith.constant 0 : index
    %274 = vector.load %arg2[%c2880, %c0_183] : memref<3136x512xbf16, #tpu.memory_space<vmem>>, vector<64x512xbf16>
    %cst_184 = arith.constant dense<0.000000e+00> : vector<2x512xf32>
    %275 = tpu.matmul %273, %274, %cst_184 {dimension_numbers = #tpu.dot_dimension_numbers<[1], [0], [0], [1], [0, 0, 1, 1], [], []>} : vector<2x64xbf16>, vector<64x512xbf16>, vector<2x512xf32> -> vector<2x512xf32>
    %276 = arith.addf %270, %275 : vector<2x512xf32>
    %c0_185 = arith.constant 0 : index
    %c70 = arith.constant 70 : index
    %c0_186 = arith.constant 0 : index
    %277 = vector.load %arg1[%c0_185, %c70, %c0_186] : memref<2x80x128xf32, #tpu.memory_space<vmem>>, vector<2x1x64xf32>
    %278 = vector.shape_cast %277 : vector<2x1x64xf32> to vector<2x64xf32>
    %279 = arith.truncf %278 : vector<2x64xf32> to vector<2x64xbf16>
    %c2944 = arith.constant 2944 : index
    %c0_187 = arith.constant 0 : index
    %280 = vector.load %arg2[%c2944, %c0_187] : memref<3136x512xbf16, #tpu.memory_space<vmem>>, vector<64x512xbf16>
    %cst_188 = arith.constant dense<0.000000e+00> : vector<2x512xf32>
    %281 = tpu.matmul %279, %280, %cst_188 {dimension_numbers = #tpu.dot_dimension_numbers<[1], [0], [0], [1], [0, 0, 1, 1], [], []>} : vector<2x64xbf16>, vector<64x512xbf16>, vector<2x512xf32> -> vector<2x512xf32>
    %282 = arith.addf %276, %281 : vector<2x512xf32>
    %c0_189 = arith.constant 0 : index
    %c71 = arith.constant 71 : index
    %c0_190 = arith.constant 0 : index
    %283 = vector.load %arg1[%c0_189, %c71, %c0_190] : memref<2x80x128xf32, #tpu.memory_space<vmem>>, vector<2x1x64xf32>
    %284 = vector.shape_cast %283 : vector<2x1x64xf32> to vector<2x64xf32>
    %285 = arith.truncf %284 : vector<2x64xf32> to vector<2x64xbf16>
    %c3008 = arith.constant 3008 : index
    %c0_191 = arith.constant 0 : index
    %286 = vector.load %arg2[%c3008, %c0_191] : memref<3136x512xbf16, #tpu.memory_space<vmem>>, vector<64x512xbf16>
    %cst_192 = arith.constant dense<0.000000e+00> : vector<2x512xf32>
    %287 = tpu.matmul %285, %286, %cst_192 {dimension_numbers = #tpu.dot_dimension_numbers<[1], [0], [0], [1], [0, 0, 1, 1], [], []>} : vector<2x64xbf16>, vector<64x512xbf16>, vector<2x512xf32> -> vector<2x512xf32>
    %288 = arith.addf %282, %287 : vector<2x512xf32>
    %c0_193 = arith.constant 0 : index
    %c72 = arith.constant 72 : index
    %c0_194 = arith.constant 0 : index
    %289 = vector.load %arg1[%c0_193, %c72, %c0_194] : memref<2x80x128xf32, #tpu.memory_space<vmem>>, vector<2x1x64xf32>
    %290 = vector.shape_cast %289 : vector<2x1x64xf32> to vector<2x64xf32>
    %291 = arith.truncf %290 : vector<2x64xf32> to vector<2x64xbf16>
    %c3072 = arith.constant 3072 : index
    %c0_195 = arith.constant 0 : index
    %292 = vector.load %arg2[%c3072, %c0_195] : memref<3136x512xbf16, #tpu.memory_space<vmem>>, vector<64x512xbf16>
    %cst_196 = arith.constant dense<0.000000e+00> : vector<2x512xf32>
    %293 = tpu.matmul %291, %292, %cst_196 {dimension_numbers = #tpu.dot_dimension_numbers<[1], [0], [0], [1], [0, 0, 1, 1], [], []>} : vector<2x64xbf16>, vector<64x512xbf16>, vector<2x512xf32> -> vector<2x512xf32>
    %294 = arith.addf %288, %293 : vector<2x512xf32>
    %c0_197 = arith.constant 0 : index
    %c0_198 = arith.constant 0 : index
    %295 = vector.load %arg3[%c0_197, %c0_198] : memref<1x512xf32, #tpu.memory_space<vmem>>, vector<1x512xf32>
    %296 = vector.broadcast %295 : vector<1x512xf32> to vector<2x512xf32>
    %297 = arith.addf %294, %296 : vector<2x512xf32>
    %cst_199 = arith.constant 0.000000e+00 : f32
    %298 = vector.broadcast %cst_199 : f32 to vector<2x512xf32>
    %299 = arith.maximumf %297, %298 : vector<2x512xf32>
    %c0_200 = arith.constant 0 : index
    %c0_201 = arith.constant 0 : index
    %300 = vector.load %arg4[%c0_200, %c0_201] : memref<512x128xf32, #tpu.memory_space<vmem>>, vector<512x128xf32>
    %cst_202 = arith.constant dense<0.000000e+00> : vector<2x128xf32>
    %301 = tpu.matmul %299, %300, %cst_202 {dimension_numbers = #tpu.dot_dimension_numbers<[1], [0], [0], [1], [0, 0, 1, 1], [], []>} : vector<2x512xf32>, vector<512x128xf32>, vector<2x128xf32> -> vector<2x128xf32>
    %c0_203 = arith.constant 0 : index
    %c0_204 = arith.constant 0 : index
    %302 = vector.load %arg5[%c0_203, %c0_204] : memref<1x128xf32, #tpu.memory_space<vmem>>, vector<1x128xf32>
    %303 = vector.broadcast %302 : vector<1x128xf32> to vector<2x128xf32>
    %304 = arith.addf %301, %303 : vector<2x128xf32>
    %c0_205 = arith.constant 0 : index
    %c0_206 = arith.constant 0 : index
    %305 = vector.load %arg6[%c0_205, %c0_206] : memref<2x128xf32, #tpu.memory_space<vmem>>, vector<2x128xf32>
    tpu.vector_store %arg6[%c0_205, %c0_206], %304 {strides = array<i32>} : memref<2x128xf32, #tpu.memory_space<vmem>>, vector<2x128xf32>,
    return
  }
  func.func @transform_0(%arg0: i32) -> (i32, i32, i32) {
    %c0_i32 = arith.constant 0 : i32
    %c0_i32_0 = arith.constant 0 : i32
    %c0_i32_1 = arith.constant 0 : i32
    return %arg0, %c0_i32, %c0_i32_0 : i32, i32, i32
  }
  func.func @transform_1(%arg0: i32) -> (i32, i32) {
    %c0_i32 = arith.constant 0 : i32
    %c0_i32_0 = arith.constant 0 : i32
    %c0_i32_1 = arith.constant 0 : i32
    return %c0_i32, %c0_i32_0 : i32, i32
  }
  func.func @transform_2(%arg0: i32) -> (i32, i32) {
    %c0_i32 = arith.constant 0 : i32
    %c0_i32_0 = arith.constant 0 : i32
    %c0_i32_1 = arith.constant 0 : i32
    return %c0_i32, %c0_i32_0 : i32, i32
  }
  func.func @transform_3(%arg0: i32) -> (i32, i32) {
    %c0_i32 = arith.constant 0 : i32
    %c0_i32_0 = arith.constant 0 : i32
    %c0_i32_1 = arith.constant 0 : i32
    return %c0_i32, %c0_i32_0 : i32, i32
  }
  func.func @transform_4(%arg0: i32) -> (i32, i32) {
    %c0_i32 = arith.constant 0 : i32
    %c0_i32_0 = arith.constant 0 : i32
    %c0_i32_1 = arith.constant 0 : i32
    return %c0_i32, %c0_i32_0 : i32, i32
  }
  func.func @transform_5(%arg0: i32) -> (i32, i32) {
    %c0_i32 = arith.constant 0 : i32
    %c0_i32_0 = arith.constant 0 : i32
    return %arg0, %c0_i32 : i32, i32
  }
}

</mosaic_0001>

<bundles_post_ra>
// kernel: conv_dqn_forward.2
= control target key start
LH: loop header
LB: loop body
LE: loop exit
PB: predicated region body
PF: predicated region fallthrough
CT: control target
= control target key end

     0   :  { %s5076_s24 = smov 0   ;;  %s7013_s0 = inlined_call_operand.vmem [shape: f32[2,136,256], index: 0, kind: input, shape index: {}]   ;;  %s7014_s1 = inlined_call_operand.vmem [shape: f32[1024,128], index: 1, kind: input, shape index: {}]   ;;  %s7015_s2 = inlined_call_operand.vmem [shape: f32[1,128], index: 2, kind: input, shape index: {}]   ;;  %s7016_s3 = inlined_call_operand.vmem [shape: f32[512,128], index: 3, kind: input, shape index: {}]   ;;  %s7017_s4 = inlined_call_operand.vmem [shape: f32[1,128], index: 4, kind: input, shape index: {}]   ;;  %s7018_s5 = inlined_call_operand.vmem [shape: f32[1152,128], index: 5, kind: input, shape index: {}]   ;;  %s7019_s6 = inlined_call_operand.vmem [shape: f32[1,128], index: 6, kind: input, shape index: {}]   ;;  %s7020_s7 = inlined_call_operand.vmem [shape: f32[2,80,128], index: 7, kind: output, shape index: {}]  }
   0x1 LB: > { %s3605_s25 = sadd.s32 4294967295, %s5032_s24   ;;  %p3609_p0 = scmp.ge.s32.totalorder %s5032_s24, 1  ;;  %s5032_s24 = sphi %s5076_s24, %s17_s24  }
   0x2   : > { %p237_p1 = scmp.lt.s32.totalorder %s5032_s24, 3 }
   0x4   : > { %p238_p2 = pnand %p3609_p0, %p237_p1 }
   0x6   : > { %241 = sbr.rel (%p238_p2) target bundleno = 966 (0x3c6), region = 48 }
   0xb   : > { %v376_v0 = vld [vmem:[%s7014_s1 + $0x1f8] sm:$0xff]  ;;  %v375_v4 = vld [vmem:[%s7014_s1 + $0x1f0] sm:$0xff]  ;;  %v374_v8 = vld [vmem:[%s7014_s1 + $0x1e8] sm:$0xff]  ;;  %p5146_p3 = scmp.lt.s32.totalorder %s3605_s25, 1  ;;  %vm409_vm0 = vcmask 1046528   ;;  %vm878_vm1 = vcmask 1044480  }
   0xc   : > { %v340_v1 = vld [vmem:[%s7014_s1 + $0xf8] sm:$0xff]  ;;  %3617 = vmatprep.subr.mxu0 %v376_v0  ;;  %v339_v5 = vld [vmem:[%s7014_s1 + $0xf0] sm:$0xff]  ;;  %v338_v9 = vld [vmem:[%s7014_s1 + $0xe8] sm:$0xff]  ;;  %vm1166_vm2 = vcmask 1043456   ;;  %vm5035_vm3 = vmmov 0  }
   0xd   : > { %v360_v2 = vld [vmem:[%s7014_s1 + $0x178] sm:$0xff]  ;;  %3694 = vmatprep.subr.mxu1 %v340_v1  ;;  %v359_v6 = vld [vmem:[%s7014_s1 + $0x170] sm:$0xff]  ;;  %v358_v10 = vld [vmem:[%s7014_s1 + $0x168] sm:$0xff]  ;;  %s7082_s25 = smov (!%p5146_p3, %s3605_s25), 1 }
   0xe   : > { %v324_v3 = vld [vmem:[%s7014_s1 + $0x78] sm:$0xff]  ;;  %3618 = vmatpush3.msra.mxu0 %v360_v2  ;;  %v323_v7 = vld [vmem:[%s7014_s1 + $0x70] sm:$0xff]  ;;  %v322_v11 = vld [vmem:[%s7014_s1 + $0x68] sm:$0xff]  ;;  %s5014_s13 = smul.u32 272, %s7082_s25 }
   0xf   : > { %3695 = vmatpush3.msra.mxu1 %v324_v3  ;;  %3619 = vmatprep.subr.mxu0 %v375_v4  ;;  %v373_v12 = vld [vmem:[%s7014_s1 + $0x1e0] sm:$0xff]  ;;  %v372_v16 = vld [vmem:[%s7014_s1 + $0x1d8] sm:$0xff]  ;;  %v371_v20 = vld [vmem:[%s7014_s1 + $0x1d0] sm:$0xff]  ;;  %s5015_s21 = smul.u32 80, %s7082_s25 }
  0x10   : > { %3696 = vmatprep.subr.mxu1 %v339_v5  ;;  %3620 = vmatpush3.msra.mxu0 %v359_v6  ;;  %v337_v13 = vld [vmem:[%s7014_s1 + $0xe0] sm:$0xff]  ;;  %v336_v17 = vld [vmem:[%s7014_s1 + $0xd8] sm:$0xff]  ;;  %v335_v21 = vld [vmem:[%s7014_s1 + $0xd0] sm:$0xff]  ;;  %s5232_s11 = scalar_lea.vmem %s7013_s0, %s5014_s13 }
  0x11   : > { %3697 = vmatpush3.msra.mxu1 %v323_v7  ;;  %3621 = vmatprep.subr.mxu0 %v374_v8  ;;  %v357_v14 = vld [vmem:[%s7014_s1 + $0x160] sm:$0xff]  ;;  %v356_v18 = vld [vmem:[%s7014_s1 + $0x158] sm:$0xff]  ;;  %v355_v22 = vld [vmem:[%s7014_s1 + $0x150] sm:$0xff]  ;;  %s6982_s22 = scalar_lea.vmem %s7020_s7, %s5015_s21 }
  0x12   : > { %3698 = vmatprep.subr.mxu1 %v338_v9  ;;  %v321_v15 = vld [vmem:[%s7014_s1 + $0x60] sm:$0xff]  ;;  %3622 = vmatpush3.msra.mxu0 %v358_v10  ;;  %v320_v19 = vld [vmem:[%s7014_s1 + $0x58] sm:$0xff]  ;;  %v319_v23 = vld [vmem:[%s7014_s1 + $0x50] sm:$0xff] }
  0x13   : > { %3699 = vmatpush3.msra.mxu1 %v322_v11  ;;  %3623 = vmatprep.subr.mxu0 %v373_v12  ;;  %v370_v24 = vld [vmem:[%s7014_s1 + $0x1c8] sm:$0xff]  ;;  %v369_v28 = vld [vmem:[%s7014_s1 + $0x1c0] sm:$0xff]  ;;  %v368_v32 = vld [vmem:[%s7014_s1 + $0x1b8] sm:$0xff] }
  0x14   : > { %3700 = vmatprep.subr.mxu1 %v337_v13  ;;  %3624 = vmatpush3.msra.mxu0 %v357_v14  ;;  %v334_v25 = vld [vmem:[%s7014_s1 + $0xc8] sm:$0xff]  ;;  %v333_v29 = vld [vmem:[%s7014_s1 + $0xc0] sm:$0xff]  ;;  %v332_v33 = vld [vmem:[%s7014_s1 + $0xb8] sm:$0xff] }
  0x15   : > { %3701 = vmatpush3.msra.mxu1 %v321_v15  ;;  %3625 = vmatprep.subr.mxu0 %v372_v16  ;;  %v354_v26 = vld [vmem:[%s7014_s1 + $0x148] sm:$0xff]  ;;  %v353_v30 = vld [vmem:[%s7014_s1 + $0x140] sm:$0xff]  ;;  %v352_v34 = vld [vmem:[%s7014_s1 + $0x138] sm:$0xff] }
  0x16   : > { %3702 = vmatprep.subr.mxu1 %v336_v17  ;;  %3626 = vmatpush3.msra.mxu0 %v356_v18  ;;  %v318_v27 = vld [vmem:[%s7014_s1 + $0x48] sm:$0xff]  ;;  %v317_v31 = vld [vmem:[%s7014_s1 + $0x40] sm:$0xff]  ;;  %v316_v35 = vld [vmem:[%s7014_s1 + $0x38] sm:$0xff] }
  0x17   : > { %3703 = vmatpush3.msra.mxu1 %v320_v19  ;;  %3627 = vmatprep.subr.mxu0 %v371_v20  ;;  %v367_v36 = vld [vmem:[%s7014_s1 + $0x1b0] sm:$0xff]  ;;  %v366_v40 = vld [vmem:[%s7014_s1 + $0x1a8] sm:$0xff]  ;;  %v365_v44 = vld [vmem:[%s7014_s1 + $0x1a0] sm:$0xff] }
  0x18   : > { %3704 = vmatprep.subr.mxu1 %v335_v21  ;;  %3628 = vmatpush3.msra.mxu0 %v355_v22  ;;  %v331_v37 = vld [vmem:[%s7014_s1 + $0xb0] sm:$0xff]  ;;  %v330_v41 = vld [vmem:[%s7014_s1 + $0xa8] sm:$0xff]  ;;  %v329_v45 = vld [vmem:[%s7014_s1 + $0xa0] sm:$0xff] }
  0x19   : > { %3705 = vmatpush3.msra.mxu1 %v319_v23  ;;  %3629 = vmatprep.subr.mxu0 %v370_v24  ;;  %v351_v38 = vld [vmem:[%s7014_s1 + $0x130] sm:$0xff]  ;;  %v350_v42 = vld [vmem:[%s7014_s1 + $0x128] sm:$0xff]  ;;  %v349_v46 = vld [vmem:[%s7014_s1 + $0x120] sm:$0xff] }
  0x1a   : > { %3706 = vmatprep.subr.mxu1 %v334_v25  ;;  %3630 = vmatpush3.msra.mxu0 %v354_v26  ;;  %v315_v39 = vld [vmem:[%s7014_s1 + $0x30] sm:$0xff]  ;;  %v314_v43 = vld [vmem:[%s7014_s1 + $0x28] sm:$0xff]  ;;  %v313_v47 = vld [vmem:[%s7014_s1 + $0x20] sm:$0xff] }
  0x1b   : > { %3707 = vmatpush3.msra.mxu1 %v318_v27  ;;  %3631 = vmatprep.subr.mxu0 %v369_v28  ;;  %v364_v48 = vld [vmem:[%s7014_s1 + $0x198] sm:$0xff]  ;;  %v342_v51 = vld [vmem:[%s5232_s11 + $0x8] sm:$0xfe]  ;;  %v363_v54 = vld [vmem:[%s7014_s1 + $0x190] sm:$0xff] }
  0x1c   : > { %3708 = vmatprep.subr.mxu1 %v333_v29  ;;  %3632 = vmatpush3.msra.mxu0 %v353_v30  ;;  %v328_v49 = vld [vmem:[%s7014_s1 + $0x98] sm:$0xff]  ;;  %v327_v55 = vld [vmem:[%s7014_s1 + $0x90] sm:$0xff]  ;;  %v341_v57 = vld [vmem:[%s5232_s11] sm:$0xfe]  ;;  %v413_v60 = vrot.slane %v342_v51, 1 }
  0x1d   : > { %3709 = vmatpush3.msra.mxu1 %v317_v31  ;;  %3633 = vmatprep.subr.mxu0 %v368_v32  ;;  %v5253_v50 = vld [vmem:[%s5232_s11 + $0x18] sm:$0xff]  ;;  %v5269_v56 = vld [vmem:[%s5232_s11 + $0x10] sm:$0xff]  ;;  %v362_v62 = vld [vmem:[%s7014_s1 + $0x188] sm:$0xff]  ;;  %v410_v3 = vrot.slane %v341_v57, 1 }
  0x1e   : > { %3710 = vmatprep.subr.mxu1 %v332_v33  ;;  %3634 = vmatpush3.msra.mxu0 %v352_v34  ;;  %v348_v52 = vld [vmem:[%s7014_s1 + $0x118] sm:$0xff]  ;;  %v347_v58 = vld [vmem:[%s7014_s1 + $0x110] sm:$0xff]  ;;  %v414_v61 = vrot.slane %v5253_v50, 1  ;;  %v326_v63 = vld [vmem:[%s7014_s1 + $0x88] sm:$0xff]  ;;  %v411_v4 = vrot.slane %v5269_v56, 1 }
  0x1f   : > { %3711 = vmatpush3.msra.mxu1 %v316_v35  ;;  %3635 = vmatprep.subr.mxu0 %v367_v36  ;;  %v312_v53 = vld [vmem:[%s7014_s1 + $0x18] sm:$0xff]  ;;  %v311_v59 = vld [vmem:[%s7014_s1 + $0x10] sm:$0xff]  ;;  %v5286_v0 = vld [vmem:[%s5232_s11 + $0x28] sm:$0xff] }
  0x20   : > { %3712 = vmatprep.subr.mxu1 %v331_v37  ;;  %3636 = vmatpush3.msra.mxu0 %v351_v38  ;;  %v346_v1 = vld [vmem:[%s7014_s1 + $0x108] sm:$0xff]  ;;  %v361_v5 = vld [vmem:[%s7014_s1 + $0x180] sm:$0xff]  ;;  %v415_v9 = vsel %vm409_vm0, %v413_v60, %v414_v61  ;;  %v418_v10 = vrot.slane %v5286_v0, 1  ;;  %v5314_v13 = vld [vmem:[%s5232_s11 + $0x38] sm:$0xff]  ;;  %v412_v14 = vsel %vm409_vm0, %v410_v3, %v411_v4 }
  0x21   : > { %3713 = vmatpush3.msra.mxu1 %v315_v39  ;;  %3637 = vmatprep.subr.mxu0 %v366_v40  ;;  %v310_v2 = vld [vmem:[%s7014_s1 + $0x8] sm:$0xff]  ;;  %v325_v6 = vld [vmem:[%s7014_s1 + $0x80] sm:$0xff]  ;;  %v845_v17 = vld [vmem:[%s7014_s1 + $0x2f8] sm:$0xff]  ;;  %v422_v22 = vrot.slane %v5314_v13, 1 }
  0x22   : > { %3714 = vmatprep.subr.mxu1 %v330_v41  ;;  %3638 = vmatpush3.msra.mxu0 %v350_v42  ;;  %v5302_v7 = vld [vmem:[%s5232_s11 + $0x20] sm:$0xff]  ;;  %v280_v12 = vld [vmem:[%s5232_s11 + $0x8] sm:$0xff]  ;;  %v1161_v18 = vld [vmem:[%s7014_s1 + $0x3f8] sm:$0xff]  ;;  %v419_v21 = vsel %vm409_vm0, %v414_v61, %v418_v10 }
  0x23   : > { %3715 = vmatpush3.msra.mxu1 %v314_v43  ;;  %3639 = vmatprep.subr.mxu0 %v365_v44  ;;  %v345_v8 = vld [vmem:[%s7014_s1 + $0x100] sm:$0xff]  ;;  %v416_v16 = vrot.slane %v5302_v7, 1  ;;  %v5326_v19 = vld [vmem:[%s5232_s11 + $0x30] sm:$0xff]  ;;  %v829_v20 = vld [vmem:[%s7014_s1 + $0x278] sm:$0xff]  ;;  %v423_v31 = vsel %vm409_vm0, %v418_v10, %v422_v22 }
  0x24   : > { %3716 = vmatprep.subr.mxu1 %v329_v45  ;;  %3640 = vmatpush3.msra.mxu0 %v349_v46  ;;  %v309_v11 = vld [vmem:[%s7014_s1] sm:$0xff]  ;;  %v1145_v23 = vld [vmem:[%s7014_s1 + $0x378] sm:$0xff]  ;;  %v5337_v24 = vld [vmem:[%s5232_s11 + $0x48] sm:$0xff]  ;;  %v420_v26 = vrot.slane %v5326_v19, 1 }
  0x25   : > { %3717 = vmatpush3.msra.mxu1 %v313_v47  ;;  %3641 = vmatprep.subr.mxu0 %v364_v48  ;;  %v279_v15 = vld [vmem:[%s5232_s11] sm:$0xff]  ;;  %v417_v25 = vsel %vm409_vm0, %v411_v4, %v416_v16  ;;  %v844_v27 = vld [vmem:[%s7014_s1 + $0x2f0] sm:$0xff]  ;;  %v426_v32 = vrot.slane %v5337_v24, 1  ;;  %v5361_v34 = vld [vmem:[%s5232_s11 + $0x58] sm:$0xff] }
  0x26   : > { %3718 = vmatprep.subr.mxu1 %v328_v49  ;;  %3642 = vmatpush3.msra.mxu0 %v348_v52  ;;  %v1160_v28 = vld [vmem:[%s7014_s1 + $0x3f0] sm:$0xff]  ;;  %v5348_v29 = vld [vmem:[%s5232_s11 + $0x40] sm:$0xff]  ;;  %v421_v35 = vsel %vm409_vm0, %v416_v16, %v420_v26  ;;  %v843_v37 = vld [vmem:[%s7014_s1 + $0x2e8] sm:$0xff]  ;;  %v430_v42 = vrot.slane %v5361_v34, 1 }
  0x27   : > { %3719 = vmatpush3.msra.mxu1 %v312_v53  ;;  %3643 = vmatprep.subr.mxu0 %v363_v54  ;;  %v828_v30 = vld [vmem:[%s7014_s1 + $0x270] sm:$0xff]  ;;  %v424_v36 = vrot.slane %v5348_v29, 1  ;;  %v1159_v38 = vld [vmem:[%s7014_s1 + $0x3e8] sm:$0xff]  ;;  %v427_v41 = vsel %vm409_vm0, %v422_v22, %v426_v32  ;;  %v842_v47 = vld [vmem:[%s7014_s1 + $0x2e0] sm:$0xff] }
  0x28   : > { %3720 = vmatprep.subr.mxu1 %v327_v55  ;;  %3644 = vmatpush3.msra.mxu0 %v347_v58  ;;  %v1144_v33 = vld [vmem:[%s7014_s1 + $0x370] sm:$0xff]  ;;  %v827_v40 = vld [vmem:[%s7014_s1 + $0x268] sm:$0xff]  ;;  %v1158_v48 = vld [vmem:[%s7014_s1 + $0x3e0] sm:$0xff]  ;;  %v431_v51 = vsel %vm409_vm0, %v426_v32, %v430_v42 }
  0x29   : > { %3721 = vmatpush3.msra.mxu1 %v311_v59  ;;  %3645 = vmatprep.subr.mxu0 %v362_v62  ;;  %v5372_v39 = vld [vmem:[%s5232_s11 + $0x50] sm:$0xff]  ;;  %v1143_v43 = vld [vmem:[%s7014_s1 + $0x368] sm:$0xff]  ;;  %v425_v45 = vsel %vm409_vm0, %v420_v26, %v424_v36  ;;  %v5396_v49 = vld [vmem:[%s5232_s11 + $0x60] sm:$0xff] }
  0x2a   : > { %3722 = vmatprep.subr.mxu1 %v326_v63  ;;  %3646 = vmatpush3.msra.mxu0 %v346_v1  ;;  %v5385_v44 = vld [vmem:[%s5232_s11 + $0x68] sm:$0xff]  ;;  %v428_v46 = vrot.slane %v5372_v39, 1  ;;  %v841_v53 = vld [vmem:[%s7014_s1 + $0x2d8] sm:$0xff]  ;;  %v1142_v55 = vld [vmem:[%s7014_s1 + $0x360] sm:$0xff]  ;;  %v432_v57 = vrot.slane %v5396_v49, 1 }
  0x2b   : > { %3723 = vmatpush3.msra.mxu1 %v310_v2  ;;  %3647 = vmatprep.subr.mxu0 %v361_v5  ;;  %v434_v52 = vrot.slane %v5385_v44, 1  ;;  %v5409_v54 = vld [vmem:[%s5232_s11 + $0x78] sm:$0xff]  ;;  %v5420_v59 = vld [vmem:[%s5232_s11 + $0x70] sm:$0xff]  ;;  %v5432_v1 = vld [vmem:[%s5232_s11 + $0x88] sm:$0xff] }
  0x2c   : > { %3724 = vmatprep.subr.mxu1 %v325_v6  ;;  %3648 = vmatpush3.msra.mxu0 %v345_v8  ;;  %v825_v58 = vld [vmem:[%s7014_s1 + $0x258] sm:$0xff]  ;;  %v438_v62 = vrot.slane %v5409_v54, 1  ;;  %v840_v2 = vld [vmem:[%s7014_s1 + $0x2d0] sm:$0xff]  ;;  %v433_v3 = vsel %vm409_vm0, %v428_v46, %v432_v57  ;;  %v436_v4 = vrot.slane %v5420_v59, 1  ;;  %v5444_v6 = vld [vmem:[%s5232_s11 + $0x80] sm:$0xff]  ;;  %v442_v10 = vrot.slane %v5432_v1, 1 }
  0x2d   : > { %566 = vmatprep.mubr.f32.mxu0 %v415_v9  ;;  %3725 = vmatpush3.msra.mxu1 %v309_v11  ;;  %v1157_v60 = vld [vmem:[%s7014_s1 + $0x3d8] sm:$0xff]  ;;  %v435_v61 = vsel %vm409_vm0, %v430_v42, %v434_v52  ;;  %v824_v5 = vld [vmem:[%s7014_s1 + $0x250] sm:$0xff]  ;;  %v1139_v22 = vld [vmem:[%s7014_s1 + $0x348] sm:$0xff] }
  0x2e   : > { %706 = vmatprep.mubr.f32.mxu1 %v280_v12  ;;  %567 = vmatmul.mubr.f32.vlgmr.msra.gmra.mxu0 %v412_v14  ;;  %v1141_v63 = vld [vmem:[%s7014_s1 + $0x358] sm:$0xff]  ;;  %v1156_v8 = vld [vmem:[%s7014_s1 + $0x3d0] sm:$0xff]  ;;  %v439_v9 = vsel %vm409_vm0, %v434_v52, %v438_v62  ;;  %v839_v12 = vld [vmem:[%s7014_s1 + $0x2c8] sm:$0xff]  ;;  %v437_v14 = vsel %vm409_vm0, %v432_v57, %v436_v4 }
  0x2f   : > { %707 = vmatmul.mubr.f32.vlgmr.msra.gmra.mxu1 %v279_v15  ;;  %3771 = vmatprep.subr.mxu0 %v845_v17  ;;  %v1140_v11 = vld [vmem:[%s7014_s1 + $0x350] sm:$0xff]  ;;  %v440_v15 = vrot.slane %v5444_v6, 1  ;;  %v5462_v16 = vld [vmem:[%s5232_s11 + $0x98] sm:$0xff]  ;;  %v823_v17 = vld [vmem:[%s7014_s1 + $0x248] sm:$0xff] }
  0x30   : > { %3848 = vmatprep.subr.mxu1 %v1161_v18  ;;  %3772 = vmatpush3.msra.mxu0 %v829_v20  ;;  %v1155_v18 = vld [vmem:[%s7014_s1 + $0x3c8] sm:$0xff]  ;;  %v443_v20 = vsel %vm409_vm0, %v438_v62, %v442_v10  ;;  %v837_v32 = vld [vmem:[%s7014_s1 + $0x2b8] sm:$0xff] }
  0x31   : > { %571 = vmatprep.mubr.f32.mxu0 %v419_v21  ;;  %711 = vmatprep.mubr.f32.mxu1 %v5253_v50  ;;  %v826_v50 = vld [vmem:[%s7014_s1 + $0x260] sm:$0xff]  ;;  %v5473_v21 = vld [vmem:[%s5232_s11 + $0x90] sm:$0xff]  ;;  %v441_v26 = vsel %vm409_vm0, %v436_v4, %v440_v15  ;;  %v5535_v52 = vld [vmem:[%s5232_s11 + $0xc8] sm:$0xff] }
  0x32   : > { %3849 = vmatpush3.msra.mxu1 %v1145_v23  ;;  %572 = vmatmul.mubr.f32.gmra.mxu0 %v417_v25  ;;  %v446_v23 = vrot.slane %v5462_v16, 1  ;;  %v838_v25 = vld [vmem:[%s7014_s1 + $0x2c0] sm:$0xff]  ;;  %v835_v57 = vld [vmem:[%s7014_s1 + $0x2a8] sm:$0xff]  ;;  %v458_v62 = vrot.slane %v5535_v52, 1  ;;  %v5561_v4 = vld [vmem:[%s5232_s11 + $0xd8] sm:$0xff] }
  0x33   : > { %712 = vmatmul.mubr.f32.gmra.mxu1 %v5269_v56  ;;  %3773 = vmatprep.subr.mxu0 %v844_v27  ;;  %v429_v56 = vsel %vm409_vm0, %v424_v36, %v428_v46  ;;  %v5485_v27 = vld [vmem:[%s5232_s11 + $0xa8] sm:$0xff]  ;;  %v5522_v46 = vld [vmem:[%s5232_s11 + $0xb0] sm:$0xff] }
  0x34   : > { %3850 = vmatprep.subr.mxu1 %v1160_v28  ;;  %3774 = vmatpush3.msra.mxu0 %v828_v30  ;;  %v822_v28 = vld [vmem:[%s7014_s1 + $0x240] sm:$0xff]  ;;  %v444_v30 = vrot.slane %v5473_v21, 1  ;;  %v447_v36 = vsel %vm409_vm0, %v442_v10, %v446_v23  ;;  %v1135_v10 = vld [vmem:[%s7014_s1 + $0x328] sm:$0xff] }
  0x35   : > { %576 = vmatprep.mubr.f32.mxu0 %v423_v31  ;;  %716 = vmatprep.mubr.f32.mxu1 %v5286_v0  ;;  %v1154_v31 = vld [vmem:[%s7014_s1 + $0x3c0] sm:$0xff] }
  0x36   : > { %3851 = vmatpush3.msra.mxu1 %v1144_v33  ;;  %577 = vmatmul.mubr.f32.gmra.mxu0 %v421_v35  ;;  %v5499_v33 = vld [vmem:[%s5232_s11 + $0xa0] sm:$0xff] }
  0x37   : > { %717 = vmatmul.mubr.f32.gmra.mxu1 %v5302_v7  ;;  %3775 = vmatprep.subr.mxu0 %v843_v37  ;;  %v1138_v35 = vld [vmem:[%s7014_s1 + $0x340] sm:$0xff]  ;;  %v450_v37 = vrot.slane %v5485_v27, 1  ;;  %v448_v42 = vrot.slane %v5499_v33, 1 }
  0x38   : > { %3852 = vmatprep.subr.mxu1 %v1159_v38  ;;  %3776 = vmatpush3.msra.mxu0 %v827_v40  ;;  %v821_v38 = vld [vmem:[%s7014_s1 + $0x238] sm:$0xff] }
  0x39   : > { %581 = vmatprep.mubr.f32.mxu0 %v427_v41  ;;  %721 = vmatprep.mubr.f32.mxu1 %v5314_v13  ;;  %v5511_v40 = vld [vmem:[%s5232_s11 + $0xb8] sm:$0xff]  ;;  %v445_v41 = vsel %vm409_vm0, %v440_v15, %v444_v30 }
  0x3a   : > { %3853 = vmatpush3.msra.mxu1 %v1143_v43  ;;  %582 = vmatmul.mubr.f32.gmra.mxu0 %v425_v45  ;;  %v1153_v43 = vld [vmem:[%s7014_s1 + $0x3b8] sm:$0xff]  ;;  %v836_v45 = vld [vmem:[%s7014_s1 + $0x2b0] sm:$0xff] }
  0x3b   : > { %722 = vmatmul.mubr.f32.gmra.mxu1 %v5326_v19  ;;  %3777 = vmatprep.subr.mxu0 %v842_v47  ;;  %v1137_v47 = vld [vmem:[%s7014_s1 + $0x338] sm:$0xff] }
  0x3c   : > { %3854 = vmatprep.subr.mxu1 %v1158_v48  ;;  %3778 = vmatpush3.msra.mxu0 %v826_v50  ;;  %v451_v48 = vsel %vm409_vm0, %v446_v23, %v450_v37  ;;  %v454_v50 = vrot.slane %v5511_v40, 1  ;;  %v5594_v23 = vld [vmem:[%s5232_s11 + $0xe0] sm:$0xff] }
  0x3d   : > { %586 = vmatprep.mubr.f32.mxu0 %v431_v51  ;;  %726 = vmatprep.mubr.f32.mxu1 %v5337_v24  ;;  %v820_v51 = vld [vmem:[%s7014_s1 + $0x230] sm:$0xff] }
  0x3e   : > { %3779 = vmatprep.subr.mxu0 %v841_v53  ;;  %3855 = vmatpush3.msra.mxu1 %v1142_v55  ;;  %v449_v53 = vsel %vm409_vm0, %v444_v30, %v448_v42  ;;  %v452_v55 = vrot.slane %v5522_v46, 1 }
  0x3f   : > { %587 = vmatmul.mubr.f32.gmra.mxu0 %v429_v56  ;;  %727 = vmatmul.mubr.f32.gmra.mxu1 %v5348_v29  ;;  %v1152_v56 = vld [vmem:[%s7014_s1 + $0x3b0] sm:$0xff] }
  0x40   : > { %3780 = vmatpush3.msra.mxu0 %v825_v58  ;;  %3856 = vmatprep.subr.mxu1 %v1157_v60  ;;  %v5546_v58 = vld [vmem:[%s5232_s11 + $0xc0] sm:$0xff]  ;;  %v1136_v60 = vld [vmem:[%s7014_s1 + $0x330] sm:$0xff] }
  0x41   : > { %591 = vmatprep.mubr.f32.mxu0 %v435_v61  ;;  %3857 = vmatpush3.msra.mxu1 %v1141_v63  ;;  %v455_v61 = vsel %vm409_vm0, %v450_v37, %v454_v50  ;;  %v819_v63 = vld [vmem:[%s7014_s1 + $0x228] sm:$0xff]  ;;  %v832_v37 = vld [vmem:[%s7014_s1 + $0x290] sm:$0xff] }
  0x42   : > { %731 = vmatprep.mubr.f32.mxu1 %v5361_v34  ;;  %3781 = vmatprep.subr.mxu0 %v840_v2  ;;  %v453_v2 = vsel %vm409_vm0, %v448_v42, %v452_v55  ;;  %v816_v42 = vld [vmem:[%s7014_s1 + $0x210] sm:$0xff] }
  0x43   : > { %592 = vmatmul.mubr.f32.gmra.mxu0 %v433_v3  ;;  %732 = vmatmul.mubr.f32.gmra.mxu1 %v5372_v39  ;;  %v456_v3 = vrot.slane %v5546_v58, 1 }
  0x44   : > { %3782 = vmatpush3.msra.mxu0 %v824_v5  ;;  %3858 = vmatprep.subr.mxu1 %v1156_v8  ;;  %v1151_v5 = vld [vmem:[%s7014_s1 + $0x3a8] sm:$0xff]  ;;  %v834_v8 = vld [vmem:[%s7014_s1 + $0x2a0] sm:$0xff] }
  0x45   : > { %596 = vmatprep.mubr.f32.mxu0 %v439_v9  ;;  %3859 = vmatpush3.msra.mxu1 %v1140_v11  ;;  %v5570_v9 = vld [vmem:[%s5232_s11 + $0xd0] sm:$0xff]  ;;  %v459_v11 = vsel %vm409_vm0, %v454_v50, %v458_v62  ;;  %v457_v15 = vsel %vm409_vm0, %v452_v55, %v456_v3 }
  0x46   : > { %736 = vmatprep.mubr.f32.mxu1 %v5385_v44  ;;  %3783 = vmatprep.subr.mxu0 %v839_v12  ;;  %v818_v12 = vld [vmem:[%s7014_s1 + $0x220] sm:$0xff]  ;;  %v782_v55 = vld [vmem:[%s5232_s11 + $0x10] sm:$0xf8] }
  0x47   : > { %597 = vmatmul.mubr.f32.gmra.mxu0 %v437_v14  ;;  %737 = vmatmul.mubr.f32.gmra.mxu1 %v5396_v49  ;;  %v462_v14 = vrot.slane %v5561_v4, 1 }
  0x48   : > { %3784 = vmatpush3.msra.mxu0 %v823_v17  ;;  %3860 = vmatprep.subr.mxu1 %v1155_v18  ;;  %v460_v17 = vrot.slane %v5570_v9, 1  ;;  %v5585_v18 = vld [vmem:[%s5232_s11 + $0xe8] sm:$0xff] }
  0x49   : > { %601 = vmatprep.mubr.f32.mxu0 %v443_v20  ;;  %3861 = vmatpush3.msra.mxu1 %v1139_v22  ;;  %v1150_v20 = vld [vmem:[%s7014_s1 + $0x3a0] sm:$0xff]  ;;  %v833_v22 = vld [vmem:[%s7014_s1 + $0x298] sm:$0xff]  ;;  %v466_v30 = vrot.slane %v5585_v18, 1 }
  0x4a   : > { %741 = vmatprep.mubr.f32.mxu1 %v5409_v54  ;;  %3785 = vmatprep.subr.mxu0 %v838_v25  ;;  %v1134_v25 = vld [vmem:[%s7014_s1 + $0x320] sm:$0xff] }
  0x4b   : > { %602 = vmatmul.mubr.f32.gmra.mxu0 %v441_v26  ;;  %742 = vmatmul.mubr.f32.gmra.mxu1 %v5420_v59  ;;  %v817_v26 = vld [vmem:[%s7014_s1 + $0x218] sm:$0xff] }
  0x4c   : > { %3786 = vmatpush3.msra.mxu0 %v822_v28  ;;  %3862 = vmatprep.subr.mxu1 %v1154_v31  ;;  %v463_v28 = vsel %vm409_vm0, %v458_v62, %v462_v14  ;;  %v1149_v31 = vld [vmem:[%s7014_s1 + $0x398] sm:$0xff] }
  0x4d   : > { %3787 = vmatprep.subr.mxu0 %v837_v32  ;;  %3863 = vmatpush3.msra.mxu1 %v1138_v35  ;;  %v461_v32 = vsel %vm409_vm0, %v456_v3, %v460_v17  ;;  %v464_v35 = vrot.slane %v5594_v23, 1  ;;  %v1147_v3 = vld [vmem:[%s7014_s1 + $0x388] sm:$0xff] }
  0x4e   : > { %606 = vmatprep.mubr.f32.mxu0 %v447_v36  ;;  %746 = vmatprep.mubr.f32.mxu1 %v5432_v1  ;;  %v344_v36 = vld [vmem:[%s5232_s11 + $0xf8] sm:$0x1] }
  0x4f   : > { %3788 = vmatpush3.msra.mxu0 %v821_v38  ;;  %747 = vmatmul.mubr.f32.gmra.mxu1 %v5444_v6  ;;  %v343_v38 = vld [vmem:[%s5232_s11 + $0xf0] sm:$0x1] }
  0x50   : > { %607 = vmatmul.mubr.f32.gmra.mxu0 %v445_v41  ;;  %3864 = vmatprep.subr.mxu1 %v1153_v43  ;;  %v1133_v41 = vld [vmem:[%s7014_s1 + $0x318] sm:$0xff]  ;;  %v467_v43 = vsel %vm409_vm0, %v462_v14, %v466_v30  ;;  %v468_v50 = vrot.slane %v343_v38, 1  ;;  %v1171_v14 = vrot.slane %v5286_v0, 4 }
  0x51   : > { %3789 = vmatprep.subr.mxu0 %v836_v45  ;;  %3865 = vmatpush3.msra.mxu1 %v1137_v47  ;;  %v470_v45 = vrot.slane %v344_v36, 1  ;;  %v1148_v47 = vld [vmem:[%s7014_s1 + $0x390] sm:$0xff]  ;;  %v891_v36 = vrot.slane %v5337_v24, 3 }
  0x52   : > { %611 = vmatprep.mubr.f32.mxu0 %v451_v48  ;;  %751 = vmatprep.mubr.f32.mxu1 %v5462_v16  ;;  %v465_v48 = vsel %vm409_vm0, %v460_v17, %v464_v35  ;;  %v1131_v17 = vld [vmem:[%s7014_s1 + $0x308] sm:$0xff] }
  0x53   : > { %3790 = vmatpush3.msra.mxu0 %v820_v51  ;;  %752 = vmatmul.mubr.f32.gmra.mxu1 %v5473_v21  ;;  %v783_v51 = vld [vmem:[%s5232_s11 + $0x18] sm:$0xf8] }
  0x54   : > { %612 = vmatmul.mubr.f32.gmra.mxu0 %v449_v53  ;;  %3866 = vmatprep.subr.mxu1 %v1152_v56  ;;  %v831_v53 = vld [vmem:[%s7014_s1 + $0x288] sm:$0xff]  ;;  %v1132_v56 = vld [vmem:[%s7014_s1 + $0x310] sm:$0xff]  ;;  %v882_v62 = vrot.slane %v783_v51, 3 }
  0x55   : > { %3791 = vmatprep.subr.mxu0 %v835_v57  ;;  %3867 = vmatpush3.msra.mxu1 %v1136_v60  ;;  %v815_v57 = vld [vmem:[%s7014_s1 + $0x208] sm:$0xff]  ;;  %v1127_v60 = vld [vmem:[%s5232_s11 + $0x18] sm:$0xf0] }
  0x56   : > { %616 = vmatprep.mubr.f32.mxu0 %v455_v61  ;;  %756 = vmatprep.mubr.f32.mxu1 %v5485_v27  ;;  %v471_v61 = vsel %vm409_vm0, %v466_v30, %v470_v45 }
  0x57   : > { %3792 = vmatpush3.msra.mxu0 %v819_v63  ;;  %757 = vmatmul.mubr.f32.gmra.mxu1 %v5499_v33  ;;  %v883_v63 = vrot.slane %v5286_v0, 3 }
  0x58   : > { %617 = vmatmul.mubr.f32.gmra.mxu0 %v453_v2  ;;  %3868 = vmatprep.subr.mxu1 %v1151_v5  ;;  %v1126_v2 = vld [vmem:[%s5232_s11 + $0x10] sm:$0xf0]  ;;  %v469_v5 = vsel %vm409_vm0, %v464_v35, %v468_v50 }
  0x59   : > { %3793 = vmatprep.subr.mxu0 %v834_v8  ;;  %3869 = vmatpush3.msra.mxu1 %v1135_v10  ;;  %v879_v8 = vrot.slane %v782_v55, 3  ;;  %v880_v10 = vrot.slane %v5302_v7, 3  ;;  %v884_v0 = vsel %vm878_vm1, %v882_v62, %v883_v63  ;;  %v897_v62 = vrot.slane %v5396_v49, 3 }
  0x5a   : > { %621 = vmatprep.mubr.f32.mxu0 %v459_v11  ;;  %761 = vmatprep.mubr.f32.mxu1 %v5511_v40  ;;  %v830_v11 = vld [vmem:[%s7014_s1 + $0x280] sm:$0xff] }
  0x5b   : > { %3794 = vmatpush3.msra.mxu0 %v818_v12  ;;  %762 = vmatmul.mubr.f32.gmra.mxu1 %v5522_v46  ;;  %v1170_v12 = vrot.slane %v1127_v60, 4  ;;  %v881_v30 = vsel %vm878_vm1, %v879_v8, %v880_v10 }
  0x5c   : > { %622 = vmatmul.mubr.f32.gmra.mxu0 %v457_v15  ;;  %3870 = vmatprep.subr.mxu1 %v1150_v20  ;;  %v887_v15 = vrot.slane %v5314_v13, 3  ;;  %v814_v20 = vld [vmem:[%s7014_s1 + $0x200] sm:$0xff] }
  0x5d   : > { %3795 = vmatprep.subr.mxu0 %v833_v22  ;;  %3871 = vmatpush3.msra.mxu1 %v1134_v25  ;;  %v1167_v22 = vrot.slane %v1126_v2, 4  ;;  %v1168_v25 = vrot.slane %v5302_v7, 4  ;;  %v885_v7 = vrot.slane %v5326_v19, 3  ;;  %v903_v2 = vrot.slane %v5409_v54, 3 }
  0x5e   : > { %3796 = vmatpush3.msra.mxu0 %v817_v26  ;;  %626 = vmatprep.mubr.f32.mxu0 %v463_v28  ;;  %v1146_v26 = vld [vmem:[%s7014_s1 + $0x380] sm:$0xff]  ;;  %v1175_v28 = vrot.slane %v5314_v13, 4  ;;  %v888_v35 = vsel %vm878_vm1, %v883_v63, %v887_v15  ;;  %v892_v45 = vsel %vm878_vm1, %v887_v15, %v891_v36 }
  0x5f   : > { %766 = vmatprep.mubr.f32.mxu1 %v5535_v52  ;;  %3872 = vmatprep.subr.mxu1 %v1149_v31  ;;  %v1130_v31 = vld [vmem:[%s7014_s1 + $0x300] sm:$0xff]  ;;  %v1169_v13 = vsel %vm1166_vm2, %v1167_v22, %v1168_v25 }
  0x60   : > { %627 = vmatmul.mubr.f32.gmra.mxu0 %v461_v32  ;;  %767 = vmatmul.mubr.f32.gmra.mxu1 %v5546_v58  ;;  %v1172_v32 = vsel %vm1166_vm2, %v1170_v12, %v1171_v14  ;;  %v1176_v38 = vsel %vm1166_vm2, %v1171_v14, %v1175_v28  ;;  %v907_v12 = vrot.slane %v5432_v1, 3 }
  0x61   : > { %3797 = vmatprep.subr.mxu0 %v832_v37  ;;  %3873 = vmatpush3.msra.mxu1 %v1133_v41  ;;  %v1173_v37 = vrot.slane %v5326_v19, 4  ;;  %v1179_v41 = vrot.slane %v5337_v24, 4  ;;  %v1183_v24 = vrot.slane %v5361_v34, 4 }
  0x62   : > { %3798 = vmatpush3.msra.mxu0 %v816_v42  ;;  %631 = vmatprep.mubr.f32.mxu0 %v467_v43  ;;  %v886_v42 = vsel %vm878_vm1, %v880_v10, %v885_v7  ;;  %v889_v43 = vrot.slane %v5348_v29, 3  ;;  %v901_v10 = vrot.slane %v5420_v59, 3  ;;  %v908_v22 = vsel %vm878_vm1, %v903_v2, %v907_v12 }
  0x63   : > { %771 = vmatprep.mubr.f32.mxu1 %v5561_v4  ;;  %3874 = vmatprep.subr.mxu1 %v1148_v47  ;;  %v895_v47 = vrot.slane %v5361_v34, 3  ;;  %v1174_v19 = vsel %vm1166_vm2, %v1168_v25, %v1173_v37  ;;  %v1180_v50 = vsel %vm1166_vm2, %v1175_v28, %v1179_v41  ;;  %v1184_v60 = vsel %vm1166_vm2, %v1179_v41, %v1183_v24 }
  0x64   : > { %632 = vmatmul.mubr.f32.gmra.mxu0 %v465_v48  ;;  %772 = vmatmul.mubr.f32.gmra.mxu1 %v5570_v9  ;;  %v1177_v48 = vrot.slane %v5348_v29, 4  ;;  %v890_v51 = vsel %vm878_vm1, %v885_v7, %v889_v43  ;;  %v1181_v29 = vrot.slane %v5372_v39, 4  ;;  %v1187_v34 = vrot.slane %v5385_v44, 4 }
  0x65   : > { %3799 = vmatprep.subr.mxu0 %v831_v53  ;;  %3875 = vmatpush3.msra.mxu1 %v1132_v56  ;;  %v893_v53 = vrot.slane %v5372_v39, 3  ;;  %v896_v55 = vsel %vm878_vm1, %v891_v36, %v895_v47  ;;  %v899_v56 = vrot.slane %v5385_v44, 3  ;;  %v1185_v39 = vrot.slane %v5396_v49, 4 }
  0x66   : > { %3800 = vmatpush3.msra.mxu0 %v815_v57  ;;  %636 = vmatprep.mubr.f32.mxu0 %v471_v61  ;;  %v1178_v57 = vsel %vm1166_vm2, %v1173_v37, %v1177_v48  ;;  %v1191_v44 = vrot.slane %v5409_v54, 4  ;;  %v1189_v49 = vrot.slane %v5420_v59, 4  ;;  %v1195_v54 = vrot.slane %v5432_v1, 4 }
  0x67   : > { %776 = vmatprep.mubr.f32.mxu1 %v5585_v18  ;;  %3876 = vmatprep.subr.mxu1 %v1147_v3  ;;  %v894_v61 = vsel %vm878_vm1, %v889_v43, %v893_v53  ;;  %v900_v63 = vsel %vm878_vm1, %v895_v47, %v899_v56  ;;  %v1182_v3 = vsel %vm1166_vm2, %v1177_v48, %v1181_v29  ;;  %v911_v25 = vrot.slane %v5462_v16, 3 }
  0x68   : > { %637 = vmatmul.mubr.f32.gmra.mxu0 %v469_v5  ;;  %777 = vmatmul.mubr.f32.gmra.mxu1 %v5594_v23  ;;  %v1188_v5 = vsel %vm1166_vm2, %v1183_v24, %v1187_v34  ;;  %v898_v8 = vsel %vm878_vm1, %v893_v53, %v897_v62  ;;  %v1186_v14 = vsel %vm1166_vm2, %v1181_v29, %v1185_v39  ;;  %v1193_v59 = vrot.slane %v5444_v6, 4 }
  0x69   : > { %3801 = vmatprep.subr.mxu0 %v830_v11  ;;  %3877 = vmatpush3.msra.mxu1 %v1131_v17  ;;  %v904_v11 = vsel %vm878_vm1, %v899_v56, %v903_v2  ;;  %v1192_v15 = vsel %vm1166_vm2, %v1187_v34, %v1191_v44  ;;  %v902_v17 = vsel %vm878_vm1, %v897_v62, %v901_v10  ;;  %v1199_v1 = vrot.slane %v5462_v16, 4 }
  0x6a   : > { %3802 = vmatpush3.msra.mxu0 %v814_v20  ;;  %1035 = vmatprep.mubr.f32.mxu0 %v884_v0  ;;  %v905_v20 = vrot.slane %v5444_v6, 3  ;;  %v1190_v0 = vsel %vm1166_vm2, %v1185_v39, %v1189_v49  ;;  %v915_v7 = vrot.slane %v5485_v27, 3  ;;  %v1197_v6 = vrot.slane %v5473_v21, 4 }
  0x6b   : > { %3878 = vmatprep.subr.mxu1 %v1146_v26  ;;  %1323 = vmatprep.mubr.f32.mxu1 %v1172_v32  ;;  %v1196_v26 = vsel %vm1166_vm2, %v1191_v44, %v1195_v54  ;;  %v1194_v32 = vsel %vm1166_vm2, %v1189_v49, %v1193_v59  ;;  %v1203_v16 = vrot.slane %v5485_v27, 4  ;;  %v1207_v27 = vrot.slane %v5511_v40, 4  ;;  %v810_v49 = vld [vmem:[%s5232_s11 + $0xf0] sm:$0xff] }
  0x6c   : > { %1036 = vmatmul.mubr.f32.vlgmr.msra.gmra.mxu0 %v881_v30  ;;  %3879 = vmatpush3.msra.mxu1 %v1130_v31  ;;  %v906_v28 = vsel %vm878_vm1, %v901_v10, %v905_v20  ;;  %v909_v30 = vrot.slane %v5473_v21, 3  ;;  %v912_v31 = vsel %vm878_vm1, %v907_v12, %v911_v25  ;;  %v916_v37 = vsel %vm878_vm1, %v911_v25, %v915_v7  ;;  %v1492_v12 = vld [vmem:[%s7016_s3 + $0x68] sm:$0xff] }
  0x6d   : > { %1040 = vmatprep.mubr.f32.mxu0 %v888_v35  ;;  %1324 = vmatmul.mubr.f32.vlgmr.msra.gmra.mxu1 %v1169_v13  ;;  %v1200_v35 = vsel %vm1166_vm2, %v1195_v54, %v1199_v1  ;;  %v913_v13 = vrot.slane %v5499_v33, 3  ;;  %v1198_v41 = vsel %vm1166_vm2, %v1193_v59, %v1197_v6  ;;  %v1201_v21 = vrot.slane %v5499_v33, 4  ;;  %v1129_v59 = vld [vmem:[%s5232_s11 + $0x108] sm:$0xf] }
  0x6e   : > { %1328 = vmatprep.mubr.f32.mxu1 %v1176_v38  ;;  %v910_v36 = vsel %vm878_vm1, %v905_v20, %v909_v30  ;;  %v919_v38 = vrot.slane %v5511_v40, 3  ;;  %v7021_v48 = vmov 0.0   ;;  %v1208_v40 = vsel %vm1166_vm2, %v1203_v16, %v1207_v27 }
  0x6f   : > { %v914_v43 = vsel %vm878_vm1, %v909_v30, %v913_v13  ;;  %4275 = vmatprep.subr.mxu0 %v7021_v48  ;;  %v1202_v33 = vsel %vm1166_vm2, %v1197_v6, %v1201_v21  ;;  %4346 = vmatprep.subr.mxu1 %v7021_v48  ;;  %v1211_v24 = vrot.slane %v5535_v52, 4  ;;  %v921_v53 = vrot.slane %v5546_v58, 3  ;;  %v812_v30 = vld [vmem:[%s5232_s11 + $0x100] sm:$0x7] }
  0x70   : > { %1041 = vmatmul.mubr.f32.gmra.mxu0 %v886_v42  ;;  %v1204_v42 = vsel %vm1166_vm2, %v1199_v1, %v1203_v16  ;;  %v920_v47 = vsel %vm878_vm1, %v915_v7, %v919_v38  ;;  %v1209_v29 = vrot.slane %v5546_v58, 4  ;;  %v1215_v34 = vrot.slane %v5561_v4, 4  ;;  %v1493_v58 = vld [vmem:[%s7016_s3 + $0x70] sm:$0xff]  ;;  %v1128_v16 = vld [vmem:[%s5232_s11 + $0x100] sm:$0xf] }
  0x71   : > { %1045 = vmatprep.mubr.f32.mxu0 %v892_v45  ;;  %1329 = vmatmul.mubr.f32.gmra.mxu1 %v1174_v19  ;;  %v917_v45 = vrot.slane %v5522_v46, 3  ;;  %v923_v19 = vrot.slane %v5535_v52, 3  ;;  %v925_v62 = vrot.slane %v5570_v9, 3  ;;  %v931_v2 = vrot.slane %v5585_v18, 3 }
  0x72   : > { %1333 = vmatprep.mubr.f32.mxu1 %v1180_v50  ;;  %v1205_v50 = vrot.slane %v5522_v46, 4  ;;  %v1494_v46 = vld [vmem:[%s7016_s3 + $0x78] sm:$0xff]  ;;  %v1213_v39 = vrot.slane %v5570_v9, 4  ;;  %v1216_v44 = vsel %vm1166_vm2, %v1211_v24, %v1215_v34  ;;  %v1521_v9 = vld [vmem:[%s7016_s3 + $0xe8] sm:$0xff]  ;;  %v1217_v54 = vrot.slane %v5594_v23, 4 }
  0x73   : > { %v924_v56 = vsel %vm878_vm1, %v919_v38, %v923_v19  ;;  %4347 = vmatpush3.msra.mxu1 %v1494_v46  ;;  %v926_v10 = vsel %vm878_vm1, %v921_v53, %v925_v62  ;;  %v1484_v46 = vld [vmem:[%s7016_s3 + $0x28] sm:$0xff] }
  0x74   : > { %1046 = vmatmul.mubr.f32.gmra.mxu0 %v890_v51  ;;  %v918_v51 = vsel %vm878_vm1, %v913_v13, %v917_v45  ;;  %v1206_v52 = vsel %vm1166_vm2, %v1201_v21, %v1205_v50  ;;  %4348 = vmatprep.subr.mxu1 %v7021_v48  ;;  %v1218_v7 = vsel %vm1166_vm2, %v1213_v39, %v1217_v54  ;;  %v937_v13 = vrot.slane %v812_v30, 3 }
  0x75   : > { %1050 = vmatprep.mubr.f32.mxu0 %v896_v55  ;;  %1334 = vmatmul.mubr.f32.gmra.mxu1 %v1178_v57  ;;  %v1523_v55 = vld [vmem:[%s7016_s3 + $0xf8] sm:$0xff]  ;;  %v927_v57 = vrot.slane %v5561_v4, 3 }
  0x76   : > { %1338 = vmatprep.mubr.f32.mxu1 %v1184_v60  ;;  %4276 = vmatpush3.msra.mxu0 %v1523_v55  ;;  %v1212_v60 = vsel %vm1166_vm2, %v1207_v27, %v1211_v24  ;;  %v1515_v24 = vld [vmem:[%s7016_s3 + $0xb8] sm:$0xff]  ;;  %v1514_v55 = vld [vmem:[%s7016_s3 + $0xb0] sm:$0xff] }
  0x77   : > { %4277 = vmatprep.subr.mxu0 %v7021_v48  ;;  %v928_v4 = vsel %vm878_vm1, %v923_v19, %v927_v57  ;;  %4349 = vmatpush3.msra.mxu1 %v1493_v58  ;;  %v1509_v58 = vld [vmem:[%s7016_s3 + $0x88] sm:$0xff] }
  0x78   : > { %1051 = vmatmul.mubr.f32.gmra.mxu0 %v894_v61  ;;  %v922_v61 = vsel %vm878_vm1, %v917_v45, %v921_v53  ;;  %4350 = vmatprep.subr.mxu1 %v7021_v48  ;;  %v1489_v45 = vld [vmem:[%s7016_s3 + $0x50] sm:$0xff] }
  0x79   : > { %1055 = vmatprep.mubr.f32.mxu0 %v900_v63  ;;  %1339 = vmatmul.mubr.f32.gmra.mxu1 %v1182_v3  ;;  %v1522_v63 = vld [vmem:[%s7016_s3 + $0xf0] sm:$0xff]  ;;  %v1210_v3 = vsel %vm1166_vm2, %v1205_v50, %v1209_v29  ;;  %v1516_v50 = vld [vmem:[%s7016_s3 + $0xc0] sm:$0xff] }
  0x7a   : > { %1343 = vmatprep.mubr.f32.mxu1 %v1188_v5  ;;  %4278 = vmatpush3.msra.mxu0 %v1522_v63  ;;  %v5777_v5 = vld [vmem:[%s5232_s11 + $0xf8] sm:$0xff]  ;;  %v1485_v53 = vld [vmem:[%s7016_s3 + $0x30] sm:$0xff] }
  0x7b   : > { %4279 = vmatprep.subr.mxu0 %v7021_v48  ;;  %4351 = vmatpush3.msra.mxu1 %v1492_v12  ;;  %v1510_v63 = vld [vmem:[%s7016_s3 + $0x90] sm:$0xff] }
  0x7c   : > { %1056 = vmatmul.mubr.f32.gmra.mxu0 %v898_v8  ;;  %v1219_v8 = vrot.slane %v5585_v18, 4  ;;  %v932_v18 = vsel %vm878_vm1, %v927_v57, %v931_v2  ;;  %4352 = vmatprep.subr.mxu1 %v7021_v48  ;;  %v1482_v57 = vld [vmem:[%s7016_s3 + $0x18] sm:$0xff] }
  0x7d   : > { %1060 = vmatprep.mubr.f32.mxu0 %v904_v11  ;;  %1344 = vmatmul.mubr.f32.gmra.mxu1 %v1186_v14  ;;  %v929_v11 = vrot.slane %v5594_v23, 3  ;;  %v935_v14 = vrot.slane %v5777_v5, 3  ;;  %v1491_v23 = vld [vmem:[%s7016_s3 + $0x60] sm:$0xff] }
  0x7e   : > { %1348 = vmatprep.mubr.f32.mxu1 %v1192_v15  ;;  %4280 = vmatpush3.msra.mxu0 %v1521_v9  ;;  %v1214_v15 = vsel %vm1166_vm2, %v1209_v29, %v1213_v39  ;;  %v1220_v20 = vsel %vm1166_vm2, %v1215_v34, %v1219_v8  ;;  %v1480_v29 = vld [vmem:[%s7016_s3 + $0x8] sm:$0xff]  ;;  %v1479_v34 = vld [vmem:[%s7016_s3] sm:$0xff] }
  0x7f   : > { %4281 = vmatprep.subr.mxu0 %v7021_v48  ;;  %v930_v25 = vsel %vm878_vm1, %v925_v62, %v929_v11  ;;  %v936_v1 = vsel %vm878_vm1, %v931_v2, %v935_v14  ;;  %4353 = vmatpush3.msra.mxu1 %v1491_v23  ;;  %v1511_v62 = vld [vmem:[%s7016_s3 + $0x98] sm:$0xff] }
  0x80   : > { %1061 = vmatmul.mubr.f32.gmra.mxu0 %v902_v17  ;;  %v813_v17 = vld [vmem:[%s5232_s11 + $0x108] sm:$0x7]  ;;  %4354 = vmatprep.subr.mxu1 %v7021_v48 }
  0x81   : > { %1065 = vmatprep.mubr.f32.mxu0 %v908_v22  ;;  %1349 = vmatmul.mubr.f32.gmra.mxu1 %v1190_v0  ;;  %v1223_v22 = vrot.slane %v5777_v5, 4  ;;  %v933_v0 = vrot.slane %v810_v49, 3 }
  0x82   : > { %1353 = vmatprep.mubr.f32.mxu1 %v1196_v26  ;;  %v1520_v26 = vld [vmem:[%s7016_s3 + $0xe0] sm:$0xff] }
  0x83   : > { %4282 = vmatpush3.msra.mxu0 %v1520_v26  ;;  %v1224_v6 = vsel %vm1166_vm2, %v1219_v8, %v1223_v22 }
  0x84   : > { %1066 = vmatmul.mubr.f32.gmra.mxu0 %v906_v28  ;;  %v939_v28 = vrot.slane %v813_v17, 3  ;;  %4283 = vmatprep.subr.mxu0 %v7021_v48 }
  0x85   : > { %1070 = vmatprep.mubr.f32.mxu0 %v912_v31  ;;  %1354 = vmatmul.mubr.f32.gmra.mxu1 %v1194_v32  ;;  %v1519_v31 = vld [vmem:[%s7016_s3 + $0xd8] sm:$0xff]  ;;  %v1221_v32 = vrot.slane %v810_v49, 4 }
  0x86   : > { %1358 = vmatprep.mubr.f32.mxu1 %v1200_v35  ;;  %v1227_v35 = vrot.slane %v1129_v59, 4  ;;  %4284 = vmatpush3.msra.mxu0 %v1519_v31  ;;  %v940_v38 = vsel %vm878_vm1, %v935_v14, %v939_v28 }
  0x87   : > { %v1222_v21 = vsel %vm1166_vm2, %v1217_v54, %v1221_v32  ;;  %4285 = vmatprep.subr.mxu0 %v7021_v48 }
  0x88   : > { %1071 = vmatmul.mubr.f32.gmra.mxu0 %v910_v36  ;;  %v934_v36 = vsel %vm878_vm1, %v929_v11, %v933_v0  ;;  %v1228_v27 = vsel %vm1166_vm2, %v1223_v22, %v1227_v35 }
  0x89   : > { %1075 = vmatprep.mubr.f32.mxu0 %v916_v37  ;;  %1359 = vmatmul.mubr.f32.gmra.mxu1 %v1198_v41  ;;  %v1490_v37 = vld [vmem:[%s7016_s3 + $0x58] sm:$0xff]  ;;  %v1518_v41 = vld [vmem:[%s7016_s3 + $0xd0] sm:$0xff] }
  0x8a   : > { %1363 = vmatprep.mubr.f32.mxu1 %v1204_v42  ;;  %v1225_v42 = vrot.slane %v1128_v16, 4  ;;  %4355 = vmatpush3.msra.mxu1 %v1490_v37 }
  0x8b   : > { %4286 = vmatpush3.msra.mxu0 %v1518_v41  ;;  %4356 = vmatprep.subr.mxu1 %v7021_v48 }
  0x8c   : > { %1076 = vmatmul.mubr.f32.gmra.mxu0 %v914_v43  ;;  %v938_v43 = vsel %vm878_vm1, %v933_v0, %v937_v13  ;;  %v1226_v19 = vsel %vm1166_vm2, %v1221_v32, %v1225_v42  ;;  %4357 = vmatpush3.msra.mxu1 %v1489_v45 }
  0x8d   : > { %1080 = vmatprep.mubr.f32.mxu0 %v920_v47  ;;  %1364 = vmatmul.mubr.f32.gmra.mxu1 %v1202_v33  ;;  %v1517_v47 = vld [vmem:[%s7016_s3 + $0xc8] sm:$0xff] }
  0x8e   : > { %1368 = vmatprep.mubr.f32.mxu1 %v1208_v40  ;;  %4287 = vmatprep.subr.mxu0 %v7021_v48  ;;  %v1488_v33 = vld [vmem:[%s7016_s3 + $0x48] sm:$0xff]  ;;  %v1487_v40 = vld [vmem:[%s7016_s3 + $0x40] sm:$0xff] }
  0x8f   : > { %4288 = vmatpush3.msra.mxu0 %v1517_v47  ;;  %4358 = vmatprep.subr.mxu1 %v7021_v48 }
  0x90   : > { %1081 = vmatmul.mubr.f32.gmra.mxu0 %v918_v51  ;;  %4289 = vmatprep.subr.mxu0 %v7021_v48  ;;  %v1486_v51 = vld [vmem:[%s7016_s3 + $0x38] sm:$0xff] }
  0x91   : > { %1085 = vmatprep.mubr.f32.mxu0 %v924_v56  ;;  %1369 = vmatmul.mubr.f32.gmra.mxu1 %v1206_v52  ;;  %v1483_v56 = vld [vmem:[%s7016_s3 + $0x20] sm:$0xff]  ;;  %v1481_v52 = vld [vmem:[%s7016_s3 + $0x10] sm:$0xff] }
  0x92   : > { %1373 = vmatprep.mubr.f32.mxu1 %v1212_v60  ;;  %4359 = vmatpush3.msra.mxu1 %v1488_v33  ;;  %v1513_v60 = vld [vmem:[%s7016_s3 + $0xa8] sm:$0xff] }
  0x93   : > { %4290 = vmatpush3.msra.mxu0 %v1516_v50  ;;  %4360 = vmatprep.subr.mxu1 %v7021_v48 }
  0x94   : > { %1086 = vmatmul.mubr.f32.gmra.mxu0 %v922_v61  ;;  %4291 = vmatprep.subr.mxu0 %v7021_v48  ;;  %v1512_v61 = vld [vmem:[%s7016_s3 + $0xa0] sm:$0xff] }
  0x95   : > { %1090 = vmatprep.mubr.f32.mxu0 %v928_v4  ;;  %1374 = vmatmul.mubr.f32.gmra.mxu1 %v1210_v3  ;;  %v1508_v4 = vld [vmem:[%s7016_s3 + $0x80] sm:$0xff] }
  0x96   : > { %1378 = vmatprep.mubr.f32.mxu1 %v1216_v44  ;;  %4361 = vmatpush3.msra.mxu1 %v1487_v40 }
  0x97   : > { %4292 = vmatpush3.msra.mxu0 %v1515_v24  ;;  %4362 = vmatprep.subr.mxu1 %v7021_v48 }
  0x98   : > { %1091 = vmatmul.mubr.f32.gmra.mxu0 %v926_v10  ;;  %4363 = vmatpush3.msra.mxu1 %v1486_v51 }
  0x99   : > { %1095 = vmatprep.mubr.f32.mxu0 %v932_v18  ;;  %1379 = vmatmul.mubr.f32.gmra.mxu1 %v1214_v15 }
  0x9a   : > { %1383 = vmatprep.mubr.f32.mxu1 %v1220_v20  ;;  %4293 = vmatprep.subr.mxu0 %v7021_v48 }
  0x9b   : > { %4364 = vmatprep.subr.mxu1 %v7021_v48  ;;  %4294 = vmatpush3.msra.mxu0 %v1514_v55 }
  0x9c   : > { %1096 = vmatmul.mubr.f32.gmra.mxu0 %v930_v25  ;;  %4365 = vmatpush3.msra.mxu1 %v1485_v53 }
  0x9d   : > { %1100 = vmatprep.mubr.f32.mxu0 %v936_v1  ;;  %1384 = vmatmul.mubr.f32.gmra.mxu1 %v1218_v7 }
  0x9e   : > { %1388 = vmatprep.mubr.f32.mxu1 %v1224_v6  ;;  %4366 = vmatprep.subr.mxu1 %v7021_v48 }
  0x9f   : > { %4295 = vmatprep.subr.mxu0 %v7021_v48  ;;  %4367 = vmatpush3.msra.mxu1 %v1484_v46 }
  0xa0   : > { %1101 = vmatmul.mubr.f32.gmra.mxu0 %v934_v36  ;;  %4368 = vmatprep.subr.mxu1 %v7021_v48 }
  0xa1   : > { %1105 = vmatprep.mubr.f32.mxu0 %v940_v38  ;;  %1389 = vmatmul.mubr.f32.gmra.mxu1 %v1222_v21 }
  0xa2   : > { %1393 = vmatprep.mubr.f32.mxu1 %v1228_v27  ;;  %4369 = vmatpush3.msra.mxu1 %v1483_v56 }
  0xa3   : > { %4370 = vmatprep.subr.mxu1 %v7021_v48  ;;  %4296 = vmatpush3.msra.mxu0 %v1513_v60 }
  0xa4   : > { %1106 = vmatmul.mubr.f32.gmra.mxu0 %v938_v43  ;;  %4371 = vmatpush3.msra.mxu1 %v1482_v57 }
  0xa5   : > { %1394 = vmatmul.mubr.f32.gmra.mxu1 %v1226_v19  ;;  %4372 = vmatprep.subr.mxu1 %v7021_v48 }
  0xa6   : > { %4373 = vmatpush3.msra.mxu1 %v1481_v52  ;;  %4297 = vmatprep.subr.mxu0 %v7021_v48 }
  0xa7   : > { %4374 = vmatprep.subr.mxu1 %v7021_v48  ;;  %4378 = vmatprep.mubr.msk.f32.mxu1 %vm5035_vm3, %v7021_v48 }
  0xa8   : > { %4375 = vmatpush3.msra.mxu1 %v1480_v29  ;;  %4307 = vmatprep.mubr.msk.f32.mxu0 %vm5035_vm3, %v7021_v48 }
  0xa9   : > { %4376 = vmatprep.subr.mxu1 %v7021_v48  ;;  %4298 = vmatpush3.msra.mxu0 %v1512_v61 }
  0xaa   : > { %4377 = vmatpush3.msra.mxu1 %v1479_v34  ;;  %4299 = vmatprep.subr.mxu0 %v7021_v48 }
  0xab   : > { %4488 = vmatprep.subr.mxu1 %v7021_v48  ;;  %4300 = vmatpush3.msra.mxu0 %v1511_v62 }
  0xac   : > { %4301 = vmatprep.subr.mxu0 %v7021_v48 }
  0xad   : > { %4302 = vmatpush3.msra.mxu0 %v1510_v63 }
  0xae   : > { %4303 = vmatprep.subr.mxu0 %v7021_v48 }
  0xaf   : > { %4304 = vmatpush3.msra.mxu0 %v1509_v58 }
  0xb0   : > { %4305 = vmatprep.subr.mxu0 %v7021_v48 }
  0xb1   : > { %4306 = vmatpush3.msra.mxu0 %v1508_v4 }
  0xb2   : > { %4417 = vmatprep.subr.mxu0 %v7021_v48 }
  0xee   : > { %v3649_v2 = vpop.f32.mrf.mxu0 }
  0xef   : > { %v3726_v3 = vpop.f32.mrf.mxu1 }
  0xf0   : > { %v3650_v39 = vpop.f32.mrf.mxu0 }
  0xf1   : > { %v3727_v5 = vpop.f32.mrf.mxu1  ;;  %v3651_v62 = vadd.f32 %v3650_v39, %v3649_v2 }
  0xf2   : > { %v3652_v44 = vpop.f32.mrf.mxu0  ;;  %v3728_v63 = vadd.f32 %v3727_v5, %v3726_v3 }
  0xf3   : > { %v3729_v8 = vpop.f32.mrf.mxu1 }
  0xf4   : > { %v3653_v10 = vpop.f32.mrf.mxu0 }
  0xf5   : > { %v3730_v11 = vpop.f32.mrf.mxu1  ;;  %v3654_v48 = vadd.f32 %v3653_v10, %v3652_v44 }
  0xf6   : > { %v5922_v9 = vpop.f32.mrf.mxu0 }
  0xf7   : > { %v5924_v12 = vpop.f32.mrf.mxu1 }
  0xf8   : > { %v5926_v18 = vpop.f32.mrf.mxu0 }
  0xf9   : > { %v5928_v14 = vpop.f32.mrf.mxu1  ;;  %v3657_v39 = vadd.f32 %v5926_v18, %v5922_v9 }
  0xfa   : > { %v5930_v49 = vpop.f32.mrf.mxu0  ;;  %v3734_v5 = vadd.f32 %v5928_v14, %v5924_v12  ;;  %v1984_v14 = vld [vmem:[%s7016_s3 + $0x1f8] sm:$0xff] }
  0xfb   : > { %v5932_v15 = vpop.f32.mrf.mxu1 }
  0xfc   : > { %v5934_v54 = vpop.f32.mrf.mxu0  ;;  %v719_v9 = vadd.f32 %v3734_v5, %v3657_v39 }
  0xfd   : > { %v5936_v17 = vpop.f32.mrf.mxu1 }
  0xff   : > { %v5938_v20 = vpop.f32.mrf.mxu0  ;;  %v5940_v22 = vpop.f32.mrf.mxu1 }
 0x101   : > { %v5942_v25 = vpop.f32.mrf.mxu0  ;;  %v5944_v0 = vpop.f32.mrf.mxu1 }
 0x103   : > { %v5946_v59 = vpop.f32.mrf.mxu0  ;;  %v5948_v26 = vpop.f32.mrf.mxu1 }
 0x105   : > { %v5950_v23 = vpop.f32.mrf.mxu0  ;;  %v5952_v1 = vpop.f32.mrf.mxu1 }
 0x107   : > { %v5954_v28 = vpop.f32.mrf.mxu0  ;;  %v5956_v30 = vpop.f32.mrf.mxu1 }
 0x109   : > { %v5958_v31 = vpop.f32.mrf.mxu0  ;;  %v5960_v7 = vpop.f32.mrf.mxu1 }
 0x10b   : > { %v5962_v32 = vpop.f32.mrf.mxu0  ;;  %v5964_v6 = vpop.f32.mrf.mxu1 }
 0x10d   : > { %v5966_v35 = vpop.f32.mrf.mxu0  ;;  %v5968_v16 = vpop.f32.mrf.mxu1 }
 0x10f   : > { %v5972_v13 = vpop.f32.mrf.mxu1 }
 0x110   : > { %v5970_v36 = vpop.f32.mrf.mxu0 }
 0x111   : > { %v5976_v38 = vpop.f32.mrf.mxu1 }
 0x112   : > { %v5974_v37 = vpop.f32.mrf.mxu0 }
 0x113   : > { %v5980_v21 = vpop.f32.mrf.mxu1 }
 0x114   : > { %v5978_v41 = vpop.f32.mrf.mxu0 }
 0x115   : > { %v5984_v27 = vpop.f32.mrf.mxu1 }
 0x116   : > { %v5982_v42 = vpop.f32.mrf.mxu0 }
 0x117   : > { %v5988_v45 = vpop.f32.mrf.mxu1 }
 0x118   : > { %v5986_v43 = vpop.f32.mrf.mxu0 }
 0x119   : > { %v5992_v19 = vpop.f32.mrf.mxu1 }
 0x11a   : > { %v5990_v47 = vpop.f32.mrf.mxu0 }
 0x11b   : > { %v5996_v50 = vpop.f32.mrf.mxu1 }
 0x11c   : > { %v5994_v33 = vpop.f32.mrf.mxu0 }
 0x11d   : > { %v6000_v24 = vpop.f32.mrf.mxu1 }
 0x11e   : > { %v5998_v40 = vpop.f32.mrf.mxu0  ;;  %7024 = vst [vmem:[#allocation4_spill] sm:$0xff] %v6000_v24 }
 0x120   : > { %v6002_v51 = vpop.f32.mrf.mxu0  ;;  %v6004_v53 = vpop.f32.mrf.mxu1 }
 0x121   : > { %7025 = vst [vmem:[#allocation5_spill] sm:$0xff] %v6002_v51  ;;  %7026 = vst [vmem:[#allocation6_spill] sm:$0xff] %v6004_v53 }
 0x122   : > { %v6006_v55 = vpop.f32.mrf.mxu0  ;;  %v6008_v46 = vpop.f32.mrf.mxu1 }
 0x123   : > { %7027 = vst [vmem:[#allocation7_spill] sm:$0xff] %v6006_v55  ;;  %7028 = vst [vmem:[#allocation8_spill] sm:$0xff] %v6008_v46  ;;  %v3731_v46 = vadd.f32 %v3730_v11, %v3729_v8 }
 0x124   : > { %v6010_v56 = vpop.f32.mrf.mxu0  ;;  %v6012_v57 = vpop.f32.mrf.mxu1 }
 0x125   : > { %7029 = vst [vmem:[#allocation9_spill] sm:$0xff] %v6010_v56  ;;  %7030 = vst [vmem:[#allocation10_spill] sm:$0xff] %v6012_v57  ;;  %v709_v57 = vadd.f32 %v3728_v63, %v3651_v62 }
 0x126   : > { %v6014_v52 = vpop.f32.mrf.mxu0  ;;  %v6016_v29 = vpop.f32.mrf.mxu1 }
 0x127   : > { %7031 = vst [vmem:[#allocation11_spill] sm:$0xff] %v6014_v52  ;;  %7032 = vst [vmem:[#allocation12_spill] sm:$0xff] %v6016_v29 }
 0x128   : > { %v6018_v60 = vpop.f32.mrf.mxu0  ;;  %v6020_v34 = vpop.f32.mrf.mxu1 }
 0x129   : > { %7033 = vst [vmem:[#allocation13_spill] sm:$0xff] %v6018_v60  ;;  %7034 = vst [vmem:[#allocation14_spill] sm:$0xff] %v6020_v34  ;;  %v714_v60 = vadd.f32 %v3731_v46, %v3654_v48  ;;  %v6029_v34 = vld [vmem:[%s7015_s2] ss:$0 sm:$0xff]  ;;  %v3660_v46 = vadd.f32 %v5934_v54, %v5930_v49 }
 0x12a   : > { %v6022_v61 = vpop.f32.mrf.mxu0  ;;  %v6024_v58 = vpop.f32.mrf.mxu1 }
 0x12c   : > { %v3803_v4 = vpop.f32.mrf.mxu0 }
 0x12d   : > { %v3880_v56 = vpop.f32.mrf.mxu1 }
 0x12e   : > { %v3804_v53 = vpop.f32.mrf.mxu0 }
 0x12f   : > { %v3805_v55 = vadd.f32 %v3804_v53, %v3803_v4  ;;  %v3881_v52 = vpop.f32.mrf.mxu1 }
 0x130   : > { %v3806_v51 = vpop.f32.mrf.mxu0  ;;  %v3882_v24 = vadd.f32 %v3881_v52, %v3880_v56  ;;  %v3737_v56 = vadd.f32 %v5936_v17, %v5932_v15  ;;  %v1983_v15 = vld [vmem:[%s7016_s3 + $0x1f0] sm:$0xff]  ;;  %v3663_v17 = vadd.f32 %v5942_v25, %v5938_v20 }
 0x131   : > { %v1111_v29 = vadd.f32 %v3805_v55, %v709_v57  ;;  %v3883_v2 = vpop.f32.mrf.mxu1 }
 0x132   : > { %v3807_v3 = vpop.f32.mrf.mxu0  ;;  %v724_v54 = vadd.f32 %v3737_v56, %v3660_v46 }
 0x133   : > { %v1399_v44 = vadd.f32 %v3882_v24, %v1111_v29  ;;  %v3808_v8 = vadd.f32 %v3807_v3, %v3806_v51  ;;  %v3884_v10 = vpop.f32.mrf.mxu1  ;;  %v3740_v3 = vadd.f32 %v5944_v0, %v5940_v22  ;;  %v1981_v22 = vld [vmem:[%s7016_s3 + $0x1e0] sm:$0xff]  ;;  %v3666_v0 = vadd.f32 %v5950_v23, %v5946_v59 }
 0x134   : > { %v3809_v11 = vpop.f32.mrf.mxu0  ;;  %v3885_v55 = vadd.f32 %v3884_v10, %v3883_v2  ;;  %v7035_v2 = vmov 0.0  }
 0x135   : > { %v1421_v53 = vadd.f32 %v6029_v34, %v1399_v44  ;;  %v1112_v48 = vadd.f32 %v3808_v8, %v714_v60  ;;  %v3886_v57 = vpop.f32.mrf.mxu1  ;;  %v1982_v8 = vld [vmem:[%s7016_s3 + $0x1e8] sm:$0xff]  ;;  %v729_v56 = vadd.f32 %v3740_v3, %v3663_v17  ;;  %v1812_v17 = vld [vmem:[%s7016_s3 + $0x178] sm:$0xff] }
 0x136   : > { %v3810_v52 = vpop.f32.mrf.mxu0 }
 0x137   : > { %v1436_v18 = vmax.f32 %v1421_v53, 0.0  ;;  %v1400_v62 = vadd.f32 %v3885_v55, %v1112_v48  ;;  %v3811_v12 = vadd.f32 %v3810_v52, %v3809_v11  ;;  %v3887_v24 = vpop.f32.mrf.mxu1  ;;  %v3743_v48 = vadd.f32 %v5952_v1, %v5948_v26 }
 0x138   : > { %v3812_v51 = vpop.f32.mrf.mxu0  ;;  %v3888_v49 = vadd.f32 %v3887_v24, %v3886_v57  ;;  %v3669_v24 = vadd.f32 %v5958_v31, %v5954_v28 }
 0x139   : > { %1451 = vst [vmem:[#allocation2] sm:$0xff] %v1436_v18  ;;  %v1422_v29 = vadd.f32 %v6029_v34, %v1400_v62  ;;  %v1113_v60 = vadd.f32 %v3811_v12, %v719_v9  ;;  %4379 = vmatmul.mubr.f32.vlgmr.msra.gmra.mxu1 %v1436_v18  ;;  %v3889_v63 = vpop.f32.mrf.mxu1  ;;  %v1980_v18 = vld [vmem:[%s7016_s3 + $0x1d8] sm:$0xff]  ;;  %v1979_v12 = vld [vmem:[%s7016_s3 + $0x1d0] sm:$0xff] }
 0x13a   : > { %v3813_v4 = vpop.f32.mrf.mxu0  ;;  %4381 = vmatprep.mubr.msk.f32.mxu1 %vm5035_vm3, %v7035_v2  ;;  %4489 = vmatpush3.msra.mxu1 %v1984_v14  ;;  %v734_v14 = vadd.f32 %v3743_v48, %v3666_v0  ;;  %v1809_v48 = vld [vmem:[%s7016_s3 + $0x160] sm:$0xff] }
 0x13b   : > { %v1437_v39 = vmax.f32 %v1422_v29, 0.0  ;;  %v1401_v5 = vadd.f32 %v3888_v49, %v1113_v60  ;;  %v3814_v44 = vadd.f32 %v3813_v4, %v3812_v51  ;;  %4490 = vmatprep.subr.mxu1 %v7035_v2  ;;  %v3890_v10 = vpop.f32.mrf.mxu1  ;;  %v3746_v60 = vadd.f32 %v5960_v7, %v5956_v30  ;;  %v1811_v30 = vld [vmem:[%s7016_s3 + $0x170] sm:$0xff] }
 0x13c   : > { %v3815_v20 = vpop.f32.mrf.mxu0  ;;  %4491 = vmatpush3.msra.mxu1 %v1983_v15  ;;  %v3891_v53 = vadd.f32 %v3890_v10, %v3889_v63  ;;  %v3672_v7 = vadd.f32 %v5966_v35, %v5962_v32 }
 0x13d   : > { %1452 = vst [vmem:[#allocation2 + $0x8] sm:$0xff] %v1437_v39  ;;  %v1423_v25 = vadd.f32 %v6029_v34, %v1401_v5  ;;  %v1114_v11 = vadd.f32 %v3814_v44, %v724_v54  ;;  %4382 = vmatmul.mubr.f32.gmra.mxu1 %v1437_v39  ;;  %4492 = vmatprep.subr.mxu1 %v7035_v2  ;;  %v3892_v55 = vpop.f32.mrf.mxu1 }
 0x13e   : > { %v3816_v46 = vpop.f32.mrf.mxu0  ;;  %4384 = vmatprep.mubr.msk.f32.mxu1 %vm5035_vm3, %v7035_v2  ;;  %4493 = vmatpush3.msra.mxu1 %v1982_v8  ;;  %v3749_v5 = vadd.f32 %v5968_v16, %v5964_v6  ;;  %v739_v10 = vadd.f32 %v3746_v60, %v3669_v24 }
 0x13f   : > { %v1438_v57 = vmax.f32 %v1423_v25, 0.0  ;;  %v1402_v52 = vadd.f32 %v3891_v53, %v1114_v11  ;;  %v3817_v9 = vadd.f32 %v3816_v46, %v3815_v20  ;;  %4494 = vmatprep.subr.mxu1 %v7035_v2  ;;  %v3893_v59 = vpop.f32.mrf.mxu1  ;;  %v1810_v53 = vld [vmem:[%s7016_s3 + $0x168] sm:$0xff]  ;;  %v3675_v46 = vadd.f32 %v5974_v37, %v5970_v36 }
 0x140   : > { %v3818_v23 = vpop.f32.mrf.mxu0  ;;  %4495 = vmatpush3.msra.mxu1 %v1981_v22  ;;  %v3894_v62 = vadd.f32 %v3893_v59, %v3892_v55  ;;  %v744_v55 = vadd.f32 %v3749_v5, %v3672_v7 }
 0x141   : > { %1453 = vst [vmem:[#allocation2 + $0x10] sm:$0xff] %v1438_v57  ;;  %v1424_v26 = vadd.f32 %v6029_v34, %v1402_v52  ;;  %v1115_v1 = vadd.f32 %v3817_v9, %v729_v56  ;;  %4385 = vmatmul.mubr.f32.gmra.mxu1 %v1438_v57  ;;  %4496 = vmatprep.subr.mxu1 %v7035_v2  ;;  %v3895_v51 = vpop.f32.mrf.mxu1 }
 0x142   : > { %v3819_v29 = vpop.f32.mrf.mxu0  ;;  %4387 = vmatprep.mubr.msk.f32.mxu1 %vm5035_vm3, %v7035_v2  ;;  %4497 = vmatpush3.msra.mxu1 %v1980_v18  ;;  %v3752_v52 = vadd.f32 %v5976_v38, %v5972_v13 }
 0x143   : > { %v1439_v49 = vmax.f32 %v1424_v26, 0.0  ;;  %v1403_v15 = vadd.f32 %v3894_v62, %v1115_v1  ;;  %v3820_v54 = vadd.f32 %v3819_v29, %v3818_v23  ;;  %4498 = vmatprep.subr.mxu1 %v7035_v2  ;;  %v3896_v63 = vpop.f32.mrf.mxu1  ;;  %v1808_v23 = vld [vmem:[%s7016_s3 + $0x158] sm:$0xff]  ;;  %v1807_v62 = vld [vmem:[%s7016_s3 + $0x150] sm:$0xff] }
 0x144   : > { %v3821_v28 = vpop.f32.mrf.mxu0  ;;  %v1495_v31 = vld [vmem:[#allocation2 + $0x1] sm:$0xff]  ;;  %4499 = vmatpush3.msra.mxu1 %v1979_v12  ;;  %v3897_v39 = vadd.f32 %v3896_v63, %v3895_v51  ;;  %v3678_v12 = vadd.f32 %v5982_v42, %v5978_v41  ;;  %v749_v29 = vadd.f32 %v3752_v52, %v3675_v46  ;;  %v1976_v52 = vld [vmem:[%s7016_s3 + $0x1b8] sm:$0xff] }
 0x145   : > { %1454 = vst [vmem:[#allocation2 + $0x18] sm:$0xff] %v1439_v49  ;;  %v1425_v4 = vadd.f32 %v6029_v34, %v1403_v15  ;;  %v1116_v3 = vadd.f32 %v3820_v54, %v734_v14  ;;  %4308 = vmatmul.mubr.f32.vlgmr.msra.gmra.mxu0 %v1495_v31  ;;  %4388 = vmatmul.mubr.f32.gmra.mxu1 %v1439_v49  ;;  %v3898_v44 = vpop.f32.mrf.mxu1  ;;  %v1806_v41 = vld [vmem:[%s7016_s3 + $0x148] sm:$0xff] }
 0x146   : > { %v3822_v8 = vpop.f32.mrf.mxu0  ;;  %4418 = vmatpush3.msra.mxu0 %v1812_v17  ;;  %4310 = vmatprep.mubr.msk.f32.mxu0 %vm5035_vm3, %v7035_v2  ;;  %v3755_v14 = vadd.f32 %v5984_v27, %v5980_v21 }
 0x147   : > { %v1440_v20 = vmax.f32 %v1425_v4, 0.0  ;;  %v1404_v25 = vadd.f32 %v3897_v39, %v1116_v3  ;;  %v3823_v11 = vadd.f32 %v3822_v8, %v3821_v28  ;;  %4419 = vmatprep.subr.mxu0 %v7035_v2  ;;  %4390 = vmatprep.mubr.msk.f32.mxu1 %vm5035_vm3, %v7035_v2  ;;  %v3899_v32 = vpop.f32.mrf.mxu1  ;;  %v1978_v28 = vld [vmem:[%s7016_s3 + $0x1c8] sm:$0xff]  ;;  %v3681_v4 = vadd.f32 %v5990_v47, %v5986_v43  ;;  %v1805_v8 = vld [vmem:[%s7016_s3 + $0x140] sm:$0xff] }
 0x148   : > { %v3824_v6 = vpop.f32.mrf.mxu0  ;;  %v1496_v35 = vld [vmem:[#allocation2 + $0x9] sm:$0xff]  ;;  %4420 = vmatpush3.msra.mxu0 %v1811_v30  ;;  %4500 = vmatprep.subr.mxu1 %v7035_v2  ;;  %v3900_v0 = vadd.f32 %v3899_v32, %v3898_v44  ;;  %v754_v31 = vadd.f32 %v3755_v14, %v3678_v12  ;;  %v3758_v30 = vadd.f32 %v5992_v19, %v5988_v45 }
 0x149   : > { %1455 = vst [vmem:[#allocation2 + $0x20] sm:$0xff] %v1440_v20  ;;  %v1426_v16 = vadd.f32 %v6029_v34, %v1404_v25  ;;  %v1117_v22 = vadd.f32 %v3823_v11, %v739_v10  ;;  %4311 = vmatmul.mubr.f32.gmra.mxu0 %v1496_v35  ;;  %4421 = vmatprep.subr.mxu0 %v7035_v2  ;;  %v3901_v56 = vpop.f32.mrf.mxu1  ;;  %v1977_v25 = vld [vmem:[%s7016_s3 + $0x1c0] sm:$0xff]  ;;  %v1803_v14 = vld [vmem:[%s7016_s3 + $0x130] sm:$0xff] }
 0x14a   : > { %v3825_v57 = vpop.f32.mrf.mxu0  ;;  %4313 = vmatprep.mubr.msk.f32.mxu0 %vm5035_vm3, %v7035_v2  ;;  %4422 = vmatpush3.msra.mxu0 %v1810_v53  ;;  %v3684_v11 = vadd.f32 %v5998_v40, %v5994_v33  ;;  %v7036_v53 = vld [vmem:[#allocation4_spill] sm:$0xff]  ;;  %v1804_v33 = vld [vmem:[%s7016_s3 + $0x138] sm:$0xff] }
 0x14b   : > { %v1441_v9 = vmax.f32 %v1426_v16, 0.0  ;;  %v1405_v18 = vadd.f32 %v3900_v0, %v1117_v22  ;;  %v3826_v59 = vadd.f32 %v3825_v57, %v3824_v6  ;;  %4423 = vmatprep.subr.mxu0 %v7035_v2  ;;  %4391 = vmatmul.mubr.f32.gmra.mxu1 %v1440_v20  ;;  %v3902_v36 = vpop.f32.mrf.mxu1  ;;  %v3761_v32 = vadd.f32 %v7036_v53, %v5996_v50 }
 0x14c   : > { %v3827_v37 = vpop.f32.mrf.mxu0  ;;  %v1497_v26 = vld [vmem:[#allocation2 + $0x11] sm:$0xff]  ;;  %4424 = vmatpush3.msra.mxu0 %v1809_v48  ;;  %4393 = vmatprep.mubr.msk.f32.mxu1 %vm5035_vm3, %v7035_v2  ;;  %v3903_v1 = vadd.f32 %v3902_v36, %v3901_v56  ;;  %v759_v16 = vadd.f32 %v3758_v30, %v3681_v4 }
 0x14d   : > { %1456 = vst [vmem:[#allocation2 + $0x28] sm:$0xff] %v1441_v9  ;;  %v1427_v13 = vadd.f32 %v6029_v34, %v1405_v18  ;;  %v1118_v38 = vadd.f32 %v3826_v59, %v744_v55  ;;  %4314 = vmatmul.mubr.f32.gmra.mxu0 %v1497_v26  ;;  %4425 = vmatprep.subr.mxu0 %v7035_v2  ;;  %v3904_v24 = vpop.f32.mrf.mxu1  ;;  %v7037_v18 = vld [vmem:[#allocation5_spill] sm:$0xff]  ;;  %v7038_v59 = vld [vmem:[#allocation7_spill] sm:$0xff]  ;;  %v7039_v26 = vld [vmem:[#allocation6_spill] sm:$0xff] }
 0x14e   : > { %v3828_v51 = vpop.f32.mrf.mxu0  ;;  %4316 = vmatprep.mubr.msk.f32.mxu0 %vm5035_vm3, %v7035_v2  ;;  %4426 = vmatpush3.msra.mxu0 %v1808_v23  ;;  %v3687_v23 = vadd.f32 %v7038_v59, %v7037_v18 }
 0x14f   : > { %v1442_v60 = vmax.f32 %v1427_v13, 0.0  ;;  %v1406_v49 = vadd.f32 %v3903_v1, %v1118_v38  ;;  %v3829_v15 = vadd.f32 %v3828_v51, %v3827_v37  ;;  %4394 = vmatmul.mubr.f32.gmra.mxu1 %v1441_v9  ;;  %4427 = vmatprep.subr.mxu0 %v7035_v2  ;;  %v3905_v42 = vpop.f32.mrf.mxu1  ;;  %v764_v9 = vadd.f32 %v3761_v32, %v3684_v11  ;;  %v7040_v13 = vld [vmem:[#allocation8_spill] sm:$0xff] }
 0x150   : > { %v3830_v54 = vpop.f32.mrf.mxu0  ;;  %v1498_v21 = vld [vmem:[#allocation2 + $0x19] sm:$0xff]  ;;  %4428 = vmatpush3.msra.mxu0 %v1807_v62  ;;  %4396 = vmatprep.mubr.msk.f32.mxu1 %vm5035_vm3, %v7035_v2  ;;  %v3906_v63 = vadd.f32 %v3905_v42, %v3904_v24  ;;  %v3764_v38 = vadd.f32 %v7040_v13, %v7039_v26  ;;  %v1802_v42 = vld [vmem:[%s7016_s3 + $0x128] sm:$0xff] }
 0x151   : > { %1457 = vst [vmem:[#allocation2 + $0x30] sm:$0xff] %v1442_v60  ;;  %v1428_v27 = vadd.f32 %v6029_v34, %v1406_v49  ;;  %v1119_v17 = vadd.f32 %v3829_v15, %v749_v29  ;;  %4317 = vmatmul.mubr.f32.gmra.mxu0 %v1498_v21  ;;  %4429 = vmatprep.subr.mxu0 %v7035_v2  ;;  %v3907_v3 = vpop.f32.mrf.mxu1  ;;  %v7042_v21 = vld [vmem:[#allocation11_spill] sm:$0xff] }
 0x152   : > { %v3831_v39 = vpop.f32.mrf.mxu0  ;;  %4319 = vmatprep.mubr.msk.f32.mxu0 %vm5035_vm3, %v7035_v2  ;;  %4430 = vmatpush3.msra.mxu0 %v1806_v41  ;;  %v1975_v41 = vld [vmem:[%s7016_s3 + $0x1b0] sm:$0xff] }
 0x153   : > { %v1443_v7 = vmax.f32 %v1428_v27, 0.0  ;;  %v1407_v5 = vadd.f32 %v3906_v63, %v1119_v17  ;;  %v3832_v44 = vadd.f32 %v3831_v39, %v3830_v54  ;;  %4397 = vmatmul.mubr.f32.gmra.mxu1 %v1442_v60  ;;  %4431 = vmatprep.subr.mxu0 %v7035_v2  ;;  %v3908_v43 = vpop.f32.mrf.mxu1  ;;  %v7041_v54 = vld [vmem:[#allocation9_spill] sm:$0xff]  ;;  %v7043_v17 = vld [vmem:[#allocation10_spill] sm:$0xff]  ;;  %v7044_v63 = vld [vmem:[#allocation12_spill] sm:$0xff] }
 0x154   : > { %v3833_v47 = vpop.f32.mrf.mxu0  ;;  %v1499_v10 = vld [vmem:[#allocation2 + $0x21] sm:$0xff]  ;;  %4399 = vmatprep.mubr.msk.f32.mxu1 %vm5035_vm3, %v7035_v2  ;;  %4501 = vmatpush3.msra.mxu1 %v1978_v28  ;;  %v3909_v20 = vadd.f32 %v3908_v43, %v3907_v3  ;;  %v3690_v27 = vadd.f32 %v7042_v21, %v7041_v54  ;;  %v3767_v28 = vadd.f32 %v7044_v63, %v7043_v17  ;;  %v1957_v21 = vld [vmem:[#allocation2 + $0x14] sm:$0xff] }
 0x155   : > { %1458 = vst [vmem:[#allocation2 + $0x38] sm:$0xff] %v1443_v7  ;;  %v1429_v45 = vadd.f32 %v6029_v34, %v1407_v5  ;;  %v1120_v19 = vadd.f32 %v3832_v44, %v754_v31  ;;  %4320 = vmatmul.mubr.f32.gmra.mxu0 %v1499_v10  ;;  %4502 = vmatprep.subr.mxu1 %v7035_v2  ;;  %v3910_v6 = vpop.f32.mrf.mxu1  ;;  %v1958_v17 = vld [vmem:[#allocation2 + $0x1c] sm:$0xff]  ;;  %v1785_v63 = vld [vmem:[#allocation2 + $0x13] sm:$0xff] }
 0x156   : > { %v3834_v35 = vpop.f32.mrf.mxu0  ;;  %4322 = vmatprep.mubr.msk.f32.mxu0 %vm5035_vm3, %v7035_v2  ;;  %4432 = vmatpush3.msra.mxu0 %v1805_v8  ;;  %v769_v3 = vadd.f32 %v3764_v38, %v3687_v23  ;;  %v1972_v23 = vld [vmem:[%s7016_s3 + $0x198] sm:$0xff] }
 0x157   : > { %v1444_v22 = vmax.f32 %v1429_v45, 0.0  ;;  %v1408_v0 = vadd.f32 %v3909_v20, %v1120_v19  ;;  %v3835_v48 = vadd.f32 %v3834_v35, %v3833_v47  ;;  %4400 = vmatmul.mubr.f32.gmra.mxu1 %v1443_v7  ;;  %4433 = vmatprep.subr.mxu0 %v7035_v2  ;;  %v3911_v40 = vpop.f32.mrf.mxu1  ;;  %v1974_v45 = vld [vmem:[%s7016_s3 + $0x1a8] sm:$0xff]  ;;  %v1801_v19 = vld [vmem:[%s7016_s3 + $0x120] sm:$0xff]  ;;  %v774_v20 = vadd.f32 %v3767_v28, %v3690_v27 }
 0x158   : > { %v3836_v55 = vpop.f32.mrf.mxu0  ;;  %v1500_v50 = vld [vmem:[#allocation2 + $0x29] sm:$0xff]  ;;  %4503 = vmatpush3.msra.mxu1 %v1977_v25  ;;  %4402 = vmatprep.mubr.msk.f32.mxu1 %vm5035_vm3, %v7035_v2  ;;  %v3912_v57 = vadd.f32 %v3911_v40, %v3910_v6 }
 0x159   : > { %1459 = vst [vmem:[#allocation2 + $0x40] sm:$0xff] %v1444_v22  ;;  %v1430_v46 = vadd.f32 %v6029_v34, %v1408_v0  ;;  %v1121_v56 = vadd.f32 %v3835_v48, %v759_v16  ;;  %4323 = vmatmul.mubr.f32.gmra.mxu0 %v1500_v50  ;;  %4504 = vmatprep.subr.mxu1 %v7035_v2  ;;  %v3913_v36 = vpop.f32.mrf.mxu1  ;;  %v7045_v25 = vld [vmem:[#allocation13_spill] sm:$0xff]  ;;  %v7046_v6 = vld [vmem:[#allocation14_spill] sm:$0xff] }
 0x15a   : > { %v3837_v37 = vpop.f32.mrf.mxu0  ;;  %4325 = vmatprep.mubr.msk.f32.mxu0 %vm5035_vm3, %v7035_v2  ;;  %4434 = vmatpush3.msra.mxu0 %v1804_v33  ;;  %v3693_v11 = vadd.f32 %v6022_v61, %v7045_v25  ;;  %v3770_v35 = vadd.f32 %v6024_v58, %v7046_v6  ;;  %v1973_v61 = vld [vmem:[%s7016_s3 + $0x1a0] sm:$0xff]  ;;  %v1784_v27 = vld [vmem:[#allocation2 + $0xb] sm:$0xff] }
 0x15b   : > { %v1445_v1 = vmax.f32 %v1430_v46, 0.0  ;;  %v1409_v62 = vadd.f32 %v3912_v57, %v1121_v56  ;;  %v3838_v12 = vadd.f32 %v3837_v37, %v3836_v55  ;;  %4403 = vmatmul.mubr.f32.gmra.mxu1 %v1444_v22  ;;  %4435 = vmatprep.subr.mxu0 %v7035_v2  ;;  %v3914_v24 = vpop.f32.mrf.mxu1  ;;  %v1800_v46 = vld [vmem:[%s7016_s3 + $0x118] sm:$0xff]  ;;  %v1959_v28 = vld [vmem:[#allocation2 + $0x24] sm:$0xff] }
 0x15c   : > { %v3839_v51 = vpop.f32.mrf.mxu0  ;;  %v1501_v29 = vld [vmem:[#allocation2 + $0x31] sm:$0xff]  ;;  %4505 = vmatpush3.msra.mxu1 %v1976_v52  ;;  %4405 = vmatprep.mubr.msk.f32.mxu1 %vm5035_vm3, %v7035_v2  ;;  %v3915_v15 = vadd.f32 %v3914_v24, %v3913_v36  ;;  %v779_v52 = vadd.f32 %v3770_v35, %v3693_v11 }
 0x15d   : > { %1460 = vst [vmem:[#allocation2 + $0x48] sm:$0xff] %v1445_v1  ;;  %v1431_v60 = vadd.f32 %v6029_v34, %v1409_v62  ;;  %v1122_v49 = vadd.f32 %v3838_v12, %v764_v9  ;;  %4326 = vmatmul.mubr.f32.gmra.mxu0 %v1501_v29  ;;  %4506 = vmatprep.subr.mxu1 %v7035_v2  ;;  %v3916_v31 = vpop.f32.mrf.mxu1  ;;  %v1970_v29 = vld [vmem:[%s7016_s3 + $0x188] sm:$0xff]  ;;  %v2224_v35 = vld [vmem:[%s7018_s5 + $0xf0] sm:$0xff] }
 0x15e   : > { %v3840_v4 = vpop.f32.mrf.mxu0  ;;  %4328 = vmatprep.mubr.msk.f32.mxu0 %vm5035_vm3, %v7035_v2  ;;  %4436 = vmatpush3.msra.mxu0 %v1803_v14  ;;  %v1799_v14 = vld [vmem:[%s7016_s3 + $0x110] sm:$0xff] }
 0x15f   : > { %v1446_v39 = vmax.f32 %v1431_v60, 0.0  ;;  %v1410_v30 = vadd.f32 %v3915_v15, %v1122_v49  ;;  %v3841_v7 = vadd.f32 %v3840_v4, %v3839_v51  ;;  %4406 = vmatmul.mubr.f32.gmra.mxu1 %v1445_v1  ;;  %4437 = vmatprep.subr.mxu0 %v7035_v2  ;;  %v3917_v5 = vpop.f32.mrf.mxu1  ;;  %v1971_v1 = vld [vmem:[%s7016_s3 + $0x190] sm:$0xff]  ;;  %v1798_v60 = vld [vmem:[%s7016_s3 + $0x108] sm:$0xff] }
 0x160   : > { %v3842_v44 = vpop.f32.mrf.mxu0  ;;  %v1502_v8 = vld [vmem:[#allocation2 + $0x39] sm:$0xff]  ;;  %4507 = vmatpush3.msra.mxu1 %v1975_v41  ;;  %4438 = vmatpush3.msra.mxu0 %v1802_v42  ;;  %v3918_v10 = vadd.f32 %v3917_v5, %v3916_v31  ;;  %v1956_v42 = vld [vmem:[#allocation2 + $0xc] sm:$0xff] }
 0x161   : > { %1461 = vst [vmem:[#allocation2 + $0x50] sm:$0xff] %v1446_v39  ;;  %v1432_v43 = vadd.f32 %v6029_v34, %v1410_v30  ;;  %v1123_v47 = vadd.f32 %v3841_v7, %v769_v3  ;;  %4329 = vmatmul.mubr.f32.gmra.mxu0 %v1502_v8  ;;  %4408 = vmatprep.mubr.msk.f32.mxu1 %vm5035_vm3, %v7035_v2  ;;  %v3919_v53 = vpop.f32.mrf.mxu1  ;;  %v1797_v41 = vld [vmem:[%s7016_s3 + $0x100] sm:$0xff]  ;;  %v1960_v4 = vld [vmem:[#allocation2 + $0x2c] sm:$0xff] }
 0x162   : > { %v3843_v32 = vpop.f32.mrf.mxu0  ;;  %4331 = vmatprep.mubr.msk.f32.mxu0 %vm5035_vm3, %v7035_v2  ;;  %4508 = vmatprep.subr.mxu1 %v7035_v2  ;;  %v1786_v31 = vld [vmem:[#allocation2 + $0x1b] sm:$0xff]  ;;  %v1787_v3 = vld [vmem:[#allocation2 + $0x23] sm:$0xff]  ;;  %v1788_v30 = vld [vmem:[#allocation2 + $0x2b] sm:$0xff] }
 0x163   : > { %v1447_v16 = vmax.f32 %v1432_v43, 0.0  ;;  %v1411_v22 = vadd.f32 %v3918_v10, %v1123_v47  ;;  %v3844_v0 = vadd.f32 %v3843_v32, %v3842_v44  ;;  %4409 = vmatmul.mubr.f32.gmra.mxu1 %v1446_v39  ;;  %4439 = vmatprep.subr.mxu0 %v7035_v2  ;;  %v3920_v48 = vpop.f32.mrf.mxu1  ;;  %v1961_v39 = vld [vmem:[#allocation2 + $0x34] sm:$0xff]  ;;  %v1962_v7 = vld [vmem:[#allocation2 + $0x3c] sm:$0xff] }
 0x164   : > { %v3845_v33 = vpop.f32.mrf.mxu0  ;;  %v1503_v40 = vld [vmem:[#allocation2 + $0x41] sm:$0xff]  ;;  %4509 = vmatpush3.msra.mxu1 %v1974_v45  ;;  %4440 = vmatpush3.msra.mxu0 %v1801_v19  ;;  %v3921_v58 = vadd.f32 %v3920_v48, %v3919_v53  ;;  %v1789_v5 = vld [vmem:[#allocation2 + $0x33] sm:$0xff] }
 0x165   : > { %1462 = vst [vmem:[#allocation2 + $0x58] sm:$0xff] %v1447_v16  ;;  %v1433_v55 = vadd.f32 %v6029_v34, %v1411_v22  ;;  %v1124_v50 = vadd.f32 %v3844_v0, %v774_v20  ;;  %4332 = vmatmul.mubr.f32.gmra.mxu0 %v1503_v40  ;;  %4510 = vmatprep.subr.mxu1 %v7035_v2  ;;  %v3922_v57 = vpop.f32.mrf.mxu1  ;;  %v1963_v44 = vld [vmem:[#allocation2 + $0x44] sm:$0xff]  ;;  %v1790_v8 = vld [vmem:[#allocation2 + $0x3b] sm:$0xff] }
 0x166   : > { %v3846_v56 = vpop.f32.mrf.mxu0  ;;  %4334 = vmatprep.mubr.msk.f32.mxu0 %vm5035_vm3, %v7035_v2  ;;  %4411 = vmatprep.mubr.msk.f32.mxu1 %vm5035_vm3, %v7035_v2  ;;  %v1791_v47 = vld [vmem:[#allocation2 + $0x43] sm:$0xff]  ;;  %v2225_v53 = vld [vmem:[%s7018_s5 + $0xf8] sm:$0xff] }
 0x167   : > { %v1448_v9 = vmax.f32 %v1433_v55, 0.0  ;;  %v1412_v18 = vadd.f32 %v3921_v58, %v1124_v50  ;;  %v3847_v59 = vadd.f32 %v3846_v56, %v3845_v33  ;;  %4441 = vmatprep.subr.mxu0 %v7035_v2  ;;  %4511 = vmatpush3.msra.mxu1 %v1973_v61  ;;  %v3923_v36 = vpop.f32.mrf.mxu1  ;;  %v2223_v0 = vld [vmem:[%s7018_s5 + $0xe8] sm:$0xff]  ;;  %v2222_v48 = vld [vmem:[%s7018_s5 + $0xe0] sm:$0xff]  ;;  %v2221_v40 = vld [vmem:[%s7018_s5 + $0xd8] sm:$0xff] }
 0x168   : > { %v1504_v37 = vld [vmem:[#allocation2 + $0x49] sm:$0xff]  ;;  %4412 = vmatmul.mubr.f32.gmra.mxu1 %v1447_v16  ;;  %4442 = vmatpush3.msra.mxu0 %v1800_v46  ;;  %v3924_v38 = vadd.f32 %v3923_v36, %v3922_v57  ;;  %v2199_v16 = vld [vmem:[%s7018_s5 + $0x78] sm:$0xff]  ;;  %v2196_v61 = vld [vmem:[%s7018_s5 + $0x60] sm:$0xff] }
 0x169   : > { %1463 = vst [vmem:[#allocation2 + $0x60] sm:$0xff] %v1448_v9  ;;  %v1434_v26 = vadd.f32 %v6029_v34, %v1412_v18  ;;  %v1125_v13 = vadd.f32 %v3847_v59, %v779_v52  ;;  %4335 = vmatmul.mubr.f32.gmra.mxu0 %v1504_v37  ;;  %4512 = vmatprep.subr.mxu1 %v7035_v2  ;;  %v1964_v43 = vld [vmem:[#allocation2 + $0x4c] sm:$0xff]  ;;  %v2195_v50 = vld [vmem:[%s7018_s5 + $0x58] sm:$0xff]  ;;  %v2192_v57 = vld [vmem:[%s7018_s5 + $0x40] sm:$0xff] }
 0x16a   : > { %4337 = vmatprep.mubr.msk.f32.mxu0 %vm5035_vm3, %v7035_v2  ;;  %4513 = vmatpush3.msra.mxu1 %v1972_v23  ;;  %v1792_v45 = vld [vmem:[#allocation2 + $0x4b] sm:$0xff]  ;;  %v2191_v52 = vld [vmem:[%s7018_s5 + $0x38] sm:$0xff]  ;;  %v2218_v59 = vld [vmem:[%s7018_s5 + $0xc0] sm:$0xff] }
 0x16b   : > { %v1449_v62 = vmax.f32 %v1434_v26, 0.0  ;;  %v1413_v12 = vadd.f32 %v3924_v38, %v1125_v13  ;;  %4514 = vmatprep.subr.mxu1 %v7035_v2  ;;  %4414 = vmatprep.mubr.msk.f32.mxu1 %vm5035_vm3, %v7035_v2  ;;  %v2197_v33 = vld [vmem:[%s7018_s5 + $0x68] sm:$0xff]  ;;  %v2220_v55 = vld [vmem:[%s7018_s5 + $0xd0] sm:$0xff]  ;;  %v2217_v23 = vld [vmem:[%s7018_s5 + $0xb8] sm:$0xff] }
 0x16c   : > { %v1505_v24 = vld [vmem:[#allocation2 + $0x51] sm:$0xff]  ;;  %4443 = vmatprep.subr.mxu0 %v7035_v2  ;;  %4515 = vmatpush3.msra.mxu1 %v1971_v1  ;;  %v2219_v58 = vld [vmem:[%s7018_s5 + $0xc8] sm:$0xff]  ;;  %v2188_v36 = vld [vmem:[%s7018_s5 + $0x20] sm:$0xff] }
 0x16d   : > { %1464 = vst [vmem:[#allocation2 + $0x68] sm:$0xff] %v1449_v62  ;;  %v1435_v51 = vadd.f32 %v6029_v34, %v1413_v12  ;;  %4338 = vmatmul.mubr.f32.gmra.mxu0 %v1505_v24  ;;  %4415 = vmatmul.mubr.f32.gmra.mxu1 %v1448_v9  ;;  %v1969_v34 = vld [vmem:[%s7016_s3 + $0x180] sm:$0xff]  ;;  %v1965_v10 = vld [vmem:[#allocation2 + $0x54] sm:$0xff]  ;;  %v2193_v56 = vld [vmem:[%s7018_s5 + $0x48] sm:$0xff] }
 0x16e   : > { %4340 = vmatprep.mubr.msk.f32.mxu0 %vm5035_vm3, %v7035_v2  ;;  %4444 = vmatpush3.msra.mxu0 %v1799_v14  ;;  %v1793_v20 = vld [vmem:[#allocation2 + $0x53] sm:$0xff]  ;;  %v2189_v18 = vld [vmem:[%s7018_s5 + $0x28] sm:$0xff]  ;;  %v2184_v62 = vld [vmem:[%s7018_s5] sm:$0xff] }
 0x16f   : > { %v1450_v49 = vmax.f32 %v1435_v51, 0.0  ;;  %4516 = vmatprep.subr.mxu1 %v7035_v2  ;;  %4445 = vmatprep.subr.mxu0 %v7035_v2  ;;  %v2194_v46 = vld [vmem:[%s7018_s5 + $0x50] sm:$0xff]  ;;  %v2187_v37 = vld [vmem:[%s7018_s5 + $0x18] sm:$0xff]  ;;  %v2185_v38 = vld [vmem:[%s7018_s5 + $0x8] sm:$0xff] }
 0x170   : > { %v1506_v15 = vld [vmem:[#allocation2 + $0x59] sm:$0xff]  ;;  %4517 = vmatpush3.msra.mxu1 %v1970_v29  ;;  %4446 = vmatpush3.msra.mxu0 %v1798_v60  ;;  %v2190_v9 = vld [vmem:[%s7018_s5 + $0x30] sm:$0xff]  ;;  %v2215_v1 = vld [vmem:[%s7018_s5 + $0xa8] sm:$0xff] }
 0x171   : > { %1465 = vst [vmem:[#allocation2 + $0x70] sm:$0xff] %v1450_v49  ;;  %4341 = vmatmul.mubr.f32.gmra.mxu0 %v1506_v15  ;;  %4518 = vmatprep.subr.mxu1 %v7035_v2  ;;  %v1966_v19 = vld [vmem:[#allocation2 + $0x5c] sm:$0xff]  ;;  %v2216_v26 = vld [vmem:[%s7018_s5 + $0xb0] sm:$0xff]  ;;  %v2211_v29 = vld [vmem:[%s7018_s5 + $0x88] sm:$0xff] }
 0x172   : > { %4343 = vmatprep.mubr.msk.f32.mxu0 %vm5035_vm3, %v7035_v2  ;;  %4519 = vmatpush3.msra.mxu1 %v1969_v34  ;;  %v1794_v11 = vld [vmem:[#allocation2 + $0x5b] sm:$0xff]  ;;  %v2186_v13 = vld [vmem:[%s7018_s5 + $0x10] sm:$0xff] }
 0x173   : > { %4520 = vmatprep.mubr.msk.f32.mxu1 %vm5035_vm3, %v7035_v2  ;;  %4447 = vmatprep.subr.mxu0 %v7035_v2  ;;  %v2214_v12 = vld [vmem:[%s7018_s5 + $0xa0] sm:$0xff]  ;;  %v6411_v14 = vld [vmem:[%s7018_s5 + $0x1f8] sm:$0xff]  ;;  %v2212_v51 = vld [vmem:[%s7018_s5 + $0x90] sm:$0xff] }
 0x174   : > { %v1507_v54 = vld [vmem:[#allocation2 + $0x61] sm:$0xff]  ;;  %4521 = vmatmul.mubr.f32.vlgmr.msra.gmra.mxu1 %v1956_v42  ;;  %4448 = vmatpush3.msra.mxu0 %v1797_v41  ;;  %v2213_v24 = vld [vmem:[%s7018_s5 + $0x98] sm:$0xff] }
 0x175   : > { %4344 = vmatmul.mubr.f32.gmra.mxu0 %v1507_v54  ;;  %4523 = vmatprep.mubr.msk.f32.mxu1 %vm5035_vm3, %v7035_v2  ;;  %v1967_v25 = vld [vmem:[#allocation2 + $0x64] sm:$0xff]  ;;  %v6429_v49 = vld [vmem:[%s7018_s5 + $0x178] sm:$0xff] }
 0x176   : > { %4449 = vmatprep.mubr.msk.f32.mxu0 %vm5035_vm3, %v7035_v2  ;;  %4559 = vmatprep.subr.mxu0 %v2225_v53  ;;  %v1795_v6 = vld [vmem:[#allocation2 + $0x63] sm:$0xff] }
 0x177   : > { %4606 = vmatprep.subr.mxu1 %v2199_v16  ;;  %v2210_v60 = vld [vmem:[%s7018_s5 + $0x80] sm:$0xff] }
 0x178   : > { %4524 = vmatmul.mubr.f32.gmra.mxu1 %v1957_v21  ;;  %v1968_v32 = vld [vmem:[#allocation2 + $0x6c] sm:$0xff] }
 0x179   : > { %4450 = vmatmul.mubr.f32.vlgmr.msra.gmra.mxu0 %v1784_v27  ;;  %4526 = vmatprep.mubr.msk.f32.mxu1 %vm5035_vm3, %v7035_v2  ;;  %v1796_v22 = vld [vmem:[#allocation2 + $0x6b] sm:$0xff] }
 0x17a   : > { %4452 = vmatprep.mubr.msk.f32.mxu0 %vm5035_vm3, %v7035_v2  ;;  %4560 = vmatpush3.msra.mxu0 %v2225_v53 }
 0x17b   : > { %4561 = vmatprep.subr.mxu0 %v2224_v35  ;;  %4607 = vmatpush3.msra.mxu1 %v2199_v16 }
 0x17c   : > { %4527 = vmatmul.mubr.f32.gmra.mxu1 %v1958_v17  ;;  %4562 = vmatpush3.msra.mxu0 %v2224_v35 }
 0x17d   : > { %4453 = vmatmul.mubr.f32.gmra.mxu0 %v1785_v63  ;;  %4529 = vmatprep.mubr.msk.f32.mxu1 %vm5035_vm3, %v7035_v2 }
 0x17e   : > { %4455 = vmatprep.mubr.msk.f32.mxu0 %vm5035_vm3, %v7035_v2  ;;  %4563 = vmatprep.subr.mxu0 %v2223_v0 }
 0x17f   : > { %4564 = vmatpush3.msra.mxu0 %v2223_v0 }
 0x180   : > { %4530 = vmatmul.mubr.f32.gmra.mxu1 %v1959_v28  ;;  %4565 = vmatprep.subr.mxu0 %v2222_v48 }
 0x181   : > { %4456 = vmatmul.mubr.f32.gmra.mxu0 %v1786_v31  ;;  %4532 = vmatprep.mubr.msk.f32.mxu1 %vm5035_vm3, %v7035_v2 }
 0x182   : > { %4458 = vmatprep.mubr.msk.f32.mxu0 %vm5035_vm3, %v7035_v2  ;;  %4566 = vmatpush3.msra.mxu0 %v2222_v48 }
 0x183   : > { %4567 = vmatprep.subr.mxu0 %v2221_v40 }
 0x184   : > { %4533 = vmatmul.mubr.f32.gmra.mxu1 %v1960_v4  ;;  %4568 = vmatpush3.msra.mxu0 %v2221_v40 }
 0x185   : > { %4459 = vmatmul.mubr.f32.gmra.mxu0 %v1787_v3  ;;  %4535 = vmatprep.mubr.msk.f32.mxu1 %vm5035_vm3, %v7035_v2 }
 0x186   : > { %4461 = vmatprep.mubr.msk.f32.mxu0 %vm5035_vm3, %v7035_v2  ;;  %4569 = vmatprep.subr.mxu0 %v2220_v55 }
 0x187   : > { %4570 = vmatpush3.msra.mxu0 %v2220_v55 }
 0x188   : > { %4536 = vmatmul.mubr.f32.gmra.mxu1 %v1961_v39  ;;  %4571 = vmatprep.subr.mxu0 %v2219_v58 }
 0x189   : > { %4462 = vmatmul.mubr.f32.gmra.mxu0 %v1788_v30  ;;  %4538 = vmatprep.mubr.msk.f32.mxu1 %vm5035_vm3, %v7035_v2 }
 0x18a   : > { %4464 = vmatprep.mubr.msk.f32.mxu0 %vm5035_vm3, %v7035_v2  ;;  %4572 = vmatpush3.msra.mxu0 %v2219_v58 }
 0x18b   : > { %4573 = vmatprep.subr.mxu0 %v2218_v59 }
 0x18c   : > { %4539 = vmatmul.mubr.f32.gmra.mxu1 %v1962_v7  ;;  %4574 = vmatpush3.msra.mxu0 %v2218_v59 }
 0x18d   : > { %4465 = vmatmul.mubr.f32.gmra.mxu0 %v1789_v5  ;;  %4541 = vmatprep.mubr.msk.f32.mxu1 %vm5035_vm3, %v7035_v2 }
 0x18e   : > { %4467 = vmatprep.mubr.msk.f32.mxu0 %vm5035_vm3, %v7035_v2  ;;  %4575 = vmatprep.subr.mxu0 %v2217_v23 }
 0x18f   : > { %4576 = vmatpush3.msra.mxu0 %v2217_v23 }
 0x190   : > { %4542 = vmatmul.mubr.f32.gmra.mxu1 %v1963_v44  ;;  %4577 = vmatprep.subr.mxu0 %v2216_v26 }
 0x191   : > { %4468 = vmatmul.mubr.f32.gmra.mxu0 %v1790_v8  ;;  %4544 = vmatprep.mubr.msk.f32.mxu1 %vm5035_vm3, %v7035_v2 }
 0x192   : > { %4470 = vmatprep.mubr.msk.f32.mxu0 %vm5035_vm3, %v7035_v2  ;;  %4578 = vmatpush3.msra.mxu0 %v2216_v26 }
 0x193   : > { %4579 = vmatprep.subr.mxu0 %v2215_v1 }
 0x194   : > { %4545 = vmatmul.mubr.f32.gmra.mxu1 %v1964_v43  ;;  %4580 = vmatpush3.msra.mxu0 %v2215_v1 }
 0x195   : > { %4471 = vmatmul.mubr.f32.gmra.mxu0 %v1791_v47  ;;  %4547 = vmatprep.mubr.msk.f32.mxu1 %vm5035_vm3, %v7035_v2 }
 0x196   : > { %4473 = vmatprep.mubr.msk.f32.mxu0 %vm5035_vm3, %v7035_v2  ;;  %4581 = vmatprep.subr.mxu0 %v2214_v12 }
 0x197   : > { %4582 = vmatpush3.msra.mxu0 %v2214_v12 }
 0x198   : > { %4548 = vmatmul.mubr.f32.gmra.mxu1 %v1965_v10  ;;  %4583 = vmatprep.subr.mxu0 %v2213_v24 }
 0x199   : > { %4474 = vmatmul.mubr.f32.gmra.mxu0 %v1792_v45  ;;  %4550 = vmatprep.mubr.msk.f32.mxu1 %vm5035_vm3, %v7035_v2 }
 0x19a   : > { %4476 = vmatprep.mubr.msk.f32.mxu0 %vm5035_vm3, %v7035_v2  ;;  %4584 = vmatpush3.msra.mxu0 %v2213_v24 }
 0x19b   : > { %4585 = vmatprep.subr.mxu0 %v2212_v51 }
 0x19c   : > { %4551 = vmatmul.mubr.f32.gmra.mxu1 %v1966_v19  ;;  %4586 = vmatpush3.msra.mxu0 %v2212_v51  ;;  %v6477_v51 = vld [vmem:[%s7017_s4] ss:$0 sm:$0xff] }
 0x19d   : > { %4477 = vmatmul.mubr.f32.gmra.mxu0 %v1793_v20  ;;  %4553 = vmatprep.mubr.msk.f32.mxu1 %vm5035_vm3, %v7035_v2 }
 0x19e   : > { %4479 = vmatprep.mubr.msk.f32.mxu0 %vm5035_vm3, %v7035_v2  ;;  %4587 = vmatprep.subr.mxu0 %v2211_v29 }
 0x19f   : > { %4588 = vmatpush3.msra.mxu0 %v2211_v29 }
 0x1a0   : > { %4554 = vmatmul.mubr.f32.gmra.mxu1 %v1967_v25  ;;  %4589 = vmatprep.subr.mxu0 %v2210_v60 }
 0x1a1   : > { %4480 = vmatmul.mubr.f32.gmra.mxu0 %v1794_v11  ;;  %4556 = vmatprep.mubr.msk.f32.mxu1 %vm5035_vm3, %v7035_v2 }
 0x1a2   : > { %4482 = vmatprep.mubr.msk.f32.mxu0 %vm5035_vm3, %v7035_v2  ;;  %4590 = vmatpush3.msra.mxu0 %v2210_v60 }
 0x1a3   : > { %4653 = vmatprep.subr.mxu0 %v6429_v49 }
 0x1a4   : > { %4557 = vmatmul.mubr.f32.gmra.mxu1 %v1968_v32 }
 0x1a5   : > { %4483 = vmatmul.mubr.f32.gmra.mxu0 %v1795_v6 }
 0x1a6   : > { %4485 = vmatprep.mubr.msk.f32.mxu0 %vm5035_vm3, %v7035_v2  ;;  %v2198_v2 = vld [vmem:[%s7018_s5 + $0x70] sm:$0xff] }
 0x1a7   : > { %4608 = vmatprep.subr.mxu1 %v2198_v2 }
 0x1a8   : > { %4609 = vmatpush3.msra.mxu1 %v2198_v2 }
 0x1a9   : > { %4486 = vmatmul.mubr.f32.gmra.mxu0 %v1796_v22  ;;  %4610 = vmatprep.subr.mxu1 %v2197_v33 }
 0x1aa   : > { %4611 = vmatpush3.msra.mxu1 %v2197_v33 }
 0x1ab   : > { %4612 = vmatprep.subr.mxu1 %v2196_v61 }
 0x1ac   : > { %4613 = vmatpush3.msra.mxu1 %v2196_v61 }
 0x1ad   : > { %4614 = vmatprep.subr.mxu1 %v2195_v50 }
 0x1ae   : > { %4615 = vmatpush3.msra.mxu1 %v2195_v50 }
 0x1af   : > { %4616 = vmatprep.subr.mxu1 %v2194_v46 }
 0x1b0   : > { %4617 = vmatpush3.msra.mxu1 %v2194_v46 }
 0x1b1   : > { %4618 = vmatprep.subr.mxu1 %v2193_v56 }
 0x1b2   : > { %4619 = vmatpush3.msra.mxu1 %v2193_v56 }
 0x1b3   : > { %4620 = vmatprep.subr.mxu1 %v2192_v57 }
 0x1b4   : > { %4621 = vmatpush3.msra.mxu1 %v2192_v57 }
 0x1b5   : > { %4622 = vmatprep.subr.mxu1 %v2191_v52 }
 0x1b6   : > { %4623 = vmatpush3.msra.mxu1 %v2191_v52 }
 0x1b7   : > { %4624 = vmatprep.subr.mxu1 %v2190_v9 }
 0x1b8   : > { %4625 = vmatpush3.msra.mxu1 %v2190_v9 }
 0x1b9   : > { %4626 = vmatprep.subr.mxu1 %v2189_v18 }
 0x1ba   : > { %4627 = vmatpush3.msra.mxu1 %v2189_v18 }
 0x1bb   : > { %4628 = vmatprep.subr.mxu1 %v2188_v36 }
 0x1bc   : > { %4629 = vmatpush3.msra.mxu1 %v2188_v36 }
 0x1bd   : > { %4630 = vmatprep.subr.mxu1 %v2187_v37 }
 0x1be   : > { %4631 = vmatpush3.msra.mxu1 %v2187_v37 }
 0x1bf   : > { %4632 = vmatprep.subr.mxu1 %v2186_v13 }
 0x1c0   : > { %4633 = vmatpush3.msra.mxu1 %v2186_v13 }
 0x1c1   : > { %4634 = vmatprep.subr.mxu1 %v2185_v38 }
 0x1c2   : > { %4635 = vmatpush3.msra.mxu1 %v2185_v38 }
 0x1c3   : > { %4636 = vmatprep.subr.mxu1 %v2184_v62 }
 0x1c4   : > { %4637 = vmatpush3.msra.mxu1 %v2184_v62 }
 0x1c5   : > { %4700 = vmatprep.subr.mxu1 %v6411_v14 }
 0x1f9   : > { %v1720_v34 = vpop.f32.mrf.mxu1 }
 0x1fb   : > { %v4380_v15 = vpop.f32.mrf.mxu1 }
 0x1fd   : > { %v1725_v41 = vpop.f32.mrf.mxu1 }
 0x1ff   : > { %v4383_v42 = vpop.f32.mrf.mxu1 }
 0x201   : > { %v6432_v54 = vpop.f32.mrf.mxu1 }
 0x203   : > { %v4386_v21 = vpop.f32.mrf.mxu1 }
 0x205   : > { %v1590_v27 = vpop.f32.mrf.mxu0  ;;  %v6434_v17 = vpop.f32.mrf.mxu1 }
 0x206   : > { %v1721_v38 = vadd.f32 %v1720_v34, %v1590_v27 }
 0x207   : > { %v4309_v63 = vpop.f32.mrf.mxu0  ;;  %v4389_v28 = vpop.f32.mrf.mxu1 }
 0x209   : > { %v1595_v31 = vpop.f32.mrf.mxu0 }
 0x20a   : > { %v1726_v60 = vadd.f32 %v1725_v41, %v1595_v31 }
 0x20b   : > { %v4312_v4 = vpop.f32.mrf.mxu0  ;;  %v6436_v3 = vpop.f32.mrf.mxu1 }
 0x20d   : > { %v1600_v39 = vpop.f32.mrf.mxu0  ;;  %v4392_v30 = vpop.f32.mrf.mxu1 }
 0x20e   : > { %v1731_v34 = vadd.f32 %v6432_v54, %v1600_v39  ;;  %v2631_v54 = vld [vmem:[%s7018_s5 + $0x1f0] sm:$0xff] }
 0x20f   : > { %v4315_v7 = vpop.f32.mrf.mxu0  ;;  %v6438_v5 = vpop.f32.mrf.mxu1 }
 0x211   : > { %v6440_v44 = vpop.f32.mrf.mxu0  ;;  %v4395_v8 = vpop.f32.mrf.mxu1 }
 0x212   : > { %v1736_v31 = vadd.f32 %v6434_v17, %v6440_v44  ;;  %v2630_v17 = vld [vmem:[%s7018_s5 + $0x1e8] sm:$0xff] }
 0x213   : > { %v4318_v43 = vpop.f32.mrf.mxu0  ;;  %v6442_v47 = vpop.f32.mrf.mxu1 }
 0x215   : > { %v6444_v10 = vpop.f32.mrf.mxu0  ;;  %v4398_v45 = vpop.f32.mrf.mxu1 }
 0x216   : > { %v1741_v44 = vadd.f32 %v6436_v3, %v6444_v10 }
 0x217   : > { %v4321_v19 = vpop.f32.mrf.mxu0  ;;  %v6446_v20 = vpop.f32.mrf.mxu1 }
 0x219   : > { %v6448_v25 = vpop.f32.mrf.mxu0  ;;  %v4401_v11 = vpop.f32.mrf.mxu1 }
 0x21a   : > { %v1746_v3 = vadd.f32 %v6438_v5, %v6448_v25  ;;  %v2627_v5 = vld [vmem:[%s7018_s5 + $0x1d0] sm:$0xff] }
 0x21b   : > { %v4324_v53 = vpop.f32.mrf.mxu0  ;;  %v6450_v32 = vpop.f32.mrf.mxu1 }
 0x21d   : > { %v6452_v6 = vpop.f32.mrf.mxu0  ;;  %v4404_v35 = vpop.f32.mrf.mxu1 }
 0x21f   : > { %v4327_v16 = vpop.f32.mrf.mxu0  ;;  %v6454_v22 = vpop.f32.mrf.mxu1 }
 0x221   : > { %v6456_v0 = vpop.f32.mrf.mxu0  ;;  %v4407_v2 = vpop.f32.mrf.mxu1 }
 0x223   : > { %v4330_v48 = vpop.f32.mrf.mxu0  ;;  %v6458_v33 = vpop.f32.mrf.mxu1 }
 0x225   : > { %v6460_v40 = vpop.f32.mrf.mxu0  ;;  %v4410_v61 = vpop.f32.mrf.mxu1 }
 0x227   : > { %v4333_v55 = vpop.f32.mrf.mxu0 }
 0x228   : > { %v6462_v50 = vpop.f32.mrf.mxu1 }
 0x229   : > { %v6464_v58 = vpop.f32.mrf.mxu0 }
 0x22a   : > { %v4413_v46 = vpop.f32.mrf.mxu1 }
 0x22b   : > { %v4336_v56 = vpop.f32.mrf.mxu0 }
 0x22d   : > { %v6466_v57 = vpop.f32.mrf.mxu0  ;;  %v6468_v52 = vpop.f32.mrf.mxu1 }
 0x22f   : > { %v4339_v9 = vpop.f32.mrf.mxu0  ;;  %v4416_v18 = vpop.f32.mrf.mxu1 }
 0x231   : > { %v6470_v59 = vpop.f32.mrf.mxu0 }
 0x233   : > { %v4342_v23 = vpop.f32.mrf.mxu0 }
 0x234   : > { %v2051_v36 = vpop.f32.mrf.mxu1  ;;  %v2629_v23 = vld [vmem:[%s7018_s5 + $0x1e0] sm:$0xff] }
 0x235   : > { %v6472_v37 = vpop.f32.mrf.mxu0 }
 0x236   : > { %v4522_v26 = vpop.f32.mrf.mxu1 }
 0x237   : > { %v4345_v13 = vpop.f32.mrf.mxu0 }
 0x238   : > { %v2056_v1 = vpop.f32.mrf.mxu1 }
 0x239   : > { %v1879_v62 = vpop.f32.mrf.mxu0 }
 0x23a   : > { %v1943_v12 = vadd.f32 %v1879_v62, %v1721_v38  ;;  %v4525_v24 = vpop.f32.mrf.mxu1  ;;  %v2628_v62 = vld [vmem:[%s7018_s5 + $0x1d8] sm:$0xff] }
 0x23b   : > { %v4451_v29 = vpop.f32.mrf.mxu0 }
 0x23c   : > { %v2115_v15 = vadd.f32 %v2051_v36, %v1943_v12  ;;  %v2061_v42 = vpop.f32.mrf.mxu1 }
 0x23d   : > { %v1884_v21 = vpop.f32.mrf.mxu0 }
 0x23e   : > { %v2135_v63 = vadd.f32 %v6477_v51, %v2115_v15  ;;  %v1944_v28 = vadd.f32 %v1884_v21, %v1726_v60  ;;  %v4528_v4 = vpop.f32.mrf.mxu1 }
 0x23f   : > { %v4454_v30 = vpop.f32.mrf.mxu0 }
 0x240   : > { %v2148_v27 = vmax.f32 %v2135_v63, 0.0  ;;  %v2116_v7 = vadd.f32 %v2056_v1, %v1944_v28  ;;  %v2066_v8 = vpop.f32.mrf.mxu1 }
 0x241   : > { %v1889_v43 = vpop.f32.mrf.mxu0 }
 0x242   : > { %2161 = vst [vmem:[#allocation3] sm:$0xff] %v2148_v27  ;;  %v2136_v45 = vadd.f32 %v6477_v51, %v2116_v7  ;;  %v1945_v19 = vadd.f32 %v1889_v43, %v1731_v34  ;;  %v4531_v11 = vpop.f32.mrf.mxu1  ;;  %4638 = vmatprep.mubr.f32.mxu1 %v2148_v27  ;;  %v2480_v34 = vld [vmem:[%s7018_s5 + $0x170] sm:$0xff]  ;;  %v2626_v27 = vld [vmem:[%s7018_s5 + $0x1c8] sm:$0xff] }
 0x243   : > { %v4457_v41 = vpop.f32.mrf.mxu0  ;;  %v2479_v43 = vld [vmem:[%s7018_s5 + $0x168] sm:$0xff] }
 0x244   : > { %v2149_v53 = vmax.f32 %v2136_v45, 0.0  ;;  %v2117_v35 = vadd.f32 %v2061_v42, %v1945_v19  ;;  %v2071_v16 = vpop.f32.mrf.mxu1  ;;  %v1751_v42 = vadd.f32 %v6442_v47, %v6452_v6  ;;  %v1756_v45 = vadd.f32 %v6446_v20, %v6456_v0 }
 0x245   : > { %v1894_v2 = vpop.f32.mrf.mxu0 }
 0x246   : > { %2162 = vst [vmem:[#allocation3 + $0x8] sm:$0xff] %v2149_v53  ;;  %v2137_v39 = vadd.f32 %v6477_v51, %v2117_v35  ;;  %v1946_v48 = vadd.f32 %v1894_v2, %v1736_v31  ;;  %v4534_v61 = vpop.f32.mrf.mxu1  ;;  %4639 = vmatmul.mubr.f32.vlgmr.msra.gmra.mxu1 %v2149_v53  ;;  %v2625_v35 = vld [vmem:[%s7018_s5 + $0x1c0] sm:$0xff] }
 0x247   : > { %v4460_v55 = vpop.f32.mrf.mxu0  ;;  %4701 = vmatpush3.msra.mxu1 %v6411_v14 }
 0x248   : > { %v2150_v46 = vmax.f32 %v2137_v39, 0.0  ;;  %v2118_v56 = vadd.f32 %v2066_v8, %v1946_v48  ;;  %v2076_v9 = vpop.f32.mrf.mxu1  ;;  %4702 = vmatprep.subr.mxu1 %v2631_v54  ;;  %v1761_v39 = vadd.f32 %v6450_v32, %v6460_v40 }
 0x249   : > { %v1899_v18 = vpop.f32.mrf.mxu0  ;;  %4703 = vmatpush3.msra.mxu1 %v2631_v54  ;;  %v2477_v54 = vld [vmem:[%s7018_s5 + $0x158] sm:$0xff] }
 0x24a   : > { %2163 = vst [vmem:[#allocation3 + $0x10] sm:$0xff] %v2150_v46  ;;  %v2138_v14 = vadd.f32 %v6477_v51, %v2118_v56  ;;  %v1947_v36 = vadd.f32 %v1899_v18, %v1741_v44  ;;  %v4537_v26 = vpop.f32.mrf.mxu1  ;;  %4641 = vmatprep.mubr.f32.mxu1 %v2150_v46  ;;  %4704 = vmatprep.subr.mxu1 %v2630_v17  ;;  %v2476_v56 = vld [vmem:[%s7018_s5 + $0x150] sm:$0xff] }
 0x24b   : > { %v4463_v13 = vpop.f32.mrf.mxu0  ;;  %4705 = vmatpush3.msra.mxu1 %v2630_v17  ;;  %v2624_v17 = vld [vmem:[%s7018_s5 + $0x1b8] sm:$0xff] }
 0x24c   : > { %v2151_v10 = vmax.f32 %v2138_v14, 0.0  ;;  %v2119_v38 = vadd.f32 %v2071_v16, %v1947_v36  ;;  %v2081_v1 = vpop.f32.mrf.mxu1  ;;  %4706 = vmatprep.subr.mxu1 %v2629_v23  ;;  %v1766_v14 = vadd.f32 %v6454_v22, %v6464_v58 }
 0x24d   : > { %v1904_v12 = vpop.f32.mrf.mxu0  ;;  %v2200_v24 = vld [vmem:[#allocation3 + $0x1] sm:$0xff]  ;;  %4707 = vmatpush3.msra.mxu1 %v2629_v23  ;;  %v2475_v23 = vld [vmem:[%s7018_s5 + $0x148] sm:$0xff] }
 0x24e   : > { %2164 = vst [vmem:[#allocation3 + $0x18] sm:$0xff] %v2151_v10  ;;  %v2139_v29 = vadd.f32 %v6477_v51, %v2119_v38  ;;  %v1948_v60 = vadd.f32 %v1904_v12, %v1746_v3  ;;  %4591 = vmatprep.mubr.f32.mxu0 %v2200_v24  ;;  %v4540_v15 = vpop.f32.mrf.mxu1  ;;  %4642 = vmatmul.mubr.f32.gmra.mxu1 %v2151_v10  ;;  %v2623_v3 = vld [vmem:[%s7018_s5 + $0x1b0] sm:$0xff]  ;;  %v2622_v12 = vld [vmem:[%s7018_s5 + $0x1a8] sm:$0xff] }
 0x24f   : > { %v4466_v25 = vpop.f32.mrf.mxu0  ;;  %4708 = vmatprep.subr.mxu1 %v2628_v62 }
 0x250   : > { %v2152_v21 = vmax.f32 %v2139_v29, 0.0  ;;  %v2120_v63 = vadd.f32 %v2076_v9, %v1948_v60  ;;  %v2086_v28 = vpop.f32.mrf.mxu1  ;;  %4709 = vmatpush3.msra.mxu1 %v2628_v62  ;;  %v2473_v29 = vld [vmem:[%s7018_s5 + $0x138] sm:$0xff]  ;;  %v1771_v60 = vadd.f32 %v6458_v33, %v6466_v57  ;;  %v2621_v33 = vld [vmem:[%s7018_s5 + $0x1a0] sm:$0xff] }
 0x251   : > { %v1909_v4 = vpop.f32.mrf.mxu0  ;;  %v2201_v30 = vld [vmem:[#allocation3 + $0x9] sm:$0xff]  ;;  %4710 = vmatprep.subr.mxu1 %v2627_v5 }
 0x252   : > { %2165 = vst [vmem:[#allocation3 + $0x20] sm:$0xff] %v2152_v21  ;;  %v2140_v7 = vadd.f32 %v6477_v51, %v2120_v63  ;;  %v1949_v8 = vadd.f32 %v1909_v4, %v1751_v42  ;;  %4592 = vmatmul.mubr.f32.vlgmr.msra.gmra.mxu0 %v2201_v30  ;;  %v4543_v47 = vpop.f32.mrf.mxu1  ;;  %4644 = vmatprep.mubr.f32.mxu1 %v2152_v21  ;;  %v2472_v63 = vld [vmem:[%s7018_s5 + $0x130] sm:$0xff] }
 0x253   : > { %v4469_v6 = vpop.f32.mrf.mxu0  ;;  %4654 = vmatpush3.msra.mxu0 %v6429_v49  ;;  %4711 = vmatpush3.msra.mxu1 %v2627_v5  ;;  %v2478_v49 = vld [vmem:[%s7018_s5 + $0x160] sm:$0xff]  ;;  %v2471_v47 = vld [vmem:[%s7018_s5 + $0x128] sm:$0xff] }
 0x254   : > { %v2153_v19 = vmax.f32 %v2140_v7, 0.0  ;;  %v2121_v11 = vadd.f32 %v2081_v1, %v1949_v8  ;;  %v2091_v41 = vpop.f32.mrf.mxu1  ;;  %4655 = vmatprep.subr.mxu0 %v2480_v34  ;;  %4712 = vmatprep.subr.mxu1 %v2626_v27  ;;  %v2474_v1 = vld [vmem:[%s7018_s5 + $0x140] sm:$0xff]  ;;  %v2620_v6 = vld [vmem:[%s7018_s5 + $0x198] sm:$0xff] }
 0x255   : > { %v1914_v31 = vpop.f32.mrf.mxu0  ;;  %v2202_v53 = vld [vmem:[#allocation3 + $0x11] sm:$0xff]  ;;  %4656 = vmatpush3.msra.mxu0 %v2480_v34  ;;  %4713 = vmatpush3.msra.mxu1 %v2626_v27  ;;  %v1776_v34 = vadd.f32 %v6462_v50, %v6470_v59 }
 0x256   : > { %2166 = vst [vmem:[#allocation3 + $0x28] sm:$0xff] %v2153_v19  ;;  %v2141_v20 = vadd.f32 %v6477_v51, %v2121_v11  ;;  %v1950_v0 = vadd.f32 %v1914_v31, %v1756_v45  ;;  %4594 = vmatprep.mubr.f32.mxu0 %v2202_v53  ;;  %v4546_v16 = vpop.f32.mrf.mxu1  ;;  %4657 = vmatprep.subr.mxu0 %v2479_v43  ;;  %v2470_v11 = vld [vmem:[%s7018_s5 + $0x120] sm:$0xff]  ;;  %v2619_v31 = vld [vmem:[%s7018_s5 + $0x190] sm:$0xff] }
 0x257   : > { %v4472_v2 = vpop.f32.mrf.mxu0  ;;  %4658 = vmatpush3.msra.mxu0 %v2479_v43  ;;  %4645 = vmatmul.mubr.f32.gmra.mxu1 %v2153_v19  ;;  %v1781_v53 = vadd.f32 %v6468_v52, %v6472_v37  ;;  %v2469_v16 = vld [vmem:[%s7018_s5 + $0x118] sm:$0xff] }
 0x258   : > { %v2154_v48 = vmax.f32 %v2141_v20, 0.0  ;;  %v2122_v61 = vadd.f32 %v2086_v28, %v1950_v0  ;;  %v2096_v55 = vpop.f32.mrf.mxu1  ;;  %4659 = vmatprep.subr.mxu0 %v2478_v49  ;;  %4714 = vmatprep.subr.mxu1 %v2625_v35  ;;  %v2618_v2 = vld [vmem:[%s7018_s5 + $0x188] sm:$0xff] }
 0x259   : > { %v1919_v44 = vpop.f32.mrf.mxu0  ;;  %v2203_v46 = vld [vmem:[#allocation3 + $0x19] sm:$0xff]  ;;  %4660 = vmatpush3.msra.mxu0 %v2478_v49  ;;  %4715 = vmatpush3.msra.mxu1 %v2625_v35 }
 0x25a   : > { %2167 = vst [vmem:[#allocation3 + $0x30] sm:$0xff] %v2154_v48  ;;  %v2142_v32 = vadd.f32 %v6477_v51, %v2122_v61  ;;  %v1951_v40 = vadd.f32 %v1919_v44, %v1761_v39  ;;  %4595 = vmatmul.mubr.f32.gmra.mxu0 %v2203_v46  ;;  %v4549_v9 = vpop.f32.mrf.mxu1  ;;  %4661 = vmatprep.subr.mxu0 %v2477_v54  ;;  %v2468_v61 = vld [vmem:[%s7018_s5 + $0x110] sm:$0xff]  ;;  %v2467_v46 = vld [vmem:[%s7018_s5 + $0x108] sm:$0xff] }
 0x25b   : > { %v4475_v18 = vpop.f32.mrf.mxu0  ;;  %4662 = vmatpush3.msra.mxu0 %v2477_v54  ;;  %4716 = vmatprep.subr.mxu1 %v2624_v17  ;;  %v2466_v9 = vld [vmem:[%s7018_s5 + $0x100] sm:$0xff] }
 0x25c   : > { %v2155_v36 = vmax.f32 %v2142_v32, 0.0  ;;  %v2123_v26 = vadd.f32 %v2091_v41, %v1951_v40  ;;  %v2101_v13 = vpop.f32.mrf.mxu1  ;;  %4663 = vmatprep.subr.mxu0 %v2476_v56  ;;  %4647 = vmatprep.mubr.f32.mxu1 %v2154_v48  ;;  %v2934_v32 = vld [vmem:[%s7018_s5 + $0x2f8] sm:$0xff]  ;;  %v2608_v18 = vld [vmem:[#allocation3 + $0x13] sm:$0xff] }
 0x25d   : > { %v1924_v10 = vpop.f32.mrf.mxu0  ;;  %v2204_v38 = vld [vmem:[#allocation3 + $0x21] sm:$0xff]  ;;  %4664 = vmatpush3.msra.mxu0 %v2476_v56  ;;  %4717 = vmatpush3.msra.mxu1 %v2624_v17  ;;  %v2607_v56 = vld [vmem:[#allocation3 + $0xb] sm:$0xff] }
 0x25e   : > { %2168 = vst [vmem:[#allocation3 + $0x38] sm:$0xff] %v2155_v36  ;;  %v2143_v22 = vadd.f32 %v6477_v51, %v2123_v26  ;;  %v1952_v58 = vadd.f32 %v1924_v10, %v1766_v14  ;;  %4597 = vmatprep.mubr.f32.mxu0 %v2204_v38  ;;  %v4552_v62 = vpop.f32.mrf.mxu1  ;;  %4665 = vmatprep.subr.mxu0 %v2475_v23  ;;  %v2456_v14 = vld [vmem:[#allocation3 + $0x2] sm:$0xff]  ;;  %v2782_v38 = vld [vmem:[%s7018_s5 + $0x270] sm:$0xff] }
 0x25f   : > { %v4478_v24 = vpop.f32.mrf.mxu0  ;;  %4666 = vmatpush3.msra.mxu0 %v2475_v23  ;;  %4718 = vmatprep.subr.mxu1 %v2623_v3  ;;  %v2933_v23 = vld [vmem:[%s7018_s5 + $0x2f0] sm:$0xff]  ;;  %v2783_v26 = vld [vmem:[%s7018_s5 + $0x278] sm:$0xff]  ;;  %v2781_v62 = vld [vmem:[%s7018_s5 + $0x268] sm:$0xff] }
 0x260   : > { %v2156_v15 = vmax.f32 %v2143_v22, 0.0  ;;  %v2124_v5 = vadd.f32 %v2096_v55, %v1952_v58  ;;  %v2106_v25 = vpop.f32.mrf.mxu1  ;;  %4667 = vmatprep.subr.mxu0 %v2474_v1  ;;  %4719 = vmatpush3.msra.mxu1 %v2623_v3  ;;  %v2617_v55 = vld [vmem:[%s7018_s5 + $0x180] sm:$0xff]  ;;  %v2459_v24 = vld [vmem:[#allocation3 + $0x1a] sm:$0xff] }
 0x261   : > { %v1929_v42 = vpop.f32.mrf.mxu0  ;;  %v2205_v21 = vld [vmem:[#allocation3 + $0x29] sm:$0xff]  ;;  %4668 = vmatpush3.msra.mxu0 %v2474_v1  ;;  %4720 = vmatprep.subr.mxu1 %v2622_v12  ;;  %v2458_v1 = vld [vmem:[#allocation3 + $0x12] sm:$0xff] }
 0x262   : > { %2169 = vst [vmem:[#allocation3 + $0x40] sm:$0xff] %v2156_v15  ;;  %v2144_v28 = vadd.f32 %v6477_v51, %v2124_v5  ;;  %v1953_v4 = vadd.f32 %v1929_v42, %v1771_v60  ;;  %4598 = vmatmul.mubr.f32.gmra.mxu0 %v2205_v21  ;;  %v4555_v30 = vpop.f32.mrf.mxu1  ;;  %4669 = vmatprep.subr.mxu0 %v2473_v29  ;;  %v2457_v3 = vld [vmem:[#allocation3 + $0xa] sm:$0xff]  ;;  %v2929_v5 = vld [vmem:[%s7018_s5 + $0x2d0] sm:$0xff]  ;;  %v2779_v42 = vld [vmem:[%s7018_s5 + $0x258] sm:$0xff] }
 0x263   : > { %v4481_v57 = vpop.f32.mrf.mxu0  ;;  %4648 = vmatmul.mubr.f32.gmra.mxu1 %v2155_v36  ;;  %4670 = vmatpush3.msra.mxu0 %v2473_v29  ;;  %v2609_v36 = vld [vmem:[#allocation3 + $0x1b] sm:$0xff]  ;;  %v2610_v10 = vld [vmem:[#allocation3 + $0x23] sm:$0xff]  ;;  %v2611_v58 = vld [vmem:[#allocation3 + $0x2b] sm:$0xff] }
 0x264   : > { %v6570_v27 = vmax.f32 %v2144_v28, 0.0  ;;  %v2125_v7 = vadd.f32 %v2101_v13, %v1953_v4  ;;  %v2111_v8 = vpop.f32.mrf.mxu1  ;;  %4721 = vmatpush3.msra.mxu1 %v2622_v12  ;;  %4671 = vmatprep.subr.mxu0 %v2472_v63  ;;  %v2932_v13 = vld [vmem:[%s7018_s5 + $0x2e8] sm:$0xff]  ;;  %v2931_v22 = vld [vmem:[%s7018_s5 + $0x2e0] sm:$0xff]  ;;  %v2930_v12 = vld [vmem:[%s7018_s5 + $0x2d8] sm:$0xff] }
 0x265   : > { %v1934_v43 = vpop.f32.mrf.mxu0  ;;  %v2206_v45 = vld [vmem:[#allocation3 + $0x31] sm:$0xff]  ;;  %4722 = vmatprep.subr.mxu1 %v2621_v33  ;;  %4672 = vmatpush3.msra.mxu0 %v2472_v63  ;;  %v2780_v60 = vld [vmem:[%s7018_s5 + $0x260] sm:$0xff] }
 0x266   : > { %2170 = vst [vmem:[#allocation3 + $0x48] sm:$0xff] %v6570_v27  ;;  %v6580_v50 = vadd.f32 %v6477_v51, %v2125_v7  ;;  %v1954_v59 = vadd.f32 %v1934_v43, %v1776_v34  ;;  %4600 = vmatprep.mubr.f32.mxu0 %v2206_v45  ;;  %v4558_v19 = vpop.f32.mrf.mxu1  ;;  %4723 = vmatpush3.msra.mxu1 %v2621_v33  ;;  %v2612_v29 = vld [vmem:[#allocation3 + $0x33] sm:$0xff]  ;;  %v2461_v63 = vld [vmem:[#allocation3 + $0x2a] sm:$0xff]  ;;  %v2926_v7 = vld [vmem:[%s7018_s5 + $0x2b8] sm:$0xff] }
 0x267   : > { %v4484_v41 = vpop.f32.mrf.mxu0  ;;  %4673 = vmatprep.subr.mxu0 %v2471_v47  ;;  %4724 = vmatprep.subr.mxu1 %v2620_v6  ;;  %v2928_v21 = vld [vmem:[%s7018_s5 + $0x2c8] sm:$0xff]  ;;  %v2778_v4 = vld [vmem:[%s7018_s5 + $0x250] sm:$0xff]  ;;  %v2927_v33 = vld [vmem:[%s7018_s5 + $0x2c0] sm:$0xff] }
 0x268   : > { %v2158_v49 = vmax.f32 %v6580_v50, 0.0  ;;  %v2126_v35 = vadd.f32 %v2106_v25, %v1954_v59  ;;  %4650 = vmatprep.mubr.f32.mxu1 %v2156_v15  ;;  %4674 = vmatpush3.msra.mxu0 %v2471_v47  ;;  %v2460_v15 = vld [vmem:[#allocation3 + $0x22] sm:$0xff]  ;;  %v2462_v30 = vld [vmem:[#allocation3 + $0x32] sm:$0xff] }
 0x269   : > { %v1939_v20 = vpop.f32.mrf.mxu0  ;;  %v2207_v0 = vld [vmem:[#allocation3 + $0x39] sm:$0xff]  ;;  %4725 = vmatpush3.msra.mxu1 %v2620_v6  ;;  %4675 = vmatprep.subr.mxu0 %v2470_v11  ;;  %v2777_v34 = vld [vmem:[%s7018_s5 + $0x248] sm:$0xff]  ;;  %v2776_v6 = vld [vmem:[%s7018_s5 + $0x240] sm:$0xff] }
 0x26a   : > { %2171 = vst [vmem:[#allocation3 + $0x50] sm:$0xff] %v2158_v49  ;;  %v6600_v52 = vadd.f32 %v6477_v51, %v2126_v35  ;;  %v1955_v37 = vadd.f32 %v1939_v20, %v1781_v53  ;;  %4601 = vmatmul.mubr.f32.gmra.mxu0 %v2207_v0  ;;  %4726 = vmatprep.subr.mxu1 %v2619_v31  ;;  %v2613_v25 = vld [vmem:[#allocation3 + $0x3b] sm:$0xff]  ;;  %v2909_v19 = vld [vmem:[#allocation3 + $0xd] sm:$0xff] }
 0x26b   : > { %v4487_v54 = vpop.f32.mrf.mxu0  ;;  %4676 = vmatpush3.msra.mxu0 %v2470_v11  ;;  %4727 = vmatpush3.msra.mxu1 %v2619_v31  ;;  %v2925_v43 = vld [vmem:[%s7018_s5 + $0x2b0] sm:$0xff]  ;;  %v2775_v59 = vld [vmem:[%s7018_s5 + $0x238] sm:$0xff]  ;;  %v2924_v11 = vld [vmem:[%s7018_s5 + $0x2a8] sm:$0xff] }
 0x26c   : > { %v2159_v39 = vmax.f32 %v6600_v52, 0.0  ;;  %v2127_v48 = vadd.f32 %v2111_v8, %v1955_v37  ;;  %4677 = vmatprep.subr.mxu0 %v2469_v16  ;;  %4728 = vmatprep.subr.mxu1 %v2618_v2  ;;  %v2463_v8 = vld [vmem:[#allocation3 + $0x3a] sm:$0xff]  ;;  %v2923_v53 = vld [vmem:[%s7018_s5 + $0x2a0] sm:$0xff]  ;;  %v2773_v20 = vld [vmem:[%s7018_s5 + $0x228] sm:$0xff] }
 0x26d   : > { %v2208_v17 = vld [vmem:[#allocation3 + $0x41] sm:$0xff]  ;;  %4651 = vmatmul.mubr.f32.gmra.mxu1 %v6570_v27  ;;  %4678 = vmatpush3.msra.mxu0 %v2469_v16  ;;  %v2774_v31 = vld [vmem:[%s7018_s5 + $0x230] sm:$0xff]  ;;  %v2758_v35 = vld [vmem:[#allocation3 + $0xc] sm:$0xff] }
 0x26e   : > { %2172 = vst [vmem:[#allocation3 + $0x58] sm:$0xff] %v2159_v39  ;;  %v6613_v44 = vadd.f32 %v6477_v51, %v2127_v48  ;;  %4603 = vmatprep.mubr.f32.mxu0 %v2208_v17  ;;  %4729 = vmatpush3.msra.mxu1 %v2618_v2  ;;  %v2614_v28 = vld [vmem:[#allocation3 + $0x43] sm:$0xff]  ;;  %v2921_v2 = vld [vmem:[%s7018_s5 + $0x290] sm:$0xff]  ;;  %v2920_v54 = vld [vmem:[%s7018_s5 + $0x288] sm:$0xff] }
 0x26f   : > { %4679 = vmatprep.subr.mxu0 %v2468_v61  ;;  %4730 = vmatprep.subr.mxu1 %v2617_v55  ;;  %v2464_v45 = vld [vmem:[#allocation3 + $0x42] sm:$0xff]  ;;  %v2770_v48 = vld [vmem:[%s7018_s5 + $0x210] sm:$0xff] }
 0x270   : > { %v2160_v40 = vmax.f32 %v6613_v44, 0.0  ;;  %4732 = vmatprep.mubr.f32.mxu1 %v2607_v56  ;;  %4680 = vmatpush3.msra.mxu0 %v2468_v61  ;;  %v2922_v0 = vld [vmem:[%s7018_s5 + $0x298] sm:$0xff]  ;;  %v2772_v16 = vld [vmem:[%s7018_s5 + $0x220] sm:$0xff] }
 0x271   : > { %4731 = vmatpush3.msra.mxu1 %v2617_v55  ;;  %4681 = vmatprep.subr.mxu0 %v2467_v46  ;;  %v2209_v51 = vld [vmem:[#allocation3 + $0x49] sm:$0xff]  ;;  %v2771_v37 = vld [vmem:[%s7018_s5 + $0x218] sm:$0xff] }
 0x272   : > { %2173 = vst [vmem:[#allocation3 + $0x60] sm:$0xff] %v2160_v40  ;;  %4794 = vmatprep.subr.mxu1 %v2934_v32  ;;  %4604 = vmatmul.mubr.f32.gmra.mxu0 %v2209_v51  ;;  %v2615_v57 = vld [vmem:[#allocation3 + $0x4b] sm:$0xff]  ;;  %v3236_v17 = vld [vmem:[%s7018_s5 + $0x3f8] sm:$0xff]  ;;  %v3235_v51 = vld [vmem:[%s7018_s5 + $0x3f0] sm:$0xff] }
 0x273   : > { %4682 = vmatpush3.msra.mxu0 %v2467_v46  ;;  %4733 = vmatmul.mubr.f32.vlgmr.msra.gmra.mxu1 %v2608_v18  ;;  %v2465_v41 = vld [vmem:[#allocation3 + $0x4a] sm:$0xff]  ;;  %v2910_v46 = vld [vmem:[#allocation3 + $0x15] sm:$0xff] }
 0x274   : > { %4795 = vmatpush3.msra.mxu1 %v2934_v32  ;;  %4683 = vmatprep.subr.mxu0 %v2466_v9  ;;  %v2919_v61 = vld [vmem:[%s7018_s5 + $0x280] sm:$0xff]  ;;  %v2769_v55 = vld [vmem:[%s7018_s5 + $0x208] sm:$0xff]  ;;  %v2911_v32 = vld [vmem:[#allocation3 + $0x1d] sm:$0xff] }
 0x275   : > { %4685 = vmatprep.mubr.f32.mxu0 %v2456_v14  ;;  %4735 = vmatprep.mubr.f32.mxu1 %v2609_v36  ;;  %v2616_v47 = vld [vmem:[#allocation3 + $0x53] sm:$0xff]  ;;  %v2768_v56 = vld [vmem:[%s7018_s5 + $0x200] sm:$0xff]  ;;  %v2760_v36 = vld [vmem:[#allocation3 + $0x1c] sm:$0xff] }
 0x276   : > { %4796 = vmatprep.subr.mxu1 %v2933_v23  ;;  %4684 = vmatpush3.msra.mxu0 %v2466_v9  ;;  %v3085_v9 = vld [vmem:[%s7018_s5 + $0x378] sm:$0xff]  ;;  %v2759_v18 = vld [vmem:[#allocation3 + $0x14] sm:$0xff] }
 0x277   : > { %4797 = vmatpush3.msra.mxu1 %v2933_v23  ;;  %4747 = vmatprep.subr.mxu0 %v2783_v26  ;;  %v3234_v23 = vld [vmem:[%s7018_s5 + $0x3e8] sm:$0xff]  ;;  %v2912_v14 = vld [vmem:[#allocation3 + $0x25] sm:$0xff] }
 0x278   : > { %4798 = vmatprep.subr.mxu1 %v2932_v13  ;;  %4686 = vmatmul.mubr.f32.vlgmr.msra.gmra.mxu0 %v2457_v3  ;;  %v3233_v3 = vld [vmem:[%s7018_s5 + $0x3e0] sm:$0xff] }
 0x279   : > { %4736 = vmatmul.mubr.f32.gmra.mxu1 %v2610_v10  ;;  %4748 = vmatpush3.msra.mxu0 %v2783_v26  ;;  %v3084_v26 = vld [vmem:[%s7018_s5 + $0x370] sm:$0xff]  ;;  %v3083_v10 = vld [vmem:[%s7018_s5 + $0x368] sm:$0xff] }
 0x27a   : > { %4799 = vmatpush3.msra.mxu1 %v2932_v13  ;;  %4688 = vmatprep.mubr.f32.mxu0 %v2458_v1  ;;  %v2913_v13 = vld [vmem:[#allocation3 + $0x2d] sm:$0xff]  ;;  %v3232_v1 = vld [vmem:[%s7018_s5 + $0x3d8] sm:$0xff] }
 0x27b   : > { %4738 = vmatprep.mubr.f32.mxu1 %v2611_v58  ;;  %4749 = vmatprep.subr.mxu0 %v2782_v38  ;;  %v2762_v58 = vld [vmem:[#allocation3 + $0x2c] sm:$0xff] }
 0x27c   : > { %4800 = vmatprep.subr.mxu1 %v2931_v22  ;;  %4750 = vmatpush3.msra.mxu0 %v2782_v38  ;;  %v2761_v38 = vld [vmem:[#allocation3 + $0x24] sm:$0xff] }
 0x27d   : > { %4801 = vmatpush3.msra.mxu1 %v2931_v22  ;;  %4751 = vmatprep.subr.mxu0 %v2781_v62  ;;  %v2914_v22 = vld [vmem:[#allocation3 + $0x35] sm:$0xff] }
 0x27e   : > { %4802 = vmatprep.subr.mxu1 %v2930_v12  ;;  %4689 = vmatmul.mubr.f32.gmra.mxu0 %v2459_v24  ;;  %v3231_v24 = vld [vmem:[%s7018_s5 + $0x3d0] sm:$0xff] }
 0x27f   : > { %4739 = vmatmul.mubr.f32.gmra.mxu1 %v2612_v29  ;;  %4752 = vmatpush3.msra.mxu0 %v2781_v62  ;;  %v3082_v62 = vld [vmem:[%s7018_s5 + $0x360] sm:$0xff]  ;;  %v3081_v29 = vld [vmem:[%s7018_s5 + $0x358] sm:$0xff] }
 0x280   : > { %4803 = vmatpush3.msra.mxu1 %v2930_v12  ;;  %4691 = vmatprep.mubr.f32.mxu0 %v2460_v15  ;;  %v2915_v12 = vld [vmem:[#allocation3 + $0x3d] sm:$0xff]  ;;  %v3230_v15 = vld [vmem:[%s7018_s5 + $0x3c8] sm:$0xff] }
 0x281   : > { %4741 = vmatprep.mubr.f32.mxu1 %v2613_v25  ;;  %4753 = vmatprep.subr.mxu0 %v2780_v60  ;;  %v2764_v25 = vld [vmem:[#allocation3 + $0x3c] sm:$0xff] }
 0x282   : > { %4804 = vmatprep.subr.mxu1 %v2929_v5  ;;  %4754 = vmatpush3.msra.mxu0 %v2780_v60  ;;  %v2763_v60 = vld [vmem:[#allocation3 + $0x34] sm:$0xff] }
 0x283   : > { %4805 = vmatpush3.msra.mxu1 %v2929_v5  ;;  %4755 = vmatprep.subr.mxu0 %v2779_v42  ;;  %v2916_v5 = vld [vmem:[#allocation3 + $0x45] sm:$0xff] }
 0x284   : > { %4806 = vmatprep.subr.mxu1 %v2928_v21  ;;  %4692 = vmatmul.mubr.f32.gmra.mxu0 %v2461_v63  ;;  %v3229_v63 = vld [vmem:[%s7018_s5 + $0x3c0] sm:$0xff] }
 0x285   : > { %4742 = vmatmul.mubr.f32.gmra.mxu1 %v2614_v28  ;;  %4756 = vmatpush3.msra.mxu0 %v2779_v42  ;;  %v3080_v42 = vld [vmem:[%s7018_s5 + $0x350] sm:$0xff]  ;;  %v3079_v28 = vld [vmem:[%s7018_s5 + $0x348] sm:$0xff] }
 0x286   : > { %4807 = vmatpush3.msra.mxu1 %v2928_v21  ;;  %4694 = vmatprep.mubr.f32.mxu0 %v2462_v30  ;;  %v2917_v21 = vld [vmem:[#allocation3 + $0x4d] sm:$0xff]  ;;  %v3228_v30 = vld [vmem:[%s7018_s5 + $0x3b8] sm:$0xff] }
 0x287   : > { %4744 = vmatprep.mubr.f32.mxu1 %v2615_v57  ;;  %4757 = vmatprep.subr.mxu0 %v2778_v4  ;;  %v2766_v57 = vld [vmem:[#allocation3 + $0x4c] sm:$0xff] }
 0x288   : > { %4808 = vmatprep.subr.mxu1 %v2927_v33  ;;  %4758 = vmatpush3.msra.mxu0 %v2778_v4  ;;  %v2765_v4 = vld [vmem:[#allocation3 + $0x44] sm:$0xff] }
 0x289   : > { %4809 = vmatpush3.msra.mxu1 %v2927_v33  ;;  %4759 = vmatprep.subr.mxu0 %v2777_v34  ;;  %v2918_v33 = vld [vmem:[#allocation3 + $0x55] sm:$0xff] }
 0x28a   : > { %4810 = vmatprep.subr.mxu1 %v2926_v7  ;;  %4695 = vmatmul.mubr.f32.gmra.mxu0 %v2463_v8  ;;  %v3211_v8 = vld [vmem:[#allocation3 + $0x17] sm:$0xff] }
 0x28b   : > { %4745 = vmatmul.mubr.f32.gmra.mxu1 %v2616_v47  ;;  %4760 = vmatpush3.msra.mxu0 %v2777_v34  ;;  %v3078_v34 = vld [vmem:[%s7018_s5 + $0x340] sm:$0xff]  ;;  %v3077_v47 = vld [vmem:[%s7018_s5 + $0x338] sm:$0xff] }
 0x28c   : > { %4811 = vmatpush3.msra.mxu1 %v2926_v7  ;;  %4697 = vmatprep.mubr.f32.mxu0 %v2464_v45  ;;  %v3227_v7 = vld [vmem:[%s7018_s5 + $0x3b0] sm:$0xff] }
 0x28d   : > { %4761 = vmatprep.subr.mxu0 %v2776_v6  ;;  %4812 = vmatprep.subr.mxu1 %v2925_v43  ;;  %v3076_v45 = vld [vmem:[%s7018_s5 + $0x330] sm:$0xff] }
 0x28e   : > { %4826 = vmatprep.mubr.f32.mxu1 %v2909_v19  ;;  %4762 = vmatpush3.msra.mxu0 %v2776_v6  ;;  %v3226_v6 = vld [vmem:[%s7018_s5 + $0x3a8] sm:$0xff]  ;;  %v3225_v19 = vld [vmem:[%s7018_s5 + $0x3a0] sm:$0xff] }
 0x28f   : > { %4813 = vmatpush3.msra.mxu1 %v2925_v43  ;;  %4763 = vmatprep.subr.mxu0 %v2775_v59  ;;  %v2767_v43 = vld [vmem:[#allocation3 + $0x54] sm:$0xff] }
 0x290   : > { %4814 = vmatprep.subr.mxu1 %v2924_v11  ;;  %4698 = vmatmul.mubr.f32.gmra.mxu0 %v2465_v41  ;;  %v3224_v41 = vld [vmem:[%s7018_s5 + $0x398] sm:$0xff] }
 0x291   : > { %4764 = vmatpush3.msra.mxu0 %v2775_v59  ;;  %4815 = vmatpush3.msra.mxu1 %v2924_v11  ;;  %v3060_v59 = vld [vmem:[#allocation3 + $0x16] sm:$0xff] }
 0x292   : > { %4765 = vmatprep.subr.mxu0 %v2774_v31  ;;  %4779 = vmatprep.mubr.f32.mxu0 %v2758_v35  ;;  %v3075_v11 = vld [vmem:[%s7018_s5 + $0x328] sm:$0xff]  ;;  %v3073_v35 = vld [vmem:[%s7018_s5 + $0x318] sm:$0xff] }
 0x293   : > { %4816 = vmatprep.subr.mxu1 %v2923_v53  ;;  %4766 = vmatpush3.msra.mxu0 %v2774_v31  ;;  %v3074_v31 = vld [vmem:[%s7018_s5 + $0x320] sm:$0xff] }
 0x294   : > { %4817 = vmatpush3.msra.mxu1 %v2923_v53  ;;  %4767 = vmatprep.subr.mxu0 %v2773_v20  ;;  %v3223_v53 = vld [vmem:[%s7018_s5 + $0x390] sm:$0xff] }
 0x295   : > { %4818 = vmatprep.subr.mxu1 %v2922_v0  ;;  %4768 = vmatpush3.msra.mxu0 %v2773_v20  ;;  %v3222_v20 = vld [vmem:[%s7018_s5 + $0x388] sm:$0xff] }
 0x296   : > { %4819 = vmatpush3.msra.mxu1 %v2922_v0  ;;  %4769 = vmatprep.subr.mxu0 %v2772_v16  ;;  %v3072_v0 = vld [vmem:[%s7018_s5 + $0x310] sm:$0xff] }
 0x297   : > { %4820 = vmatprep.subr.mxu1 %v2921_v2  ;;  %4770 = vmatpush3.msra.mxu0 %v2772_v16  ;;  %v3221_v16 = vld [vmem:[%s7018_s5 + $0x380] sm:$0xff] }
 0x298   : > { %4821 = vmatpush3.msra.mxu1 %v2921_v2  ;;  %4771 = vmatprep.subr.mxu0 %v2771_v37  ;;  %v3071_v2 = vld [vmem:[%s7018_s5 + $0x308] sm:$0xff] }
 0x299   : > { %4822 = vmatprep.subr.mxu1 %v2920_v54  ;;  %4772 = vmatpush3.msra.mxu0 %v2771_v37  ;;  %v3387_v37 = vld [vmem:[%s7018_s5 + $0x478] sm:$0xff] }
 0x29a   : > { %4823 = vmatpush3.msra.mxu1 %v2920_v54  ;;  %4773 = vmatprep.subr.mxu0 %v2770_v48  ;;  %v3212_v54 = vld [vmem:[#allocation3 + $0x1f] sm:$0xff] }
 0x29b   : > { %4824 = vmatprep.subr.mxu1 %v2919_v61  ;;  %4774 = vmatpush3.msra.mxu0 %v2770_v48  ;;  %v3070_v48 = vld [vmem:[%s7018_s5 + $0x300] sm:$0xff] }
 0x29c   : > { %4825 = vmatpush3.msra.mxu1 %v2919_v61  ;;  %4775 = vmatprep.subr.mxu0 %v2769_v55  ;;  %v3213_v61 = vld [vmem:[#allocation3 + $0x27] sm:$0xff] }
 0x29d   : > { %4827 = vmatmul.mubr.f32.vlgmr.msra.gmra.mxu1 %v2910_v46  ;;  %4888 = vmatprep.subr.mxu1 %v3236_v17  ;;  %v3385_v46 = vld [vmem:[%s7018_s5 + $0x468] sm:$0xff] }
 0x29e   : > { %4776 = vmatpush3.msra.mxu0 %v2769_v55  ;;  %4829 = vmatprep.mubr.f32.mxu1 %v2911_v32  ;;  %v3386_v55 = vld [vmem:[%s7018_s5 + $0x470] sm:$0xff]  ;;  %v3062_v32 = vld [vmem:[#allocation3 + $0x26] sm:$0xff] }
 0x29f   : > { %4889 = vmatpush3.msra.mxu1 %v3236_v17  ;;  %4777 = vmatprep.subr.mxu0 %v2768_v56  ;;  %v3061_v17 = vld [vmem:[#allocation3 + $0x1e] sm:$0xff] }
 0x2a0   : > { %4890 = vmatprep.subr.mxu1 %v3235_v51  ;;  %4778 = vmatpush3.msra.mxu0 %v2768_v56  ;;  %v3214_v56 = vld [vmem:[#allocation3 + $0x2f] sm:$0xff] }
 0x2a1   : > { %4891 = vmatpush3.msra.mxu1 %v3235_v51  ;;  %4780 = vmatmul.mubr.f32.vlgmr.msra.gmra.mxu0 %v2759_v18  ;;  %v3215_v51 = vld [vmem:[#allocation3 + $0x37] sm:$0xff]  ;;  %v3063_v18 = vld [vmem:[#allocation3 + $0x2e] sm:$0xff] }
 0x2a2   : > { %4830 = vmatmul.mubr.f32.gmra.mxu1 %v2912_v14  ;;  %4841 = vmatprep.subr.mxu0 %v3085_v9  ;;  %v3216_v14 = vld [vmem:[#allocation3 + $0x3f] sm:$0xff] }
 0x2a3   : > { %4892 = vmatprep.subr.mxu1 %v3234_v23  ;;  %4782 = vmatprep.mubr.f32.mxu0 %v2760_v36  ;;  %v3064_v36 = vld [vmem:[#allocation3 + $0x36] sm:$0xff] }
 0x2a4   : > { %4832 = vmatprep.mubr.f32.mxu1 %v2913_v13  ;;  %4842 = vmatpush3.msra.mxu0 %v3085_v9  ;;  %v3384_v9 = vld [vmem:[%s7018_s5 + $0x460] sm:$0xff]  ;;  %v3382_v13 = vld [vmem:[%s7018_s5 + $0x450] sm:$0xff] }
 0x2a5   : > { %4893 = vmatpush3.msra.mxu1 %v3234_v23  ;;  %4843 = vmatprep.subr.mxu0 %v3084_v26  ;;  %v3383_v23 = vld [vmem:[%s7018_s5 + $0x458] sm:$0xff] }
 0x2a6   : > { %4894 = vmatprep.subr.mxu1 %v3233_v3  ;;  %4844 = vmatpush3.msra.mxu0 %v3084_v26  ;;  %v3217_v26 = vld [vmem:[#allocation3 + $0x47] sm:$0xff] }
 0x2a7   : > { %4895 = vmatpush3.msra.mxu1 %v3233_v3  ;;  %4783 = vmatmul.mubr.f32.gmra.mxu0 %v2761_v38  ;;  %v3065_v3 = vld [vmem:[#allocation3 + $0x3e] sm:$0xff]  ;;  %v3218_v38 = vld [vmem:[#allocation3 + $0x4f] sm:$0xff] }
 0x2a8   : > { %4833 = vmatmul.mubr.f32.gmra.mxu1 %v2914_v22  ;;  %4845 = vmatprep.subr.mxu0 %v3083_v10  ;;  %v3219_v22 = vld [vmem:[#allocation3 + $0x57] sm:$0xff] }
 0x2a9   : > { %4896 = vmatprep.subr.mxu1 %v3232_v1  ;;  %4785 = vmatprep.mubr.f32.mxu0 %v2762_v58  ;;  %v3380_v58 = vld [vmem:[%s7018_s5 + $0x440] sm:$0xff] }
 0x2aa   : > { %4835 = vmatprep.mubr.f32.mxu1 %v2915_v12  ;;  %4846 = vmatpush3.msra.mxu0 %v3083_v10  ;;  %v3381_v10 = vld [vmem:[%s7018_s5 + $0x448] sm:$0xff]  ;;  %v3379_v12 = vld [vmem:[%s7018_s5 + $0x438] sm:$0xff] }
 0x2ab   : > { %4897 = vmatpush3.msra.mxu1 %v3232_v1  ;;  %4847 = vmatprep.subr.mxu0 %v3082_v62  ;;  %v3066_v1 = vld [vmem:[#allocation3 + $0x46] sm:$0xff] }
 0x2ac   : > { %4898 = vmatprep.subr.mxu1 %v3231_v24  ;;  %4848 = vmatpush3.msra.mxu0 %v3082_v62  ;;  %v3067_v62 = vld [vmem:[#allocation3 + $0x4e] sm:$0xff] }
 0x2ad   : > { %4899 = vmatpush3.msra.mxu1 %v3231_v24  ;;  %4786 = vmatmul.mubr.f32.gmra.mxu0 %v2763_v60  ;;  %v3220_v24 = vld [vmem:[#allocation3 + $0x5f] sm:$0xff] }
 0x2ae   : > { %4836 = vmatmul.mubr.f32.gmra.mxu1 %v2916_v5  ;;  %4849 = vmatprep.subr.mxu0 %v3081_v29  ;;  %v3378_v60 = vld [vmem:[%s7018_s5 + $0x430] sm:$0xff] }
 0x2af   : > { %4900 = vmatprep.subr.mxu1 %v3230_v15  ;;  %4788 = vmatprep.mubr.f32.mxu0 %v2764_v25  ;;  %v3069_v5 = vld [vmem:[#allocation3 + $0x5e] sm:$0xff]  ;;  %v3376_v25 = vld [vmem:[%s7018_s5 + $0x420] sm:$0xff] }
 0x2b0   : > { %4838 = vmatprep.mubr.f32.mxu1 %v2917_v21  ;;  %4850 = vmatpush3.msra.mxu0 %v3081_v29  ;;  %v3068_v29 = vld [vmem:[#allocation3 + $0x56] sm:$0xff] }
 0x2b1   : > { %4901 = vmatpush3.msra.mxu1 %v3230_v15  ;;  %4851 = vmatprep.subr.mxu0 %v3080_v42  ;;  %v3377_v15 = vld [vmem:[%s7018_s5 + $0x428] sm:$0xff]  ;;  %v3374_v21 = vld [vmem:[%s7018_s5 + $0x410] sm:$0xff] }
 0x2b2   : > { %4902 = vmatprep.subr.mxu1 %v3229_v63  ;;  %4852 = vmatpush3.msra.mxu0 %v3080_v42  ;;  %v3362_v42 = vld [vmem:[#allocation3 + $0x18] sm:$0xff] }
 0x2b3   : > { %4903 = vmatpush3.msra.mxu1 %v3229_v63  ;;  %4789 = vmatmul.mubr.f32.gmra.mxu0 %v2765_v4  ;;  %v3373_v63 = vld [vmem:[%s7018_s5 + $0x408] sm:$0xff]  ;;  %v3363_v4 = vld [vmem:[#allocation3 + $0x20] sm:$0xff] }
 0x2b4   : > { %4839 = vmatmul.mubr.f32.gmra.mxu1 %v2918_v33  ;;  %4853 = vmatprep.subr.mxu0 %v3079_v28  ;;  %v3365_v33 = vld [vmem:[#allocation3 + $0x30] sm:$0xff] }
 0x2b5   : > { %4904 = vmatprep.subr.mxu1 %v3228_v30  ;;  %4791 = vmatprep.mubr.f32.mxu0 %v2766_v57  ;;  %v3366_v57 = vld [vmem:[#allocation3 + $0x38] sm:$0xff] }
 0x2b6   : > { %4854 = vmatpush3.msra.mxu0 %v3079_v28  ;;  %4905 = vmatpush3.msra.mxu1 %v3228_v30  ;;  %v3372_v28 = vld [vmem:[%s7018_s5 + $0x400] sm:$0xff] }
 0x2b7   : > { %4920 = vmatprep.mubr.f32.mxu1 %v3211_v8  ;;  %4855 = vmatprep.subr.mxu0 %v3078_v34  ;;  %v3364_v30 = vld [vmem:[#allocation3 + $0x28] sm:$0xff] }
 0x2b8   : > { %4906 = vmatprep.subr.mxu1 %v3227_v7  ;;  %4856 = vmatpush3.msra.mxu0 %v3078_v34  ;;  %v3367_v34 = vld [vmem:[#allocation3 + $0x40] sm:$0xff] }
 0x2b9   : > { %4907 = vmatpush3.msra.mxu1 %v3227_v7  ;;  %4792 = vmatmul.mubr.f32.gmra.mxu0 %v2767_v43 }
 0x2ba   : > { %4857 = vmatprep.subr.mxu0 %v3077_v47  ;;  %4908 = vmatprep.subr.mxu1 %v3226_v6 }
 0x2bb   : > { %4858 = vmatpush3.msra.mxu0 %v3077_v47  ;;  %4873 = vmatprep.mubr.f32.mxu0 %v3060_v59 }
 0x2bc   : > { %4909 = vmatpush3.msra.mxu1 %v3226_v6  ;;  %4859 = vmatprep.subr.mxu0 %v3076_v45 }
 0x2bd   : > { %4910 = vmatprep.subr.mxu1 %v3225_v19  ;;  %4860 = vmatpush3.msra.mxu0 %v3076_v45 }
 0x2be   : > { %4911 = vmatpush3.msra.mxu1 %v3225_v19  ;;  %4861 = vmatprep.subr.mxu0 %v3075_v11 }
 0x2bf   : > { %4912 = vmatprep.subr.mxu1 %v3224_v41  ;;  %4862 = vmatpush3.msra.mxu0 %v3075_v11 }
 0x2c0   : > { %4913 = vmatpush3.msra.mxu1 %v3224_v41  ;;  %4863 = vmatprep.subr.mxu0 %v3074_v31 }
 0x2c1   : > { %4914 = vmatprep.subr.mxu1 %v3223_v53  ;;  %4864 = vmatpush3.msra.mxu0 %v3074_v31 }
 0x2c2   : > { %4915 = vmatpush3.msra.mxu1 %v3223_v53  ;;  %4865 = vmatprep.subr.mxu0 %v3073_v35 }
 0x2c3   : > { %4916 = vmatprep.subr.mxu1 %v3222_v20  ;;  %4866 = vmatpush3.msra.mxu0 %v3073_v35 }
 0x2c4   : > { %4917 = vmatpush3.msra.mxu1 %v3222_v20  ;;  %4867 = vmatprep.subr.mxu0 %v3072_v0 }
 0x2c5   : > { %4918 = vmatprep.subr.mxu1 %v3221_v16  ;;  %4868 = vmatpush3.msra.mxu0 %v3072_v0 }
 0x2c6   : > { %4919 = vmatpush3.msra.mxu1 %v3221_v16  ;;  %4869 = vmatprep.subr.mxu0 %v3071_v2 }
 0x2c7   : > { %4921 = vmatmul.mubr.f32.vlgmr.msra.gmra.mxu1 %v3212_v54  ;;  %4982 = vmatprep.subr.mxu1 %v3387_v37 }
 0x2c8   : > { %4870 = vmatpush3.msra.mxu0 %v3071_v2  ;;  %4923 = vmatprep.mubr.f32.mxu1 %v3213_v61 }
 0x2c9   : > { %4998 = vmatpush3.msra.mxu1 %v3387_v37  ;;  %4871 = vmatprep.subr.mxu0 %v3070_v48 }
 0x2ca   : > { %4983 = vmatprep.subr.mxu1 %v3386_v55  ;;  %4872 = vmatpush3.msra.mxu0 %v3070_v48 }
 0x2cb   : > { %4999 = vmatpush3.msra.mxu1 %v3386_v55  ;;  %4874 = vmatmul.mubr.f32.vlgmr.msra.gmra.mxu0 %v3061_v17 }
 0x2cc   : > { %4924 = vmatmul.mubr.f32.gmra.mxu1 %v3214_v56  ;;  %4935 = vmatprep.subr.mxu0 %v3387_v37 }
 0x2cd   : > { %4984 = vmatprep.subr.mxu1 %v3385_v46  ;;  %4876 = vmatprep.mubr.f32.mxu0 %v3062_v32 }
 0x2ce   : > { %4926 = vmatprep.mubr.f32.mxu1 %v3215_v51  ;;  %4936 = vmatpush3.msra.mxu0 %v3387_v37 }
 0x2cf   : > { %5000 = vmatpush3.msra.mxu1 %v3385_v46  ;;  %4937 = vmatprep.subr.mxu0 %v3386_v55 }
 0x2d0   : > { %4985 = vmatprep.subr.mxu1 %v3384_v9  ;;  %4938 = vmatpush3.msra.mxu0 %v3386_v55 }
 0x2d1   : > { %5001 = vmatpush3.msra.mxu1 %v3384_v9  ;;  %4877 = vmatmul.mubr.f32.gmra.mxu0 %v3063_v18 }
 0x2d2   : > { %4927 = vmatmul.mubr.f32.gmra.mxu1 %v3216_v14  ;;  %4939 = vmatprep.subr.mxu0 %v3385_v46 }
 0x2d3   : > { %4986 = vmatprep.subr.mxu1 %v3383_v23  ;;  %4879 = vmatprep.mubr.f32.mxu0 %v3064_v36 }
 0x2d4   : > { %4929 = vmatprep.mubr.f32.mxu1 %v3217_v26  ;;  %4940 = vmatpush3.msra.mxu0 %v3385_v46 }
 0x2d5   : > { %5002 = vmatpush3.msra.mxu1 %v3383_v23  ;;  %4941 = vmatprep.subr.mxu0 %v3384_v9 }
 0x2d6   : > { %4987 = vmatprep.subr.mxu1 %v3382_v13  ;;  %4942 = vmatpush3.msra.mxu0 %v3384_v9 }
 0x2d7   : > { %5003 = vmatpush3.msra.mxu1 %v3382_v13  ;;  %4880 = vmatmul.mubr.f32.gmra.mxu0 %v3065_v3 }
 0x2d8   : > { %4930 = vmatmul.mubr.f32.gmra.mxu1 %v3218_v38  ;;  %4943 = vmatprep.subr.mxu0 %v3383_v23 }
 0x2d9   : > { %4988 = vmatprep.subr.mxu1 %v3381_v10  ;;  %4882 = vmatprep.mubr.f32.mxu0 %v3066_v1 }
 0x2da   : > { %4932 = vmatprep.mubr.f32.mxu1 %v3219_v22  ;;  %4944 = vmatpush3.msra.mxu0 %v3383_v23 }
 0x2db   : > { %5004 = vmatpush3.msra.mxu1 %v3381_v10  ;;  %4945 = vmatprep.subr.mxu0 %v3382_v13 }
 0x2dc   : > { %4989 = vmatprep.subr.mxu1 %v3380_v58  ;;  %4946 = vmatpush3.msra.mxu0 %v3382_v13 }
 0x2dd   : > { %5005 = vmatpush3.msra.mxu1 %v3380_v58  ;;  %4883 = vmatmul.mubr.f32.gmra.mxu0 %v3067_v62 }
 0x2de   : > { %4933 = vmatmul.mubr.f32.gmra.mxu1 %v3220_v24  ;;  %4947 = vmatprep.subr.mxu0 %v3381_v10 }
 0x2df   : > { %4990 = vmatprep.subr.mxu1 %v3379_v12  ;;  %4885 = vmatprep.mubr.f32.mxu0 %v3068_v29 }
 0x2e0   : > { %4948 = vmatpush3.msra.mxu0 %v3381_v10  ;;  %5006 = vmatpush3.msra.mxu1 %v3379_v12 }
 0x2e1   : > { %4976 = vmatprep.mubr.f32.mxu1 %v6570_v27  ;;  %4949 = vmatprep.subr.mxu0 %v3380_v58  ;;  %v3375_v27 = vld [vmem:[%s7018_s5 + $0x418] sm:$0xff] }
 0x2e2   : > { %4991 = vmatprep.subr.mxu1 %v3378_v60  ;;  %4950 = vmatpush3.msra.mxu0 %v3380_v58 }
 0x2e3   : > { %5007 = vmatpush3.msra.mxu1 %v3378_v60  ;;  %4886 = vmatmul.mubr.f32.gmra.mxu0 %v3069_v5 }
 0x2e4   : > { %4951 = vmatprep.subr.mxu0 %v3379_v12  ;;  %4992 = vmatprep.subr.mxu1 %v3377_v15 }
 0x2e5   : > { %4952 = vmatpush3.msra.mxu0 %v3379_v12  ;;  %5008 = vmatpush3.msra.mxu1 %v3377_v15 }
 0x2e6   : > { %4967 = vmatprep.mubr.f32.mxu0 %v3362_v42  ;;  %4953 = vmatprep.subr.mxu0 %v3378_v60 }
 0x2e7   : > { %4993 = vmatprep.subr.mxu1 %v3376_v25  ;;  %4954 = vmatpush3.msra.mxu0 %v3378_v60 }
 0x2e8   : > { %5009 = vmatpush3.msra.mxu1 %v3376_v25  ;;  %4955 = vmatprep.subr.mxu0 %v3377_v15 }
 0x2e9   : > { %4994 = vmatprep.subr.mxu1 %v3375_v27  ;;  %4956 = vmatpush3.msra.mxu0 %v3377_v15 }
 0x2ea   : > { %5010 = vmatpush3.msra.mxu1 %v3375_v27  ;;  %4957 = vmatprep.subr.mxu0 %v3376_v25 }
 0x2eb   : > { %4995 = vmatprep.subr.mxu1 %v3374_v21  ;;  %4958 = vmatpush3.msra.mxu0 %v3376_v25 }
 0x2ec   : > { %5011 = vmatpush3.msra.mxu1 %v3374_v21  ;;  %4959 = vmatprep.subr.mxu0 %v3375_v27 }
 0x2ed   : > { %4996 = vmatprep.subr.mxu1 %v3373_v63  ;;  %4960 = vmatpush3.msra.mxu0 %v3375_v27 }
 0x2ee   : > { %5012 = vmatpush3.msra.mxu1 %v3373_v63  ;;  %4961 = vmatprep.subr.mxu0 %v3374_v21 }
 0x2ef   : > { %4997 = vmatprep.subr.mxu1 %v3372_v28  ;;  %4962 = vmatpush3.msra.mxu0 %v3374_v21 }
 0x2f0   : > { %5013 = vmatpush3.msra.mxu1 %v3372_v28  ;;  %4963 = vmatprep.subr.mxu0 %v3373_v63 }
 0x2f1   : > { %4977 = vmatmul.mubr.f32.vlgmr.msra.gmra.mxu1 %v2158_v49  ;;  %4964 = vmatpush3.msra.mxu0 %v3373_v63 }
 0x2f2   : > { %4979 = vmatprep.mubr.f32.mxu1 %v2159_v39  ;;  %4965 = vmatprep.subr.mxu0 %v3372_v28 }
 0x2f3   : > { %4966 = vmatpush3.msra.mxu0 %v3372_v28 }
 0x2f4   : > { %4968 = vmatmul.mubr.f32.vlgmr.msra.gmra.mxu0 %v3363_v4 }
 0x2f5   : > { %4980 = vmatmul.mubr.f32.gmra.mxu1 %v2160_v40  ;;  %4970 = vmatprep.mubr.f32.mxu0 %v3364_v30 }
 0x2f8   : > { %4971 = vmatmul.mubr.f32.gmra.mxu0 %v3365_v33 }
 0x2f9   : > { %4973 = vmatprep.mubr.f32.mxu0 %v3366_v57 }
 0x2fc   : > { %4974 = vmatmul.mubr.f32.gmra.mxu0 %v3367_v34 }
 0x306   : > { %v4640_v50 = vpop.f32.mrf.mxu1 }
 0x308   : > { %v2407_v52 = vpop.f32.mrf.mxu1 }
 0x30e   : > { %v4643_v47 = vpop.f32.mrf.mxu1 }
 0x310   : > { %v2417_v44 = vpop.f32.mrf.mxu1 }
 0x312   : > { %v4593_v49 = vpop.f32.mrf.mxu0 }
 0x313   : > { %v6871_v7 = vadd.f32 %v4640_v50, %v4593_v49 }
 0x314   : > { %v2292_v39 = vpop.f32.mrf.mxu0 }
 0x315   : > { %v6873_v8 = vadd.f32 %v2407_v52, %v2292_v39 }
 0x317   : > { %v4646_v59 = vpop.f32.mrf.mxu1 }
 0x319   : > { %v2427_v41 = vpop.f32.mrf.mxu1 }
 0x31a   : > { %v4596_v6 = vpop.f32.mrf.mxu0 }
 0x31b   : > { %v6875_v43 = vadd.f32 %v4643_v47, %v4596_v6 }
 0x31c   : > { %v2302_v40 = vpop.f32.mrf.mxu0 }
 0x31d   : > { %v6877_v45 = vadd.f32 %v2417_v44, %v2302_v40 }
 0x322   : > { %v4599_v19 = vpop.f32.mrf.mxu0 }
 0x323   : > { %v6879_v11 = vadd.f32 %v4646_v59, %v4599_v19  ;;  %v4649_v35 = vpop.f32.mrf.mxu1 }
 0x324   : > { %v2312_v31 = vpop.f32.mrf.mxu0 }
 0x325   : > { %v6881_v53 = vadd.f32 %v2427_v41, %v2312_v31  ;;  %v2437_v0 = vpop.f32.mrf.mxu1 }
 0x32a   : > { %v4602_v20 = vpop.f32.mrf.mxu0 }
 0x32c   : > { %v2322_v16 = vpop.f32.mrf.mxu0 }
 0x32d   : > { %v4652_v2 = vpop.f32.mrf.mxu1 }
 0x32f   : > { %v2447_v54 = vpop.f32.mrf.mxu1 }
 0x332   : > { %v4605_v37 = vpop.f32.mrf.mxu0 }
 0x333   : > { %v6883_v61 = vpop.f32.mrf.mxu1 }
 0x334   : > { %v2332_v48 = vpop.f32.mrf.mxu0 }
 0x335   : > { %v6885_v17 = vpop.f32.mrf.mxu1 }
 0x338   : > { %v4687_v55 = vpop.f32.mrf.mxu0 }
 0x339   : > { %v6887_v56 = vpop.f32.mrf.mxu1 }
 0x33a   : > { %v2548_v46 = vpop.f32.mrf.mxu0 }
 0x33b   : > { %v6889_v51 = vpop.f32.mrf.mxu1 }
 0x33e   : > { %v4690_v32 = vpop.f32.mrf.mxu0 }
 0x33f   : > { %v6893_v18 = vpop.f32.mrf.mxu1 }
 0x340   : > { %v6891_v9 = vpop.f32.mrf.mxu0 }
 0x341   : > { %v6897_v14 = vpop.f32.mrf.mxu1 }
 0x344   : > { %v6895_v23 = vpop.f32.mrf.mxu0 }
 0x345   : > { %v4743_v26 = vpop.f32.mrf.mxu1 }
 0x346   : > { %v6899_v36 = vpop.f32.mrf.mxu0 }
 0x347   : > { %v2729_v3 = vpop.f32.mrf.mxu1 }
 0x34a   : > { %v4696_v13 = vpop.f32.mrf.mxu0 }
 0x34b   : > { %v4746_v38 = vpop.f32.mrf.mxu1 }
 0x34c   : > { %v2578_v10 = vpop.f32.mrf.mxu0 }
 0x34d   : > { %v2739_v22 = vpop.f32.mrf.mxu1 }
 0x350   : > { %v4699_v1 = vpop.f32.mrf.mxu0 }
 0x352   : > { %v2588_v58 = vpop.f32.mrf.mxu0 }
 0x35d   : > { %v6901_v62 = vpop.f32.mrf.mxu1 }
 0x35f   : > { %v6903_v24 = vpop.f32.mrf.mxu1 }
 0x360   : > { %7047 = vst [vmem:[#allocation4_spill] sm:$0xff] %v6903_v24 }
 0x361   : > { %v4781_v12 = vpop.f32.mrf.mxu0 }
 0x362   : > { %v6905_v60 = vpop.f32.mrf.mxu1 }
 0x363   : > { %v2850_v29 = vpop.f32.mrf.mxu0  ;;  %7048 = vst [vmem:[#allocation5_spill] sm:$0xff] %v6905_v60  ;;  %v2453_v60 = vadd.f32 %v4652_v2, %v4605_v37  ;;  %v2599_v2 = vadd.f32 %v6891_v9, %v6877_v45 }
 0x364   : > { %v6909_v5 = vpop.f32.mrf.mxu1 }
 0x365   : > { %7049 = vst [vmem:[#allocation7_spill] sm:$0xff] %v6909_v5  ;;  %v2438_v5 = vadd.f32 %v2437_v0, %v2322_v16  ;;  %v2750_v45 = vadd.f32 %v6889_v51, %v2599_v2 }
 0x367   : > { %v6907_v15 = vpop.f32.mrf.mxu0 }
 0x368   : > { %v6913_v42 = vpop.f32.mrf.mxu1 }
 0x369   : > { %v6911_v25 = vpop.f32.mrf.mxu0  ;;  %7050 = vst [vmem:[#allocation6_spill] sm:$0xff] %v6913_v42 }
 0x36a   : > { %v6917_v21 = vpop.f32.mrf.mxu1 }
 0x36b   : > { %7052 = vst [vmem:[#allocation9_spill] sm:$0xff] %v6917_v21  ;;  %v2443_v21 = vadd.f32 %v4649_v35, %v4602_v20  ;;  %v2600_v20 = vadd.f32 %v4690_v32, %v6875_v43  ;;  %v2601_v43 = vadd.f32 %v6899_v36, %v6881_v53 }
 0x36d   : > { %v6915_v27 = vpop.f32.mrf.mxu0  ;;  %v2751_v32 = vadd.f32 %v6887_v56, %v2600_v20  ;;  %v2752_v56 = vadd.f32 %v6897_v14, %v2601_v43  ;;  %v6970_v14 = vld [vmem:[%s7019_s6] ss:$0 sm:$0xff] }
 0x36e   : > { %7051 = vst [vmem:[#allocation8_spill] sm:$0xff] %v6915_v27  ;;  %v4837_v28 = vpop.f32.mrf.mxu1 }
 0x36f   : > { %v6919_v63 = vpop.f32.mrf.mxu0 }
 0x370   : > { %7053 = vst [vmem:[#allocation11_spill] sm:$0xff] %v6919_v63  ;;  %v3031_v30 = vpop.f32.mrf.mxu1  ;;  %v2603_v63 = vadd.f32 %v2578_v10, %v2438_v5 }
 0x372   : > { %v2754_v35 = vadd.f32 %v2729_v3, %v2603_v63  ;;  %v7068_v63 = vld [vmem:[#allocation5_spill] sm:$0xff] }
 0x373   : > { %v4790_v4 = vpop.f32.mrf.mxu0 }
 0x374   : > { %v4840_v57 = vpop.f32.mrf.mxu1 }
 0x375   : > { %v2880_v33 = vpop.f32.mrf.mxu0 }
 0x376   : > { %v6921_v50 = vpop.f32.mrf.mxu1 }
 0x377   : > { %7054 = vst [vmem:[#allocation10_spill] sm:$0xff] %v6921_v50  ;;  %v2606_v50 = vadd.f32 %v4699_v1, %v2453_v60 }
 0x379   : > { %v4793_v34 = vpop.f32.mrf.mxu0  ;;  %v2757_v37 = vadd.f32 %v4746_v38, %v2606_v50 }
 0x37b   : > { %v2890_v49 = vpop.f32.mrf.mxu0 }
 0x37e   : > { %v7065_v60 = vld [vmem:[#allocation10_spill] sm:$0xff] }
 0x387   : > { %v6923_v52 = vpop.f32.mrf.mxu1 }
 0x388   : > { %7055 = vst [vmem:[#allocation12_spill] sm:$0xff] %v6923_v52 }
 0x389   : > { %v6925_v47 = vpop.f32.mrf.mxu1 }
 0x38a   : > { %7056 = vst [vmem:[#allocation13_spill] sm:$0xff] %v6925_v47  ;;  %v2604_v47 = vadd.f32 %v4696_v13, %v2443_v21 }
 0x38b   : > { %v4875_v39 = vpop.f32.mrf.mxu0 }
 0x38c   : > { %v6927_v44 = vpop.f32.mrf.mxu1 }
 0x38d   : > { %v3152_v6 = vpop.f32.mrf.mxu0  ;;  %7057 = vst [vmem:[#allocation14_spill] sm:$0xff] %v6927_v44  ;;  %v2598_v44 = vadd.f32 %v4687_v55, %v6871_v7  ;;  %v2905_v7 = vadd.f32 %v2880_v33, %v2754_v35  ;;  %v7073_v35 = vld [vmem:[#allocation6_spill] sm:$0xff] }
 0x38e   : > { %v6931_v59 = vpop.f32.mrf.mxu1 }
 0x38f   : > { %7059 = vst [vmem:[#allocation16_spill] sm:$0xff] %v6931_v59  ;;  %v2448_v59 = vadd.f32 %v2447_v54, %v2332_v48  ;;  %v2908_v48 = vadd.f32 %v4793_v34, %v2757_v37  ;;  %v3056_v38 = vadd.f32 %v3031_v30, %v2905_v7 }
 0x391   : > { %v6929_v40 = vpop.f32.mrf.mxu0  ;;  %v2605_v24 = vadd.f32 %v2588_v58, %v2448_v59  ;;  %v7064_v58 = vld [vmem:[#allocation4_spill] sm:$0xff]  ;;  %v7075_v37 = vld [vmem:[#allocation13_spill] sm:$0xff] }
 0x392   : > { %7058 = vst [vmem:[#allocation15_spill] sm:$0xff] %v6929_v40  ;;  %v6935_v41 = vpop.f32.mrf.mxu1 }
 0x393   : > { %v6933_v19 = vpop.f32.mrf.mxu0  ;;  %7061 = vst [vmem:[#allocation18_spill] sm:$0xff] %v6935_v41  ;;  %v2597_v41 = vadd.f32 %v2548_v46, %v6873_v8  ;;  %v2602_v46 = vadd.f32 %v6895_v23, %v6879_v11  ;;  %v3059_v23 = vadd.f32 %v4840_v57, %v2908_v48 }
 0x394   : > { %7060 = vst [vmem:[#allocation17_spill] sm:$0xff] %v6933_v19  ;;  %v6939_v42 = vpop.f32.mrf.mxu1  ;;  %v2755_v19 = vadd.f32 %v4743_v26, %v2604_v47  ;;  %v2756_v26 = vadd.f32 %v2739_v22, %v2605_v24  ;;  %v2901_v22 = vadd.f32 %v6911_v25, %v2750_v45  ;;  %v7071_v47 = vld [vmem:[#allocation12_spill] sm:$0xff]  ;;  %v7077_v45 = vld [vmem:[#allocation14_spill] sm:$0xff] }
 0x395   : > { %7063 = vst [vmem:[#allocation20_spill] sm:$0xff] %v6939_v42  ;;  %v2749_v42 = vadd.f32 %v6883_v61, %v2598_v44  ;;  %v2748_v54 = vadd.f32 %v6885_v17, %v2597_v41  ;;  %v2902_v17 = vadd.f32 %v6907_v15, %v2751_v32  ;;  %v2753_v53 = vadd.f32 %v6893_v18, %v2602_v46 }
 0x396   : > { %v2907_v9 = vadd.f32 %v2890_v49, %v2756_v26 }
 0x397   : > { %v6937_v31 = vpop.f32.mrf.mxu0  ;;  %v2900_v55 = vadd.f32 %v4781_v12, %v2749_v42  ;;  %v2899_v61 = vadd.f32 %v2850_v29, %v2748_v54  ;;  %v7066_v42 = vld [vmem:[#allocation8_spill] sm:$0xff] }
 0x398   : > { %7062 = vst [vmem:[#allocation19_spill] sm:$0xff] %v6937_v31  ;;  %v4931_v40 = vpop.f32.mrf.mxu1  ;;  %v2906_v31 = vadd.f32 %v4790_v4, %v2755_v19  ;;  %v3058_v5 = vadd.f32 %v7065_v60, %v2907_v9  ;;  %v7069_v4 = vld [vmem:[#allocation7_spill] sm:$0xff] }
 0x399   : > { %v6941_v52 = vpop.f32.mrf.mxu0  ;;  %v3051_v1 = vadd.f32 %v6901_v62, %v2900_v55  ;;  %v3050_v12 = vadd.f32 %v7064_v58, %v2899_v61  ;;  %v2904_v62 = vadd.f32 %v7066_v42, %v2753_v53  ;;  %v3052_v30 = vadd.f32 %v7069_v4, %v2901_v22  ;;  %v7070_v50 = vld [vmem:[#allocation15_spill] sm:$0xff]  ;;  %v7078_v22 = vld [vmem:[#allocation16_spill] sm:$0xff] }
 0x39a   : > { %v3333_v0 = vpop.f32.mrf.mxu1  ;;  %v3057_v8 = vadd.f32 %v4837_v28, %v2906_v31  ;;  %v3053_v28 = vadd.f32 %v7068_v63, %v2902_v17 }
 0x39b   : > { %v3202_v36 = vadd.f32 %v4875_v39, %v3051_v1  ;;  %v3201_v21 = vadd.f32 %v3152_v6, %v3050_v12  ;;  %v7072_v6 = vld [vmem:[#allocation17_spill] sm:$0xff]  ;;  %v3055_v20 = vadd.f32 %v7073_v35, %v2904_v62 }
 0x39c   : > { %v3204_v49 = vadd.f32 %v7070_v50, %v3053_v28 }
 0x39d   : > { %v4884_v27 = vpop.f32.mrf.mxu0  ;;  %v3353_v44 = vadd.f32 %v7071_v47, %v3202_v36  ;;  %v3352_v55 = vadd.f32 %v7075_v37, %v3201_v21  ;;  %v7080_v21 = vld [vmem:[#allocation20_spill] sm:$0xff] }
 0x39e   : > { %v4934_v13 = vpop.f32.mrf.mxu1  ;;  %v3208_v10 = vadd.f32 %v4884_v27, %v3057_v8  ;;  %v7067_v27 = vld [vmem:[#allocation11_spill] sm:$0xff]  ;;  %v3355_v9 = vadd.f32 %v7077_v45, %v3204_v49 }
 0x39f   : > { %v3182_v16 = vpop.f32.mrf.mxu0  ;;  %v2903_v25 = vadd.f32 %v7067_v27, %v2752_v56  ;;  %v7076_v43 = vld [vmem:[#allocation19_spill] sm:$0xff] }
 0x3a0   : > { %v3207_v11 = vadd.f32 %v3182_v16, %v3056_v38  ;;  %v3343_v51 = vpop.f32.mrf.mxu1  ;;  %v3359_v15 = vadd.f32 %v4931_v40, %v3208_v10  ;;  %v3203_v40 = vadd.f32 %v7072_v6, %v3052_v30  ;;  %v7074_v16 = vld [vmem:[#allocation9_spill] sm:$0xff]  ;;  %v3206_v61 = vadd.f32 %v7076_v43, %v3055_v20 }
 0x3a1   : > { %v3054_v2 = vadd.f32 %v7074_v16, %v2903_v25 }
 0x3a2   : > { %v3358_v34 = vadd.f32 %v3333_v0, %v3207_v11  ;;  %v3354_v11 = vadd.f32 %v7078_v22, %v3203_v40 }
 0x3a3   : > { %v4887_v3 = vpop.f32.mrf.mxu0 }
 0x3a4   : > { %v3210_v29 = vadd.f32 %v4887_v3, %v3059_v23  ;;  %v3205_v23 = vadd.f32 %v6941_v52, %v3054_v2 }
 0x3a5   : > { %v3192_v24 = vpop.f32.mrf.mxu0 }
 0x3a6   : > { %v3209_v33 = vadd.f32 %v3192_v24, %v3058_v5  ;;  %v3361_v31 = vadd.f32 %v4934_v13, %v3210_v29  ;;  %v7079_v5 = vld [vmem:[#allocation18_spill] sm:$0xff]  ;;  %v3356_v63 = vadd.f32 %v7080_v21, %v3205_v23 }
 0x3a7   : > { %v3357_v52 = vadd.f32 %v7079_v5, %v3206_v61 }
 0x3a8   : > { %v3360_v46 = vadd.f32 %v3343_v51, %v3209_v33 }
 0x3b1   : > { %v4978_v18 = vpop.f32.mrf.mxu1 }
 0x3b2   : > { %v3510_v57 = vadd.f32 %v4978_v18, %v3359_v15 }
 0x3b3   : > { %v3484_v39 = vpop.f32.mrf.mxu1 }
 0x3b4   : > { %v3527_v59 = vadd.f32 %v6970_v14, %v3510_v57  ;;  %v3509_v19 = vadd.f32 %v3484_v39, %v3358_v34  ;;  %v4969_v41 = vpop.f32.mrf.mxu0 }
 0x3b5   : > { %v3504_v0 = vadd.f32 %v4969_v41, %v3353_v44  ;;  %v4981_v7 = vpop.f32.mrf.mxu1 }
 0x3b6   : > { %v3537_v54 = vmax.f32 %v3527_v59, 0.0  ;;  %v3526_v48 = vadd.f32 %v6970_v14, %v3509_v19  ;;  %v3512_v26 = vadd.f32 %v4981_v7, %v3361_v31  ;;  %v3454_v8 = vpop.f32.mrf.mxu0 }
 0x3b7   : > { %v3521_v32 = vadd.f32 %v6970_v14, %v3504_v0  ;;  %v3503_v13 = vadd.f32 %v3454_v8, %v3352_v55  ;;  %v3494_v3 = vpop.f32.mrf.mxu1 }
 0x3b8   : > { %3547 = vst [vmem:[%s6982_s22 + $0x38] sm:$0xff] %v3537_v54  ;;  %v3536_v10 = vmax.f32 %v3526_v48, 0.0  ;;  %v3529_v38 = vadd.f32 %v6970_v14, %v3512_v26  ;;  %v3511_v17 = vadd.f32 %v3494_v3, %v3360_v46  ;;  %v4972_v1 = vpop.f32.mrf.mxu0 }
 0x3b9   : > { %v3531_v53 = vmax.f32 %v3521_v32, 0.0  ;;  %v3520_v56 = vadd.f32 %v6970_v14, %v3503_v13  ;;  %v3506_v36 = vadd.f32 %v4972_v1, %v3355_v9 }
 0x3ba   : > { %3546 = vst [vmem:[%s6982_s22 + $0x30] sm:$0xff] %v3536_v10  ;;  %v3539_v58 = vmax.f32 %v3529_v38, 0.0  ;;  %v3528_v12 = vadd.f32 %v6970_v14, %v3511_v17  ;;  %v3464_v51 = vpop.f32.mrf.mxu0 }
 0x3bb   : > { %3541 = vst [vmem:[%s6982_s22 + $0x8] sm:$0xff] %v3531_v53  ;;  %v3530_v24 = vmax.f32 %v3520_v56, 0.0  ;;  %v3523_v29 = vadd.f32 %v6970_v14, %v3506_v36  ;;  %v3505_v60 = vadd.f32 %v3464_v51, %v3354_v11 }
 0x3bc   : > { %3549 = vst [vmem:[%s6982_s22 + $0x48] sm:$0xff] %v3539_v58  ;;  %v3538_v15 = vmax.f32 %v3528_v12, 0.0  ;;  %v4975_v42 = vpop.f32.mrf.mxu0 }
 0x3bd   : > { %3540 = vst [vmem:[%s6982_s22] sm:$0xff] %v3530_v24  ;;  %v3533_v62 = vmax.f32 %v3523_v29, 0.0  ;;  %v3522_v27 = vadd.f32 %v6970_v14, %v3505_v60  ;;  %v3508_v25 = vadd.f32 %v4975_v42, %v3357_v52 }
 0x3be   : > { %3548 = vst [vmem:[%s6982_s22 + $0x40] sm:$0xff] %v3538_v15  ;;  %v3474_v28 = vpop.f32.mrf.mxu0 }
 0x3bf   : > { %3543 = vst [vmem:[%s6982_s22 + $0x18] sm:$0xff] %v3533_v62  ;;  %v3532_v18 = vmax.f32 %v3522_v27, 0.0  ;;  %v3525_v4 = vadd.f32 %v6970_v14, %v3508_v25  ;;  %v3507_v30 = vadd.f32 %v3474_v28, %v3356_v63 }
 0x3c1   : > { %3542 = vst [vmem:[%s6982_s22 + $0x10] sm:$0xff] %v3532_v18  ;;  %v3535_v33 = vmax.f32 %v3525_v4, 0.0  ;;  %v3524_v57 = vadd.f32 %v6970_v14, %v3507_v30 }
 0x3c3   : > { %3545 = vst [vmem:[%s6982_s22 + $0x28] sm:$0xff] %v3535_v33  ;;  %v3534_v34 = vmax.f32 %v3524_v57, 0.0 }
 0x3c5   : > { %3544 = vst [vmem:[%s6982_s22 + $0x20] sm:$0xff] %v3534_v34 }
 0x3c6 PF: > { %s17_s24 = sadd.s32 1, %s5032_s24  }
 0x3c7   : > { %p14_p4 = scmp.ge.s32.totalorder %s17_s24, 4  }
 0x3c9   :  { %16 = sbr.rel (!%p14_p4) target bundleno = 1 (0x1), region = 78 }

// kernel: conv_dqn_forward.3
= control target key start
LH: loop header
LB: loop body
LE: loop exit
PB: predicated region body
PF: predicated region fallthrough
CT: control target
= control target key end

     0   :  { %v12029_v2 = vmov 0   ;;  %vm67_vm0 = vcmask 1041409   ;;  %vm150_vm1 = vcmask 523264   ;;  %s15171_s0 = inlined_call_operand.vmem [shape: f32[2,80,128], index: 0, kind: input, shape index: {}]   ;;  %s15172_s1 = inlined_call_operand.vmem [shape: bf16[3136,512], index: 1, kind: input, shape index: {}]   ;;  %s15173_s2 = inlined_call_operand.vmem [shape: f32[1,512], index: 2, kind: input, shape index: {}]   ;;  %s15174_s3 = inlined_call_operand.vmem [shape: f32[512,128], index: 3, kind: input, shape index: {}]   ;;  %s15175_s4 = inlined_call_operand.vmem [shape: f32[1,128], index: 4, kind: input, shape index: {}]   ;;  %s15176_s5 = inlined_call_operand.hbm [shape: f32[2,128], index: 5, kind: output, shape index: {}]  }
   0x1   :  { %v10831_v0 = vld [vmem:[%s15172_s1 + $0xe4] ss:$16 sps:$4 sm:$0xff]   ;;  %v10833_v1 = vld [vmem:[%s15172_s1 + $0xec] ss:$16 sps:$4 sm:$0xff]   ;;  %186 = vmatprep.mubr.bf16.mxu0 %v12029_v2  ;;  %227 = vmatprep.mubr.bf16.mxu1 %v12029_v2  ;;  %v10835_v3 = vld [vmem:[%s15172_s1 + $0xe0] ss:$16 sps:$4 sm:$0xff]  }
   0x2   :  { %162 = vmatprep.subr.bf16.mxu0 %v10831_v0  ;;  %v10836_v4 = vld [vmem:[%s15172_s1 + $0xe8] ss:$16 sps:$4 sm:$0xff]   ;;  %203 = vmatprep.subr.bf16.mxu1 %v10833_v1  ;;  %v10837_v5 = vld [vmem:[%s15172_s1 + $0xc4] ss:$16 sps:$4 sm:$0xff]   ;;  %v10839_v6 = vld [vmem:[%s15172_s1 + $0xcc] ss:$16 sps:$4 sm:$0xff]  }
   0x3   :  { %163 = vmatpush1.bf16.msra.mxu0 %v10835_v3  ;;  %204 = vmatpush1.bf16.msra.mxu1 %v10836_v4  ;;  %v10841_v7 = vld [vmem:[%s15172_s1 + $0xc0] ss:$16 sps:$4 sm:$0xff]   ;;  %v10842_v8 = vld [vmem:[%s15172_s1 + $0xc8] ss:$16 sps:$4 sm:$0xff]   ;;  %v10843_v9 = vld [vmem:[%s15172_s1 + $0xa4] ss:$16 sps:$4 sm:$0xff]  }
   0x4   :  { %164 = vmatprep.subr.bf16.mxu0 %v10837_v5  ;;  %205 = vmatprep.subr.bf16.mxu1 %v10839_v6  ;;  %v10845_v10 = vld [vmem:[%s15172_s1 + $0xac] ss:$16 sps:$4 sm:$0xff]   ;;  %v10847_v11 = vld [vmem:[%s15172_s1 + $0xa0] ss:$16 sps:$4 sm:$0xff]   ;;  %v10848_v12 = vld [vmem:[%s15172_s1 + $0xa8] ss:$16 sps:$4 sm:$0xff]  }
   0x5   :  { %v10849_v13 = vld [vmem:[%s15172_s1 + $0x84] ss:$16 sps:$4 sm:$0xff]   ;;  %v10851_v14 = vld [vmem:[%s15172_s1 + $0x8c] ss:$16 sps:$4 sm:$0xff]   ;;  %v42_v15 = vld [vmem:[%s15171_s0 + $0x1] sm:$0x1] }
   0x6   :  { %v43_v16 = vld [vmem:[%s15171_s0 + $0x51] sm:$0x1]  ;;  %v44_v17 = vpack.c.bf16 %v42_v15, %v42_v15  ;;  %v10854_v19 = vld [vmem:[%s15172_s1 + $0x88] ss:$16 sps:$4 sm:$0xff]   ;;  %v10857_v21 = vld [vmem:[%s15172_s1 + $0x64] ss:$16 sps:$4 sm:$0xff]  }
   0x7   :  { %165 = vmatpush1.bf16.msra.mxu0 %v10841_v7  ;;  %206 = vmatpush1.bf16.msra.mxu1 %v10842_v8  ;;  %v10853_v18 = vld [vmem:[%s15172_s1 + $0x80] ss:$16 sps:$4 sm:$0xff]   ;;  %v45_v20 = vpack.c.bf16 %v43_v16, %v43_v16  ;;  %v10860_v22 = vld [vmem:[%s15172_s1 + $0x6c] ss:$16 sps:$4 sm:$0xff]   ;;  %v10858_v27 = vld [vmem:[%s15172_s1 + $0x68] ss:$16 sps:$4 sm:$0xff]  }
   0x8   :  { %166 = vmatprep.subr.bf16.mxu0 %v10843_v9  ;;  %207 = vmatprep.subr.bf16.mxu1 %v10845_v10  ;;  %v64_v23 = vunpack.c.l.b16 %v44_v17  ;;  %v10855_v26 = vld [vmem:[%s15172_s1 + $0x60] ss:$16 sps:$4 sm:$0xff]   ;;  %v10863_v29 = vld [vmem:[%s15172_s1 + $0x44] ss:$16 sps:$4 sm:$0xff]   ;;  %v10866_v31 = vld [vmem:[%s15172_s1 + $0x4c] ss:$16 sps:$4 sm:$0xff]  }
   0x9   :  { %v65_v24 = vunpack.c.l.b16 %v45_v20  ;;  %v10861_v32 = vld [vmem:[%s15172_s1 + $0x40] ss:$16 sps:$4 sm:$0xff]   ;;  %v10864_v33 = vld [vmem:[%s15172_s1 + $0x48] ss:$16 sps:$4 sm:$0xff]   ;;  %v10869_v36 = vld [vmem:[%s15172_s1 + $0x24] ss:$16 sps:$4 sm:$0xff]  }
   0xa   :  { %v22_v34 = vld [vmem:[%s15171_s0] sm:$0x1]  ;;  %v23_v35 = vld [vmem:[%s15171_s0 + $0x50] sm:$0x1]  ;;  %v10872_v37 = vld [vmem:[%s15172_s1 + $0x2c] ss:$16 sps:$4 sm:$0xff]  }
   0xb   :  { %167 = vmatpush1.bf16.msra.mxu0 %v10847_v11  ;;  %208 = vmatpush1.bf16.msra.mxu1 %v10848_v12  ;;  %v66_v25 = vrot.slane %v65_v24, 7  ;;  %v24_v38 = vpack.c.bf16 %v22_v34, %v22_v34  ;;  %v25_v39 = vpack.c.bf16 %v23_v35, %v23_v35  ;;  %v10867_v41 = vld [vmem:[%s15172_s1 + $0x20] ss:$16 sps:$4 sm:$0xff]   ;;  %v10870_v42 = vld [vmem:[%s15172_s1 + $0x28] ss:$16 sps:$4 sm:$0xff]  }
   0xc   :  { %168 = vmatprep.subr.bf16.mxu0 %v10849_v13  ;;  %209 = vmatprep.subr.bf16.mxu1 %v10851_v14  ;;  %v10875_v44 = vld [vmem:[%s15172_s1 + $0x4] ss:$16 sps:$4 sm:$0xff]   ;;  %v10878_v45 = vld [vmem:[%s15172_s1 + $0xc] ss:$16 sps:$4 sm:$0xff]   ;;  %v10873_v47 = vld [vmem:[%s15172_s1] ss:$16 sps:$4 sm:$0xff]  }
   0xd   :  { %v68_v28 = vsel %vm67_vm0, %v66_v25, %v64_v23  ;;  %v239_v40 = vunpack.c.l.b16 %v25_v39  ;;  %v238_v43 = vunpack.c.l.b16 %v24_v38  ;;  %v10876_v48 = vld [vmem:[%s15172_s1 + $0x8] ss:$16 sps:$4 sm:$0xff]   ;;  %v10881_v50 = vld [vmem:[%s15172_s1 + $0x164] ss:$16 sps:$4 sm:$0xff]   ;;  %v10884_v51 = vld [vmem:[%s15172_s1 + $0x16c] ss:$16 sps:$4 sm:$0xff]  }
   0xe   :  { %v69_v30 = vpack.c.b16 %v68_v28, %v68_v28  ;;  %v10879_v52 = vld [vmem:[%s15172_s1 + $0x160] ss:$16 sps:$4 sm:$0xff]   ;;  %v10882_v54 = vld [vmem:[%s15172_s1 + $0x168] ss:$16 sps:$4 sm:$0xff]   ;;  %v10887_v55 = vld [vmem:[%s15172_s1 + $0x144] ss:$16 sps:$4 sm:$0xff]  }
   0xf   :  { %169 = vmatpush1.bf16.msra.mxu0 %v10853_v18  ;;  %210 = vmatpush1.bf16.msra.mxu1 %v10854_v19  ;;  %v240_v46 = vrot.slane %v239_v40, 7  ;;  %v409_v56 = vld [vmem:[%s15171_s0 + $0x52] sm:$0x1]  ;;  %v10890_v57 = vld [vmem:[%s15172_s1 + $0x14c] ss:$16 sps:$4 sm:$0xff]  }
  0x10   :  { %334 = vmatprep.subr.bf16.mxu0 %v10857_v21  ;;  %375 = vmatprep.subr.bf16.mxu1 %v10860_v22  ;;  %v411_v58 = vpack.c.bf16 %v409_v56, %v409_v56  ;;  %v408_v59 = vld [vmem:[%s15171_s0 + $0x2] sm:$0x1]  ;;  %v10888_v61 = vld [vmem:[%s15172_s1 + $0x148] ss:$16 sps:$4 sm:$0xff]   ;;  %v10893_v62 = vld [vmem:[%s15172_s1 + $0x124] ss:$16 sps:$4 sm:$0xff]  }
  0x11   :  { %v241_v49 = vsel %vm67_vm0, %v240_v46, %v238_v43  ;;  %v10885_v60 = vld [vmem:[%s15172_s1 + $0x140] ss:$16 sps:$4 sm:$0xff]   ;;  %v410_v63 = vpack.c.bf16 %v408_v59, %v408_v59  ;;  %v10896_v1 = vld [vmem:[%s15172_s1 + $0x12c] ss:$16 sps:$4 sm:$0xff]   ;;  %v10894_v4 = vld [vmem:[%s15172_s1 + $0x128] ss:$16 sps:$4 sm:$0xff]  }
  0x12   :  { %9892 = vmatmul.mubr.msk.bf16.vlgmr.msra.gmra.mxu0 %vm150_vm1, %v69_v30  ;;  %9893 = vmatmul.mubr.msk.bf16.vlgmr.msra.gmra.mxu1 %vm150_vm1, %v69_v30  ;;  %v242_v53 = vpack.c.b16 %v241_v49, %v241_v49  ;;  %v431_v0 = vunpack.c.l.b16 %v411_v58  ;;  %v10891_v3 = vld [vmem:[%s15172_s1 + $0x120] ss:$16 sps:$4 sm:$0xff]   ;;  %v10899_v5 = vld [vmem:[%s15172_s1 + $0x104] ss:$16 sps:$4 sm:$0xff]   ;;  %v10902_v8 = vld [vmem:[%s15172_s1 + $0x10c] ss:$16 sps:$4 sm:$0xff]  }
  0x13   :  { %335 = vmatpush1.bf16.msra.mxu0 %v10855_v26  ;;  %376 = vmatpush1.bf16.msra.mxu1 %v10858_v27  ;;  %v430_v6 = vunpack.c.l.b16 %v410_v63  ;;  %v10897_v9 = vld [vmem:[%s15172_s1 + $0x100] ss:$16 sps:$4 sm:$0xff]   ;;  %v10900_v10 = vld [vmem:[%s15172_s1 + $0x108] ss:$16 sps:$4 sm:$0xff]   ;;  %v10905_v12 = vld [vmem:[%s15172_s1 + $0x1e4] ss:$16 sps:$4 sm:$0xff]  }
  0x14   :  { %336 = vmatprep.subr.bf16.mxu0 %v10863_v29  ;;  %377 = vmatprep.subr.bf16.mxu1 %v10866_v31  ;;  %v432_v7 = vrot.slane %v431_v0, 7  ;;  %v10908_v13 = vld [vmem:[%s15172_s1 + $0x1ec] ss:$16 sps:$4 sm:$0xff]   ;;  %v605_v14 = vld [vmem:[%s15171_s0 + $0x53] sm:$0x1] }
  0x15   :  { %358 = vmatprep.mubr.bf16.mxu0 %v12029_v2  ;;  %399 = vmatprep.mubr.bf16.mxu1 %v12029_v2  ;;  %v10903_v16 = vld [vmem:[%s15172_s1 + $0x1e0] ss:$16 sps:$4 sm:$0xff]   ;;  %v10906_v17 = vld [vmem:[%s15172_s1 + $0x1e8] ss:$16 sps:$4 sm:$0xff]   ;;  %v10911_v18 = vld [vmem:[%s15172_s1 + $0x1c4] ss:$16 sps:$4 sm:$0xff]   ;;  %v607_v19 = vpack.c.bf16 %v605_v14, %v605_v14 }
  0x16   :  { %v433_v11 = vsel %vm67_vm0, %v432_v7, %v430_v6  ;;  %v10914_v20 = vld [vmem:[%s15172_s1 + $0x1cc] ss:$16 sps:$4 sm:$0xff]   ;;  %v604_v21 = vld [vmem:[%s15171_s0 + $0x3] sm:$0x1]  ;;  %v10912_v23 = vld [vmem:[%s15172_s1 + $0x1c8] ss:$16 sps:$4 sm:$0xff]  }
  0x17   :  { %337 = vmatpush1.bf16.msra.mxu0 %v10861_v32  ;;  %378 = vmatpush1.bf16.msra.mxu1 %v10864_v33  ;;  %v434_v15 = vpack.c.b16 %v433_v11, %v433_v11  ;;  %v10909_v22 = vld [vmem:[%s15172_s1 + $0x1c0] ss:$16 sps:$4 sm:$0xff]   ;;  %v606_v24 = vpack.c.bf16 %v604_v21, %v604_v21  ;;  %v627_v25 = vunpack.c.l.b16 %v607_v19  ;;  %v10917_v26 = vld [vmem:[%s15172_s1 + $0x1a4] ss:$16 sps:$4 sm:$0xff]   ;;  %v10920_v27 = vld [vmem:[%s15172_s1 + $0x1ac] ss:$16 sps:$4 sm:$0xff]  }
  0x18   :  { %338 = vmatprep.subr.bf16.mxu0 %v10869_v36  ;;  %379 = vmatprep.subr.bf16.mxu1 %v10872_v37  ;;  %v10915_v28 = vld [vmem:[%s15172_s1 + $0x1a0] ss:$16 sps:$4 sm:$0xff]   ;;  %v10918_v29 = vld [vmem:[%s15172_s1 + $0x1a8] ss:$16 sps:$4 sm:$0xff]   ;;  %v10923_v30 = vld [vmem:[%s15172_s1 + $0x184] ss:$16 sps:$4 sm:$0xff]  }
  0x19   :  { %v626_v31 = vunpack.c.l.b16 %v606_v24  ;;  %v628_v32 = vrot.slane %v627_v25, 7  ;;  %v10926_v33 = vld [vmem:[%s15172_s1 + $0x18c] ss:$16 sps:$4 sm:$0xff]   ;;  %v10921_v34 = vld [vmem:[%s15172_s1 + $0x180] ss:$16 sps:$4 sm:$0xff]  }
  0x1a   :  { %v10924_v35 = vld [vmem:[%s15172_s1 + $0x188] ss:$16 sps:$4 sm:$0xff]   ;;  %v10929_v36 = vld [vmem:[%s15172_s1 + $0x264] ss:$16 sps:$4 sm:$0xff]   ;;  %v10932_v38 = vld [vmem:[%s15172_s1 + $0x26c] ss:$16 sps:$4 sm:$0xff]  }
  0x1b   :  { %339 = vmatpush1.bf16.msra.mxu0 %v10867_v41  ;;  %380 = vmatpush1.bf16.msra.mxu1 %v10870_v42  ;;  %v629_v37 = vsel %vm67_vm0, %v628_v32, %v626_v31  ;;  %v801_v39 = vld [vmem:[%s15171_s0 + $0x54] sm:$0x1]  ;;  %v10927_v41 = vld [vmem:[%s15172_s1 + $0x260] ss:$16 sps:$4 sm:$0xff]   ;;  %v10930_v42 = vld [vmem:[%s15172_s1 + $0x268] ss:$16 sps:$4 sm:$0xff]  }
  0x1c   :  { %340 = vmatprep.subr.bf16.mxu0 %v10875_v44  ;;  %381 = vmatprep.subr.bf16.mxu1 %v10878_v45  ;;  %v630_v40 = vpack.c.b16 %v629_v37, %v629_v37  ;;  %v803_v43 = vpack.c.bf16 %v801_v39, %v801_v39  ;;  %v10935_v44 = vld [vmem:[%s15172_s1 + $0x244] ss:$16 sps:$4 sm:$0xff]   ;;  %v10938_v45 = vld [vmem:[%s15172_s1 + $0x24c] ss:$16 sps:$4 sm:$0xff]   ;;  %v10945_v59 = vld [vmem:[%s15172_s1 + $0x200] ss:$16 sps:$4 sm:$0xff]  }
  0x1d   :  { %v800_v46 = vld [vmem:[%s15171_s0 + $0x4] sm:$0x1]  ;;  %v10950_v58 = vld [vmem:[%s15172_s1 + $0x20c] ss:$16 sps:$4 sm:$0xff]   ;;  %v997_v0 = vld [vmem:[%s15171_s0 + $0x55] sm:$0x1] }
  0x1e   :  { %v802_v49 = vpack.c.bf16 %v800_v46, %v800_v46  ;;  %v10956_v63 = vld [vmem:[%s15172_s1 + $0x2ec] ss:$16 sps:$4 sm:$0xff]   ;;  %v999_v7 = vpack.c.bf16 %v997_v0, %v997_v0  ;;  %v10965_v11 = vld [vmem:[%s15172_s1 + $0x2a4] ss:$16 sps:$4 sm:$0xff]   ;;  %v10969_v21 = vld [vmem:[%s15172_s1 + $0x280] ss:$16 sps:$4 sm:$0xff]  }
  0x1f   :  { %341 = vmatpush1.bf16.msra.mxu0 %v10873_v47  ;;  %382 = vmatpush1.bf16.msra.mxu1 %v10876_v48  ;;  %v10933_v47 = vld [vmem:[%s15172_s1 + $0x240] ss:$16 sps:$4 sm:$0xff]   ;;  %v10936_v48 = vld [vmem:[%s15172_s1 + $0x248] ss:$16 sps:$4 sm:$0xff]   ;;  %v10962_v6 = vld [vmem:[%s15172_s1 + $0x2cc] ss:$16 sps:$4 sm:$0xff]  }
  0x20   :  { %526 = vmatprep.subr.bf16.mxu0 %v10881_v50  ;;  %567 = vmatprep.subr.bf16.mxu1 %v10884_v51  ;;  %v823_v50 = vunpack.c.l.b16 %v803_v43  ;;  %v10941_v51 = vld [vmem:[%s15172_s1 + $0x224] ss:$16 sps:$4 sm:$0xff]   ;;  %v10968_v14 = vld [vmem:[%s15172_s1 + $0x2ac] ss:$16 sps:$4 sm:$0xff]   ;;  %v10993_v46 = vld [vmem:[%s15172_s1 + $0x300] ss:$16 sps:$4 sm:$0xff]  }
  0x21   :  { %v10971_v19 = vld [vmem:[%s15172_s1 + $0x284] ss:$16 sps:$4 sm:$0xff]   ;;  %v10980_v25 = vld [vmem:[%s15172_s1 + $0x36c] ss:$16 sps:$4 sm:$0xff]  }
  0x22   :  { %9910 = vmatmul.mubr.msk.bf16.vlgmr.msra.gmra.mxu0 %vm150_vm1, %v242_v53  ;;  %9911 = vmatmul.mubr.msk.bf16.vlgmr.msra.gmra.mxu1 %vm150_vm1, %v242_v53  ;;  %v10939_v53 = vld [vmem:[%s15172_s1 + $0x220] ss:$16 sps:$4 sm:$0xff]   ;;  %v824_v56 = vrot.slane %v823_v50, 7  ;;  %v10977_v24 = vld [vmem:[%s15172_s1 + $0x364] ss:$16 sps:$4 sm:$0xff]  }
  0x23   :  { %527 = vmatpush1.bf16.msra.mxu0 %v10879_v52  ;;  %568 = vmatpush1.bf16.msra.mxu1 %v10882_v54  ;;  %v10944_v52 = vld [vmem:[%s15172_s1 + $0x22c] ss:$16 sps:$4 sm:$0xff]   ;;  %v10942_v54 = vld [vmem:[%s15172_s1 + $0x228] ss:$16 sps:$4 sm:$0xff]  }
  0x24   :  { %528 = vmatprep.subr.bf16.mxu0 %v10887_v55  ;;  %569 = vmatprep.subr.bf16.mxu1 %v10890_v57  ;;  %v822_v55 = vunpack.c.l.b16 %v802_v49  ;;  %v10947_v57 = vld [vmem:[%s15172_s1 + $0x204] ss:$16 sps:$4 sm:$0xff]   ;;  %v10986_v32 = vld [vmem:[%s15172_s1 + $0x34c] ss:$16 sps:$4 sm:$0xff]  }
  0x25   :  { %550 = vmatprep.mubr.bf16.mxu0 %v12029_v2  ;;  %591 = vmatprep.mubr.bf16.mxu1 %v12029_v2  ;;  %v10992_v39 = vld [vmem:[%s15172_s1 + $0x32c] ss:$16 sps:$4 sm:$0xff]  }
  0x26   :  { %v11004_v50 = vld [vmem:[%s15172_s1 + $0x3ec] ss:$16 sps:$4 sm:$0xff]  }
  0x27   :  { %529 = vmatpush1.bf16.msra.mxu0 %v10885_v60  ;;  %570 = vmatpush1.bf16.msra.mxu1 %v10888_v61  ;;  %v10948_v60 = vld [vmem:[%s15172_s1 + $0x208] ss:$16 sps:$4 sm:$0xff]   ;;  %v825_v61 = vsel %vm67_vm0, %v824_v56, %v822_v55  ;;  %v11007_v55 = vld [vmem:[%s15172_s1 + $0x3c4] ss:$16 sps:$4 sm:$0xff]   ;;  %v11016_v0 = vld [vmem:[%s15172_s1 + $0x3ac] ss:$16 sps:$4 sm:$0xff]  }
  0x28   :  { %530 = vmatprep.subr.bf16.mxu0 %v10893_v62  ;;  %571 = vmatprep.subr.bf16.mxu1 %v10896_v1  ;;  %v10953_v62 = vld [vmem:[%s15172_s1 + $0x2e4] ss:$16 sps:$4 sm:$0xff]   ;;  %v10951_v1 = vld [vmem:[%s15172_s1 + $0x2e0] ss:$16 sps:$4 sm:$0xff]  }
  0x2b   :  { %531 = vmatpush1.bf16.msra.mxu0 %v10891_v3  ;;  %572 = vmatpush1.bf16.msra.mxu1 %v10894_v4  ;;  %v826_v3 = vpack.c.b16 %v825_v61, %v825_v61  ;;  %v10954_v4 = vld [vmem:[%s15172_s1 + $0x2e8] ss:$16 sps:$4 sm:$0xff]  }
  0x2c   :  { %532 = vmatprep.subr.bf16.mxu0 %v10899_v5  ;;  %573 = vmatprep.subr.bf16.mxu1 %v10902_v8  ;;  %v10959_v5 = vld [vmem:[%s15172_s1 + $0x2c4] ss:$16 sps:$4 sm:$0xff]  }
  0x2d   :  { %v996_v8 = vld [vmem:[%s15171_s0 + $0x5] sm:$0x1] }
  0x2f   :  { %533 = vmatpush1.bf16.msra.mxu0 %v10897_v9  ;;  %574 = vmatpush1.bf16.msra.mxu1 %v10900_v10  ;;  %v10957_v9 = vld [vmem:[%s15172_s1 + $0x2c0] ss:$16 sps:$4 sm:$0xff]   ;;  %v10960_v10 = vld [vmem:[%s15172_s1 + $0x2c8] ss:$16 sps:$4 sm:$0xff]  }
  0x30   :  { %722 = vmatprep.subr.bf16.mxu0 %v10905_v12  ;;  %763 = vmatprep.subr.bf16.mxu1 %v10908_v13  ;;  %v998_v12 = vpack.c.bf16 %v996_v8, %v996_v8  ;;  %v1019_v13 = vunpack.c.l.b16 %v999_v7  ;;  %v11022_v7 = vld [vmem:[%s15172_s1 + $0x38c] ss:$16 sps:$4 sm:$0xff]   ;;  %v11017_v8 = vld [vmem:[%s15172_s1 + $0x380] ss:$16 sps:$4 sm:$0xff]  }
  0x32   :  { %9928 = vmatmul.mubr.msk.bf16.vlgmr.msra.gmra.mxu0 %vm150_vm1, %v434_v15  ;;  %9929 = vmatmul.mubr.msk.bf16.vlgmr.msra.gmra.mxu1 %vm150_vm1, %v434_v15  ;;  %v10963_v15 = vld [vmem:[%s15172_s1 + $0x2a0] ss:$16 sps:$4 sm:$0xff]  }
  0x33   :  { %723 = vmatpush1.bf16.msra.mxu0 %v10903_v16  ;;  %764 = vmatpush1.bf16.msra.mxu1 %v10906_v17  ;;  %v10966_v16 = vld [vmem:[%s15172_s1 + $0x2a8] ss:$16 sps:$4 sm:$0xff]   ;;  %v1018_v17 = vunpack.c.l.b16 %v998_v12  ;;  %v11028_v12 = vld [vmem:[%s15172_s1 + $0x46c] ss:$16 sps:$4 sm:$0xff]  }
  0x34   :  { %724 = vmatprep.subr.bf16.mxu0 %v10911_v18  ;;  %765 = vmatprep.subr.bf16.mxu1 %v10914_v20  ;;  %v1020_v18 = vrot.slane %v1019_v13, 7  ;;  %v10974_v20 = vld [vmem:[%s15172_s1 + $0x28c] ss:$16 sps:$4 sm:$0xff]  }
  0x35   :  { %746 = vmatprep.mubr.bf16.mxu0 %v12029_v2  ;;  %787 = vmatprep.mubr.bf16.mxu1 %v12029_v2  ;;  %v1585_v13 = vld [vmem:[%s15171_s0 + $0x5c] sm:$0x1] }
  0x37   :  { %725 = vmatpush1.bf16.msra.mxu0 %v10909_v22  ;;  %766 = vmatpush1.bf16.msra.mxu1 %v10912_v23  ;;  %v10972_v22 = vld [vmem:[%s15172_s1 + $0x288] ss:$16 sps:$4 sm:$0xff]   ;;  %v1021_v23 = vsel %vm67_vm0, %v1020_v18, %v1018_v17  ;;  %v11031_v17 = vld [vmem:[%s15172_s1 + $0x444] ss:$16 sps:$4 sm:$0xff]   ;;  %v11034_v18 = vld [vmem:[%s15172_s1 + $0x44c] ss:$16 sps:$4 sm:$0xff]  }
  0x38   :  { %726 = vmatprep.subr.bf16.mxu0 %v10917_v26  ;;  %767 = vmatprep.subr.bf16.mxu1 %v10920_v27  ;;  %v1193_v26 = vld [vmem:[%s15171_s0 + $0x56] sm:$0x1]  ;;  %v1022_v27 = vpack.c.b16 %v1021_v23, %v1021_v23 }
  0x39   :  { %v1195_v31 = vpack.c.bf16 %v1193_v26, %v1193_v26  ;;  %v11040_v26 = vld [vmem:[%s15172_s1 + $0x42c] ss:$16 sps:$4 sm:$0xff]  }
  0x3b   :  { %727 = vmatpush1.bf16.msra.mxu0 %v10915_v28  ;;  %768 = vmatpush1.bf16.msra.mxu1 %v10918_v29  ;;  %v10975_v28 = vld [vmem:[%s15172_s1 + $0x360] ss:$16 sps:$4 sm:$0xff]   ;;  %v10978_v29 = vld [vmem:[%s15172_s1 + $0x368] ss:$16 sps:$4 sm:$0xff]  }
  0x3c   :  { %728 = vmatprep.subr.bf16.mxu0 %v10923_v30  ;;  %769 = vmatprep.subr.bf16.mxu1 %v10926_v33  ;;  %v10983_v30 = vld [vmem:[%s15172_s1 + $0x344] ss:$16 sps:$4 sm:$0xff]  }
  0x3d   :  { %v1192_v33 = vld [vmem:[%s15171_s0 + $0x6] sm:$0x1] }
  0x3e   :  { %v1194_v37 = vpack.c.bf16 %v1192_v33, %v1192_v33  ;;  %v11041_v33 = vld [vmem:[%s15172_s1 + $0x400] ss:$16 sps:$4 sm:$0xff]  }
  0x3f   :  { %729 = vmatpush1.bf16.msra.mxu0 %v10921_v34  ;;  %770 = vmatpush1.bf16.msra.mxu1 %v10924_v35  ;;  %v10981_v34 = vld [vmem:[%s15172_s1 + $0x340] ss:$16 sps:$4 sm:$0xff]   ;;  %v10984_v35 = vld [vmem:[%s15172_s1 + $0x348] ss:$16 sps:$4 sm:$0xff]  }
  0x40   :  { %918 = vmatprep.subr.bf16.mxu0 %v10929_v36  ;;  %959 = vmatprep.subr.bf16.mxu1 %v10932_v38  ;;  %v10989_v36 = vld [vmem:[%s15172_s1 + $0x324] ss:$16 sps:$4 sm:$0xff]   ;;  %v1215_v38 = vunpack.c.l.b16 %v1195_v31  ;;  %v1214_v43 = vunpack.c.l.b16 %v1194_v37  ;;  %v11052_v37 = vld [vmem:[%s15172_s1 + $0x4ec] ss:$16 sps:$4 sm:$0xff]  }
  0x41   :  { %v11043_v31 = vld [vmem:[%s15172_s1 + $0x404] ss:$16 sps:$4 sm:$0xff]  }
  0x42   :  { %9946 = vmatmul.mubr.msk.bf16.vlgmr.msra.gmra.mxu0 %vm150_vm1, %v630_v40  ;;  %9947 = vmatmul.mubr.msk.bf16.vlgmr.msra.gmra.mxu1 %vm150_vm1, %v630_v40  ;;  %v10987_v40 = vld [vmem:[%s15172_s1 + $0x320] ss:$16 sps:$4 sm:$0xff]  }
  0x43   :  { %919 = vmatpush1.bf16.msra.mxu0 %v10927_v41  ;;  %960 = vmatpush1.bf16.msra.mxu1 %v10930_v42  ;;  %v10990_v41 = vld [vmem:[%s15172_s1 + $0x328] ss:$16 sps:$4 sm:$0xff]   ;;  %v10995_v42 = vld [vmem:[%s15172_s1 + $0x304] ss:$16 sps:$4 sm:$0xff]  }
  0x44   :  { %920 = vmatprep.subr.bf16.mxu0 %v10935_v44  ;;  %961 = vmatprep.subr.bf16.mxu1 %v10938_v45  ;;  %v1216_v44 = vrot.slane %v1215_v38, 7  ;;  %v10998_v45 = vld [vmem:[%s15172_s1 + $0x30c] ss:$16 sps:$4 sm:$0xff]  }
  0x45   :  { %942 = vmatprep.mubr.bf16.mxu0 %v12029_v2  ;;  %983 = vmatprep.mubr.bf16.mxu1 %v12029_v2  ;;  %v1781_v38 = vld [vmem:[%s15171_s0 + $0x5d] sm:$0x1] }
  0x46   :  { %v1217_v49 = vsel %vm67_vm0, %v1216_v44, %v1214_v43  ;;  %v11058_v43 = vld [vmem:[%s15172_s1 + $0x4cc] ss:$16 sps:$4 sm:$0xff]   ;;  %v1783_v44 = vpack.c.bf16 %v1781_v38, %v1781_v38 }
  0x47   :  { %921 = vmatpush1.bf16.msra.mxu0 %v10933_v47  ;;  %962 = vmatpush1.bf16.msra.mxu1 %v10936_v48  ;;  %v10996_v47 = vld [vmem:[%s15172_s1 + $0x308] ss:$16 sps:$4 sm:$0xff]   ;;  %v11001_v48 = vld [vmem:[%s15172_s1 + $0x3e4] ss:$16 sps:$4 sm:$0xff]   ;;  %v11112_v38 = vld [vmem:[%s15172_s1 + $0x5ac] ss:$16 sps:$4 sm:$0xff]  }
  0x48   :  { %922 = vmatprep.subr.bf16.mxu0 %v10941_v51  ;;  %963 = vmatprep.subr.bf16.mxu1 %v10944_v52  ;;  %v1389_v51 = vld [vmem:[%s15171_s0 + $0x5b] sm:$0x1]  ;;  %v1218_v52 = vpack.c.b16 %v1217_v49, %v1217_v49 }
  0x49   :  { %v1391_v56 = vpack.c.bf16 %v1389_v51, %v1389_v51  ;;  %v11064_v51 = vld [vmem:[%s15172_s1 + $0x4ac] ss:$16 sps:$4 sm:$0xff]  }
  0x4b   :  { %923 = vmatpush1.bf16.msra.mxu0 %v10939_v53  ;;  %964 = vmatpush1.bf16.msra.mxu1 %v10942_v54  ;;  %v10999_v53 = vld [vmem:[%s15172_s1 + $0x3e0] ss:$16 sps:$4 sm:$0xff]   ;;  %v11002_v54 = vld [vmem:[%s15172_s1 + $0x3e8] ss:$16 sps:$4 sm:$0xff]  }
  0x4c   :  { %924 = vmatprep.subr.bf16.mxu0 %v10947_v57  ;;  %965 = vmatprep.subr.bf16.mxu1 %v10950_v58  ;;  %v11010_v57 = vld [vmem:[%s15172_s1 + $0x3cc] ss:$16 sps:$4 sm:$0xff]   ;;  %v1388_v58 = vld [vmem:[%s15171_s0 + $0xb] sm:$0x1] }
  0x4d   :  { %v1390_v61 = vpack.c.bf16 %v1388_v58, %v1388_v58  ;;  %v11065_v58 = vld [vmem:[%s15172_s1 + $0x480] ss:$16 sps:$4 sm:$0xff]  }
  0x4f   :  { %925 = vmatpush1.bf16.msra.mxu0 %v10945_v59  ;;  %966 = vmatpush1.bf16.msra.mxu1 %v10948_v60  ;;  %v11005_v59 = vld [vmem:[%s15172_s1 + $0x3c0] ss:$16 sps:$4 sm:$0xff]   ;;  %v11008_v60 = vld [vmem:[%s15172_s1 + $0x3c8] ss:$16 sps:$4 sm:$0xff]  }
  0x50   :  { %1114 = vmatprep.subr.bf16.mxu0 %v10953_v62  ;;  %1155 = vmatprep.subr.bf16.mxu1 %v10956_v63  ;;  %v1411_v62 = vunpack.c.l.b16 %v1391_v56  ;;  %v11013_v63 = vld [vmem:[%s15172_s1 + $0x3a4] ss:$16 sps:$4 sm:$0xff]  }
  0x52   :  { %9964 = vmatmul.mubr.msk.bf16.vlgmr.msra.gmra.mxu0 %vm150_vm1, %v826_v3  ;;  %9965 = vmatmul.mubr.msk.bf16.vlgmr.msra.gmra.mxu1 %vm150_vm1, %v826_v3  ;;  %v11014_v3 = vld [vmem:[%s15172_s1 + $0x3a8] ss:$16 sps:$4 sm:$0xff]  }
  0x53   :  { %1115 = vmatpush1.bf16.msra.mxu0 %v10951_v1  ;;  %1156 = vmatpush1.bf16.msra.mxu1 %v10954_v4  ;;  %v11011_v1 = vld [vmem:[%s15172_s1 + $0x3a0] ss:$16 sps:$4 sm:$0xff]   ;;  %v1410_v4 = vunpack.c.l.b16 %v1390_v61  ;;  %v11073_v61 = vld [vmem:[%s15172_s1 + $0x564] ss:$16 sps:$4 sm:$0xff]  }
  0x54   :  { %1116 = vmatprep.subr.bf16.mxu0 %v10959_v5  ;;  %1157 = vmatprep.subr.bf16.mxu1 %v10962_v6  ;;  %v1412_v5 = vrot.slane %v1411_v62, 7  ;;  %v11019_v6 = vld [vmem:[%s15172_s1 + $0x384] ss:$16 sps:$4 sm:$0xff]   ;;  %v11076_v62 = vld [vmem:[%s15172_s1 + $0x56c] ss:$16 sps:$4 sm:$0xff]  }
  0x55   :  { %1138 = vmatprep.mubr.bf16.mxu0 %v12029_v2  ;;  %1179 = vmatprep.mubr.bf16.mxu1 %v12029_v2 }
  0x57   :  { %1117 = vmatpush1.bf16.msra.mxu0 %v10957_v9  ;;  %1158 = vmatpush1.bf16.msra.mxu1 %v10960_v10  ;;  %v11020_v9 = vld [vmem:[%s15172_s1 + $0x388] ss:$16 sps:$4 sm:$0xff]   ;;  %v11025_v10 = vld [vmem:[%s15172_s1 + $0x464] ss:$16 sps:$4 sm:$0xff]  }
  0x58   :  { %1118 = vmatprep.subr.bf16.mxu0 %v10965_v11  ;;  %1159 = vmatprep.subr.bf16.mxu1 %v10968_v14  ;;  %v1413_v11 = vsel %vm67_vm0, %v1412_v5, %v1410_v4  ;;  %v11023_v14 = vld [vmem:[%s15172_s1 + $0x460] ss:$16 sps:$4 sm:$0xff]   ;;  %v11079_v4 = vld [vmem:[%s15172_s1 + $0x544] ss:$16 sps:$4 sm:$0xff]  }
  0x5b   :  { %1119 = vmatpush1.bf16.msra.mxu0 %v10963_v15  ;;  %1160 = vmatpush1.bf16.msra.mxu1 %v10966_v16  ;;  %v1414_v15 = vpack.c.b16 %v1413_v11, %v1413_v11  ;;  %v11026_v16 = vld [vmem:[%s15172_s1 + $0x468] ss:$16 sps:$4 sm:$0xff]  }
  0x5c   :  { %1120 = vmatprep.subr.bf16.mxu0 %v10971_v19  ;;  %1161 = vmatprep.subr.bf16.mxu1 %v10974_v20  ;;  %v1587_v19 = vpack.c.bf16 %v1585_v13, %v1585_v13  ;;  %v1584_v20 = vld [vmem:[%s15171_s0 + $0xc] sm:$0x1] }
  0x5d   :  { %v1586_v23 = vpack.c.bf16 %v1584_v20, %v1584_v20  ;;  %v11088_v13 = vld [vmem:[%s15172_s1 + $0x52c] ss:$16 sps:$4 sm:$0xff]   ;;  %v11089_v20 = vld [vmem:[%s15172_s1 + $0x500] ss:$16 sps:$4 sm:$0xff]  }
  0x5f   :  { %1121 = vmatpush1.bf16.msra.mxu0 %v10969_v21  ;;  %1162 = vmatpush1.bf16.msra.mxu1 %v10972_v22  ;;  %v11029_v21 = vld [vmem:[%s15172_s1 + $0x440] ss:$16 sps:$4 sm:$0xff]   ;;  %v11032_v22 = vld [vmem:[%s15172_s1 + $0x448] ss:$16 sps:$4 sm:$0xff]  }
  0x60   :  { %1310 = vmatprep.subr.bf16.mxu0 %v10977_v24  ;;  %1351 = vmatprep.subr.bf16.mxu1 %v10980_v25  ;;  %v1607_v24 = vunpack.c.l.b16 %v1587_v19  ;;  %v11037_v25 = vld [vmem:[%s15172_s1 + $0x424] ss:$16 sps:$4 sm:$0xff]   ;;  %v11094_v19 = vld [vmem:[%s15172_s1 + $0x50c] ss:$16 sps:$4 sm:$0xff]  }
  0x62   :  { %9982 = vmatmul.mubr.msk.bf16.vlgmr.msra.gmra.mxu0 %vm150_vm1, %v1022_v27  ;;  %9983 = vmatmul.mubr.msk.bf16.vlgmr.msra.gmra.mxu1 %vm150_vm1, %v1022_v27  ;;  %v11035_v27 = vld [vmem:[%s15172_s1 + $0x420] ss:$16 sps:$4 sm:$0xff]  }
  0x63   :  { %1311 = vmatpush1.bf16.msra.mxu0 %v10975_v28  ;;  %1352 = vmatpush1.bf16.msra.mxu1 %v10978_v29  ;;  %v11038_v28 = vld [vmem:[%s15172_s1 + $0x428] ss:$16 sps:$4 sm:$0xff]   ;;  %v1606_v29 = vunpack.c.l.b16 %v1586_v23 }
  0x64   :  { %1312 = vmatprep.subr.bf16.mxu0 %v10983_v30  ;;  %1353 = vmatprep.subr.bf16.mxu1 %v10986_v32  ;;  %v1608_v30 = vrot.slane %v1607_v24, 7  ;;  %v11046_v32 = vld [vmem:[%s15172_s1 + $0x40c] ss:$16 sps:$4 sm:$0xff]  }
  0x65   :  { %1334 = vmatprep.mubr.bf16.mxu0 %v12029_v2  ;;  %1375 = vmatprep.mubr.bf16.mxu1 %v12029_v2  ;;  %v11100_v24 = vld [vmem:[%s15172_s1 + $0x5ec] ss:$16 sps:$4 sm:$0xff]  }
  0x67   :  { %1313 = vmatpush1.bf16.msra.mxu0 %v10981_v34  ;;  %1354 = vmatpush1.bf16.msra.mxu1 %v10984_v35  ;;  %v11044_v34 = vld [vmem:[%s15172_s1 + $0x408] ss:$16 sps:$4 sm:$0xff]   ;;  %v1609_v35 = vsel %vm67_vm0, %v1608_v30, %v1606_v29  ;;  %v11103_v29 = vld [vmem:[%s15172_s1 + $0x5c4] ss:$16 sps:$4 sm:$0xff]   ;;  %v11106_v30 = vld [vmem:[%s15172_s1 + $0x5cc] ss:$16 sps:$4 sm:$0xff]  }
  0x68   :  { %1314 = vmatprep.subr.bf16.mxu0 %v10989_v36  ;;  %1355 = vmatprep.subr.bf16.mxu1 %v10992_v39  ;;  %v11049_v36 = vld [vmem:[%s15172_s1 + $0x4e4] ss:$16 sps:$4 sm:$0xff]   ;;  %v1610_v39 = vpack.c.b16 %v1609_v35, %v1609_v35 }
  0x6b   :  { %1315 = vmatpush1.bf16.msra.mxu0 %v10987_v40  ;;  %1356 = vmatpush1.bf16.msra.mxu1 %v10990_v41  ;;  %v11047_v40 = vld [vmem:[%s15172_s1 + $0x4e0] ss:$16 sps:$4 sm:$0xff]   ;;  %v11050_v41 = vld [vmem:[%s15172_s1 + $0x4e8] ss:$16 sps:$4 sm:$0xff]  }
  0x6c   :  { %1316 = vmatprep.subr.bf16.mxu0 %v10995_v42  ;;  %1357 = vmatprep.subr.bf16.mxu1 %v10998_v45  ;;  %v11055_v42 = vld [vmem:[%s15172_s1 + $0x4c4] ss:$16 sps:$4 sm:$0xff]   ;;  %v1780_v45 = vld [vmem:[%s15171_s0 + $0xd] sm:$0x1] }
  0x6d   :  { %v1782_v49 = vpack.c.bf16 %v1780_v45, %v1780_v45  ;;  %v11113_v45 = vld [vmem:[%s15172_s1 + $0x580] ss:$16 sps:$4 sm:$0xff]  }
  0x6f   :  { %1317 = vmatpush1.bf16.msra.mxu0 %v10993_v46  ;;  %1358 = vmatpush1.bf16.msra.mxu1 %v10996_v47  ;;  %v11053_v46 = vld [vmem:[%s15172_s1 + $0x4c0] ss:$16 sps:$4 sm:$0xff]   ;;  %v11056_v47 = vld [vmem:[%s15172_s1 + $0x4c8] ss:$16 sps:$4 sm:$0xff]  }
  0x70   :  { %1506 = vmatprep.subr.bf16.mxu0 %v11001_v48  ;;  %1547 = vmatprep.subr.bf16.mxu1 %v11004_v50  ;;  %v11061_v48 = vld [vmem:[%s15172_s1 + $0x4a4] ss:$16 sps:$4 sm:$0xff]   ;;  %v1803_v50 = vunpack.c.l.b16 %v1783_v44  ;;  %v11118_v44 = vld [vmem:[%s15172_s1 + $0x58c] ss:$16 sps:$4 sm:$0xff]  }
  0x72   :  { %10000 = vmatmul.mubr.msk.bf16.vlgmr.msra.gmra.mxu0 %vm150_vm1, %v1218_v52  ;;  %10001 = vmatmul.mubr.msk.bf16.vlgmr.msra.gmra.mxu1 %vm150_vm1, %v1218_v52  ;;  %v11059_v52 = vld [vmem:[%s15172_s1 + $0x4a0] ss:$16 sps:$4 sm:$0xff]   ;;  %v1804_v56 = vrot.slane %v1803_v50, 7 }
  0x73   :  { %1507 = vmatpush1.bf16.msra.mxu0 %v10999_v53  ;;  %1548 = vmatpush1.bf16.msra.mxu1 %v11002_v54  ;;  %v11062_v53 = vld [vmem:[%s15172_s1 + $0x4a8] ss:$16 sps:$4 sm:$0xff]   ;;  %v11067_v54 = vld [vmem:[%s15172_s1 + $0x484] ss:$16 sps:$4 sm:$0xff]   ;;  %v2369_v50 = vld [vmem:[%s15171_s0 + $0x60] sm:$0x1] }
  0x74   :  { %1508 = vmatprep.subr.bf16.mxu0 %v11007_v55  ;;  %1549 = vmatprep.subr.bf16.mxu1 %v11010_v57  ;;  %v1802_v55 = vunpack.c.l.b16 %v1782_v49  ;;  %v11070_v57 = vld [vmem:[%s15172_s1 + $0x48c] ss:$16 sps:$4 sm:$0xff]  }
  0x75   :  { %1530 = vmatprep.mubr.bf16.mxu0 %v12029_v2  ;;  %1571 = vmatprep.mubr.bf16.mxu1 %v12029_v2  ;;  %v11124_v49 = vld [vmem:[%s15172_s1 + $0x66c] ss:$16 sps:$4 sm:$0xff]  }
  0x77   :  { %1509 = vmatpush1.bf16.msra.mxu0 %v11005_v59  ;;  %1550 = vmatpush1.bf16.msra.mxu1 %v11008_v60  ;;  %v11068_v59 = vld [vmem:[%s15172_s1 + $0x488] ss:$16 sps:$4 sm:$0xff]   ;;  %v1805_v60 = vsel %vm67_vm0, %v1804_v56, %v1802_v55  ;;  %v11130_v55 = vld [vmem:[%s15172_s1 + $0x64c] ss:$16 sps:$4 sm:$0xff]   ;;  %v2371_v56 = vpack.c.bf16 %v2369_v50, %v2369_v50 }
  0x78   :  { %1510 = vmatprep.subr.bf16.mxu0 %v11013_v63  ;;  %1551 = vmatprep.subr.bf16.mxu1 %v11016_v0  ;;  %v1977_v63 = vld [vmem:[%s15171_s0 + $0x5e] sm:$0x1]  ;;  %v1806_v0 = vpack.c.b16 %v1805_v60, %v1805_v60  ;;  %v11133_v60 = vld [vmem:[%s15172_s1 + $0x624] ss:$16 sps:$4 sm:$0xff]  }
  0x79   :  { %v1979_v5 = vpack.c.bf16 %v1977_v63, %v1977_v63  ;;  %v11136_v63 = vld [vmem:[%s15172_s1 + $0x62c] ss:$16 sps:$4 sm:$0xff]  }
  0x7b   :  { %1511 = vmatpush1.bf16.msra.mxu0 %v11011_v1  ;;  %1552 = vmatpush1.bf16.msra.mxu1 %v11014_v3  ;;  %v11071_v1 = vld [vmem:[%s15172_s1 + $0x560] ss:$16 sps:$4 sm:$0xff]   ;;  %v11074_v3 = vld [vmem:[%s15172_s1 + $0x568] ss:$16 sps:$4 sm:$0xff]   ;;  %v1999_v11 = vunpack.c.l.b16 %v1979_v5  ;;  %v11139_v5 = vld [vmem:[%s15172_s1 + $0x604] ss:$16 sps:$4 sm:$0xff]  }
  0x7c   :  { %1512 = vmatprep.subr.bf16.mxu0 %v11019_v6  ;;  %1553 = vmatprep.subr.bf16.mxu1 %v11022_v7  ;;  %v11082_v6 = vld [vmem:[%s15172_s1 + $0x54c] ss:$16 sps:$4 sm:$0xff]  }
  0x7d   :  { %v1976_v7 = vld [vmem:[%s15171_s0 + $0xe] sm:$0x1] }
  0x7f   :  { %1513 = vmatpush1.bf16.msra.mxu0 %v11017_v8  ;;  %1554 = vmatpush1.bf16.msra.mxu1 %v11020_v9  ;;  %v11077_v8 = vld [vmem:[%s15172_s1 + $0x540] ss:$16 sps:$4 sm:$0xff]   ;;  %v11080_v9 = vld [vmem:[%s15172_s1 + $0x548] ss:$16 sps:$4 sm:$0xff]  }
  0x80   :  { %1702 = vmatprep.subr.bf16.mxu0 %v11025_v10  ;;  %1743 = vmatprep.subr.bf16.mxu1 %v11028_v12  ;;  %v1978_v10 = vpack.c.bf16 %v1976_v7, %v1976_v7  ;;  %v11085_v12 = vld [vmem:[%s15172_s1 + $0x524] ss:$16 sps:$4 sm:$0xff]   ;;  %v11137_v7 = vld [vmem:[%s15172_s1 + $0x600] ss:$16 sps:$4 sm:$0xff]  }
  0x82   :  { %10018 = vmatmul.mubr.msk.bf16.vlgmr.msra.gmra.mxu0 %vm150_vm1, %v1414_v15  ;;  %10019 = vmatmul.mubr.msk.bf16.vlgmr.msra.gmra.mxu1 %vm150_vm1, %v1414_v15  ;;  %v11086_v15 = vld [vmem:[%s15172_s1 + $0x528] ss:$16 sps:$4 sm:$0xff]  }
  0x83   :  { %1703 = vmatpush1.bf16.msra.mxu0 %v11023_v14  ;;  %1744 = vmatpush1.bf16.msra.mxu1 %v11026_v16  ;;  %v11083_v14 = vld [vmem:[%s15172_s1 + $0x520] ss:$16 sps:$4 sm:$0xff]   ;;  %v11091_v16 = vld [vmem:[%s15172_s1 + $0x504] ss:$16 sps:$4 sm:$0xff]  }
  0x84   :  { %1704 = vmatprep.subr.bf16.mxu0 %v11031_v17  ;;  %1745 = vmatprep.subr.bf16.mxu1 %v11034_v18  ;;  %v1998_v17 = vunpack.c.l.b16 %v1978_v10  ;;  %v2000_v18 = vrot.slane %v1999_v11, 7  ;;  %v11145_v10 = vld [vmem:[%s15172_s1 + $0x6e4] ss:$16 sps:$4 sm:$0xff]   ;;  %v11148_v11 = vld [vmem:[%s15172_s1 + $0x6ec] ss:$16 sps:$4 sm:$0xff]  }
  0x85   :  { %1726 = vmatprep.mubr.bf16.mxu0 %v12029_v2  ;;  %1767 = vmatprep.mubr.bf16.mxu1 %v12029_v2 }
  0x86   :  { %v2001_v23 = vsel %vm67_vm0, %v2000_v18, %v1998_v17  ;;  %v11154_v18 = vld [vmem:[%s15172_s1 + $0x6cc] ss:$16 sps:$4 sm:$0xff]  }
  0x87   :  { %1705 = vmatpush1.bf16.msra.mxu0 %v11029_v21  ;;  %1746 = vmatpush1.bf16.msra.mxu1 %v11032_v22  ;;  %v11092_v21 = vld [vmem:[%s15172_s1 + $0x508] ss:$16 sps:$4 sm:$0xff]   ;;  %v11097_v22 = vld [vmem:[%s15172_s1 + $0x5e4] ss:$16 sps:$4 sm:$0xff]  }
  0x88   :  { %1706 = vmatprep.subr.bf16.mxu0 %v11037_v25  ;;  %1747 = vmatprep.subr.bf16.mxu1 %v11040_v26  ;;  %v2173_v25 = vld [vmem:[%s15171_s0 + $0x5f] sm:$0x1]  ;;  %v11095_v26 = vld [vmem:[%s15172_s1 + $0x5e0] ss:$16 sps:$4 sm:$0xff]  }
  0x8b   :  { %1707 = vmatpush1.bf16.msra.mxu0 %v11035_v27  ;;  %1748 = vmatpush1.bf16.msra.mxu1 %v11038_v28  ;;  %v2002_v27 = vpack.c.b16 %v2001_v23, %v2001_v23  ;;  %v11098_v28 = vld [vmem:[%s15172_s1 + $0x5e8] ss:$16 sps:$4 sm:$0xff]  }
  0x8c   :  { %1708 = vmatprep.subr.bf16.mxu0 %v11043_v31  ;;  %1749 = vmatprep.subr.bf16.mxu1 %v11046_v32  ;;  %v2175_v31 = vpack.c.bf16 %v2173_v25, %v2173_v25  ;;  %v2172_v32 = vld [vmem:[%s15171_s0 + $0xf] sm:$0x1]  ;;  %v11152_v23 = vld [vmem:[%s15172_s1 + $0x6c8] ss:$16 sps:$4 sm:$0xff]  }
  0x8d   :  { %v2174_v35 = vpack.c.bf16 %v2172_v32, %v2172_v32  ;;  %v11155_v32 = vld [vmem:[%s15172_s1 + $0x6a0] ss:$16 sps:$4 sm:$0xff]  }
  0x8f   :  { %1709 = vmatpush1.bf16.msra.mxu0 %v11041_v33  ;;  %1750 = vmatpush1.bf16.msra.mxu1 %v11044_v34  ;;  %v11101_v33 = vld [vmem:[%s15172_s1 + $0x5c0] ss:$16 sps:$4 sm:$0xff]   ;;  %v11104_v34 = vld [vmem:[%s15172_s1 + $0x5c8] ss:$16 sps:$4 sm:$0xff]  }
  0x90   :  { %1898 = vmatprep.subr.bf16.mxu0 %v11049_v36  ;;  %1939 = vmatprep.subr.bf16.mxu1 %v11052_v37  ;;  %v2195_v36 = vunpack.c.l.b16 %v2175_v31  ;;  %v11109_v37 = vld [vmem:[%s15172_s1 + $0x5a4] ss:$16 sps:$4 sm:$0xff]  }
  0x92   :  { %10036 = vmatmul.mubr.msk.bf16.vlgmr.msra.gmra.mxu0 %vm150_vm1, %v1610_v39  ;;  %10037 = vmatmul.mubr.msk.bf16.vlgmr.msra.gmra.mxu1 %vm150_vm1, %v1610_v39  ;;  %v11107_v39 = vld [vmem:[%s15172_s1 + $0x5a0] ss:$16 sps:$4 sm:$0xff]  }
  0x93   :  { %1899 = vmatpush1.bf16.msra.mxu0 %v11047_v40  ;;  %1940 = vmatpush1.bf16.msra.mxu1 %v11050_v41  ;;  %v11110_v40 = vld [vmem:[%s15172_s1 + $0x5a8] ss:$16 sps:$4 sm:$0xff]   ;;  %v2194_v41 = vunpack.c.l.b16 %v2174_v35 }
  0x94   :  { %1900 = vmatprep.subr.bf16.mxu0 %v11055_v42  ;;  %1941 = vmatprep.subr.bf16.mxu1 %v11058_v43  ;;  %v2196_v42 = vrot.slane %v2195_v36, 7  ;;  %v11115_v43 = vld [vmem:[%s15172_s1 + $0x584] ss:$16 sps:$4 sm:$0xff]  }
  0x95   :  { %1922 = vmatprep.mubr.bf16.mxu0 %v12029_v2  ;;  %1963 = vmatprep.mubr.bf16.mxu1 %v12029_v2 }
  0x97   :  { %1901 = vmatpush1.bf16.msra.mxu0 %v11053_v46  ;;  %1942 = vmatpush1.bf16.msra.mxu1 %v11056_v47  ;;  %v11116_v46 = vld [vmem:[%s15172_s1 + $0x588] ss:$16 sps:$4 sm:$0xff]   ;;  %v2197_v47 = vsel %vm67_vm0, %v2196_v42, %v2194_v41  ;;  %v11169_v42 = vld [vmem:[%s15172_s1 + $0x764] ss:$16 sps:$4 sm:$0xff]  }
  0x98   :  { %1902 = vmatprep.subr.bf16.mxu0 %v11061_v48  ;;  %1943 = vmatprep.subr.bf16.mxu1 %v11064_v51  ;;  %v11121_v48 = vld [vmem:[%s15172_s1 + $0x664] ss:$16 sps:$4 sm:$0xff]   ;;  %v11119_v51 = vld [vmem:[%s15172_s1 + $0x660] ss:$16 sps:$4 sm:$0xff]   ;;  %v11164_v41 = vld [vmem:[%s15172_s1 + $0x688] ss:$16 sps:$4 sm:$0xff]  }
  0x9b   :  { %1903 = vmatpush1.bf16.msra.mxu0 %v11059_v52  ;;  %1944 = vmatpush1.bf16.msra.mxu1 %v11062_v53  ;;  %v2198_v52 = vpack.c.b16 %v2197_v47, %v2197_v47  ;;  %v11122_v53 = vld [vmem:[%s15172_s1 + $0x668] ss:$16 sps:$4 sm:$0xff]   ;;  %v11167_v47 = vld [vmem:[%s15172_s1 + $0x760] ss:$16 sps:$4 sm:$0xff]  }
  0x9c   :  { %1904 = vmatprep.subr.bf16.mxu0 %v11067_v54  ;;  %1945 = vmatprep.subr.bf16.mxu1 %v11070_v57  ;;  %v11127_v54 = vld [vmem:[%s15172_s1 + $0x644] ss:$16 sps:$4 sm:$0xff]   ;;  %v2368_v57 = vld [vmem:[%s15171_s0 + $0x10] sm:$0x1] }
  0x9f   :  { %1905 = vmatpush1.bf16.msra.mxu0 %v11065_v58  ;;  %1946 = vmatpush1.bf16.msra.mxu1 %v11068_v59  ;;  %v11125_v58 = vld [vmem:[%s15172_s1 + $0x640] ss:$16 sps:$4 sm:$0xff]   ;;  %v11128_v59 = vld [vmem:[%s15172_s1 + $0x648] ss:$16 sps:$4 sm:$0xff]  }
  0xa0   :  { %2094 = vmatprep.subr.bf16.mxu0 %v11073_v61  ;;  %2135 = vmatprep.subr.bf16.mxu1 %v11076_v62  ;;  %v2370_v61 = vpack.c.bf16 %v2368_v57, %v2368_v57  ;;  %v2391_v62 = vunpack.c.l.b16 %v2371_v56  ;;  %v11173_v57 = vld [vmem:[%s15172_s1 + $0x740] ss:$16 sps:$4 sm:$0xff]  }
  0xa2   :  { %10054 = vmatmul.mubr.msk.bf16.vlgmr.msra.gmra.mxu0 %vm150_vm1, %v1806_v0  ;;  %10055 = vmatmul.mubr.msk.bf16.vlgmr.msra.gmra.mxu1 %vm150_vm1, %v1806_v0  ;;  %v11131_v0 = vld [vmem:[%s15172_s1 + $0x620] ss:$16 sps:$4 sm:$0xff]  }
  0xa3   :  { %2095 = vmatpush1.bf16.msra.mxu0 %v11071_v1  ;;  %2136 = vmatpush1.bf16.msra.mxu1 %v11074_v3  ;;  %v11134_v1 = vld [vmem:[%s15172_s1 + $0x628] ss:$16 sps:$4 sm:$0xff]   ;;  %v2390_v3 = vunpack.c.l.b16 %v2370_v61 }
  0xa4   :  { %2096 = vmatprep.subr.bf16.mxu0 %v11079_v4  ;;  %2137 = vmatprep.subr.bf16.mxu1 %v11082_v6  ;;  %v2392_v4 = vrot.slane %v2391_v62, 7  ;;  %v11142_v6 = vld [vmem:[%s15172_s1 + $0x60c] ss:$16 sps:$4 sm:$0xff]  }
  0xa5   :  { %2118 = vmatprep.mubr.bf16.mxu0 %v12029_v2  ;;  %2159 = vmatprep.mubr.bf16.mxu1 %v12029_v2 }
  0xa7   :  { %2097 = vmatpush1.bf16.msra.mxu0 %v11077_v8  ;;  %2138 = vmatpush1.bf16.msra.mxu1 %v11080_v9  ;;  %v11140_v8 = vld [vmem:[%s15172_s1 + $0x608] ss:$16 sps:$4 sm:$0xff]   ;;  %v2393_v9 = vsel %vm67_vm0, %v2392_v4, %v2390_v3 }
  0xa8   :  { %2098 = vmatprep.subr.bf16.mxu0 %v11085_v12  ;;  %2139 = vmatprep.subr.bf16.mxu1 %v11088_v13  ;;  %v2565_v12 = vld [vmem:[%s15171_s0 + $0x61] sm:$0x1]  ;;  %v2394_v13 = vpack.c.b16 %v2393_v9, %v2393_v9 }
  0xa9   :  { %v2567_v17 = vpack.c.bf16 %v2565_v12, %v2565_v12  ;;  %v11187_v12 = vld [vmem:[%s15172_s1 + $0x704] ss:$16 sps:$4 sm:$0xff]  }
  0xab   :  { %2099 = vmatpush1.bf16.msra.mxu0 %v11083_v14  ;;  %2140 = vmatpush1.bf16.msra.mxu1 %v11086_v15  ;;  %v11143_v14 = vld [vmem:[%s15172_s1 + $0x6e0] ss:$16 sps:$4 sm:$0xff]   ;;  %v11146_v15 = vld [vmem:[%s15172_s1 + $0x6e8] ss:$16 sps:$4 sm:$0xff]  }
  0xac   :  { %2100 = vmatprep.subr.bf16.mxu0 %v11091_v16  ;;  %2141 = vmatprep.subr.bf16.mxu1 %v11094_v19  ;;  %v11151_v16 = vld [vmem:[%s15172_s1 + $0x6c4] ss:$16 sps:$4 sm:$0xff]   ;;  %v2564_v19 = vld [vmem:[%s15171_s0 + $0x11] sm:$0x1] }
  0xad   :  { %v2566_v25 = vpack.c.bf16 %v2564_v19, %v2564_v19  ;;  %v2957_v19 = vld [vmem:[%s15171_s0 + $0x67] sm:$0x1] }
  0xaf   :  { %2101 = vmatpush1.bf16.msra.mxu0 %v11089_v20  ;;  %2142 = vmatpush1.bf16.msra.mxu1 %v11092_v21  ;;  %v2586_v35 = vunpack.c.l.b16 %v2566_v25  ;;  %v2959_v25 = vpack.c.bf16 %v2957_v19, %v2957_v19  ;;  %v11235_v19 = vld [vmem:[%s15172_s1 + $0x804] ss:$16 sps:$4 sm:$0xff]  }
  0xb0   :  { %2290 = vmatprep.subr.bf16.mxu0 %v11097_v22  ;;  %2331 = vmatprep.subr.bf16.mxu1 %v11100_v24  ;;  %v11149_v22 = vld [vmem:[%s15172_s1 + $0x6c0] ss:$16 sps:$4 sm:$0xff]   ;;  %v11157_v24 = vld [vmem:[%s15172_s1 + $0x6a4] ss:$16 sps:$4 sm:$0xff]  }
  0xb2   :  { %10072 = vmatmul.mubr.msk.bf16.vlgmr.msra.gmra.mxu0 %vm150_vm1, %v2002_v27  ;;  %10073 = vmatmul.mubr.msk.bf16.vlgmr.msra.gmra.mxu1 %vm150_vm1, %v2002_v27 }
  0xb3   :  { %2291 = vmatpush1.bf16.msra.mxu0 %v11095_v26  ;;  %2332 = vmatpush1.bf16.msra.mxu1 %v11098_v28  ;;  %v2587_v26 = vunpack.c.l.b16 %v2567_v17 }
  0xb4   :  { %2292 = vmatprep.subr.bf16.mxu0 %v11103_v29  ;;  %2333 = vmatprep.subr.bf16.mxu1 %v11106_v30  ;;  %v11160_v29 = vld [vmem:[%s15172_s1 + $0x6ac] ss:$16 sps:$4 sm:$0xff]  }
  0xb5   :  { %2314 = vmatprep.mubr.bf16.mxu0 %v12029_v2  ;;  %2355 = vmatprep.mubr.bf16.mxu1 %v12029_v2  ;;  %v2588_v36 = vrot.slane %v2587_v26, 7  ;;  %v2956_v26 = vld [vmem:[%s15171_s0 + $0x17] sm:$0x1] }
  0xb7   :  { %2293 = vmatpush1.bf16.msra.mxu0 %v11101_v33  ;;  %2334 = vmatpush1.bf16.msra.mxu1 %v11104_v34  ;;  %v11158_v33 = vld [vmem:[%s15172_s1 + $0x6a8] ss:$16 sps:$4 sm:$0xff]   ;;  %v11163_v34 = vld [vmem:[%s15172_s1 + $0x684] ss:$16 sps:$4 sm:$0xff]  }
  0xb8   :  { %2294 = vmatprep.subr.bf16.mxu0 %v11109_v37  ;;  %2335 = vmatprep.subr.bf16.mxu1 %v11112_v38 }
  0xbb   :  { %2295 = vmatpush1.bf16.msra.mxu0 %v11107_v39  ;;  %2336 = vmatpush1.bf16.msra.mxu1 %v11110_v40  ;;  %v11166_v39 = vld [vmem:[%s15172_s1 + $0x68c] ss:$16 sps:$4 sm:$0xff]   ;;  %v11161_v40 = vld [vmem:[%s15172_s1 + $0x680] ss:$16 sps:$4 sm:$0xff]  }
  0xbc   :  { %2296 = vmatprep.subr.bf16.mxu0 %v11115_v43  ;;  %2337 = vmatprep.subr.bf16.mxu1 %v11118_v44  ;;  %v2589_v43 = vsel %vm67_vm0, %v2588_v36, %v2586_v35  ;;  %v11172_v44 = vld [vmem:[%s15172_s1 + $0x76c] ss:$16 sps:$4 sm:$0xff]   ;;  %v2979_v35 = vunpack.c.l.b16 %v2959_v25  ;;  %v11233_v25 = vld [vmem:[%s15172_s1 + $0x800] ss:$16 sps:$4 sm:$0xff]  }
  0xbf   :  { %2297 = vmatpush1.bf16.msra.mxu0 %v11113_v45  ;;  %2338 = vmatpush1.bf16.msra.mxu1 %v11116_v46  ;;  %v2761_v45 = vld [vmem:[%s15171_s0 + $0x66] sm:$0x1]  ;;  %v2590_v46 = vpack.c.b16 %v2589_v43, %v2589_v43  ;;  %v11203_v43 = vld [vmem:[%s15172_s1 + $0x7a0] ss:$16 sps:$4 sm:$0xff]  }
  0xc0   :  { %2486 = vmatprep.subr.bf16.mxu0 %v11121_v48  ;;  %2527 = vmatprep.subr.bf16.mxu1 %v11124_v49  ;;  %v11170_v48 = vld [vmem:[%s15172_s1 + $0x768] ss:$16 sps:$4 sm:$0xff]   ;;  %v11175_v49 = vld [vmem:[%s15172_s1 + $0x744] ss:$16 sps:$4 sm:$0xff]   ;;  %v2763_v50 = vpack.c.bf16 %v2761_v45, %v2761_v45 }
  0xc2   :  { %10090 = vmatmul.mubr.msk.bf16.vlgmr.msra.gmra.mxu0 %vm150_vm1, %v2198_v52  ;;  %10091 = vmatmul.mubr.msk.bf16.vlgmr.msra.gmra.mxu1 %vm150_vm1, %v2198_v52  ;;  %v2760_v52 = vld [vmem:[%s15171_s0 + $0x16] sm:$0x1] }
  0xc3   :  { %2487 = vmatpush1.bf16.msra.mxu0 %v11119_v51  ;;  %2528 = vmatpush1.bf16.msra.mxu1 %v11122_v53  ;;  %v11178_v51 = vld [vmem:[%s15172_s1 + $0x74c] ss:$16 sps:$4 sm:$0xff]  }
  0xc4   :  { %2488 = vmatprep.subr.bf16.mxu0 %v11127_v54  ;;  %2529 = vmatprep.subr.bf16.mxu1 %v11130_v55 }
  0xc5   :  { %2510 = vmatprep.mubr.bf16.mxu0 %v12029_v2  ;;  %2551 = vmatprep.mubr.bf16.mxu1 %v12029_v2 }
  0xc7   :  { %2489 = vmatpush1.bf16.msra.mxu0 %v11125_v58  ;;  %2530 = vmatpush1.bf16.msra.mxu1 %v11128_v59  ;;  %v11176_v58 = vld [vmem:[%s15172_s1 + $0x748] ss:$16 sps:$4 sm:$0xff]   ;;  %v2762_v59 = vpack.c.bf16 %v2760_v52, %v2760_v52 }
  0xc8   :  { %2490 = vmatprep.subr.bf16.mxu0 %v11133_v60  ;;  %2531 = vmatprep.subr.bf16.mxu1 %v11136_v63  ;;  %v2783_v60 = vunpack.c.l.b16 %v2763_v50  ;;  %v11181_v63 = vld [vmem:[%s15172_s1 + $0x724] ss:$16 sps:$4 sm:$0xff]   ;;  %v11214_v50 = vld [vmem:[%s15172_s1 + $0x78c] ss:$16 sps:$4 sm:$0xff]   ;;  %v11212_v52 = vld [vmem:[%s15172_s1 + $0x788] ss:$16 sps:$4 sm:$0xff]  }
  0xca   :  { %v2784_v9 = vrot.slane %v2783_v60, 7  ;;  %v11223_v60 = vld [vmem:[%s15172_s1 + $0x844] ss:$16 sps:$4 sm:$0xff]  }
  0xcb   :  { %2491 = vmatpush1.bf16.msra.mxu0 %v11131_v0  ;;  %2532 = vmatpush1.bf16.msra.mxu1 %v11134_v1  ;;  %v11184_v0 = vld [vmem:[%s15172_s1 + $0x72c] ss:$16 sps:$4 sm:$0xff]  }
  0xcc   :  { %2492 = vmatprep.subr.bf16.mxu0 %v11139_v5  ;;  %2533 = vmatprep.subr.bf16.mxu1 %v11142_v6  ;;  %v11179_v6 = vld [vmem:[%s15172_s1 + $0x720] ss:$16 sps:$4 sm:$0xff]  }
  0xcf   :  { %2493 = vmatpush1.bf16.msra.mxu0 %v11137_v7  ;;  %2534 = vmatpush1.bf16.msra.mxu1 %v11140_v8  ;;  %v11182_v7 = vld [vmem:[%s15172_s1 + $0x728] ss:$16 sps:$4 sm:$0xff]   ;;  %v2782_v8 = vunpack.c.l.b16 %v2762_v59 }
  0xd0   :  { %2682 = vmatprep.subr.bf16.mxu0 %v11145_v10  ;;  %2723 = vmatprep.subr.bf16.mxu1 %v11148_v11  ;;  %v11218_v59 = vld [vmem:[%s15172_s1 + $0x868] ss:$16 sps:$4 sm:$0xff]  }
  0xd1   :  { %v2785_v17 = vsel %vm67_vm0, %v2784_v9, %v2782_v8 }
  0xd2   :  { %v188_v20 = vpop.f32.mrf.mxu0  ;;  %v229_v21 = vpop.f32.mrf.mxu1  ;;  %10108 = vmatmul.mubr.msk.bf16.vlgmr.msra.gmra.mxu0 %vm150_vm1, %v2394_v13  ;;  %10109 = vmatmul.mubr.msk.bf16.vlgmr.msra.gmra.mxu1 %vm150_vm1, %v2394_v13  ;;  %v11190_v13 = vld [vmem:[%s15172_s1 + $0x70c] ss:$16 sps:$4 sm:$0xff]  }
  0xd3   :  { %2683 = vmatpush1.bf16.msra.mxu0 %v11143_v14  ;;  %2724 = vmatpush1.bf16.msra.mxu1 %v11146_v15  ;;  %v11185_v14 = vld [vmem:[%s15172_s1 + $0x700] ss:$16 sps:$4 sm:$0xff]   ;;  %v11188_v15 = vld [vmem:[%s15172_s1 + $0x708] ss:$16 sps:$4 sm:$0xff]  }
  0xd4   :  { %v190_v27 = vpop.f32.mrf.mxu0  ;;  %v231_v28 = vpop.f32.mrf.mxu1  ;;  %2684 = vmatprep.subr.bf16.mxu0 %v11151_v16  ;;  %2725 = vmatprep.subr.bf16.mxu1 %v11154_v18  ;;  %v11193_v16 = vld [vmem:[%s15172_s1 + $0x7e4] ss:$16 sps:$4 sm:$0xff]   ;;  %v11196_v18 = vld [vmem:[%s15172_s1 + $0x7ec] ss:$16 sps:$4 sm:$0xff]  }
  0xd5   :  { %2706 = vmatprep.mubr.bf16.mxu0 %v12029_v2  ;;  %2747 = vmatprep.mubr.bf16.mxu1 %v12029_v2 }
  0xd6   :  { %v192_v30 = vpop.f32.mrf.mxu0  ;;  %v233_v31 = vpop.f32.mrf.mxu1 }
  0xd7   :  { %2685 = vmatpush1.bf16.msra.mxu0 %v11149_v22  ;;  %2726 = vmatpush1.bf16.msra.mxu1 %v11152_v23  ;;  %v11194_v22 = vld [vmem:[%s15172_s1 + $0x7e8] ss:$16 sps:$4 sm:$0xff]   ;;  %v11199_v23 = vld [vmem:[%s15172_s1 + $0x7c4] ss:$16 sps:$4 sm:$0xff]  }
  0xd8   :  { %v193_v37 = vpop.f32.mrf.mxu0  ;;  %v234_v38 = vpop.f32.mrf.mxu1  ;;  %2686 = vmatprep.subr.bf16.mxu0 %v11157_v24  ;;  %2727 = vmatprep.subr.bf16.mxu1 %v11160_v29  ;;  %v11202_v24 = vld [vmem:[%s15172_s1 + $0x7cc] ss:$16 sps:$4 sm:$0xff]   ;;  %v11197_v29 = vld [vmem:[%s15172_s1 + $0x7c0] ss:$16 sps:$4 sm:$0xff]   ;;  %v11200_v30 = vld [vmem:[%s15172_s1 + $0x7c8] ss:$16 sps:$4 sm:$0xff]  }
  0xd9   :  { %v11208_v38 = vld [vmem:[%s15172_s1 + $0x7ac] ss:$16 sps:$4 sm:$0xff]  }
  0xdb   :  { %2687 = vmatpush1.bf16.msra.mxu0 %v11155_v32  ;;  %2728 = vmatpush1.bf16.msra.mxu1 %v11158_v33  ;;  %v11205_v33 = vld [vmem:[%s15172_s1 + $0x7a4] ss:$16 sps:$4 sm:$0xff]  }
  0xdc   :  { %2688 = vmatprep.subr.bf16.mxu0 %v11163_v34  ;;  %2729 = vmatprep.subr.bf16.mxu1 %v11166_v39  ;;  %v2958_v34 = vpack.c.bf16 %v2956_v26, %v2956_v26  ;;  %v11236_v26 = vld [vmem:[%s15172_s1 + $0x808] ss:$16 sps:$4 sm:$0xff]  }
  0xde   :  { %v2978_v45 = vunpack.c.l.b16 %v2958_v34  ;;  %v11247_v34 = vld [vmem:[%s15172_s1 + $0x8c4] ss:$16 sps:$4 sm:$0xff]  }
  0xdf   :  { %2689 = vmatpush1.bf16.msra.mxu0 %v11161_v40  ;;  %2730 = vmatpush1.bf16.msra.mxu1 %v11164_v41 }
  0xe0   :  { %2878 = vmatprep.subr.bf16.mxu0 %v11169_v42  ;;  %2919 = vmatprep.subr.bf16.mxu1 %v11172_v44  ;;  %v11206_v44 = vld [vmem:[%s15172_s1 + $0x7a8] ss:$16 sps:$4 sm:$0xff]  }
  0xe2   :  { %v360_v53 = vpop.f32.mrf.mxu0  ;;  %v401_v54 = vpop.f32.mrf.mxu1  ;;  %10126 = vmatmul.mubr.msk.bf16.vlgmr.msra.gmra.mxu0 %vm150_vm1, %v2590_v46  ;;  %10127 = vmatmul.mubr.msk.bf16.vlgmr.msra.gmra.mxu1 %vm150_vm1, %v2590_v46  ;;  %v2980_v46 = vrot.slane %v2979_v35, 7 }
  0xe3   :  { %v361_v55 = vadd.f32 %v360_v53, %v188_v20  ;;  %v402_v56 = vadd.f32 %v401_v54, %v229_v21  ;;  %2879 = vmatpush1.bf16.msra.mxu0 %v11167_v47  ;;  %2920 = vmatpush1.bf16.msra.mxu1 %v11170_v48  ;;  %v11191_v20 = vld [vmem:[%s15172_s1 + $0x7e0] ss:$16 sps:$4 sm:$0xff]   ;;  %v2786_v21 = vpack.c.b16 %v2785_v17, %v2785_v17  ;;  %v11217_v54 = vld [vmem:[%s15172_s1 + $0x864] ss:$16 sps:$4 sm:$0xff]  }
  0xe4   :  { %v362_v61 = vpop.f32.mrf.mxu0  ;;  %v403_v62 = vpop.f32.mrf.mxu1  ;;  %2880 = vmatprep.subr.bf16.mxu0 %v11175_v49  ;;  %2921 = vmatprep.subr.bf16.mxu1 %v11178_v51  ;;  %v11211_v49 = vld [vmem:[%s15172_s1 + $0x784] ss:$16 sps:$4 sm:$0xff]   ;;  %v11209_v51 = vld [vmem:[%s15172_s1 + $0x780] ss:$16 sps:$4 sm:$0xff]   ;;  %v2981_v53 = vsel %vm67_vm0, %v2980_v46, %v2978_v45 }
  0xe5   :  { %v363_v1 = vadd.f32 %v362_v61, %v190_v27  ;;  %v404_v3 = vadd.f32 %v403_v62, %v231_v28  ;;  %2902 = vmatprep.mubr.bf16.mxu0 %v12029_v2  ;;  %2943 = vmatprep.mubr.bf16.mxu1 %v12029_v2  ;;  %v11226_v62 = vld [vmem:[%s15172_s1 + $0x84c] ss:$16 sps:$4 sm:$0xff]   ;;  %v11227_v17 = vld [vmem:[%s15172_s1 + $0x820] ss:$16 sps:$4 sm:$0xff]  }
  0xe6   :  { %v364_v4 = vpop.f32.mrf.mxu0  ;;  %v405_v5 = vpop.f32.mrf.mxu1 }
  0xe7   :  { %2881 = vmatpush1.bf16.msra.mxu0 %v11173_v57  ;;  %2922 = vmatpush1.bf16.msra.mxu1 %v11176_v58  ;;  %v2982_v57 = vpack.c.b16 %v2981_v53, %v2981_v53  ;;  %v11215_v58 = vld [vmem:[%s15172_s1 + $0x860] ss:$16 sps:$4 sm:$0xff]   ;;  %v11224_v4 = vld [vmem:[%s15172_s1 + $0x848] ss:$16 sps:$4 sm:$0xff]  }
  0xe8   :  { %v365_v10 = vpop.f32.mrf.mxu0  ;;  %v406_v11 = vpop.f32.mrf.mxu1  ;;  %2882 = vmatprep.subr.bf16.mxu0 %v11181_v63  ;;  %2923 = vmatprep.subr.bf16.mxu1 %v11184_v0  ;;  %v3152_v63 = vld [vmem:[%s15171_s0 + $0x18] sm:$0x1] }
  0xe9   :  { %v3154_v8 = vpack.c.bf16 %v3152_v63, %v3152_v63  ;;  %v11260_v63 = vld [vmem:[%s15172_s1 + $0x888] ss:$16 sps:$4 sm:$0xff]  }
  0xeb   :  { %2883 = vmatpush1.bf16.msra.mxu0 %v11179_v6  ;;  %2924 = vmatpush1.bf16.msra.mxu1 %v11182_v7  ;;  %v11229_v7 = vld [vmem:[%s15172_s1 + $0x824] ss:$16 sps:$4 sm:$0xff]  }
  0xec   :  { %2884 = vmatprep.subr.bf16.mxu0 %v11187_v12  ;;  %2925 = vmatprep.subr.bf16.mxu1 %v11190_v13  ;;  %v11232_v12 = vld [vmem:[%s15172_s1 + $0x82c] ss:$16 sps:$4 sm:$0xff]  }
  0xef   :  { %2885 = vmatpush1.bf16.msra.mxu0 %v11185_v14  ;;  %2926 = vmatpush1.bf16.msra.mxu1 %v11188_v15 }
  0xf0   :  { %3074 = vmatprep.subr.bf16.mxu0 %v11193_v16  ;;  %3115 = vmatprep.subr.bf16.mxu1 %v11196_v18  ;;  %v11230_v18 = vld [vmem:[%s15172_s1 + $0x828] ss:$16 sps:$4 sm:$0xff]  }
  0xf2   :  { %v552_v27 = vpop.f32.mrf.mxu0  ;;  %v593_v28 = vpop.f32.mrf.mxu1  ;;  %10144 = vmatmul.mubr.msk.bf16.vlgmr.msra.gmra.mxu0 %vm150_vm1, %v2786_v21  ;;  %10145 = vmatmul.mubr.msk.bf16.vlgmr.msra.gmra.mxu1 %vm150_vm1, %v2786_v21 }
  0xf3   :  { %v600_v31 = vadd.f32 %v552_v27, %v361_v55  ;;  %v602_v32 = vadd.f32 %v593_v28, %v402_v56  ;;  %3075 = vmatpush1.bf16.msra.mxu0 %v11191_v20  ;;  %3116 = vmatpush1.bf16.msra.mxu1 %v11194_v22  ;;  %v11220_v55 = vld [vmem:[%s15172_s1 + $0x86c] ss:$16 sps:$4 sm:$0xff]   ;;  %v3153_v56 = vld [vmem:[%s15171_s0 + $0x68] sm:$0x1]  ;;  %v3174_v20 = vunpack.c.l.b16 %v3154_v8  ;;  %v11241_v28 = vld [vmem:[%s15172_s1 + $0x8e4] ss:$16 sps:$4 sm:$0xff]  }
  0xf4   :  { %v554_v36 = vpop.f32.mrf.mxu0  ;;  %v595_v37 = vpop.f32.mrf.mxu1  ;;  %3076 = vmatprep.subr.bf16.mxu0 %v11199_v23  ;;  %3117 = vmatprep.subr.bf16.mxu1 %v11202_v24  ;;  %v3155_v61 = vpack.c.bf16 %v3153_v56, %v3153_v56  ;;  %v11238_v24 = vld [vmem:[%s15172_s1 + $0x80c] ss:$16 sps:$4 sm:$0xff]   ;;  %v11259_v56 = vld [vmem:[%s15172_s1 + $0x884] ss:$16 sps:$4 sm:$0xff]  }
  0xf5   :  { %v601_v39 = vadd.f32 %v554_v36, %v363_v1  ;;  %v603_v40 = vadd.f32 %v595_v37, %v404_v3  ;;  %3098 = vmatprep.mubr.bf16.mxu0 %v12029_v2  ;;  %3139 = vmatprep.mubr.bf16.mxu1 %v12029_v2  ;;  %v11221_v3 = vld [vmem:[%s15172_s1 + $0x840] ss:$16 sps:$4 sm:$0xff]   ;;  %v11250_v36 = vld [vmem:[%s15172_s1 + $0x8cc] ss:$16 sps:$4 sm:$0xff]   ;;  %v3348_v37 = vld [vmem:[%s15171_s0 + $0x19] sm:$0x1] }
  0xf6   :  { %v556_v41 = vpop.f32.mrf.mxu0  ;;  %v597_v42 = vpop.f32.mrf.mxu1  ;;  %v3175_v9 = vunpack.c.l.b16 %v3155_v61  ;;  %v11262_v61 = vld [vmem:[%s15172_s1 + $0x88c] ss:$16 sps:$4 sm:$0xff]   ;;  %v11271_v8 = vld [vmem:[%s15172_s1 + $0x944] ss:$16 sps:$4 sm:$0xff]  }
  0xf7   :  { %3077 = vmatpush1.bf16.msra.mxu0 %v11197_v29  ;;  %3118 = vmatpush1.bf16.msra.mxu1 %v11200_v30  ;;  %v11244_v29 = vld [vmem:[%s15172_s1 + $0x8ec] ss:$16 sps:$4 sm:$0xff]   ;;  %v3349_v30 = vld [vmem:[%s15171_s0 + $0x69] sm:$0x1]  ;;  %v11245_v42 = vld [vmem:[%s15172_s1 + $0x8c0] ss:$16 sps:$4 sm:$0xff]  }
  0xf8   :  { %v557_v47 = vpop.f32.mrf.mxu0  ;;  %v598_v48 = vpop.f32.mrf.mxu1  ;;  %3078 = vmatprep.subr.bf16.mxu0 %v11205_v33  ;;  %3119 = vmatprep.subr.bf16.mxu1 %v11208_v38  ;;  %v3176_v21 = vrot.slane %v3175_v9, 7  ;;  %v11242_v33 = vld [vmem:[%s15172_s1 + $0x8e8] ss:$16 sps:$4 sm:$0xff]   ;;  %v3351_v35 = vpack.c.bf16 %v3349_v30, %v3349_v30  ;;  %v11274_v9 = vld [vmem:[%s15172_s1 + $0x94c] ss:$16 sps:$4 sm:$0xff]  }
  0xf9   :  { %v11253_v48 = vld [vmem:[%s15172_s1 + $0x8a4] ss:$16 sps:$4 sm:$0xff]  }
  0xfa   :  { %v3177_v27 = vsel %vm67_vm0, %v3176_v21, %v3174_v20  ;;  %v3371_v45 = vunpack.c.l.b16 %v3351_v35  ;;  %v11286_v35 = vld [vmem:[%s15172_s1 + $0x90c] ss:$16 sps:$4 sm:$0xff]  }
  0xfb   :  { %3079 = vmatpush1.bf16.msra.mxu0 %v11203_v43  ;;  %3120 = vmatpush1.bf16.msra.mxu1 %v11206_v44  ;;  %v11248_v43 = vld [vmem:[%s15172_s1 + $0x8c8] ss:$16 sps:$4 sm:$0xff]   ;;  %v3350_v44 = vpack.c.bf16 %v3348_v37, %v3348_v37 }
  0xfc   :  { %3080 = vmatprep.subr.bf16.mxu0 %v11211_v49  ;;  %3121 = vmatprep.subr.bf16.mxu1 %v11214_v50  ;;  %v11256_v49 = vld [vmem:[%s15172_s1 + $0x8ac] ss:$16 sps:$4 sm:$0xff]   ;;  %v11284_v37 = vld [vmem:[%s15172_s1 + $0x908] ss:$16 sps:$4 sm:$0xff]  }
  0xff   :  { %3081 = vmatpush1.bf16.msra.mxu0 %v11209_v51  ;;  %3122 = vmatpush1.bf16.msra.mxu1 %v11212_v52 }
 0x100   :  { %3270 = vmatprep.subr.bf16.mxu0 %v11217_v54  ;;  %3311 = vmatprep.subr.bf16.mxu1 %v11220_v55  ;;  %v11251_v54 = vld [vmem:[%s15172_s1 + $0x8a0] ss:$16 sps:$4 sm:$0xff]   ;;  %v11254_v55 = vld [vmem:[%s15172_s1 + $0x8a8] ss:$16 sps:$4 sm:$0xff]  }
 0x102   :  { %v748_v0 = vpop.f32.mrf.mxu0  ;;  %v789_v1 = vpop.f32.mrf.mxu1  ;;  %10162 = vmatmul.mubr.msk.bf16.vlgmr.msra.gmra.mxu0 %vm150_vm1, %v2982_v57  ;;  %10163 = vmatmul.mubr.msk.bf16.vlgmr.msra.gmra.mxu1 %vm150_vm1, %v2982_v57  ;;  %v3370_v57 = vunpack.c.l.b16 %v3350_v44  ;;  %v11290_v44 = vld [vmem:[%s15172_s1 + $0x9e8] ss:$16 sps:$4 sm:$0xff]  }
 0x103   :  { %v796_v5 = vadd.f32 %v748_v0, %v600_v31  ;;  %v798_v6 = vadd.f32 %v789_v1, %v602_v32  ;;  %3271 = vmatpush1.bf16.msra.mxu0 %v11215_v58  ;;  %3312 = vmatpush1.bf16.msra.mxu1 %v11218_v59  ;;  %v3178_v31 = vpack.c.b16 %v3177_v27, %v3177_v27  ;;  %v11239_v32 = vld [vmem:[%s15172_s1 + $0x8e0] ss:$16 sps:$4 sm:$0xff]   ;;  %v3372_v58 = vrot.slane %v3371_v45, 7  ;;  %v11265_v0 = vld [vmem:[%s15172_s1 + $0x964] ss:$16 sps:$4 sm:$0xff]  }
 0x104   :  { %v750_v10 = vpop.f32.mrf.mxu0  ;;  %v791_v11 = vpop.f32.mrf.mxu1  ;;  %3272 = vmatprep.subr.bf16.mxu0 %v11223_v60  ;;  %3313 = vmatprep.subr.bf16.mxu1 %v11226_v62  ;;  %v11257_v62 = vld [vmem:[%s15172_s1 + $0x880] ss:$16 sps:$4 sm:$0xff]   ;;  %v11295_v45 = vld [vmem:[%s15172_s1 + $0x9c4] ss:$16 sps:$4 sm:$0xff]  }
 0x105   :  { %v797_v13 = vadd.f32 %v750_v10, %v601_v39  ;;  %v799_v14 = vadd.f32 %v791_v11, %v603_v40  ;;  %3294 = vmatprep.mubr.bf16.mxu0 %v12029_v2  ;;  %3335 = vmatprep.mubr.bf16.mxu1 %v12029_v2  ;;  %v3373_v1 = vsel %vm67_vm0, %v3372_v58, %v3370_v57  ;;  %v3544_v11 = vld [vmem:[%s15171_s0 + $0x1a] sm:$0x1] }
 0x106   :  { %v752_v15 = vpop.f32.mrf.mxu0  ;;  %v793_v16 = vpop.f32.mrf.mxu1 }
 0x107   :  { %3273 = vmatpush1.bf16.msra.mxu0 %v11221_v3  ;;  %3314 = vmatpush1.bf16.msra.mxu1 %v11224_v4  ;;  %v11268_v3 = vld [vmem:[%s15172_s1 + $0x96c] ss:$16 sps:$4 sm:$0xff]   ;;  %v3545_v4 = vld [vmem:[%s15171_s0 + $0x6a] sm:$0x1]  ;;  %v11269_v16 = vld [vmem:[%s15172_s1 + $0x940] ss:$16 sps:$4 sm:$0xff]  }
 0x108   :  { %v753_v22 = vpop.f32.mrf.mxu0  ;;  %v794_v23 = vpop.f32.mrf.mxu1  ;;  %3274 = vmatprep.subr.bf16.mxu0 %v11229_v7  ;;  %3315 = vmatprep.subr.bf16.mxu1 %v11232_v12  ;;  %v11266_v7 = vld [vmem:[%s15172_s1 + $0x968] ss:$16 sps:$4 sm:$0xff]   ;;  %v3547_v10 = vpack.c.bf16 %v3545_v4, %v3545_v4 }
 0x109   :  { %v11277_v22 = vld [vmem:[%s15172_s1 + $0x924] ss:$16 sps:$4 sm:$0xff]   ;;  %v11280_v23 = vld [vmem:[%s15172_s1 + $0x92c] ss:$16 sps:$4 sm:$0xff]  }
 0x10b   :  { %3275 = vmatpush1.bf16.msra.mxu0 %v11227_v17  ;;  %3316 = vmatpush1.bf16.msra.mxu1 %v11230_v18  ;;  %v11272_v17 = vld [vmem:[%s15172_s1 + $0x948] ss:$16 sps:$4 sm:$0xff]   ;;  %v3546_v18 = vpack.c.bf16 %v3544_v11, %v3544_v11 }
 0x10c   :  { %3276 = vmatprep.subr.bf16.mxu0 %v11235_v19  ;;  %3317 = vmatprep.subr.bf16.mxu1 %v11238_v24  ;;  %v3567_v19 = vunpack.c.l.b16 %v3547_v10  ;;  %v11305_v10 = vld [vmem:[%s15172_s1 + $0x980] ss:$16 sps:$4 sm:$0xff]   ;;  %v11308_v11 = vld [vmem:[%s15172_s1 + $0x988] ss:$16 sps:$4 sm:$0xff]  }
 0x10d   :  { %v3566_v30 = vunpack.c.l.b16 %v3546_v18 }
 0x10f   :  { %3277 = vmatpush1.bf16.msra.mxu0 %v11233_v25  ;;  %3318 = vmatpush1.bf16.msra.mxu1 %v11236_v26 }
 0x110   :  { %3466 = vmatprep.subr.bf16.mxu0 %v11241_v28  ;;  %3507 = vmatprep.subr.bf16.mxu1 %v11244_v29  ;;  %v11275_v28 = vld [vmem:[%s15172_s1 + $0x920] ss:$16 sps:$4 sm:$0xff]   ;;  %v11278_v29 = vld [vmem:[%s15172_s1 + $0x928] ss:$16 sps:$4 sm:$0xff]  }
 0x112   :  { %v944_v38 = vpop.f32.mrf.mxu0  ;;  %v985_v39 = vpop.f32.mrf.mxu1  ;;  %10180 = vmatmul.mubr.msk.bf16.vlgmr.msra.gmra.mxu0 %vm150_vm1, %v3178_v31  ;;  %10181 = vmatmul.mubr.msk.bf16.vlgmr.msra.gmra.mxu1 %vm150_vm1, %v3178_v31  ;;  %v3568_v31 = vrot.slane %v3567_v19, 7  ;;  %v11319_v19 = vld [vmem:[%s15172_s1 + $0xa44] ss:$16 sps:$4 sm:$0xff]  }
 0x113   :  { %v992_v40 = vadd.f32 %v944_v38, %v796_v5  ;;  %v994_v41 = vadd.f32 %v985_v39, %v798_v6  ;;  %3467 = vmatpush1.bf16.msra.mxu0 %v11239_v32  ;;  %3508 = vmatpush1.bf16.msra.mxu1 %v11242_v33  ;;  %v11263_v5 = vld [vmem:[%s15172_s1 + $0x960] ss:$16 sps:$4 sm:$0xff]   ;;  %v3374_v6 = vpack.c.b16 %v3373_v1, %v3373_v1  ;;  %v11289_v39 = vld [vmem:[%s15172_s1 + $0x9e4] ss:$16 sps:$4 sm:$0xff]  }
 0x114   :  { %v946_v46 = vpop.f32.mrf.mxu0  ;;  %v987_v47 = vpop.f32.mrf.mxu1  ;;  %3468 = vmatprep.subr.bf16.mxu0 %v11247_v34  ;;  %3509 = vmatprep.subr.bf16.mxu1 %v11250_v36  ;;  %v11283_v34 = vld [vmem:[%s15172_s1 + $0x904] ss:$16 sps:$4 sm:$0xff]   ;;  %v11281_v36 = vld [vmem:[%s15172_s1 + $0x900] ss:$16 sps:$4 sm:$0xff]   ;;  %v3569_v38 = vsel %vm67_vm0, %v3568_v31, %v3566_v30 }
 0x115   :  { %v993_v50 = vadd.f32 %v946_v46, %v797_v13  ;;  %v995_v51 = vadd.f32 %v987_v47, %v799_v14  ;;  %3490 = vmatprep.mubr.bf16.mxu0 %v12029_v2  ;;  %3531 = vmatprep.mubr.bf16.mxu1 %v12029_v2  ;;  %v11298_v47 = vld [vmem:[%s15172_s1 + $0x9cc] ss:$16 sps:$4 sm:$0xff]  }
 0x116   :  { %v948_v52 = vpop.f32.mrf.mxu0  ;;  %v989_v53 = vpop.f32.mrf.mxu1 }
 0x117   :  { %3469 = vmatpush1.bf16.msra.mxu0 %v11245_v42  ;;  %3510 = vmatpush1.bf16.msra.mxu1 %v11248_v43  ;;  %v3570_v42 = vpack.c.b16 %v3569_v38, %v3569_v38  ;;  %v11287_v43 = vld [vmem:[%s15172_s1 + $0x9e0] ss:$16 sps:$4 sm:$0xff]   ;;  %v11326_v38 = vld [vmem:[%s15172_s1 + $0xa28] ss:$16 sps:$4 sm:$0xff]  }
 0x118   :  { %v949_v59 = vpop.f32.mrf.mxu0  ;;  %v990_v60 = vpop.f32.mrf.mxu1  ;;  %3470 = vmatprep.subr.bf16.mxu0 %v11253_v48  ;;  %3511 = vmatprep.subr.bf16.mxu1 %v11256_v49  ;;  %v3740_v48 = vld [vmem:[%s15171_s0 + $0x1b] sm:$0x1]  ;;  %v11293_v49 = vld [vmem:[%s15172_s1 + $0x9c0] ss:$16 sps:$4 sm:$0xff]  }
 0x119   :  { %v11301_v59 = vld [vmem:[%s15172_s1 + $0x9a4] ss:$16 sps:$4 sm:$0xff]   ;;  %v11304_v60 = vld [vmem:[%s15172_s1 + $0x9ac] ss:$16 sps:$4 sm:$0xff]  }
 0x11b   :  { %3471 = vmatpush1.bf16.msra.mxu0 %v11251_v54  ;;  %3512 = vmatpush1.bf16.msra.mxu1 %v11254_v55  ;;  %v3742_v55 = vpack.c.bf16 %v3740_v48, %v3740_v48  ;;  %v11332_v48 = vld [vmem:[%s15172_s1 + $0xa08] ss:$16 sps:$4 sm:$0xff]  }
 0x11c   :  { %3472 = vmatprep.subr.bf16.mxu0 %v11259_v56  ;;  %3513 = vmatprep.subr.bf16.mxu1 %v11262_v61 }
 0x11d   :  { %v3762_v4 = vunpack.c.l.b16 %v3742_v55 }
 0x11f   :  { %3473 = vmatpush1.bf16.msra.mxu0 %v11257_v62  ;;  %3514 = vmatpush1.bf16.msra.mxu1 %v11260_v63  ;;  %v11299_v63 = vld [vmem:[%s15172_s1 + $0x9a0] ss:$16 sps:$4 sm:$0xff]  }
 0x120   :  { %3662 = vmatprep.subr.bf16.mxu0 %v11265_v0  ;;  %3703 = vmatprep.subr.bf16.mxu1 %v11268_v3  ;;  %v11302_v0 = vld [vmem:[%s15172_s1 + $0x9a8] ss:$16 sps:$4 sm:$0xff]  }
 0x122   :  { %v1140_v12 = vpop.f32.mrf.mxu0  ;;  %v1181_v13 = vpop.f32.mrf.mxu1  ;;  %10198 = vmatmul.mubr.msk.bf16.vlgmr.msra.gmra.mxu0 %vm150_vm1, %v3374_v6  ;;  %10199 = vmatmul.mubr.msk.bf16.vlgmr.msra.gmra.mxu1 %vm150_vm1, %v3374_v6 }
 0x123   :  { %v1188_v14 = vadd.f32 %v1140_v12, %v992_v40  ;;  %v1190_v15 = vadd.f32 %v1181_v13, %v994_v41  ;;  %3663 = vmatpush1.bf16.msra.mxu0 %v11263_v5  ;;  %3704 = vmatpush1.bf16.msra.mxu1 %v11266_v7  ;;  %v11292_v40 = vld [vmem:[%s15172_s1 + $0x9ec] ss:$16 sps:$4 sm:$0xff]   ;;  %v3741_v41 = vld [vmem:[%s15171_s0 + $0x6b] sm:$0x1]  ;;  %v11313_v13 = vld [vmem:[%s15172_s1 + $0xa64] ss:$16 sps:$4 sm:$0xff]  }
 0x124   :  { %v1142_v20 = vpop.f32.mrf.mxu0  ;;  %v1183_v21 = vpop.f32.mrf.mxu1  ;;  %3664 = vmatprep.subr.bf16.mxu0 %v11271_v8  ;;  %3705 = vmatprep.subr.bf16.mxu1 %v11274_v9  ;;  %v3743_v46 = vpack.c.bf16 %v3741_v41, %v3741_v41  ;;  %v11307_v8 = vld [vmem:[%s15172_s1 + $0x984] ss:$16 sps:$4 sm:$0xff]   ;;  %v11310_v9 = vld [vmem:[%s15172_s1 + $0x98c] ss:$16 sps:$4 sm:$0xff]  }
 0x125   :  { %v1189_v24 = vadd.f32 %v1142_v20, %v993_v50  ;;  %v1191_v25 = vadd.f32 %v1183_v21, %v995_v51  ;;  %3686 = vmatprep.mubr.bf16.mxu0 %v12029_v2  ;;  %3727 = vmatprep.mubr.bf16.mxu1 %v12029_v2  ;;  %v11296_v50 = vld [vmem:[%s15172_s1 + $0x9c8] ss:$16 sps:$4 sm:$0xff]   ;;  %v11322_v21 = vld [vmem:[%s15172_s1 + $0xa4c] ss:$16 sps:$4 sm:$0xff]  }
 0x126   :  { %v1144_v26 = vpop.f32.mrf.mxu0  ;;  %v1185_v27 = vpop.f32.mrf.mxu1  ;;  %v3763_v56 = vunpack.c.l.b16 %v3743_v46  ;;  %v11334_v46 = vld [vmem:[%s15172_s1 + $0xa0c] ss:$16 sps:$4 sm:$0xff]  }
 0x127   :  { %3665 = vmatpush1.bf16.msra.mxu0 %v11269_v16  ;;  %3706 = vmatpush1.bf16.msra.mxu1 %v11272_v17  ;;  %v11311_v16 = vld [vmem:[%s15172_s1 + $0xa60] ss:$16 sps:$4 sm:$0xff]   ;;  %v11314_v17 = vld [vmem:[%s15172_s1 + $0xa68] ss:$16 sps:$4 sm:$0xff]  }
 0x128   :  { %v1145_v32 = vpop.f32.mrf.mxu0  ;;  %v1186_v33 = vpop.f32.mrf.mxu1  ;;  %3666 = vmatprep.subr.bf16.mxu0 %v11277_v22  ;;  %3707 = vmatprep.subr.bf16.mxu1 %v11280_v23  ;;  %v3764_v5 = vrot.slane %v3763_v56, 7  ;;  %v3936_v22 = vld [vmem:[%s15171_s0 + $0x1c] sm:$0x1]  ;;  %v11317_v23 = vld [vmem:[%s15172_s1 + $0xa40] ss:$16 sps:$4 sm:$0xff]  }
 0x129   :  { %v11325_v33 = vld [vmem:[%s15172_s1 + $0xa24] ss:$16 sps:$4 sm:$0xff]  }
 0x12a   :  { %v3765_v12 = vsel %vm67_vm0, %v3764_v5, %v3762_v4  ;;  %v11343_v56 = vld [vmem:[%s15172_s1 + $0xac4] ss:$16 sps:$4 sm:$0xff]  }
 0x12b   :  { %3667 = vmatpush1.bf16.msra.mxu0 %v11275_v28  ;;  %3708 = vmatpush1.bf16.msra.mxu1 %v11278_v29  ;;  %v3766_v18 = vpack.c.b16 %v3765_v12, %v3765_v12  ;;  %v3938_v29 = vpack.c.bf16 %v3936_v22, %v3936_v22  ;;  %v11350_v12 = vld [vmem:[%s15172_s1 + $0xaa8] ss:$16 sps:$4 sm:$0xff]  }
 0x12c   :  { %3668 = vmatprep.subr.bf16.mxu0 %v11283_v34  ;;  %3709 = vmatprep.subr.bf16.mxu1 %v11286_v35  ;;  %v11328_v34 = vld [vmem:[%s15172_s1 + $0xa2c] ss:$16 sps:$4 sm:$0xff]   ;;  %v11356_v22 = vld [vmem:[%s15172_s1 + $0xa88] ss:$16 sps:$4 sm:$0xff]  }
 0x12d   :  { %v3958_v41 = vunpack.c.l.b16 %v3938_v29 }
 0x12f   :  { %3669 = vmatpush1.bf16.msra.mxu0 %v11281_v36  ;;  %3710 = vmatpush1.bf16.msra.mxu1 %v11284_v37  ;;  %v11323_v37 = vld [vmem:[%s15172_s1 + $0xa20] ss:$16 sps:$4 sm:$0xff]  }
 0x130   :  { %3858 = vmatprep.subr.bf16.mxu0 %v11289_v39  ;;  %3899 = vmatprep.subr.bf16.mxu1 %v11292_v40 }
 0x132   :  { %v1336_v51 = vpop.f32.mrf.mxu0  ;;  %v1377_v52 = vpop.f32.mrf.mxu1  ;;  %10216 = vmatmul.mubr.msk.bf16.vlgmr.msra.gmra.mxu0 %vm150_vm1, %v3570_v42  ;;  %10217 = vmatmul.mubr.msk.bf16.vlgmr.msra.gmra.mxu1 %vm150_vm1, %v3570_v42 }
 0x133   :  { %v1384_v53 = vadd.f32 %v1336_v51, %v1188_v14  ;;  %v1386_v54 = vadd.f32 %v1377_v52, %v1190_v15  ;;  %3859 = vmatpush1.bf16.msra.mxu0 %v11287_v43  ;;  %3900 = vmatpush1.bf16.msra.mxu1 %v11290_v44  ;;  %v11316_v14 = vld [vmem:[%s15172_s1 + $0xa6c] ss:$16 sps:$4 sm:$0xff]   ;;  %v4133_v52 = vld [vmem:[%s15171_s0 + $0x71] sm:$0x1] }
 0x134   :  { %v1338_v57 = vpop.f32.mrf.mxu0  ;;  %v1379_v58 = vpop.f32.mrf.mxu1  ;;  %3860 = vmatprep.subr.bf16.mxu0 %v11295_v45  ;;  %3901 = vmatprep.subr.bf16.mxu1 %v11298_v47  ;;  %v3937_v15 = vld [vmem:[%s15171_s0 + $0x6c] sm:$0x1]  ;;  %v11331_v45 = vld [vmem:[%s15172_s1 + $0xa04] ss:$16 sps:$4 sm:$0xff]   ;;  %v11329_v47 = vld [vmem:[%s15172_s1 + $0xa00] ss:$16 sps:$4 sm:$0xff]  }
 0x135   :  { %v1385_v61 = vadd.f32 %v1338_v57, %v1189_v24  ;;  %v1387_v62 = vadd.f32 %v1379_v58, %v1191_v25  ;;  %3882 = vmatprep.mubr.bf16.mxu0 %v12029_v2  ;;  %3923 = vmatprep.mubr.bf16.mxu1 %v12029_v2  ;;  %v3939_v20 = vpack.c.bf16 %v3937_v15, %v3937_v15  ;;  %v11320_v24 = vld [vmem:[%s15172_s1 + $0xa48] ss:$16 sps:$4 sm:$0xff]   ;;  %v11340_v51 = vld [vmem:[%s15172_s1 + $0xaec] ss:$16 sps:$4 sm:$0xff]  }
 0x136   :  { %v1340_v1 = vpop.f32.mrf.mxu0  ;;  %v1381_v3 = vpop.f32.mrf.mxu1  ;;  %v4135_v57 = vpack.c.bf16 %v4133_v52, %v4133_v52  ;;  %v11346_v58 = vld [vmem:[%s15172_s1 + $0xacc] ss:$16 sps:$4 sm:$0xff]  }
 0x137   :  { %3861 = vmatpush1.bf16.msra.mxu0 %v11293_v49  ;;  %3902 = vmatpush1.bf16.msra.mxu1 %v11296_v50  ;;  %v3959_v30 = vunpack.c.l.b16 %v3939_v20  ;;  %v11337_v50 = vld [vmem:[%s15172_s1 + $0xae4] ss:$16 sps:$4 sm:$0xff]   ;;  %v11358_v20 = vld [vmem:[%s15172_s1 + $0xa8c] ss:$16 sps:$4 sm:$0xff]  }
 0x138   :  { %v1341_v6 = vpop.f32.mrf.mxu0  ;;  %v1382_v7 = vpop.f32.mrf.mxu1  ;;  %3862 = vmatprep.subr.bf16.mxu0 %v11301_v59  ;;  %3903 = vmatprep.subr.bf16.mxu1 %v11304_v60  ;;  %v4132_v59 = vld [vmem:[%s15171_s0 + $0x21] sm:$0x1]  ;;  %v4155_v4 = vunpack.c.l.b16 %v4135_v57  ;;  %v11382_v57 = vld [vmem:[%s15172_s1 + $0xb0c] ss:$16 sps:$4 sm:$0xff]  }
 0x139   :  { %v3960_v42 = vrot.slane %v3959_v30, 7  ;;  %v11341_v60 = vld [vmem:[%s15172_s1 + $0xac0] ss:$16 sps:$4 sm:$0xff]   ;;  %v4134_v3 = vpack.c.bf16 %v4132_v59, %v4132_v59  ;;  %v11349_v7 = vld [vmem:[%s15172_s1 + $0xaa4] ss:$16 sps:$4 sm:$0xff]  }
 0x13a   :  { %v11367_v30 = vld [vmem:[%s15172_s1 + $0xb44] ss:$16 sps:$4 sm:$0xff]   ;;  %v11380_v59 = vld [vmem:[%s15172_s1 + $0xb08] ss:$16 sps:$4 sm:$0xff]  }
 0x13b   :  { %3863 = vmatpush1.bf16.msra.mxu0 %v11299_v63  ;;  %3904 = vmatpush1.bf16.msra.mxu1 %v11302_v0  ;;  %v3961_v49 = vsel %vm67_vm0, %v3960_v42, %v3958_v41  ;;  %v4154_v15 = vunpack.c.l.b16 %v4134_v3 }
 0x13c   :  { %3864 = vmatprep.subr.bf16.mxu0 %v11307_v8  ;;  %3905 = vmatprep.subr.bf16.mxu1 %v11310_v9  ;;  %v3962_v55 = vpack.c.b16 %v3961_v49, %v3961_v49  ;;  %v11352_v8 = vld [vmem:[%s15172_s1 + $0xaac] ss:$16 sps:$4 sm:$0xff]   ;;  %v11374_v49 = vld [vmem:[%s15172_s1 + $0xb28] ss:$16 sps:$4 sm:$0xff]  }
 0x13f   :  { %3865 = vmatpush1.bf16.msra.mxu0 %v11305_v10  ;;  %3906 = vmatpush1.bf16.msra.mxu1 %v11308_v11  ;;  %v11347_v11 = vld [vmem:[%s15172_s1 + $0xaa0] ss:$16 sps:$4 sm:$0xff]  }
 0x140   :  { %4054 = vmatprep.subr.bf16.mxu0 %v11313_v13  ;;  %4095 = vmatprep.subr.bf16.mxu1 %v11316_v14 }
 0x142   :  { %v1532_v25 = vpop.f32.mrf.mxu0  ;;  %v1573_v26 = vpop.f32.mrf.mxu1  ;;  %10234 = vmatmul.mubr.msk.bf16.vlgmr.msra.gmra.mxu0 %vm150_vm1, %v3766_v18  ;;  %10235 = vmatmul.mubr.msk.bf16.vlgmr.msra.gmra.mxu1 %vm150_vm1, %v3766_v18 }
 0x143   :  { %v1580_v27 = vadd.f32 %v1532_v25, %v1384_v53  ;;  %v1582_v28 = vadd.f32 %v1573_v26, %v1386_v54  ;;  %4055 = vmatpush1.bf16.msra.mxu0 %v11311_v16  ;;  %4096 = vmatpush1.bf16.msra.mxu1 %v11314_v17  ;;  %v11335_v53 = vld [vmem:[%s15172_s1 + $0xae0] ss:$16 sps:$4 sm:$0xff]   ;;  %v11338_v54 = vld [vmem:[%s15172_s1 + $0xae8] ss:$16 sps:$4 sm:$0xff]   ;;  %v4156_v16 = vrot.slane %v4155_v4, 7 }
 0x144   :  { %v1534_v31 = vpop.f32.mrf.mxu0  ;;  %v1575_v32 = vpop.f32.mrf.mxu1  ;;  %4056 = vmatprep.subr.bf16.mxu0 %v11319_v19  ;;  %4097 = vmatprep.subr.bf16.mxu1 %v11322_v21  ;;  %v11355_v19 = vld [vmem:[%s15172_s1 + $0xa84] ss:$16 sps:$4 sm:$0xff]   ;;  %v11353_v21 = vld [vmem:[%s15172_s1 + $0xa80] ss:$16 sps:$4 sm:$0xff]   ;;  %v11364_v25 = vld [vmem:[%s15172_s1 + $0xb6c] ss:$16 sps:$4 sm:$0xff]  }
 0x145   :  { %v1581_v35 = vadd.f32 %v1534_v31, %v1385_v61  ;;  %v1583_v36 = vadd.f32 %v1575_v32, %v1387_v62  ;;  %4078 = vmatprep.mubr.bf16.mxu0 %v12029_v2  ;;  %4119 = vmatprep.mubr.bf16.mxu1 %v12029_v2  ;;  %v11344_v61 = vld [vmem:[%s15172_s1 + $0xac8] ss:$16 sps:$4 sm:$0xff]   ;;  %v4329_v26 = vld [vmem:[%s15171_s0 + $0x72] sm:$0x1]  ;;  %v11370_v32 = vld [vmem:[%s15172_s1 + $0xb4c] ss:$16 sps:$4 sm:$0xff]  }
 0x146   :  { %v1536_v39 = vpop.f32.mrf.mxu0  ;;  %v1577_v40 = vpop.f32.mrf.mxu1  ;;  %v4331_v31 = vpack.c.bf16 %v4329_v26, %v4329_v26  ;;  %v11391_v4 = vld [vmem:[%s15172_s1 + $0xbc4] ss:$16 sps:$4 sm:$0xff]  }
 0x147   :  { %4057 = vmatpush1.bf16.msra.mxu0 %v11317_v23  ;;  %4098 = vmatpush1.bf16.msra.mxu1 %v11320_v24  ;;  %v4157_v23 = vsel %vm67_vm0, %v4156_v16, %v4154_v15  ;;  %v11361_v24 = vld [vmem:[%s15172_s1 + $0xb64] ss:$16 sps:$4 sm:$0xff]  }
 0x148   :  { %v1537_v43 = vpop.f32.mrf.mxu0  ;;  %v1578_v44 = vpop.f32.mrf.mxu1  ;;  %4058 = vmatprep.subr.bf16.mxu0 %v11325_v33  ;;  %4099 = vmatprep.subr.bf16.mxu1 %v11328_v34  ;;  %v4158_v29 = vpack.c.b16 %v4157_v23, %v4157_v23  ;;  %v4328_v33 = vld [vmem:[%s15171_s0 + $0x22] sm:$0x1]  ;;  %v4351_v41 = vunpack.c.l.b16 %v4331_v31  ;;  %v11398_v23 = vld [vmem:[%s15172_s1 + $0xba8] ss:$16 sps:$4 sm:$0xff]   ;;  %v11406_v31 = vld [vmem:[%s15172_s1 + $0xb8c] ss:$16 sps:$4 sm:$0xff]  }
 0x149   :  { %v11365_v34 = vld [vmem:[%s15172_s1 + $0xb40] ss:$16 sps:$4 sm:$0xff]   ;;  %v4330_v40 = vpack.c.bf16 %v4328_v33, %v4328_v33  ;;  %v11373_v44 = vld [vmem:[%s15172_s1 + $0xb24] ss:$16 sps:$4 sm:$0xff]   ;;  %v11404_v33 = vld [vmem:[%s15172_s1 + $0xb88] ss:$16 sps:$4 sm:$0xff]  }
 0x14b   :  { %4059 = vmatpush1.bf16.msra.mxu0 %v11323_v37  ;;  %4100 = vmatpush1.bf16.msra.mxu1 %v11326_v38  ;;  %v4350_v52 = vunpack.c.l.b16 %v4330_v40 }
 0x14c   :  { %4060 = vmatprep.subr.bf16.mxu0 %v11331_v45  ;;  %4101 = vmatprep.subr.bf16.mxu1 %v11334_v46  ;;  %v11376_v45 = vld [vmem:[%s15172_s1 + $0xb2c] ss:$16 sps:$4 sm:$0xff]  }
 0x14f   :  { %4061 = vmatpush1.bf16.msra.mxu0 %v11329_v47  ;;  %4102 = vmatpush1.bf16.msra.mxu1 %v11332_v48  ;;  %v11371_v48 = vld [vmem:[%s15172_s1 + $0xb20] ss:$16 sps:$4 sm:$0xff]  }
 0x150   :  { %4250 = vmatprep.subr.bf16.mxu0 %v11337_v50  ;;  %4291 = vmatprep.subr.bf16.mxu1 %v11340_v51 }
 0x152   :  { %v1728_v62 = vpop.f32.mrf.mxu0  ;;  %v1769_v63 = vpop.f32.mrf.mxu1  ;;  %10252 = vmatmul.mubr.msk.bf16.vlgmr.msra.gmra.mxu0 %vm150_vm1, %v3962_v55  ;;  %10253 = vmatmul.mubr.msk.bf16.vlgmr.msra.gmra.mxu1 %vm150_vm1, %v3962_v55 }
 0x153   :  { %v1776_v0 = vadd.f32 %v1728_v62, %v1580_v27  ;;  %v1778_v1 = vadd.f32 %v1769_v63, %v1582_v28  ;;  %4251 = vmatpush1.bf16.msra.mxu0 %v11335_v53  ;;  %4292 = vmatpush1.bf16.msra.mxu1 %v11338_v54  ;;  %v11359_v27 = vld [vmem:[%s15172_s1 + $0xb60] ss:$16 sps:$4 sm:$0xff]   ;;  %v11362_v28 = vld [vmem:[%s15172_s1 + $0xb68] ss:$16 sps:$4 sm:$0xff]   ;;  %v4352_v53 = vrot.slane %v4351_v41, 7 }
 0x154   :  { %v1730_v5 = vpop.f32.mrf.mxu0  ;;  %v1771_v6 = vpop.f32.mrf.mxu1  ;;  %4252 = vmatprep.subr.bf16.mxu0 %v11343_v56  ;;  %4293 = vmatprep.subr.bf16.mxu1 %v11346_v58  ;;  %v11379_v56 = vld [vmem:[%s15172_s1 + $0xb04] ss:$16 sps:$4 sm:$0xff]   ;;  %v11377_v58 = vld [vmem:[%s15172_s1 + $0xb00] ss:$16 sps:$4 sm:$0xff]   ;;  %v11388_v62 = vld [vmem:[%s15172_s1 + $0xbec] ss:$16 sps:$4 sm:$0xff]  }
 0x155   :  { %v1777_v9 = vadd.f32 %v1730_v5, %v1581_v35  ;;  %v1779_v10 = vadd.f32 %v1771_v6, %v1583_v36  ;;  %4274 = vmatprep.mubr.bf16.mxu0 %v12029_v2  ;;  %4315 = vmatprep.mubr.bf16.mxu1 %v12029_v2  ;;  %v11368_v35 = vld [vmem:[%s15172_s1 + $0xb48] ss:$16 sps:$4 sm:$0xff]   ;;  %v4525_v63 = vld [vmem:[%s15171_s0 + $0x73] sm:$0x1]  ;;  %v11394_v6 = vld [vmem:[%s15172_s1 + $0xbcc] ss:$16 sps:$4 sm:$0xff]  }
 0x156   :  { %v1732_v13 = vpop.f32.mrf.mxu0  ;;  %v1773_v14 = vpop.f32.mrf.mxu1  ;;  %v4527_v5 = vpack.c.bf16 %v4525_v63, %v4525_v63  ;;  %v11415_v41 = vld [vmem:[%s15172_s1 + $0xc44] ss:$16 sps:$4 sm:$0xff]  }
 0x157   :  { %4253 = vmatpush1.bf16.msra.mxu0 %v11341_v60  ;;  %4294 = vmatpush1.bf16.msra.mxu1 %v11344_v61  ;;  %v4353_v60 = vsel %vm67_vm0, %v4352_v53, %v4350_v52  ;;  %v11385_v61 = vld [vmem:[%s15172_s1 + $0xbe4] ss:$16 sps:$4 sm:$0xff]  }
 0x158   :  { %v1733_v17 = vpop.f32.mrf.mxu0  ;;  %v1774_v18 = vpop.f32.mrf.mxu1  ;;  %4254 = vmatprep.subr.bf16.mxu0 %v11349_v7  ;;  %4295 = vmatprep.subr.bf16.mxu1 %v11352_v8  ;;  %v4354_v3 = vpack.c.b16 %v4353_v60, %v4353_v60  ;;  %v4524_v7 = vld [vmem:[%s15171_s0 + $0x23] sm:$0x1]  ;;  %v4547_v15 = vunpack.c.l.b16 %v4527_v5  ;;  %v11422_v60 = vld [vmem:[%s15172_s1 + $0xc28] ss:$16 sps:$4 sm:$0xff]   ;;  %v11430_v5 = vld [vmem:[%s15172_s1 + $0xc0c] ss:$16 sps:$4 sm:$0xff]  }
 0x159   :  { %v11389_v8 = vld [vmem:[%s15172_s1 + $0xbc0] ss:$16 sps:$4 sm:$0xff]   ;;  %v4526_v14 = vpack.c.bf16 %v4524_v7, %v4524_v7  ;;  %v11397_v18 = vld [vmem:[%s15172_s1 + $0xba4] ss:$16 sps:$4 sm:$0xff]   ;;  %v11428_v7 = vld [vmem:[%s15172_s1 + $0xc08] ss:$16 sps:$4 sm:$0xff]  }
 0x15b   :  { %4255 = vmatpush1.bf16.msra.mxu0 %v11347_v11  ;;  %4296 = vmatpush1.bf16.msra.mxu1 %v11350_v12  ;;  %v4546_v26 = vunpack.c.l.b16 %v4526_v14 }
 0x15c   :  { %4256 = vmatprep.subr.bf16.mxu0 %v11355_v19  ;;  %4297 = vmatprep.subr.bf16.mxu1 %v11358_v20  ;;  %v11400_v19 = vld [vmem:[%s15172_s1 + $0xbac] ss:$16 sps:$4 sm:$0xff]  }
 0x15f   :  { %4257 = vmatpush1.bf16.msra.mxu0 %v11353_v21  ;;  %4298 = vmatpush1.bf16.msra.mxu1 %v11356_v22  ;;  %v11395_v22 = vld [vmem:[%s15172_s1 + $0xba0] ss:$16 sps:$4 sm:$0xff]  }
 0x160   :  { %4446 = vmatprep.subr.bf16.mxu0 %v11361_v24  ;;  %4487 = vmatprep.subr.bf16.mxu1 %v11364_v25 }
 0x162   :  { %v1924_v36 = vpop.f32.mrf.mxu0  ;;  %v1965_v37 = vpop.f32.mrf.mxu1  ;;  %10270 = vmatmul.mubr.msk.bf16.vlgmr.msra.gmra.mxu0 %vm150_vm1, %v4158_v29  ;;  %10271 = vmatmul.mubr.msk.bf16.vlgmr.msra.gmra.mxu1 %vm150_vm1, %v4158_v29 }
 0x163   :  { %v1972_v38 = vadd.f32 %v1924_v36, %v1776_v0  ;;  %v1974_v39 = vadd.f32 %v1965_v37, %v1778_v1  ;;  %4447 = vmatpush1.bf16.msra.mxu0 %v11359_v27  ;;  %4488 = vmatpush1.bf16.msra.mxu1 %v11362_v28  ;;  %v11383_v0 = vld [vmem:[%s15172_s1 + $0xbe0] ss:$16 sps:$4 sm:$0xff]   ;;  %v11386_v1 = vld [vmem:[%s15172_s1 + $0xbe8] ss:$16 sps:$4 sm:$0xff]   ;;  %v4548_v27 = vrot.slane %v4547_v15, 7 }
 0x164   :  { %v1926_v42 = vpop.f32.mrf.mxu0  ;;  %v1967_v43 = vpop.f32.mrf.mxu1  ;;  %4448 = vmatprep.subr.bf16.mxu0 %v11367_v30  ;;  %4489 = vmatprep.subr.bf16.mxu1 %v11370_v32  ;;  %v11403_v30 = vld [vmem:[%s15172_s1 + $0xb84] ss:$16 sps:$4 sm:$0xff]   ;;  %v11401_v32 = vld [vmem:[%s15172_s1 + $0xb80] ss:$16 sps:$4 sm:$0xff]   ;;  %v11412_v36 = vld [vmem:[%s15172_s1 + $0xc6c] ss:$16 sps:$4 sm:$0xff]  }
 0x165   :  { %v1973_v46 = vadd.f32 %v1926_v42, %v1777_v9  ;;  %v1975_v47 = vadd.f32 %v1967_v43, %v1779_v10  ;;  %4470 = vmatprep.mubr.bf16.mxu0 %v12029_v2  ;;  %4511 = vmatprep.mubr.bf16.mxu1 %v12029_v2  ;;  %v11392_v9 = vld [vmem:[%s15172_s1 + $0xbc8] ss:$16 sps:$4 sm:$0xff]   ;;  %v4721_v37 = vld [vmem:[%s15171_s0 + $0x74] sm:$0x1]  ;;  %v11418_v43 = vld [vmem:[%s15172_s1 + $0xc4c] ss:$16 sps:$4 sm:$0xff]  }
 0x166   :  { %v1928_v50 = vpop.f32.mrf.mxu0  ;;  %v1969_v51 = vpop.f32.mrf.mxu1  ;;  %v4723_v42 = vpack.c.bf16 %v4721_v37, %v4721_v37  ;;  %v11439_v15 = vld [vmem:[%s15172_s1 + $0xcc4] ss:$16 sps:$4 sm:$0xff]  }
 0x167   :  { %4449 = vmatpush1.bf16.msra.mxu0 %v11365_v34  ;;  %4490 = vmatpush1.bf16.msra.mxu1 %v11368_v35  ;;  %v4549_v34 = vsel %vm67_vm0, %v4548_v27, %v4546_v26  ;;  %v11409_v35 = vld [vmem:[%s15172_s1 + $0xc64] ss:$16 sps:$4 sm:$0xff]  }
 0x168   :  { %v1929_v54 = vpop.f32.mrf.mxu0  ;;  %v1970_v55 = vpop.f32.mrf.mxu1  ;;  %4450 = vmatprep.subr.bf16.mxu0 %v11373_v44  ;;  %4491 = vmatprep.subr.bf16.mxu1 %v11376_v45  ;;  %v4550_v40 = vpack.c.b16 %v4549_v34, %v4549_v34  ;;  %v4720_v44 = vld [vmem:[%s15171_s0 + $0x24] sm:$0x1]  ;;  %v11413_v45 = vld [vmem:[%s15172_s1 + $0xc40] ss:$16 sps:$4 sm:$0xff]   ;;  %v4743_v52 = vunpack.c.l.b16 %v4723_v42  ;;  %v11446_v34 = vld [vmem:[%s15172_s1 + $0xca8] ss:$16 sps:$4 sm:$0xff]  }
 0x169   :  { %v4722_v51 = vpack.c.bf16 %v4720_v44, %v4720_v44  ;;  %v11421_v55 = vld [vmem:[%s15172_s1 + $0xc24] ss:$16 sps:$4 sm:$0xff]   ;;  %v11454_v42 = vld [vmem:[%s15172_s1 + $0xc8c] ss:$16 sps:$4 sm:$0xff]   ;;  %v11452_v44 = vld [vmem:[%s15172_s1 + $0xc88] ss:$16 sps:$4 sm:$0xff]  }
 0x16b   :  { %4451 = vmatpush1.bf16.msra.mxu0 %v11371_v48  ;;  %4492 = vmatpush1.bf16.msra.mxu1 %v11374_v49  ;;  %v4742_v63 = vunpack.c.l.b16 %v4722_v51 }
 0x16c   :  { %4452 = vmatprep.subr.bf16.mxu0 %v11379_v56  ;;  %4493 = vmatprep.subr.bf16.mxu1 %v11382_v57  ;;  %v11424_v56 = vld [vmem:[%s15172_s1 + $0xc2c] ss:$16 sps:$4 sm:$0xff]  }
 0x16f   :  { %4453 = vmatpush1.bf16.msra.mxu0 %v11377_v58  ;;  %4494 = vmatpush1.bf16.msra.mxu1 %v11380_v59  ;;  %v11419_v59 = vld [vmem:[%s15172_s1 + $0xc20] ss:$16 sps:$4 sm:$0xff]  }
 0x170   :  { %4642 = vmatprep.subr.bf16.mxu0 %v11385_v61  ;;  %4683 = vmatprep.subr.bf16.mxu1 %v11388_v62 }
 0x172   :  { %v2120_v10 = vpop.f32.mrf.mxu0  ;;  %v2161_v11 = vpop.f32.mrf.mxu1  ;;  %10288 = vmatmul.mubr.msk.bf16.vlgmr.msra.gmra.mxu0 %vm150_vm1, %v4354_v3  ;;  %10289 = vmatmul.mubr.msk.bf16.vlgmr.msra.gmra.mxu1 %vm150_vm1, %v4354_v3 }
 0x173   :  { %v2168_v12 = vadd.f32 %v2120_v10, %v1972_v38  ;;  %v2170_v13 = vadd.f32 %v2161_v11, %v1974_v39  ;;  %4643 = vmatpush1.bf16.msra.mxu0 %v11383_v0  ;;  %4684 = vmatpush1.bf16.msra.mxu1 %v11386_v1  ;;  %v11407_v38 = vld [vmem:[%s15172_s1 + $0xc60] ss:$16 sps:$4 sm:$0xff]   ;;  %v11410_v39 = vld [vmem:[%s15172_s1 + $0xc68] ss:$16 sps:$4 sm:$0xff]   ;;  %v4744_v0 = vrot.slane %v4743_v52, 7 }
 0x174   :  { %v2122_v16 = vpop.f32.mrf.mxu0  ;;  %v2163_v17 = vpop.f32.mrf.mxu1  ;;  %4644 = vmatprep.subr.bf16.mxu0 %v11391_v4  ;;  %4685 = vmatprep.subr.bf16.mxu1 %v11394_v6  ;;  %v11427_v4 = vld [vmem:[%s15172_s1 + $0xc04] ss:$16 sps:$4 sm:$0xff]   ;;  %v11425_v6 = vld [vmem:[%s15172_s1 + $0xc00] ss:$16 sps:$4 sm:$0xff]   ;;  %v11436_v10 = vld [vmem:[%s15172_s1 + $0xcec] ss:$16 sps:$4 sm:$0xff]  }
 0x175   :  { %v2169_v20 = vadd.f32 %v2122_v16, %v1973_v46  ;;  %v2171_v21 = vadd.f32 %v2163_v17, %v1975_v47  ;;  %4666 = vmatprep.mubr.bf16.mxu0 %v12029_v2  ;;  %4707 = vmatprep.mubr.bf16.mxu1 %v12029_v2  ;;  %v11416_v46 = vld [vmem:[%s15172_s1 + $0xc48] ss:$16 sps:$4 sm:$0xff]   ;;  %v4917_v11 = vld [vmem:[%s15171_s0 + $0x75] sm:$0x1]  ;;  %v11442_v17 = vld [vmem:[%s15172_s1 + $0xccc] ss:$16 sps:$4 sm:$0xff]  }
 0x176   :  { %v2124_v24 = vpop.f32.mrf.mxu0  ;;  %v2165_v25 = vpop.f32.mrf.mxu1  ;;  %v4919_v16 = vpack.c.bf16 %v4917_v11, %v4917_v11  ;;  %v11463_v52 = vld [vmem:[%s15172_s1 + $0xd44] ss:$16 sps:$4 sm:$0xff]  }
 0x177   :  { %4645 = vmatpush1.bf16.msra.mxu0 %v11389_v8  ;;  %4686 = vmatpush1.bf16.msra.mxu1 %v11392_v9  ;;  %v4745_v8 = vsel %vm67_vm0, %v4744_v0, %v4742_v63  ;;  %v11433_v9 = vld [vmem:[%s15172_s1 + $0xce4] ss:$16 sps:$4 sm:$0xff]  }
 0x178   :  { %v2125_v28 = vpop.f32.mrf.mxu0  ;;  %v2166_v29 = vpop.f32.mrf.mxu1  ;;  %4646 = vmatprep.subr.bf16.mxu0 %v11397_v18  ;;  %4687 = vmatprep.subr.bf16.mxu1 %v11400_v19  ;;  %v4746_v14 = vpack.c.b16 %v4745_v8, %v4745_v8  ;;  %v4916_v18 = vld [vmem:[%s15171_s0 + $0x25] sm:$0x1]  ;;  %v11437_v19 = vld [vmem:[%s15172_s1 + $0xcc0] ss:$16 sps:$4 sm:$0xff]   ;;  %v4939_v26 = vunpack.c.l.b16 %v4919_v16  ;;  %v11470_v8 = vld [vmem:[%s15172_s1 + $0xd28] ss:$16 sps:$4 sm:$0xff]  }
 0x179   :  { %v4918_v25 = vpack.c.bf16 %v4916_v18, %v4916_v18  ;;  %v11445_v29 = vld [vmem:[%s15172_s1 + $0xca4] ss:$16 sps:$4 sm:$0xff]   ;;  %v11478_v16 = vld [vmem:[%s15172_s1 + $0xd0c] ss:$16 sps:$4 sm:$0xff]   ;;  %v11476_v18 = vld [vmem:[%s15172_s1 + $0xd08] ss:$16 sps:$4 sm:$0xff]  }
 0x17b   :  { %4647 = vmatpush1.bf16.msra.mxu0 %v11395_v22  ;;  %4688 = vmatpush1.bf16.msra.mxu1 %v11398_v23  ;;  %v4938_v37 = vunpack.c.l.b16 %v4918_v25 }
 0x17c   :  { %4648 = vmatprep.subr.bf16.mxu0 %v11403_v30  ;;  %4689 = vmatprep.subr.bf16.mxu1 %v11406_v31  ;;  %v11448_v30 = vld [vmem:[%s15172_s1 + $0xcac] ss:$16 sps:$4 sm:$0xff]  }
 0x17f   :  { %4649 = vmatpush1.bf16.msra.mxu0 %v11401_v32  ;;  %4690 = vmatpush1.bf16.msra.mxu1 %v11404_v33  ;;  %v11443_v33 = vld [vmem:[%s15172_s1 + $0xca0] ss:$16 sps:$4 sm:$0xff]  }
 0x180   :  { %4838 = vmatprep.subr.bf16.mxu0 %v11409_v35  ;;  %4879 = vmatprep.subr.bf16.mxu1 %v11412_v36 }
 0x182   :  { %v2316_v47 = vpop.f32.mrf.mxu0  ;;  %v2357_v48 = vpop.f32.mrf.mxu1  ;;  %10306 = vmatmul.mubr.msk.bf16.vlgmr.msra.gmra.mxu0 %vm150_vm1, %v4550_v40  ;;  %10307 = vmatmul.mubr.msk.bf16.vlgmr.msra.gmra.mxu1 %vm150_vm1, %v4550_v40 }
 0x183   :  { %v2364_v49 = vadd.f32 %v2316_v47, %v2168_v12  ;;  %v2366_v50 = vadd.f32 %v2357_v48, %v2170_v13  ;;  %4839 = vmatpush1.bf16.msra.mxu0 %v11407_v38  ;;  %4880 = vmatpush1.bf16.msra.mxu1 %v11410_v39  ;;  %v11431_v12 = vld [vmem:[%s15172_s1 + $0xce0] ss:$16 sps:$4 sm:$0xff]   ;;  %v11434_v13 = vld [vmem:[%s15172_s1 + $0xce8] ss:$16 sps:$4 sm:$0xff]   ;;  %v4940_v38 = vrot.slane %v4939_v26, 7 }
 0x184   :  { %v2318_v53 = vpop.f32.mrf.mxu0  ;;  %v2359_v54 = vpop.f32.mrf.mxu1  ;;  %4840 = vmatprep.subr.bf16.mxu0 %v11415_v41  ;;  %4881 = vmatprep.subr.bf16.mxu1 %v11418_v43  ;;  %v11451_v41 = vld [vmem:[%s15172_s1 + $0xc84] ss:$16 sps:$4 sm:$0xff]   ;;  %v11449_v43 = vld [vmem:[%s15172_s1 + $0xc80] ss:$16 sps:$4 sm:$0xff]   ;;  %v11460_v47 = vld [vmem:[%s15172_s1 + $0xd6c] ss:$16 sps:$4 sm:$0xff]  }
 0x185   :  { %v2365_v57 = vadd.f32 %v2318_v53, %v2169_v20  ;;  %v2367_v58 = vadd.f32 %v2359_v54, %v2171_v21  ;;  %4862 = vmatprep.mubr.bf16.mxu0 %v12029_v2  ;;  %4903 = vmatprep.mubr.bf16.mxu1 %v12029_v2  ;;  %v11440_v20 = vld [vmem:[%s15172_s1 + $0xcc8] ss:$16 sps:$4 sm:$0xff]   ;;  %v5113_v48 = vld [vmem:[%s15171_s0 + $0x76] sm:$0x1]  ;;  %v11466_v54 = vld [vmem:[%s15172_s1 + $0xd4c] ss:$16 sps:$4 sm:$0xff]  }
 0x186   :  { %v2320_v61 = vpop.f32.mrf.mxu0  ;;  %v2361_v62 = vpop.f32.mrf.mxu1  ;;  %v5115_v53 = vpack.c.bf16 %v5113_v48, %v5113_v48  ;;  %v11487_v26 = vld [vmem:[%s15172_s1 + $0xdc4] ss:$16 sps:$4 sm:$0xff]  }
 0x187   :  { %4841 = vmatpush1.bf16.msra.mxu0 %v11413_v45  ;;  %4882 = vmatpush1.bf16.msra.mxu1 %v11416_v46  ;;  %v4941_v45 = vsel %vm67_vm0, %v4940_v38, %v4938_v37  ;;  %v11457_v46 = vld [vmem:[%s15172_s1 + $0xd64] ss:$16 sps:$4 sm:$0xff]  }
 0x188   :  { %v2321_v1 = vpop.f32.mrf.mxu0  ;;  %v2362_v3 = vpop.f32.mrf.mxu1  ;;  %4842 = vmatprep.subr.bf16.mxu0 %v11421_v55  ;;  %4883 = vmatprep.subr.bf16.mxu1 %v11424_v56  ;;  %v4942_v51 = vpack.c.b16 %v4941_v45, %v4941_v45  ;;  %v5112_v55 = vld [vmem:[%s15171_s0 + $0x26] sm:$0x1]  ;;  %v11461_v56 = vld [vmem:[%s15172_s1 + $0xd40] ss:$16 sps:$4 sm:$0xff]   ;;  %v5135_v63 = vunpack.c.l.b16 %v5115_v53  ;;  %v11494_v45 = vld [vmem:[%s15172_s1 + $0xda8] ss:$16 sps:$4 sm:$0xff]  }
 0x189   :  { %v5114_v62 = vpack.c.bf16 %v5112_v55, %v5112_v55  ;;  %v11469_v3 = vld [vmem:[%s15172_s1 + $0xd24] ss:$16 sps:$4 sm:$0xff]   ;;  %v11502_v53 = vld [vmem:[%s15172_s1 + $0xd8c] ss:$16 sps:$4 sm:$0xff]   ;;  %v11500_v55 = vld [vmem:[%s15172_s1 + $0xd88] ss:$16 sps:$4 sm:$0xff]  }
 0x18b   :  { %4843 = vmatpush1.bf16.msra.mxu0 %v11419_v59  ;;  %4884 = vmatpush1.bf16.msra.mxu1 %v11422_v60  ;;  %v5134_v11 = vunpack.c.l.b16 %v5114_v62 }
 0x18c   :  { %4844 = vmatprep.subr.bf16.mxu0 %v11427_v4  ;;  %4885 = vmatprep.subr.bf16.mxu1 %v11430_v5  ;;  %v11472_v4 = vld [vmem:[%s15172_s1 + $0xd2c] ss:$16 sps:$4 sm:$0xff]  }
 0x18f   :  { %4845 = vmatpush1.bf16.msra.mxu0 %v11425_v6  ;;  %4886 = vmatpush1.bf16.msra.mxu1 %v11428_v7  ;;  %v11467_v7 = vld [vmem:[%s15172_s1 + $0xd20] ss:$16 sps:$4 sm:$0xff]  }
 0x190   :  { %5034 = vmatprep.subr.bf16.mxu0 %v11433_v9  ;;  %5075 = vmatprep.subr.bf16.mxu1 %v11436_v10 }
 0x192   :  { %v2512_v21 = vpop.f32.mrf.mxu0  ;;  %v2553_v22 = vpop.f32.mrf.mxu1  ;;  %10324 = vmatmul.mubr.msk.bf16.vlgmr.msra.gmra.mxu0 %vm150_vm1, %v4746_v14  ;;  %10325 = vmatmul.mubr.msk.bf16.vlgmr.msra.gmra.mxu1 %vm150_vm1, %v4746_v14 }
 0x193   :  { %v2560_v23 = vadd.f32 %v2512_v21, %v2364_v49  ;;  %v2562_v24 = vadd.f32 %v2553_v22, %v2366_v50  ;;  %5035 = vmatpush1.bf16.msra.mxu0 %v11431_v12  ;;  %5076 = vmatpush1.bf16.msra.mxu1 %v11434_v13  ;;  %v11455_v49 = vld [vmem:[%s15172_s1 + $0xd60] ss:$16 sps:$4 sm:$0xff]   ;;  %v11458_v50 = vld [vmem:[%s15172_s1 + $0xd68] ss:$16 sps:$4 sm:$0xff]   ;;  %v5136_v12 = vrot.slane %v5135_v63, 7 }
 0x194   :  { %v2514_v27 = vpop.f32.mrf.mxu0  ;;  %v2555_v28 = vpop.f32.mrf.mxu1  ;;  %5036 = vmatprep.subr.bf16.mxu0 %v11439_v15  ;;  %5077 = vmatprep.subr.bf16.mxu1 %v11442_v17  ;;  %v11475_v15 = vld [vmem:[%s15172_s1 + $0xd04] ss:$16 sps:$4 sm:$0xff]   ;;  %v11473_v17 = vld [vmem:[%s15172_s1 + $0xd00] ss:$16 sps:$4 sm:$0xff]   ;;  %v11484_v21 = vld [vmem:[%s15172_s1 + $0xdec] ss:$16 sps:$4 sm:$0xff]  }
 0x195   :  { %v2561_v31 = vadd.f32 %v2514_v27, %v2365_v57  ;;  %v2563_v32 = vadd.f32 %v2555_v28, %v2367_v58  ;;  %5058 = vmatprep.mubr.bf16.mxu0 %v12029_v2  ;;  %5099 = vmatprep.mubr.bf16.mxu1 %v12029_v2  ;;  %v11464_v57 = vld [vmem:[%s15172_s1 + $0xd48] ss:$16 sps:$4 sm:$0xff]   ;;  %v5309_v22 = vld [vmem:[%s15171_s0 + $0x77] sm:$0x1]  ;;  %v11490_v28 = vld [vmem:[%s15172_s1 + $0xdcc] ss:$16 sps:$4 sm:$0xff]  }
 0x196   :  { %v2516_v35 = vpop.f32.mrf.mxu0  ;;  %v2557_v36 = vpop.f32.mrf.mxu1  ;;  %v5311_v27 = vpack.c.bf16 %v5309_v22, %v5309_v22  ;;  %v11511_v63 = vld [vmem:[%s15172_s1 + $0xe44] ss:$16 sps:$4 sm:$0xff]  }
 0x197   :  { %5037 = vmatpush1.bf16.msra.mxu0 %v11437_v19  ;;  %5078 = vmatpush1.bf16.msra.mxu1 %v11440_v20  ;;  %v5137_v19 = vsel %vm67_vm0, %v5136_v12, %v5134_v11  ;;  %v11481_v20 = vld [vmem:[%s15172_s1 + $0xde4] ss:$16 sps:$4 sm:$0xff]  }
 0x198   :  { %v2517_v39 = vpop.f32.mrf.mxu0  ;;  %v2558_v40 = vpop.f32.mrf.mxu1  ;;  %5038 = vmatprep.subr.bf16.mxu0 %v11445_v29  ;;  %5079 = vmatprep.subr.bf16.mxu1 %v11448_v30  ;;  %v5138_v25 = vpack.c.b16 %v5137_v19, %v5137_v19  ;;  %v5308_v29 = vld [vmem:[%s15171_s0 + $0x27] sm:$0x1]  ;;  %v11485_v30 = vld [vmem:[%s15172_s1 + $0xdc0] ss:$16 sps:$4 sm:$0xff]   ;;  %v5331_v37 = vunpack.c.l.b16 %v5311_v27  ;;  %v11518_v19 = vld [vmem:[%s15172_s1 + $0xe28] ss:$16 sps:$4 sm:$0xff]  }
 0x199   :  { %v5310_v36 = vpack.c.bf16 %v5308_v29, %v5308_v29  ;;  %v11493_v40 = vld [vmem:[%s15172_s1 + $0xda4] ss:$16 sps:$4 sm:$0xff]   ;;  %v11526_v27 = vld [vmem:[%s15172_s1 + $0xe0c] ss:$16 sps:$4 sm:$0xff]   ;;  %v11524_v29 = vld [vmem:[%s15172_s1 + $0xe08] ss:$16 sps:$4 sm:$0xff]  }
 0x19b   :  { %5039 = vmatpush1.bf16.msra.mxu0 %v11443_v33  ;;  %5080 = vmatpush1.bf16.msra.mxu1 %v11446_v34  ;;  %v5330_v48 = vunpack.c.l.b16 %v5310_v36 }
 0x19c   :  { %5040 = vmatprep.subr.bf16.mxu0 %v11451_v41  ;;  %5081 = vmatprep.subr.bf16.mxu1 %v11454_v42  ;;  %v11496_v41 = vld [vmem:[%s15172_s1 + $0xdac] ss:$16 sps:$4 sm:$0xff]  }
 0x19f   :  { %5041 = vmatpush1.bf16.msra.mxu0 %v11449_v43  ;;  %5082 = vmatpush1.bf16.msra.mxu1 %v11452_v44  ;;  %v11491_v44 = vld [vmem:[%s15172_s1 + $0xda0] ss:$16 sps:$4 sm:$0xff]  }
 0x1a0   :  { %5230 = vmatprep.subr.bf16.mxu0 %v11457_v46  ;;  %5271 = vmatprep.subr.bf16.mxu1 %v11460_v47 }
 0x1a2   :  { %v2708_v58 = vpop.f32.mrf.mxu0  ;;  %v2749_v59 = vpop.f32.mrf.mxu1  ;;  %10342 = vmatmul.mubr.msk.bf16.vlgmr.msra.gmra.mxu0 %vm150_vm1, %v4942_v51  ;;  %10343 = vmatmul.mubr.msk.bf16.vlgmr.msra.gmra.mxu1 %vm150_vm1, %v4942_v51 }
 0x1a3   :  { %v2756_v60 = vadd.f32 %v2708_v58, %v2560_v23  ;;  %v2758_v61 = vadd.f32 %v2749_v59, %v2562_v24  ;;  %5231 = vmatpush1.bf16.msra.mxu0 %v11455_v49  ;;  %5272 = vmatpush1.bf16.msra.mxu1 %v11458_v50  ;;  %v11479_v23 = vld [vmem:[%s15172_s1 + $0xde0] ss:$16 sps:$4 sm:$0xff]   ;;  %v11482_v24 = vld [vmem:[%s15172_s1 + $0xde8] ss:$16 sps:$4 sm:$0xff]   ;;  %v5332_v49 = vrot.slane %v5331_v37, 7 }
 0x1a4   :  { %v2710_v0 = vpop.f32.mrf.mxu0  ;;  %v2751_v1 = vpop.f32.mrf.mxu1  ;;  %5232 = vmatprep.subr.bf16.mxu0 %v11463_v52  ;;  %5273 = vmatprep.subr.bf16.mxu1 %v11466_v54  ;;  %v11499_v52 = vld [vmem:[%s15172_s1 + $0xd84] ss:$16 sps:$4 sm:$0xff]   ;;  %v11497_v54 = vld [vmem:[%s15172_s1 + $0xd80] ss:$16 sps:$4 sm:$0xff]   ;;  %v11508_v58 = vld [vmem:[%s15172_s1 + $0xe6c] ss:$16 sps:$4 sm:$0xff]  }
 0x1a5   :  { %v2757_v5 = vadd.f32 %v2710_v0, %v2561_v31  ;;  %v2759_v6 = vadd.f32 %v2751_v1, %v2563_v32  ;;  %5254 = vmatprep.mubr.bf16.mxu0 %v12029_v2  ;;  %5295 = vmatprep.mubr.bf16.mxu1 %v12029_v2  ;;  %v11488_v31 = vld [vmem:[%s15172_s1 + $0xdc8] ss:$16 sps:$4 sm:$0xff]   ;;  %v5505_v59 = vld [vmem:[%s15171_s0 + $0x7c] sm:$0x1]  ;;  %v11535_v37 = vld [vmem:[%s15172_s1 + $0xec4] ss:$16 sps:$4 sm:$0xff]  }
 0x1a6   :  { %v2712_v9 = vpop.f32.mrf.mxu0  ;;  %v2753_v10 = vpop.f32.mrf.mxu1  ;;  %v5507_v0 = vpack.c.bf16 %v5505_v59, %v5505_v59  ;;  %v11514_v1 = vld [vmem:[%s15172_s1 + $0xe4c] ss:$16 sps:$4 sm:$0xff]  }
 0x1a7   :  { %5233 = vmatpush1.bf16.msra.mxu0 %v11461_v56  ;;  %5274 = vmatpush1.bf16.msra.mxu1 %v11464_v57  ;;  %v5333_v56 = vsel %vm67_vm0, %v5332_v49, %v5330_v48  ;;  %v11505_v57 = vld [vmem:[%s15172_s1 + $0xe64] ss:$16 sps:$4 sm:$0xff]  }
 0x1a8   :  { %v2713_v13 = vpop.f32.mrf.mxu0  ;;  %v2754_v14 = vpop.f32.mrf.mxu1  ;;  %5234 = vmatprep.subr.bf16.mxu0 %v11469_v3  ;;  %5275 = vmatprep.subr.bf16.mxu1 %v11472_v4  ;;  %v5334_v62 = vpack.c.b16 %v5333_v56, %v5333_v56  ;;  %v5504_v3 = vld [vmem:[%s15171_s0 + $0x2c] sm:$0x1]  ;;  %v11509_v4 = vld [vmem:[%s15172_s1 + $0xe40] ss:$16 sps:$4 sm:$0xff]   ;;  %v5527_v11 = vunpack.c.l.b16 %v5507_v0  ;;  %v11542_v56 = vld [vmem:[%s15172_s1 + $0xea8] ss:$16 sps:$4 sm:$0xff]  }
 0x1a9   :  { %v5506_v10 = vpack.c.bf16 %v5504_v3, %v5504_v3  ;;  %v11517_v14 = vld [vmem:[%s15172_s1 + $0xe24] ss:$16 sps:$4 sm:$0xff]   ;;  %v11550_v0 = vld [vmem:[%s15172_s1 + $0xe8c] ss:$16 sps:$4 sm:$0xff]   ;;  %v11548_v3 = vld [vmem:[%s15172_s1 + $0xe88] ss:$16 sps:$4 sm:$0xff]  }
 0x1ab   :  { %5235 = vmatpush1.bf16.msra.mxu0 %v11467_v7  ;;  %5276 = vmatpush1.bf16.msra.mxu1 %v11470_v8  ;;  %v5526_v22 = vunpack.c.l.b16 %v5506_v10 }
 0x1ac   :  { %5236 = vmatprep.subr.bf16.mxu0 %v11475_v15  ;;  %5277 = vmatprep.subr.bf16.mxu1 %v11478_v16  ;;  %v11520_v15 = vld [vmem:[%s15172_s1 + $0xe2c] ss:$16 sps:$4 sm:$0xff]  }
 0x1af   :  { %5237 = vmatpush1.bf16.msra.mxu0 %v11473_v17  ;;  %5278 = vmatpush1.bf16.msra.mxu1 %v11476_v18  ;;  %v11515_v18 = vld [vmem:[%s15172_s1 + $0xe20] ss:$16 sps:$4 sm:$0xff]  }
 0x1b0   :  { %5426 = vmatprep.subr.bf16.mxu0 %v11481_v20  ;;  %5467 = vmatprep.subr.bf16.mxu1 %v11484_v21 }
 0x1b2   :  { %v2904_v32 = vpop.f32.mrf.mxu0  ;;  %v2945_v33 = vpop.f32.mrf.mxu1  ;;  %10360 = vmatmul.mubr.msk.bf16.vlgmr.msra.gmra.mxu0 %vm150_vm1, %v5138_v25  ;;  %10361 = vmatmul.mubr.msk.bf16.vlgmr.msra.gmra.mxu1 %vm150_vm1, %v5138_v25 }
 0x1b3   :  { %v2952_v34 = vadd.f32 %v2904_v32, %v2756_v60  ;;  %v2954_v35 = vadd.f32 %v2945_v33, %v2758_v61  ;;  %5427 = vmatpush1.bf16.msra.mxu0 %v11479_v23  ;;  %5468 = vmatpush1.bf16.msra.mxu1 %v11482_v24  ;;  %v11503_v60 = vld [vmem:[%s15172_s1 + $0xe60] ss:$16 sps:$4 sm:$0xff]   ;;  %v11506_v61 = vld [vmem:[%s15172_s1 + $0xe68] ss:$16 sps:$4 sm:$0xff]   ;;  %v5528_v23 = vrot.slane %v5527_v11, 7 }
 0x1b4   :  { %v2906_v38 = vpop.f32.mrf.mxu0  ;;  %v2947_v39 = vpop.f32.mrf.mxu1  ;;  %5428 = vmatprep.subr.bf16.mxu0 %v11487_v26  ;;  %5469 = vmatprep.subr.bf16.mxu1 %v11490_v28  ;;  %v11523_v26 = vld [vmem:[%s15172_s1 + $0xe04] ss:$16 sps:$4 sm:$0xff]   ;;  %v11521_v28 = vld [vmem:[%s15172_s1 + $0xe00] ss:$16 sps:$4 sm:$0xff]   ;;  %v11532_v32 = vld [vmem:[%s15172_s1 + $0xeec] ss:$16 sps:$4 sm:$0xff]  }
 0x1b5   :  { %v2953_v42 = vadd.f32 %v2906_v38, %v2757_v5  ;;  %v2955_v43 = vadd.f32 %v2947_v39, %v2759_v6  ;;  %5450 = vmatprep.mubr.bf16.mxu0 %v12029_v2  ;;  %5491 = vmatprep.mubr.bf16.mxu1 %v12029_v2  ;;  %v11512_v5 = vld [vmem:[%s15172_s1 + $0xe48] ss:$16 sps:$4 sm:$0xff]   ;;  %v5701_v33 = vld [vmem:[%s15171_s0 + $0x7d] sm:$0x1]  ;;  %v11559_v11 = vld [vmem:[%s15172_s1 + $0xf44] ss:$16 sps:$4 sm:$0xff]  }
 0x1b6   :  { %v2908_v46 = vpop.f32.mrf.mxu0  ;;  %v2949_v47 = vpop.f32.mrf.mxu1  ;;  %v5703_v38 = vpack.c.bf16 %v5701_v33, %v5701_v33  ;;  %v11538_v39 = vld [vmem:[%s15172_s1 + $0xecc] ss:$16 sps:$4 sm:$0xff]  }
 0x1b7   :  { %5429 = vmatpush1.bf16.msra.mxu0 %v11485_v30  ;;  %5470 = vmatpush1.bf16.msra.mxu1 %v11488_v31  ;;  %v5529_v30 = vsel %vm67_vm0, %v5528_v23, %v5526_v22  ;;  %v11529_v31 = vld [vmem:[%s15172_s1 + $0xee4] ss:$16 sps:$4 sm:$0xff]  }
 0x1b8   :  { %v2909_v50 = vpop.f32.mrf.mxu0  ;;  %v2950_v51 = vpop.f32.mrf.mxu1  ;;  %5430 = vmatprep.subr.bf16.mxu0 %v11493_v40  ;;  %5471 = vmatprep.subr.bf16.mxu1 %v11496_v41  ;;  %v5530_v36 = vpack.c.b16 %v5529_v30, %v5529_v30  ;;  %v5700_v40 = vld [vmem:[%s15171_s0 + $0x2d] sm:$0x1]  ;;  %v11533_v41 = vld [vmem:[%s15172_s1 + $0xec0] ss:$16 sps:$4 sm:$0xff]   ;;  %v5723_v48 = vunpack.c.l.b16 %v5703_v38  ;;  %v11566_v30 = vld [vmem:[%s15172_s1 + $0xf28] ss:$16 sps:$4 sm:$0xff]  }
 0x1b9   :  { %v5702_v47 = vpack.c.bf16 %v5700_v40, %v5700_v40  ;;  %v11541_v51 = vld [vmem:[%s15172_s1 + $0xea4] ss:$16 sps:$4 sm:$0xff]   ;;  %v11574_v38 = vld [vmem:[%s15172_s1 + $0xf0c] ss:$16 sps:$4 sm:$0xff]   ;;  %v11572_v40 = vld [vmem:[%s15172_s1 + $0xf08] ss:$16 sps:$4 sm:$0xff]  }
 0x1bb   :  { %5431 = vmatpush1.bf16.msra.mxu0 %v11491_v44  ;;  %5472 = vmatpush1.bf16.msra.mxu1 %v11494_v45  ;;  %v5722_v59 = vunpack.c.l.b16 %v5702_v47 }
 0x1bc   :  { %5432 = vmatprep.subr.bf16.mxu0 %v11499_v52  ;;  %5473 = vmatprep.subr.bf16.mxu1 %v11502_v53  ;;  %v11544_v52 = vld [vmem:[%s15172_s1 + $0xeac] ss:$16 sps:$4 sm:$0xff]  }
 0x1bf   :  { %5433 = vmatpush1.bf16.msra.mxu0 %v11497_v54  ;;  %5474 = vmatpush1.bf16.msra.mxu1 %v11500_v55  ;;  %v11539_v55 = vld [vmem:[%s15172_s1 + $0xea0] ss:$16 sps:$4 sm:$0xff]  }
 0x1c0   :  { %5622 = vmatprep.subr.bf16.mxu0 %v11505_v57  ;;  %5663 = vmatprep.subr.bf16.mxu1 %v11508_v58 }
 0x1c2   :  { %v3100_v6 = vpop.f32.mrf.mxu0  ;;  %v3141_v7 = vpop.f32.mrf.mxu1  ;;  %10378 = vmatmul.mubr.msk.bf16.vlgmr.msra.gmra.mxu0 %vm150_vm1, %v5334_v62  ;;  %10379 = vmatmul.mubr.msk.bf16.vlgmr.msra.gmra.mxu1 %vm150_vm1, %v5334_v62 }
 0x1c3   :  { %v3148_v8 = vadd.f32 %v3100_v6, %v2952_v34  ;;  %v3150_v9 = vadd.f32 %v3141_v7, %v2954_v35  ;;  %5623 = vmatpush1.bf16.msra.mxu0 %v11503_v60  ;;  %5664 = vmatpush1.bf16.msra.mxu1 %v11506_v61  ;;  %v11527_v34 = vld [vmem:[%s15172_s1 + $0xee0] ss:$16 sps:$4 sm:$0xff]   ;;  %v11530_v35 = vld [vmem:[%s15172_s1 + $0xee8] ss:$16 sps:$4 sm:$0xff]   ;;  %v5724_v60 = vrot.slane %v5723_v48, 7 }
 0x1c4   :  { %v3102_v12 = vpop.f32.mrf.mxu0  ;;  %v3143_v13 = vpop.f32.mrf.mxu1  ;;  %5624 = vmatprep.subr.bf16.mxu0 %v11511_v63  ;;  %5665 = vmatprep.subr.bf16.mxu1 %v11514_v1  ;;  %v11547_v63 = vld [vmem:[%s15172_s1 + $0xe84] ss:$16 sps:$4 sm:$0xff]   ;;  %v11545_v1 = vld [vmem:[%s15172_s1 + $0xe80] ss:$16 sps:$4 sm:$0xff]   ;;  %v11556_v6 = vld [vmem:[%s15172_s1 + $0xf6c] ss:$16 sps:$4 sm:$0xff]  }
 0x1c5   :  { %v3149_v16 = vadd.f32 %v3102_v12, %v2953_v42  ;;  %v3151_v17 = vadd.f32 %v3143_v13, %v2955_v43  ;;  %5646 = vmatprep.mubr.bf16.mxu0 %v12029_v2  ;;  %5687 = vmatprep.mubr.bf16.mxu1 %v12029_v2  ;;  %v11536_v42 = vld [vmem:[%s15172_s1 + $0xec8] ss:$16 sps:$4 sm:$0xff]   ;;  %v5897_v7 = vld [vmem:[%s15171_s0 + $0x7e] sm:$0x1] }
 0x1c6   :  { %v3104_v20 = vpop.f32.mrf.mxu0  ;;  %v3145_v21 = vpop.f32.mrf.mxu1  ;;  %v5899_v12 = vpack.c.bf16 %v5897_v7, %v5897_v7  ;;  %v11562_v13 = vld [vmem:[%s15172_s1 + $0xf4c] ss:$16 sps:$4 sm:$0xff]  }
 0x1c7   :  { %5625 = vmatpush1.bf16.msra.mxu0 %v11509_v4  ;;  %5666 = vmatpush1.bf16.msra.mxu1 %v11512_v5  ;;  %v5725_v4 = vsel %vm67_vm0, %v5724_v60, %v5722_v59  ;;  %v11553_v5 = vld [vmem:[%s15172_s1 + $0xf64] ss:$16 sps:$4 sm:$0xff]  }
 0x1c8   :  { %v3105_v24 = vpop.f32.mrf.mxu0  ;;  %v3146_v25 = vpop.f32.mrf.mxu1  ;;  %5626 = vmatprep.subr.bf16.mxu0 %v11517_v14  ;;  %5667 = vmatprep.subr.bf16.mxu1 %v11520_v15  ;;  %v5726_v10 = vpack.c.b16 %v5725_v4, %v5725_v4  ;;  %v5896_v14 = vld [vmem:[%s15171_s0 + $0x2e] sm:$0x1]  ;;  %v11557_v15 = vld [vmem:[%s15172_s1 + $0xf40] ss:$16 sps:$4 sm:$0xff]   ;;  %v5919_v22 = vunpack.c.l.b16 %v5899_v12 }
 0x1c9   :  { %v5898_v21 = vpack.c.bf16 %v5896_v14, %v5896_v14  ;;  %v11565_v25 = vld [vmem:[%s15172_s1 + $0xf24] ss:$16 sps:$4 sm:$0xff]  }
 0x1cb   :  { %5627 = vmatpush1.bf16.msra.mxu0 %v11515_v18  ;;  %5668 = vmatpush1.bf16.msra.mxu1 %v11518_v19  ;;  %v5918_v33 = vunpack.c.l.b16 %v5898_v21 }
 0x1cc   :  { %5628 = vmatprep.subr.bf16.mxu0 %v11523_v26  ;;  %5669 = vmatprep.subr.bf16.mxu1 %v11526_v27  ;;  %v11568_v26 = vld [vmem:[%s15172_s1 + $0xf2c] ss:$16 sps:$4 sm:$0xff]  }
 0x1cf   :  { %5629 = vmatpush1.bf16.msra.mxu0 %v11521_v28  ;;  %5670 = vmatpush1.bf16.msra.mxu1 %v11524_v29  ;;  %v11563_v29 = vld [vmem:[%s15172_s1 + $0xf20] ss:$16 sps:$4 sm:$0xff]  }
 0x1d0   :  { %5818 = vmatprep.subr.bf16.mxu0 %v11529_v31  ;;  %5859 = vmatprep.subr.bf16.mxu1 %v11532_v32 }
 0x1d2   :  { %v3296_v43 = vpop.f32.mrf.mxu0  ;;  %v3337_v44 = vpop.f32.mrf.mxu1  ;;  %10396 = vmatmul.mubr.msk.bf16.vlgmr.msra.gmra.mxu0 %vm150_vm1, %v5530_v36  ;;  %10397 = vmatmul.mubr.msk.bf16.vlgmr.msra.gmra.mxu1 %vm150_vm1, %v5530_v36 }
 0x1d3   :  { %v3344_v45 = vadd.f32 %v3296_v43, %v3148_v8  ;;  %v3346_v46 = vadd.f32 %v3337_v44, %v3150_v9  ;;  %5819 = vmatpush1.bf16.msra.mxu0 %v11527_v34  ;;  %5860 = vmatpush1.bf16.msra.mxu1 %v11530_v35  ;;  %v11551_v8 = vld [vmem:[%s15172_s1 + $0xf60] ss:$16 sps:$4 sm:$0xff]   ;;  %v11554_v9 = vld [vmem:[%s15172_s1 + $0xf68] ss:$16 sps:$4 sm:$0xff]   ;;  %v5920_v34 = vrot.slane %v5919_v22, 7 }
 0x1d4   :  { %v3298_v49 = vpop.f32.mrf.mxu0  ;;  %v3339_v50 = vpop.f32.mrf.mxu1  ;;  %5820 = vmatprep.subr.bf16.mxu0 %v11535_v37  ;;  %5861 = vmatprep.subr.bf16.mxu1 %v11538_v39  ;;  %v11571_v37 = vld [vmem:[%s15172_s1 + $0xf04] ss:$16 sps:$4 sm:$0xff]   ;;  %v11569_v39 = vld [vmem:[%s15172_s1 + $0xf00] ss:$16 sps:$4 sm:$0xff]  }
 0x1d5   :  { %v3345_v53 = vadd.f32 %v3298_v49, %v3149_v16  ;;  %v3347_v54 = vadd.f32 %v3339_v50, %v3151_v17  ;;  %5842 = vmatprep.mubr.bf16.mxu0 %v12029_v2  ;;  %5883 = vmatprep.mubr.bf16.mxu1 %v12029_v2  ;;  %v11560_v16 = vld [vmem:[%s15172_s1 + $0xf48] ss:$16 sps:$4 sm:$0xff]  }
 0x1d6   :  { %v3300_v57 = vpop.f32.mrf.mxu0  ;;  %v3341_v58 = vpop.f32.mrf.mxu1 }
 0x1d7   :  { %5821 = vmatpush1.bf16.msra.mxu0 %v11533_v41  ;;  %5862 = vmatpush1.bf16.msra.mxu1 %v11536_v42  ;;  %v5921_v41 = vsel %vm67_vm0, %v5920_v34, %v5918_v33 }
 0x1d8   :  { %v3301_v61 = vpop.f32.mrf.mxu0  ;;  %v3342_v62 = vpop.f32.mrf.mxu1  ;;  %5822 = vmatprep.subr.bf16.mxu0 %v11541_v51  ;;  %5863 = vmatprep.subr.bf16.mxu1 %v11544_v52 }
 0x1db   :  { %5823 = vmatpush1.bf16.msra.mxu0 %v11539_v55  ;;  %5864 = vmatpush1.bf16.msra.mxu1 %v11542_v56 }
 0x1dc   :  { %5824 = vmatprep.subr.bf16.mxu0 %v11547_v63  ;;  %5865 = vmatprep.subr.bf16.mxu1 %v11550_v0 }
 0x1df   :  { %5825 = vmatpush1.bf16.msra.mxu0 %v11545_v1  ;;  %5866 = vmatpush1.bf16.msra.mxu1 %v11548_v3 }
 0x1e0   :  { %6014 = vmatprep.subr.bf16.mxu0 %v11553_v5  ;;  %6055 = vmatprep.subr.bf16.mxu1 %v11556_v6 }
 0x1e2   :  { %v3492_v17 = vpop.f32.mrf.mxu0  ;;  %v3533_v18 = vpop.f32.mrf.mxu1  ;;  %10414 = vmatmul.mubr.msk.bf16.vlgmr.msra.gmra.mxu0 %vm150_vm1, %v5726_v10  ;;  %10415 = vmatmul.mubr.msk.bf16.vlgmr.msra.gmra.mxu1 %vm150_vm1, %v5726_v10 }
 0x1e3   :  { %v3540_v19 = vadd.f32 %v3492_v17, %v3344_v45  ;;  %v3542_v20 = vadd.f32 %v3533_v18, %v3346_v46  ;;  %6015 = vmatpush1.bf16.msra.mxu0 %v11551_v8  ;;  %6056 = vmatpush1.bf16.msra.mxu1 %v11554_v9 }
 0x1e4   :  { %v3494_v23 = vpop.f32.mrf.mxu0  ;;  %v3535_v24 = vpop.f32.mrf.mxu1  ;;  %6016 = vmatprep.subr.bf16.mxu0 %v11559_v11  ;;  %6057 = vmatprep.subr.bf16.mxu1 %v11562_v13 }
 0x1e5   :  { %v3541_v27 = vadd.f32 %v3494_v23, %v3345_v53  ;;  %v3543_v28 = vadd.f32 %v3535_v24, %v3347_v54  ;;  %6038 = vmatprep.mubr.bf16.mxu0 %v12029_v2  ;;  %6079 = vmatprep.mubr.bf16.mxu1 %v12029_v2 }
 0x1e6   :  { %v3496_v31 = vpop.f32.mrf.mxu0  ;;  %v3537_v32 = vpop.f32.mrf.mxu1 }
 0x1e7   :  { %6017 = vmatpush1.bf16.msra.mxu0 %v11557_v15  ;;  %6058 = vmatpush1.bf16.msra.mxu1 %v11560_v16 }
 0x1e8   :  { %v3497_v35 = vpop.f32.mrf.mxu0  ;;  %v3538_v36 = vpop.f32.mrf.mxu1  ;;  %6018 = vmatprep.subr.bf16.mxu0 %v11565_v25  ;;  %6059 = vmatprep.subr.bf16.mxu1 %v11568_v26 }
 0x1eb   :  { %6019 = vmatpush1.bf16.msra.mxu0 %v11563_v29  ;;  %6060 = vmatpush1.bf16.msra.mxu1 %v11566_v30 }
 0x1ec   :  { %10 = vsyncpa [#allocation3], 0  ;;  %6020 = vmatprep.subr.bf16.mxu0 %v11571_v37  ;;  %6061 = vmatprep.subr.bf16.mxu1 %v11574_v38  ;;  %v11577_v42 = vld [vmem:[%s15172_s1 + $0xfe4] ss:$16 sps:$4 sm:$0xff]   ;;  %v11580_v43 = vld [vmem:[%s15172_s1 + $0xfec] ss:$16 sps:$4 sm:$0xff]   ;;  %v5922_v45 = vpack.c.b16 %v5921_v41, %v5921_v41 }
 0x1ed   :  { %v6093_v44 = vld [vmem:[%s15171_s0 + $0x7f] sm:$0x1]  ;;  %v11575_v46 = vld [vmem:[%s15172_s1 + $0xfe0] ss:$16 sps:$4 sm:$0xff]   ;;  %v11578_v47 = vld [vmem:[%s15172_s1 + $0xfe8] ss:$16 sps:$4 sm:$0xff]  }
 0x1ee   :  { %v6095_v48 = vpack.c.bf16 %v6093_v44, %v6093_v44  ;;  %v11583_v49 = vld [vmem:[%s15172_s1 + $0xfc4] ss:$16 sps:$4 sm:$0xff]   ;;  %v11586_v50 = vld [vmem:[%s15172_s1 + $0xfcc] ss:$16 sps:$4 sm:$0xff]   ;;  %v11581_v56 = vld [vmem:[%s15172_s1 + $0xfc0] ss:$16 sps:$4 sm:$0xff]  }
 0x1ef   :  { %6021 = vmatpush1.bf16.msra.mxu0 %v11569_v39  ;;  %6062 = vmatpush1.bf16.msra.mxu1 %v11572_v40  ;;  %v6092_v51 = vld [vmem:[%s15171_s0 + $0x2f] sm:$0x1]  ;;  %v11584_v57 = vld [vmem:[%s15172_s1 + $0xfc8] ss:$16 sps:$4 sm:$0xff]   ;;  %v11589_v62 = vld [vmem:[%s15172_s1 + $0xfa4] ss:$16 sps:$4 sm:$0xff]  }
 0x1f0   :  { %6210 = vmatprep.subr.bf16.mxu0 %v11577_v42  ;;  %6251 = vmatprep.subr.bf16.mxu1 %v11580_v43  ;;  %v6094_v58 = vpack.c.bf16 %v6092_v51, %v6092_v51  ;;  %v6115_v59 = vunpack.c.l.b16 %v6095_v48  ;;  %v11592_v63 = vld [vmem:[%s15172_s1 + $0xfac] ss:$16 sps:$4 sm:$0xff]   ;;  %v11587_v5 = vld [vmem:[%s15172_s1 + $0xfa0] ss:$16 sps:$4 sm:$0xff]   ;;  %v11590_v6 = vld [vmem:[%s15172_s1 + $0xfa8] ss:$16 sps:$4 sm:$0xff]  }
 0x1f1   :  { %v11595_v11 = vld [vmem:[%s15172_s1 + $0xf84] ss:$16 sps:$4 sm:$0xff]   ;;  %v11598_v12 = vld [vmem:[%s15172_s1 + $0xf8c] ss:$16 sps:$4 sm:$0xff]   ;;  %v11593_v13 = vld [vmem:[%s15172_s1 + $0xf80] ss:$16 sps:$4 sm:$0xff]  }
 0x1f2   :  { %v3688_v52 = vpop.f32.mrf.mxu0  ;;  %v3729_v53 = vpop.f32.mrf.mxu1  ;;  %10432 = vmatmul.mubr.msk.bf16.vlgmr.msra.gmra.mxu0 %vm150_vm1, %v5922_v45  ;;  %10433 = vmatmul.mubr.msk.bf16.vlgmr.msra.gmra.mxu1 %vm150_vm1, %v5922_v45  ;;  %v6114_v7 = vunpack.c.l.b16 %v6094_v58  ;;  %v6116_v8 = vrot.slane %v6115_v59, 7  ;;  %v11596_v14 = vld [vmem:[%s15172_s1 + $0xf88] ss:$16 sps:$4 sm:$0xff]   ;;  %v11601_v16 = vld [vmem:[%s15172_s1 + $0x1064] ss:$16 sps:$4 sm:$0xff]   ;;  %s12030_s26 = smov [#allocation2]  }
 0x1f3   :  { %v3736_v54 = vadd.f32 %v3688_v52, %v3540_v19  ;;  %v3738_v55 = vadd.f32 %v3729_v53, %v3542_v20  ;;  %6211 = vmatpush1.bf16.msra.mxu0 %v11575_v46  ;;  %6252 = vmatpush1.bf16.msra.mxu1 %v11578_v47  ;;  %v11604_v17 = vld [vmem:[%s15172_s1 + $0x106c] ss:$16 sps:$4 sm:$0xff]   ;;  %v6289_v18 = vld [vmem:[%s15171_s0 + $0x80] sm:$0x1]  ;;  %v11602_v21 = vld [vmem:[%s15172_s1 + $0x1068] ss:$16 sps:$4 sm:$0xff]  }
 0x1f4   :  { %v3690_v60 = vpop.f32.mrf.mxu0  ;;  %v3731_v61 = vpop.f32.mrf.mxu1  ;;  %6212 = vmatprep.subr.bf16.mxu0 %v11583_v49  ;;  %6253 = vmatprep.subr.bf16.mxu1 %v11586_v50  ;;  %v6117_v15 = vsel %vm67_vm0, %v6116_v8, %v6114_v7  ;;  %v11599_v20 = vld [vmem:[%s15172_s1 + $0x1060] ss:$16 sps:$4 sm:$0xff]   ;;  %v6291_v22 = vpack.c.bf16 %v6289_v18, %v6289_v18  ;;  %v11607_v23 = vld [vmem:[%s15172_s1 + $0x1044] ss:$16 sps:$4 sm:$0xff]   ;;  %v11610_v24 = vld [vmem:[%s15172_s1 + $0x104c] ss:$16 sps:$4 sm:$0xff]  }
 0x1f5   :  { %v3737_v0 = vadd.f32 %v3690_v60, %v3541_v27  ;;  %v3739_v1 = vadd.f32 %v3731_v61, %v3543_v28  ;;  %6234 = vmatprep.mubr.bf16.mxu0 %v12029_v2  ;;  %6275 = vmatprep.mubr.bf16.mxu1 %v12029_v2  ;;  %v6118_v19 = vpack.c.b16 %v6117_v15, %v6117_v15  ;;  %v6288_v25 = vld [vmem:[%s15171_s0 + $0x30] sm:$0x1]  ;;  %v11608_v31 = vld [vmem:[%s15172_s1 + $0x1048] ss:$16 sps:$4 sm:$0xff]   ;;  %v11613_v36 = vld [vmem:[%s15172_s1 + $0x1024] ss:$16 sps:$4 sm:$0xff]  }
 0x1f6   :  { %v3692_v3 = vpop.f32.mrf.mxu0  ;;  %v3733_v4 = vpop.f32.mrf.mxu1  ;;  %v11605_v30 = vld [vmem:[%s15172_s1 + $0x1040] ss:$16 sps:$4 sm:$0xff]   ;;  %v6290_v32 = vpack.c.bf16 %v6288_v25, %v6288_v25  ;;  %v6311_v33 = vunpack.c.l.b16 %v6291_v22  ;;  %v11616_v37 = vld [vmem:[%s15172_s1 + $0x102c] ss:$16 sps:$4 sm:$0xff]   ;;  %v11614_v43 = vld [vmem:[%s15172_s1 + $0x1028] ss:$16 sps:$4 sm:$0xff]  }
 0x1f7   :  { %6213 = vmatpush1.bf16.msra.mxu0 %v11581_v56  ;;  %6254 = vmatpush1.bf16.msra.mxu1 %v11584_v57  ;;  %v11611_v42 = vld [vmem:[%s15172_s1 + $0x1020] ss:$16 sps:$4 sm:$0xff]   ;;  %v11619_v48 = vld [vmem:[%s15172_s1 + $0x1004] ss:$16 sps:$4 sm:$0xff]   ;;  %v11622_v49 = vld [vmem:[%s15172_s1 + $0x100c] ss:$16 sps:$4 sm:$0xff]  }
 0x1f8   :  { %v3693_v9 = vpop.f32.mrf.mxu0  ;;  %v3734_v10 = vpop.f32.mrf.mxu1  ;;  %6214 = vmatprep.subr.bf16.mxu0 %v11589_v62  ;;  %6255 = vmatprep.subr.bf16.mxu1 %v11592_v63  ;;  %v6310_v44 = vunpack.c.l.b16 %v6290_v32  ;;  %v6312_v45 = vrot.slane %v6311_v33, 7  ;;  %v11617_v50 = vld [vmem:[%s15172_s1 + $0x1000] ss:$16 sps:$4 sm:$0xff]   ;;  %v11620_v51 = vld [vmem:[%s15172_s1 + $0x1008] ss:$16 sps:$4 sm:$0xff]   ;;  %s9868_s27 = sshll.u32 %s12030_s26, 4  ;;  %s9869_s27 = int_to_ptr.vmem [resolvable:$true] %s9868_s27 }
 0x1f9   :  { %v11625_v53 = vld [vmem:[%s15172_s1 + $0x10e4] ss:$16 sps:$4 sm:$0xff]   ;;  %v11623_v57 = vld [vmem:[%s15172_s1 + $0x10e0] ss:$16 sps:$4 sm:$0xff]   ;;  %v11626_v58 = vld [vmem:[%s15172_s1 + $0x10e8] ss:$16 sps:$4 sm:$0xff]   ;;  %p12012_p1 = scmp.lt.s32.totalorder %s9869_s27, %s9869_s27 }
 0x1fa   :  { %v6313_v52 = vsel %vm67_vm0, %v6312_v45, %v6310_v44  ;;  %v11631_v60 = vld [vmem:[%s15172_s1 + $0x10c4] ss:$16 sps:$4 sm:$0xff]   ;;  %v11634_v61 = vld [vmem:[%s15172_s1 + $0x10cc] ss:$16 sps:$4 sm:$0xff]   ;;  %v6484_v62 = vld [vmem:[%s15171_s0 + $0x31] sm:$0x1] }
 0x1fb   :  { %6215 = vmatpush1.bf16.msra.mxu0 %v11587_v5  ;;  %6256 = vmatpush1.bf16.msra.mxu1 %v11590_v6  ;;  %v6314_v56 = vpack.c.b16 %v6313_v52, %v6313_v52  ;;  %v11629_v4 = vld [vmem:[%s15172_s1 + $0x10c0] ss:$16 sps:$4 sm:$0xff]   ;;  %v11632_v5 = vld [vmem:[%s15172_s1 + $0x10c8] ss:$16 sps:$4 sm:$0xff]   ;;  %v6486_v6 = vpack.c.bf16 %v6484_v62, %v6484_v62  ;;  %v11637_v10 = vld [vmem:[%s15172_s1 + $0x10a4] ss:$16 sps:$4 sm:$0xff]  }
 0x1fc   :  { %6216 = vmatprep.subr.bf16.mxu0 %v11595_v11  ;;  %6257 = vmatprep.subr.bf16.mxu1 %v11598_v12  ;;  %v11640_v11 = vld [vmem:[%s15172_s1 + $0x10ac] ss:$16 sps:$4 sm:$0xff]   ;;  %v11643_v22 = vld [vmem:[%s15172_s1 + $0x1084] ss:$16 sps:$4 sm:$0xff]   ;;  %v11644_v25 = vld [vmem:[%s15172_s1 + $0x1088] ss:$16 sps:$4 sm:$0xff]  }
 0x1fd   :  { %v6506_v18 = vunpack.c.l.b16 %v6486_v6  ;;  %v11650_v32 = vld [vmem:[%s15172_s1 + $0x1168] ss:$16 sps:$4 sm:$0xff]   ;;  %v11673_v62 = vld [vmem:[%s15172_s1 + $0x11e4] ss:$16 sps:$4 sm:$0xff]   ;;  %s12007_s28 = scalar_lea.vmem %s9869_s27, 32 }
 0x1fe   :  { %v11662_v52 = vld [vmem:[%s15172_s1 + $0x1128] ss:$16 sps:$4 sm:$0xff]   ;;  %p12008_p0 = scmp.ne.s32.totalorder %s9869_s27, %s12007_s28  ;;  %p12013_p2 = scmp.lt.s32.totalorder %s12007_s28, %s12007_s28 }
 0x1ff   :  { %6217 = vmatpush1.bf16.msra.mxu0 %v11593_v13  ;;  %6258 = vmatpush1.bf16.msra.mxu1 %v11596_v14 }
 0x200   :  { %6406 = vmatprep.subr.bf16.mxu0 %v11601_v16  ;;  %6447 = vmatprep.subr.bf16.mxu1 %v11604_v17  ;;  %v11635_v16 = vld [vmem:[%s15172_s1 + $0x10a0] ss:$16 sps:$4 sm:$0xff]   ;;  %v11638_v17 = vld [vmem:[%s15172_s1 + $0x10a8] ss:$16 sps:$4 sm:$0xff]   ;;  %p12014_p3 = por %p12013_p2, %p12012_p1 }
 0x202   :  { %v3884_v26 = vpop.f32.mrf.mxu0  ;;  %v3925_v27 = vpop.f32.mrf.mxu1  ;;  %10450 = vmatmul.mubr.msk.bf16.vlgmr.msra.gmra.mxu0 %vm150_vm1, %v6118_v19  ;;  %10451 = vmatmul.mubr.msk.bf16.vlgmr.msra.gmra.mxu1 %vm150_vm1, %v6118_v19  ;;  %p12015_p4 = pnand %p12014_p3, %p12008_p0 }
 0x203   :  { %v3932_v28 = vadd.f32 %v3884_v26, %v3736_v54  ;;  %v3934_v29 = vadd.f32 %v3925_v27, %v3738_v55  ;;  %6407 = vmatpush1.bf16.msra.mxu0 %v11599_v20  ;;  %6448 = vmatpush1.bf16.msra.mxu1 %v11602_v21  ;;  %v11628_v54 = vld [vmem:[%s15172_s1 + $0x10ec] ss:$16 sps:$4 sm:$0xff]   ;;  %v6485_v55 = vld [vmem:[%s15171_s0 + $0x81] sm:$0x1]  ;;  %v11649_v27 = vld [vmem:[%s15172_s1 + $0x1164] ss:$16 sps:$4 sm:$0xff]  }
 0x204   :  { %v3886_v34 = vpop.f32.mrf.mxu0  ;;  %v3927_v35 = vpop.f32.mrf.mxu1  ;;  %6408 = vmatprep.subr.bf16.mxu0 %v11607_v23  ;;  %6449 = vmatprep.subr.bf16.mxu1 %v11610_v24  ;;  %v6487_v59 = vpack.c.bf16 %v6485_v55, %v6485_v55  ;;  %v11646_v23 = vld [vmem:[%s15172_s1 + $0x108c] ss:$16 sps:$4 sm:$0xff]   ;;  %v11641_v24 = vld [vmem:[%s15172_s1 + $0x1080] ss:$16 sps:$4 sm:$0xff]  }
 0x205   :  { %v3933_v38 = vadd.f32 %v3886_v34, %v3737_v0  ;;  %v3935_v39 = vadd.f32 %v3927_v35, %v3739_v1  ;;  %6430 = vmatprep.mubr.bf16.mxu0 %v12029_v2  ;;  %6471 = vmatprep.mubr.bf16.mxu1 %v12029_v2  ;;  %v11655_v34 = vld [vmem:[%s15172_s1 + $0x1144] ss:$16 sps:$4 sm:$0xff]   ;;  %v11658_v35 = vld [vmem:[%s15172_s1 + $0x114c] ss:$16 sps:$4 sm:$0xff]  }
 0x206   :  { %v3888_v40 = vpop.f32.mrf.mxu0  ;;  %v3929_v41 = vpop.f32.mrf.mxu1  ;;  %v6507_v7 = vunpack.c.l.b16 %v6487_v59  ;;  %v11665_v59 = vld [vmem:[%s15172_s1 + $0x1100] ss:$16 sps:$4 sm:$0xff]  }
 0x207   :  { %6409 = vmatpush1.bf16.msra.mxu0 %v11605_v30  ;;  %6450 = vmatpush1.bf16.msra.mxu1 %v11608_v31  ;;  %v11647_v31 = vld [vmem:[%s15172_s1 + $0x1160] ss:$16 sps:$4 sm:$0xff]  }
 0x208   :  { %v3889_v46 = vpop.f32.mrf.mxu0  ;;  %v3930_v47 = vpop.f32.mrf.mxu1  ;;  %6410 = vmatprep.subr.bf16.mxu0 %v11613_v36  ;;  %6451 = vmatprep.subr.bf16.mxu1 %v11616_v37  ;;  %v6508_v19 = vrot.slane %v6507_v7, 7  ;;  %v6680_v36 = vld [vmem:[%s15171_s0 + $0x32] sm:$0x1]  ;;  %v11679_v7 = vld [vmem:[%s15172_s1 + $0x11c4] ss:$16 sps:$4 sm:$0xff]  }
 0x209   :  { %v11653_v41 = vld [vmem:[%s15172_s1 + $0x1140] ss:$16 sps:$4 sm:$0xff]   ;;  %v11661_v47 = vld [vmem:[%s15172_s1 + $0x1124] ss:$16 sps:$4 sm:$0xff]  }
 0x20a   :  { %v6509_v26 = vsel %vm67_vm0, %v6508_v19, %v6506_v18  ;;  %v11677_v18 = vld [vmem:[%s15172_s1 + $0x11c0] ss:$16 sps:$4 sm:$0xff]  }
 0x20b   :  { %6411 = vmatpush1.bf16.msra.mxu0 %v11611_v42  ;;  %6452 = vmatpush1.bf16.msra.mxu1 %v11614_v43  ;;  %v6510_v30 = vpack.c.b16 %v6509_v26, %v6509_v26  ;;  %v11656_v42 = vld [vmem:[%s15172_s1 + $0x1148] ss:$16 sps:$4 sm:$0xff]   ;;  %v6682_v43 = vpack.c.bf16 %v6680_v36, %v6680_v36 }
 0x20c   :  { %6412 = vmatprep.subr.bf16.mxu0 %v11619_v48  ;;  %6453 = vmatprep.subr.bf16.mxu1 %v11622_v49  ;;  %v11664_v48 = vld [vmem:[%s15172_s1 + $0x112c] ss:$16 sps:$4 sm:$0xff]   ;;  %v11692_v36 = vld [vmem:[%s15172_s1 + $0x1188] ss:$16 sps:$4 sm:$0xff]  }
 0x20f   :  { %6413 = vmatpush1.bf16.msra.mxu0 %v11617_v50  ;;  %6454 = vmatpush1.bf16.msra.mxu1 %v11620_v51  ;;  %v11659_v51 = vld [vmem:[%s15172_s1 + $0x1120] ss:$16 sps:$4 sm:$0xff]  }
 0x210   :  { %6602 = vmatprep.subr.bf16.mxu0 %v11625_v53  ;;  %6643 = vmatprep.subr.bf16.mxu1 %v11628_v54  ;;  %v6702_v53 = vunpack.c.l.b16 %v6682_v43  ;;  %v11698_v43 = vld [vmem:[%s15172_s1 + $0x1268] ss:$16 sps:$4 sm:$0xff]  }
 0x212   :  { %v4080_v63 = vpop.f32.mrf.mxu0  ;;  %v4121_v0 = vpop.f32.mrf.mxu1  ;;  %10468 = vmatmul.mubr.msk.bf16.vlgmr.msra.gmra.mxu0 %vm150_vm1, %v6314_v56  ;;  %10469 = vmatmul.mubr.msk.bf16.vlgmr.msra.gmra.mxu1 %vm150_vm1, %v6314_v56 }
 0x213   :  { %v4128_v1 = vadd.f32 %v4080_v63, %v3932_v28  ;;  %v4130_v3 = vadd.f32 %v4121_v0, %v3934_v29  ;;  %6603 = vmatpush1.bf16.msra.mxu0 %v11623_v57  ;;  %6644 = vmatpush1.bf16.msra.mxu1 %v11626_v58  ;;  %v11652_v28 = vld [vmem:[%s15172_s1 + $0x116c] ss:$16 sps:$4 sm:$0xff]   ;;  %v6681_v29 = vld [vmem:[%s15171_s0 + $0x82] sm:$0x1]  ;;  %v11667_v57 = vld [vmem:[%s15172_s1 + $0x1104] ss:$16 sps:$4 sm:$0xff]  }
 0x214   :  { %v4082_v8 = vpop.f32.mrf.mxu0  ;;  %v4123_v9 = vpop.f32.mrf.mxu1  ;;  %6604 = vmatprep.subr.bf16.mxu0 %v11631_v60  ;;  %6645 = vmatprep.subr.bf16.mxu1 %v11634_v61  ;;  %v6683_v33 = vpack.c.bf16 %v6681_v29, %v6681_v29  ;;  %v11670_v58 = vld [vmem:[%s15172_s1 + $0x110c] ss:$16 sps:$4 sm:$0xff]   ;;  %v11668_v60 = vld [vmem:[%s15172_s1 + $0x1108] ss:$16 sps:$4 sm:$0xff]   ;;  %v6877_v0 = vld [vmem:[%s15171_s0 + $0x87] sm:$0x1] }
 0x215   :  { %v14044_v12 = vadd.f32 %v4082_v8, %v3933_v38  ;;  %v14046_v13 = vadd.f32 %v4123_v9, %v3935_v39  ;;  %6626 = vmatprep.mubr.bf16.mxu0 %v12029_v2  ;;  %6667 = vmatprep.mubr.bf16.mxu1 %v12029_v2  ;;  %v11676_v63 = vld [vmem:[%s15172_s1 + $0x11ec] ss:$16 sps:$4 sm:$0xff]   ;;  %v6879_v6 = vpack.c.bf16 %v6877_v0, %v6877_v0  ;;  %v11707_v0 = vld [vmem:[%s15172_s1 + $0x1220] ss:$16 sps:$4 sm:$0xff]  }
 0x216   :  { %v4084_v14 = vpop.f32.mrf.mxu0  ;;  %v4125_v15 = vpop.f32.mrf.mxu1  ;;  %v6703_v44 = vunpack.c.l.b16 %v6683_v33  ;;  %v11682_v8 = vld [vmem:[%s15172_s1 + $0x11cc] ss:$16 sps:$4 sm:$0xff]   ;;  %v11691_v33 = vld [vmem:[%s15172_s1 + $0x1184] ss:$16 sps:$4 sm:$0xff]  }
 0x217   :  { %6605 = vmatpush1.bf16.msra.mxu0 %v11629_v4  ;;  %6646 = vmatpush1.bf16.msra.mxu1 %v11632_v5  ;;  %v11674_v4 = vld [vmem:[%s15172_s1 + $0x11e8] ss:$16 sps:$4 sm:$0xff]   ;;  %v6876_v5 = vld [vmem:[%s15171_s0 + $0x37] sm:$0x1]  ;;  %v6899_v19 = vunpack.c.l.b16 %v6879_v6 }
 0x218   :  { %v4085_v20 = vpop.f32.mrf.mxu0  ;;  %v4126_v21 = vpop.f32.mrf.mxu1  ;;  %6606 = vmatprep.subr.bf16.mxu0 %v11637_v10  ;;  %6647 = vmatprep.subr.bf16.mxu1 %v11640_v11  ;;  %v6704_v54 = vrot.slane %v6703_v44, 7  ;;  %v6878_v14 = vpack.c.bf16 %v6876_v5, %v6876_v5 }
 0x21a   :  { %v6705_v61 = vsel %vm67_vm0, %v6704_v54, %v6702_v53  ;;  %v6898_v29 = vunpack.c.l.b16 %v6878_v14  ;;  %v11704_v53 = vld [vmem:[%s15172_s1 + $0x1248] ss:$16 sps:$4 sm:$0xff]   ;;  %v11721_v14 = vld [vmem:[%s15172_s1 + $0x12e4] ss:$16 sps:$4 sm:$0xff]  }
 0x21b   :  { %6607 = vmatpush1.bf16.msra.mxu0 %v11635_v16  ;;  %6648 = vmatpush1.bf16.msra.mxu1 %v11638_v17 }
 0x21c   :  { %6608 = vmatprep.subr.bf16.mxu0 %v11643_v22  ;;  %6649 = vmatprep.subr.bf16.mxu1 %v11646_v23  ;;  %v11688_v22 = vld [vmem:[%s15172_s1 + $0x11ac] ss:$16 sps:$4 sm:$0xff]  }
 0x21f   :  { %6609 = vmatpush1.bf16.msra.mxu0 %v11641_v24  ;;  %6650 = vmatpush1.bf16.msra.mxu1 %v11644_v25 }
 0x220   :  { %6798 = vmatprep.subr.bf16.mxu0 %v11649_v27  ;;  %6839 = vmatprep.subr.bf16.mxu1 %v11652_v28  ;;  %v11683_v27 = vld [vmem:[%s15172_s1 + $0x11a0] ss:$16 sps:$4 sm:$0xff]   ;;  %v11686_v28 = vld [vmem:[%s15172_s1 + $0x11a8] ss:$16 sps:$4 sm:$0xff]  }
 0x222   :  { %v4276_v37 = vpop.f32.mrf.mxu0  ;;  %v4317_v38 = vpop.f32.mrf.mxu1  ;;  %10486 = vmatmul.mubr.msk.bf16.vlgmr.msra.gmra.mxu0 %vm150_vm1, %v6510_v30  ;;  %10487 = vmatmul.mubr.msk.bf16.vlgmr.msra.gmra.mxu1 %vm150_vm1, %v6510_v30  ;;  %v6900_v30 = vrot.slane %v6899_v19, 7 }
 0x223   :  { %v4324_v39 = vadd.f32 %v4276_v37, %v4128_v1  ;;  %v4326_v40 = vadd.f32 %v4317_v38, %v4130_v3  ;;  %6799 = vmatpush1.bf16.msra.mxu0 %v11647_v31  ;;  %6840 = vmatpush1.bf16.msra.mxu1 %v11650_v32  ;;  %v6706_v1 = vpack.c.b16 %v6705_v61, %v6705_v61  ;;  %v11671_v3 = vld [vmem:[%s15172_s1 + $0x11e0] ss:$16 sps:$4 sm:$0xff]   ;;  %v11697_v38 = vld [vmem:[%s15172_s1 + $0x1264] ss:$16 sps:$4 sm:$0xff]  }
 0x224   :  { %v4278_v45 = vpop.f32.mrf.mxu0  ;;  %v4319_v46 = vpop.f32.mrf.mxu1  ;;  %6800 = vmatprep.subr.bf16.mxu0 %v11655_v34  ;;  %6841 = vmatprep.subr.bf16.mxu1 %v11658_v35  ;;  %v11694_v34 = vld [vmem:[%s15172_s1 + $0x118c] ss:$16 sps:$4 sm:$0xff]   ;;  %v11689_v35 = vld [vmem:[%s15172_s1 + $0x1180] ss:$16 sps:$4 sm:$0xff]   ;;  %v6901_v37 = vsel %vm67_vm0, %v6900_v30, %v6898_v29 }
 0x225   :  { %6822 = vmatprep.mubr.bf16.mxu0 %v12029_v2  ;;  %6863 = vmatprep.mubr.bf16.mxu1 %v12029_v2  ;;  %v4325_v9 = vadd.f32 %v4278_v45, %v14044_v12  ;;  %v4327_v15 = vadd.f32 %v4319_v46, %v14046_v13  ;;  %v11680_v12 = vld [vmem:[%s15172_s1 + $0x11c8] ss:$16 sps:$4 sm:$0xff]   ;;  %v11685_v13 = vld [vmem:[%s15172_s1 + $0x11a4] ss:$16 sps:$4 sm:$0xff]   ;;  %v11706_v46 = vld [vmem:[%s15172_s1 + $0x124c] ss:$16 sps:$4 sm:$0xff]  }
 0x226   :  { %v4280_v49 = vpop.f32.mrf.mxu0  ;;  %v4321_v50 = vpop.f32.mrf.mxu1  ;;  %v11703_v45 = vld [vmem:[%s15172_s1 + $0x1244] ss:$16 sps:$4 sm:$0xff]  }
 0x227   :  { %6801 = vmatpush1.bf16.msra.mxu0 %v11653_v41  ;;  %6842 = vmatpush1.bf16.msra.mxu1 %v11656_v42  ;;  %v6902_v41 = vpack.c.b16 %v6901_v37, %v6901_v37  ;;  %v11695_v42 = vld [vmem:[%s15172_s1 + $0x1260] ss:$16 sps:$4 sm:$0xff]  }
 0x228   :  { %v4281_v55 = vpop.f32.mrf.mxu0  ;;  %v4322_v56 = vpop.f32.mrf.mxu1  ;;  %6802 = vmatprep.subr.bf16.mxu0 %v11661_v47  ;;  %6843 = vmatprep.subr.bf16.mxu1 %v11664_v48  ;;  %v7072_v47 = vld [vmem:[%s15171_s0 + $0x38] sm:$0x1] }
 0x229   :  { %v7074_v54 = vpack.c.bf16 %v7072_v47, %v7072_v47  ;;  %v11740_v47 = vld [vmem:[%s15172_s1 + $0x1288] ss:$16 sps:$4 sm:$0xff]  }
 0x22b   :  { %6803 = vmatpush1.bf16.msra.mxu0 %v11659_v51  ;;  %6844 = vmatpush1.bf16.msra.mxu1 %v11662_v52  ;;  %v11701_v52 = vld [vmem:[%s15172_s1 + $0x1240] ss:$16 sps:$4 sm:$0xff]  }
 0x22c   :  { %6804 = vmatprep.subr.bf16.mxu0 %v11667_v57  ;;  %6845 = vmatprep.subr.bf16.mxu1 %v11670_v58  ;;  %v11709_v58 = vld [vmem:[%s15172_s1 + $0x1224] ss:$16 sps:$4 sm:$0xff]  }
 0x22f   :  { %6805 = vmatpush1.bf16.msra.mxu0 %v11665_v59  ;;  %6846 = vmatpush1.bf16.msra.mxu1 %v11668_v60  ;;  %v11712_v59 = vld [vmem:[%s15172_s1 + $0x122c] ss:$16 sps:$4 sm:$0xff]  }
 0x230   :  { %6994 = vmatprep.subr.bf16.mxu0 %v11673_v62  ;;  %7035 = vmatprep.subr.bf16.mxu1 %v11676_v63 }
 0x232   :  { %v4472_v10 = vpop.f32.mrf.mxu0  ;;  %v4513_v11 = vpop.f32.mrf.mxu1  ;;  %10504 = vmatmul.mubr.msk.bf16.vlgmr.msra.gmra.mxu0 %vm150_vm1, %v6706_v1  ;;  %10505 = vmatmul.mubr.msk.bf16.vlgmr.msra.gmra.mxu1 %vm150_vm1, %v6706_v1  ;;  %v11710_v1 = vld [vmem:[%s15172_s1 + $0x1228] ss:$16 sps:$4 sm:$0xff]  }
 0x233   :  { %v4520_v16 = vadd.f32 %v4472_v10, %v4324_v39  ;;  %v4522_v17 = vadd.f32 %v4513_v11, %v4326_v40  ;;  %6995 = vmatpush1.bf16.msra.mxu0 %v11671_v3  ;;  %7036 = vmatpush1.bf16.msra.mxu1 %v11674_v4  ;;  %v11700_v39 = vld [vmem:[%s15172_s1 + $0x126c] ss:$16 sps:$4 sm:$0xff]   ;;  %v7073_v40 = vld [vmem:[%s15171_s0 + $0x88] sm:$0x1]  ;;  %v7094_v3 = vunpack.c.l.b16 %v7074_v54 }
 0x234   :  { %v4474_v20 = vpop.f32.mrf.mxu0  ;;  %v4515_v21 = vpop.f32.mrf.mxu1  ;;  %6996 = vmatprep.subr.bf16.mxu0 %v11679_v7  ;;  %7037 = vmatprep.subr.bf16.mxu1 %v11682_v8  ;;  %v7075_v44 = vpack.c.bf16 %v7073_v40, %v7073_v40  ;;  %v11715_v7 = vld [vmem:[%s15172_s1 + $0x1204] ss:$16 sps:$4 sm:$0xff]   ;;  %v11718_v8 = vld [vmem:[%s15172_s1 + $0x120c] ss:$16 sps:$4 sm:$0xff]   ;;  %v11716_v10 = vld [vmem:[%s15172_s1 + $0x1208] ss:$16 sps:$4 sm:$0xff]  }
 0x235   :  { %v4521_v23 = vadd.f32 %v4474_v20, %v4325_v9  ;;  %v4523_v24 = vadd.f32 %v4515_v21, %v4327_v15  ;;  %7018 = vmatprep.mubr.bf16.mxu0 %v12029_v2  ;;  %7059 = vmatprep.mubr.bf16.mxu1 %v12029_v2  ;;  %v11713_v9 = vld [vmem:[%s15172_s1 + $0x1200] ss:$16 sps:$4 sm:$0xff]   ;;  %v11724_v15 = vld [vmem:[%s15172_s1 + $0x12ec] ss:$16 sps:$4 sm:$0xff]   ;;  %v11727_v20 = vld [vmem:[%s15172_s1 + $0x12c4] ss:$16 sps:$4 sm:$0xff]  }
 0x236   :  { %v4476_v25 = vpop.f32.mrf.mxu0  ;;  %v4517_v26 = vpop.f32.mrf.mxu1  ;;  %v7095_v55 = vunpack.c.l.b16 %v7075_v44  ;;  %v11730_v21 = vld [vmem:[%s15172_s1 + $0x12cc] ss:$16 sps:$4 sm:$0xff]   ;;  %v11739_v44 = vld [vmem:[%s15172_s1 + $0x1284] ss:$16 sps:$4 sm:$0xff]   ;;  %v11746_v54 = vld [vmem:[%s15172_s1 + $0x1368] ss:$16 sps:$4 sm:$0xff]  }
 0x237   :  { %6997 = vmatpush1.bf16.msra.mxu0 %v11677_v18  ;;  %7038 = vmatpush1.bf16.msra.mxu1 %v11680_v12  ;;  %v11719_v18 = vld [vmem:[%s15172_s1 + $0x12e0] ss:$16 sps:$4 sm:$0xff]   ;;  %v11722_v12 = vld [vmem:[%s15172_s1 + $0x12e8] ss:$16 sps:$4 sm:$0xff]  }
 0x238   :  { %v4477_v31 = vpop.f32.mrf.mxu0  ;;  %v4518_v32 = vpop.f32.mrf.mxu1  ;;  %6998 = vmatprep.subr.bf16.mxu0 %v11685_v13  ;;  %7039 = vmatprep.subr.bf16.mxu1 %v11688_v22  ;;  %v7096_v4 = vrot.slane %v7095_v55, 7  ;;  %v7268_v13 = vld [vmem:[%s15171_s0 + $0x39] sm:$0x1]  ;;  %v11725_v26 = vld [vmem:[%s15172_s1 + $0x12c0] ss:$16 sps:$4 sm:$0xff]  }
 0x239   :  { %v11733_v32 = vld [vmem:[%s15172_s1 + $0x12a4] ss:$16 sps:$4 sm:$0xff]  }
 0x23a   :  { %v7097_v11 = vsel %vm67_vm0, %v7096_v4, %v7094_v3 }
 0x23b   :  { %6999 = vmatpush1.bf16.msra.mxu0 %v11683_v27  ;;  %7040 = vmatpush1.bf16.msra.mxu1 %v11686_v28  ;;  %v11728_v27 = vld [vmem:[%s15172_s1 + $0x12c8] ss:$16 sps:$4 sm:$0xff]   ;;  %v7270_v28 = vpack.c.bf16 %v7268_v13, %v7268_v13 }
 0x23c   :  { %7000 = vmatprep.subr.bf16.mxu0 %v11691_v33  ;;  %7041 = vmatprep.subr.bf16.mxu1 %v11694_v34  ;;  %v11736_v33 = vld [vmem:[%s15172_s1 + $0x12ac] ss:$16 sps:$4 sm:$0xff]   ;;  %v11764_v13 = vld [vmem:[%s15172_s1 + $0x1308] ss:$16 sps:$4 sm:$0xff]  }
 0x23d   :  { %v7290_v40 = vunpack.c.l.b16 %v7270_v28  ;;  %v11770_v28 = vld [vmem:[%s15172_s1 + $0x13e8] ss:$16 sps:$4 sm:$0xff]  }
 0x23f   :  { %7001 = vmatpush1.bf16.msra.mxu0 %v11689_v35  ;;  %7042 = vmatpush1.bf16.msra.mxu1 %v11692_v36 }
 0x240   :  { %7190 = vmatprep.subr.bf16.mxu0 %v11697_v38  ;;  %7231 = vmatprep.subr.bf16.mxu1 %v11700_v39  ;;  %v11731_v38 = vld [vmem:[%s15172_s1 + $0x12a0] ss:$16 sps:$4 sm:$0xff]   ;;  %v11734_v39 = vld [vmem:[%s15172_s1 + $0x12a8] ss:$16 sps:$4 sm:$0xff]  }
 0x242   :  { %v4668_v48 = vpop.f32.mrf.mxu0  ;;  %v4709_v49 = vpop.f32.mrf.mxu1  ;;  %10522 = vmatmul.mubr.msk.bf16.vlgmr.msra.gmra.mxu0 %vm150_vm1, %v6902_v41  ;;  %10523 = vmatmul.mubr.msk.bf16.vlgmr.msra.gmra.mxu1 %vm150_vm1, %v6902_v41 }
 0x243   :  { %v4716_v50 = vadd.f32 %v4668_v48, %v4520_v16  ;;  %v4718_v51 = vadd.f32 %v4709_v49, %v4522_v17  ;;  %7191 = vmatpush1.bf16.msra.mxu0 %v11695_v42  ;;  %7232 = vmatpush1.bf16.msra.mxu1 %v11698_v43  ;;  %v7269_v16 = vld [vmem:[%s15171_s0 + $0x89] sm:$0x1]  ;;  %v7098_v17 = vpack.c.b16 %v7097_v11, %v7097_v11  ;;  %v11745_v49 = vld [vmem:[%s15172_s1 + $0x1364] ss:$16 sps:$4 sm:$0xff]  }
 0x244   :  { %v4670_v56 = vpop.f32.mrf.mxu0  ;;  %v4711_v57 = vpop.f32.mrf.mxu1  ;;  %7192 = vmatprep.subr.bf16.mxu0 %v11703_v45  ;;  %7233 = vmatprep.subr.bf16.mxu1 %v11706_v46  ;;  %v7271_v19 = vpack.c.bf16 %v7269_v16, %v7269_v16  ;;  %v11742_v45 = vld [vmem:[%s15172_s1 + $0x128c] ss:$16 sps:$4 sm:$0xff]   ;;  %v11737_v46 = vld [vmem:[%s15172_s1 + $0x1280] ss:$16 sps:$4 sm:$0xff]  }
 0x245   :  { %v4717_v60 = vadd.f32 %v4670_v56, %v4521_v23  ;;  %v4719_v61 = vadd.f32 %v4711_v57, %v4523_v24  ;;  %7214 = vmatprep.mubr.bf16.mxu0 %v12029_v2  ;;  %7255 = vmatprep.mubr.bf16.mxu1 %v12029_v2  ;;  %v11751_v56 = vld [vmem:[%s15172_s1 + $0x1344] ss:$16 sps:$4 sm:$0xff]   ;;  %v11754_v57 = vld [vmem:[%s15172_s1 + $0x134c] ss:$16 sps:$4 sm:$0xff]  }
 0x246   :  { %v4672_v62 = vpop.f32.mrf.mxu0  ;;  %v4713_v63 = vpop.f32.mrf.mxu1  ;;  %v7291_v29 = vunpack.c.l.b16 %v7271_v19  ;;  %v11763_v19 = vld [vmem:[%s15172_s1 + $0x1304] ss:$16 sps:$4 sm:$0xff]  }
 0x247   :  { %7193 = vmatpush1.bf16.msra.mxu0 %v11701_v52  ;;  %7234 = vmatpush1.bf16.msra.mxu1 %v11704_v53  ;;  %v11743_v53 = vld [vmem:[%s15172_s1 + $0x1360] ss:$16 sps:$4 sm:$0xff]  }
 0x248   :  { %v4673_v5 = vpop.f32.mrf.mxu0  ;;  %v4714_v6 = vpop.f32.mrf.mxu1  ;;  %7194 = vmatprep.subr.bf16.mxu0 %v11709_v58  ;;  %7235 = vmatprep.subr.bf16.mxu1 %v11712_v59  ;;  %v7292_v41 = vrot.slane %v7291_v29, 7  ;;  %v7464_v58 = vld [vmem:[%s15171_s0 + $0x3a] sm:$0x1]  ;;  %v11749_v63 = vld [vmem:[%s15172_s1 + $0x1340] ss:$16 sps:$4 sm:$0xff]  }
 0x249   :  { %v11757_v6 = vld [vmem:[%s15172_s1 + $0x1324] ss:$16 sps:$4 sm:$0xff]  }
 0x24a   :  { %v7293_v48 = vsel %vm67_vm0, %v7292_v41, %v7290_v40 }
 0x24b   :  { %7195 = vmatpush1.bf16.msra.mxu0 %v11707_v0  ;;  %7236 = vmatpush1.bf16.msra.mxu1 %v11710_v1  ;;  %v7294_v52 = vpack.c.b16 %v7293_v48, %v7293_v48  ;;  %v11752_v0 = vld [vmem:[%s15172_s1 + $0x1348] ss:$16 sps:$4 sm:$0xff]   ;;  %v7466_v1 = vpack.c.bf16 %v7464_v58, %v7464_v58 }
 0x24c   :  { %7196 = vmatprep.subr.bf16.mxu0 %v11715_v7  ;;  %7237 = vmatprep.subr.bf16.mxu1 %v11718_v8  ;;  %v11760_v7 = vld [vmem:[%s15172_s1 + $0x132c] ss:$16 sps:$4 sm:$0xff]   ;;  %v11788_v58 = vld [vmem:[%s15172_s1 + $0x1388] ss:$16 sps:$4 sm:$0xff]  }
 0x24d   :  { %v7486_v16 = vunpack.c.l.b16 %v7466_v1  ;;  %v11794_v1 = vld [vmem:[%s15172_s1 + $0x1468] ss:$16 sps:$4 sm:$0xff]  }
 0x24f   :  { %7197 = vmatpush1.bf16.msra.mxu0 %v11713_v9  ;;  %7238 = vmatpush1.bf16.msra.mxu1 %v11716_v10 }
 0x250   :  { %7386 = vmatprep.subr.bf16.mxu0 %v11721_v14  ;;  %7427 = vmatprep.subr.bf16.mxu1 %v11724_v15  ;;  %v11755_v14 = vld [vmem:[%s15172_s1 + $0x1320] ss:$16 sps:$4 sm:$0xff]   ;;  %v11758_v15 = vld [vmem:[%s15172_s1 + $0x1328] ss:$16 sps:$4 sm:$0xff]  }
 0x252   :  { %v4864_v22 = vpop.f32.mrf.mxu0  ;;  %v4905_v23 = vpop.f32.mrf.mxu1  ;;  %10540 = vmatmul.mubr.msk.bf16.vlgmr.msra.gmra.mxu0 %vm150_vm1, %v7098_v17  ;;  %10541 = vmatmul.mubr.msk.bf16.vlgmr.msra.gmra.mxu1 %vm150_vm1, %v7098_v17 }
 0x253   :  { %v4912_v24 = vadd.f32 %v4864_v22, %v4716_v50  ;;  %v4914_v25 = vadd.f32 %v4905_v23, %v4718_v51  ;;  %7387 = vmatpush1.bf16.msra.mxu0 %v11719_v18  ;;  %7428 = vmatpush1.bf16.msra.mxu1 %v11722_v12  ;;  %v11748_v50 = vld [vmem:[%s15172_s1 + $0x136c] ss:$16 sps:$4 sm:$0xff]   ;;  %v7465_v51 = vld [vmem:[%s15171_s0 + $0x8a] sm:$0x1]  ;;  %v11769_v23 = vld [vmem:[%s15172_s1 + $0x13e4] ss:$16 sps:$4 sm:$0xff]  }
 0x254   :  { %v4866_v30 = vpop.f32.mrf.mxu0  ;;  %v4907_v31 = vpop.f32.mrf.mxu1  ;;  %7388 = vmatprep.subr.bf16.mxu0 %v11727_v20  ;;  %7429 = vmatprep.subr.bf16.mxu1 %v11730_v21  ;;  %v7467_v55 = vpack.c.bf16 %v7465_v51, %v7465_v51  ;;  %v11766_v20 = vld [vmem:[%s15172_s1 + $0x130c] ss:$16 sps:$4 sm:$0xff]   ;;  %v11761_v21 = vld [vmem:[%s15172_s1 + $0x1300] ss:$16 sps:$4 sm:$0xff]  }
 0x255   :  { %v4913_v34 = vadd.f32 %v4866_v30, %v4717_v60  ;;  %v4915_v35 = vadd.f32 %v4907_v31, %v4719_v61  ;;  %7410 = vmatprep.mubr.bf16.mxu0 %v12029_v2  ;;  %7451 = vmatprep.mubr.bf16.mxu1 %v12029_v2  ;;  %v11775_v30 = vld [vmem:[%s15172_s1 + $0x13c4] ss:$16 sps:$4 sm:$0xff]   ;;  %v11778_v31 = vld [vmem:[%s15172_s1 + $0x13cc] ss:$16 sps:$4 sm:$0xff]  }
 0x256   :  { %v4868_v36 = vpop.f32.mrf.mxu0  ;;  %v4909_v37 = vpop.f32.mrf.mxu1  ;;  %v7487_v3 = vunpack.c.l.b16 %v7467_v55  ;;  %v11787_v55 = vld [vmem:[%s15172_s1 + $0x1384] ss:$16 sps:$4 sm:$0xff]  }
 0x257   :  { %7389 = vmatpush1.bf16.msra.mxu0 %v11725_v26  ;;  %7430 = vmatpush1.bf16.msra.mxu1 %v11728_v27  ;;  %v11767_v27 = vld [vmem:[%s15172_s1 + $0x13e0] ss:$16 sps:$4 sm:$0xff]  }
 0x258   :  { %v4869_v42 = vpop.f32.mrf.mxu0  ;;  %v4910_v43 = vpop.f32.mrf.mxu1  ;;  %7390 = vmatprep.subr.bf16.mxu0 %v11733_v32  ;;  %7431 = vmatprep.subr.bf16.mxu1 %v11736_v33  ;;  %v7488_v17 = vrot.slane %v7487_v3, 7  ;;  %v7660_v32 = vld [vmem:[%s15171_s0 + $0x3b] sm:$0x1]  ;;  %v11773_v37 = vld [vmem:[%s15172_s1 + $0x13c0] ss:$16 sps:$4 sm:$0xff]  }
 0x259   :  { %v11781_v43 = vld [vmem:[%s15172_s1 + $0x13a4] ss:$16 sps:$4 sm:$0xff]  }
 0x25a   :  { %v7489_v22 = vsel %vm67_vm0, %v7488_v17, %v7486_v16 }
 0x25b   :  { %7391 = vmatpush1.bf16.msra.mxu0 %v11731_v38  ;;  %7432 = vmatpush1.bf16.msra.mxu1 %v11734_v39  ;;  %v7490_v26 = vpack.c.b16 %v7489_v22, %v7489_v22  ;;  %v11776_v38 = vld [vmem:[%s15172_s1 + $0x13c8] ss:$16 sps:$4 sm:$0xff]   ;;  %v7662_v39 = vpack.c.bf16 %v7660_v32, %v7660_v32 }
 0x25c   :  { %7392 = vmatprep.subr.bf16.mxu0 %v11739_v44  ;;  %7433 = vmatprep.subr.bf16.mxu1 %v11742_v45  ;;  %v11784_v44 = vld [vmem:[%s15172_s1 + $0x13ac] ss:$16 sps:$4 sm:$0xff]   ;;  %v11812_v32 = vld [vmem:[%s15172_s1 + $0x1408] ss:$16 sps:$4 sm:$0xff]  }
 0x25d   :  { %v7682_v51 = vunpack.c.l.b16 %v7662_v39  ;;  %v11818_v39 = vld [vmem:[%s15172_s1 + $0x14e8] ss:$16 sps:$4 sm:$0xff]  }
 0x25f   :  { %7393 = vmatpush1.bf16.msra.mxu0 %v11737_v46  ;;  %7434 = vmatpush1.bf16.msra.mxu1 %v11740_v47 }
 0x260   :  { %7582 = vmatprep.subr.bf16.mxu0 %v11745_v49  ;;  %7623 = vmatprep.subr.bf16.mxu1 %v11748_v50  ;;  %v11779_v49 = vld [vmem:[%s15172_s1 + $0x13a0] ss:$16 sps:$4 sm:$0xff]   ;;  %v11782_v50 = vld [vmem:[%s15172_s1 + $0x13a8] ss:$16 sps:$4 sm:$0xff]  }
 0x262   :  { %v5060_v59 = vpop.f32.mrf.mxu0  ;;  %v5101_v60 = vpop.f32.mrf.mxu1  ;;  %10558 = vmatmul.mubr.msk.bf16.vlgmr.msra.gmra.mxu0 %vm150_vm1, %v7294_v52  ;;  %10559 = vmatmul.mubr.msk.bf16.vlgmr.msra.gmra.mxu1 %vm150_vm1, %v7294_v52 }
 0x263   :  { %v5108_v61 = vadd.f32 %v5060_v59, %v4912_v24  ;;  %v5110_v62 = vadd.f32 %v5101_v60, %v4914_v25  ;;  %7583 = vmatpush1.bf16.msra.mxu0 %v11743_v53  ;;  %7624 = vmatpush1.bf16.msra.mxu1 %v11746_v54  ;;  %v11772_v24 = vld [vmem:[%s15172_s1 + $0x13ec] ss:$16 sps:$4 sm:$0xff]   ;;  %v7661_v25 = vld [vmem:[%s15171_s0 + $0x8b] sm:$0x1]  ;;  %v11793_v60 = vld [vmem:[%s15172_s1 + $0x1464] ss:$16 sps:$4 sm:$0xff]  }
 0x264   :  { %v5062_v4 = vpop.f32.mrf.mxu0  ;;  %v5103_v5 = vpop.f32.mrf.mxu1  ;;  %7584 = vmatprep.subr.bf16.mxu0 %v11751_v56  ;;  %7625 = vmatprep.subr.bf16.mxu1 %v11754_v57  ;;  %v7663_v29 = vpack.c.bf16 %v7661_v25, %v7661_v25  ;;  %v11790_v56 = vld [vmem:[%s15172_s1 + $0x138c] ss:$16 sps:$4 sm:$0xff]   ;;  %v11785_v57 = vld [vmem:[%s15172_s1 + $0x1380] ss:$16 sps:$4 sm:$0xff]  }
 0x265   :  { %v5109_v8 = vadd.f32 %v5062_v4, %v4913_v34  ;;  %v5111_v9 = vadd.f32 %v5103_v5, %v4915_v35  ;;  %7606 = vmatprep.mubr.bf16.mxu0 %v12029_v2  ;;  %7647 = vmatprep.mubr.bf16.mxu1 %v12029_v2  ;;  %v11799_v4 = vld [vmem:[%s15172_s1 + $0x1444] ss:$16 sps:$4 sm:$0xff]   ;;  %v11802_v5 = vld [vmem:[%s15172_s1 + $0x144c] ss:$16 sps:$4 sm:$0xff]  }
 0x266   :  { %v5064_v10 = vpop.f32.mrf.mxu0  ;;  %v5105_v11 = vpop.f32.mrf.mxu1  ;;  %v7683_v40 = vunpack.c.l.b16 %v7663_v29  ;;  %v11811_v29 = vld [vmem:[%s15172_s1 + $0x1404] ss:$16 sps:$4 sm:$0xff]  }
 0x267   :  { %7585 = vmatpush1.bf16.msra.mxu0 %v11749_v63  ;;  %7626 = vmatpush1.bf16.msra.mxu1 %v11752_v0  ;;  %v11791_v0 = vld [vmem:[%s15172_s1 + $0x1460] ss:$16 sps:$4 sm:$0xff]  }
 0x268   :  { %v5065_v18 = vpop.f32.mrf.mxu0  ;;  %v5106_v12 = vpop.f32.mrf.mxu1  ;;  %7586 = vmatprep.subr.bf16.mxu0 %v11757_v6  ;;  %7627 = vmatprep.subr.bf16.mxu1 %v11760_v7  ;;  %v7684_v52 = vrot.slane %v7683_v40, 7  ;;  %v7856_v6 = vld [vmem:[%s15171_s0 + $0x3c] sm:$0x1]  ;;  %v11797_v11 = vld [vmem:[%s15172_s1 + $0x1440] ss:$16 sps:$4 sm:$0xff]  }
 0x269   :  { %v11805_v12 = vld [vmem:[%s15172_s1 + $0x1424] ss:$16 sps:$4 sm:$0xff]  }
 0x26a   :  { %v7685_v59 = vsel %vm67_vm0, %v7684_v52, %v7682_v51 }
 0x26b   :  { %7587 = vmatpush1.bf16.msra.mxu0 %v11755_v14  ;;  %7628 = vmatpush1.bf16.msra.mxu1 %v11758_v15  ;;  %v7686_v63 = vpack.c.b16 %v7685_v59, %v7685_v59  ;;  %v11800_v14 = vld [vmem:[%s15172_s1 + $0x1448] ss:$16 sps:$4 sm:$0xff]   ;;  %v7858_v15 = vpack.c.bf16 %v7856_v6, %v7856_v6 }
 0x26c   :  { %7588 = vmatprep.subr.bf16.mxu0 %v11763_v19  ;;  %7629 = vmatprep.subr.bf16.mxu1 %v11766_v20  ;;  %v11808_v19 = vld [vmem:[%s15172_s1 + $0x142c] ss:$16 sps:$4 sm:$0xff]   ;;  %v11836_v6 = vld [vmem:[%s15172_s1 + $0x1488] ss:$16 sps:$4 sm:$0xff]  }
 0x26d   :  { %v7878_v25 = vunpack.c.l.b16 %v7858_v15  ;;  %v11842_v15 = vld [vmem:[%s15172_s1 + $0x1568] ss:$16 sps:$4 sm:$0xff]  }
 0x26f   :  { %7589 = vmatpush1.bf16.msra.mxu0 %v11761_v21  ;;  %7630 = vmatpush1.bf16.msra.mxu1 %v11764_v13 }
 0x270   :  { %7778 = vmatprep.subr.bf16.mxu0 %v11769_v23  ;;  %7819 = vmatprep.subr.bf16.mxu1 %v11772_v24  ;;  %v11803_v23 = vld [vmem:[%s15172_s1 + $0x1420] ss:$16 sps:$4 sm:$0xff]   ;;  %v11806_v24 = vld [vmem:[%s15172_s1 + $0x1428] ss:$16 sps:$4 sm:$0xff]  }
 0x272   :  { %v5256_v33 = vpop.f32.mrf.mxu0  ;;  %v5297_v34 = vpop.f32.mrf.mxu1  ;;  %10576 = vmatmul.mubr.msk.bf16.vlgmr.msra.gmra.mxu0 %vm150_vm1, %v7490_v26  ;;  %10577 = vmatmul.mubr.msk.bf16.vlgmr.msra.gmra.mxu1 %vm150_vm1, %v7490_v26 }
 0x273   :  { %v5304_v35 = vadd.f32 %v5256_v33, %v5108_v61  ;;  %v5306_v36 = vadd.f32 %v5297_v34, %v5110_v62  ;;  %7779 = vmatpush1.bf16.msra.mxu0 %v11767_v27  ;;  %7820 = vmatpush1.bf16.msra.mxu1 %v11770_v28  ;;  %v11796_v61 = vld [vmem:[%s15172_s1 + $0x146c] ss:$16 sps:$4 sm:$0xff]   ;;  %v11817_v34 = vld [vmem:[%s15172_s1 + $0x14e4] ss:$16 sps:$4 sm:$0xff]  }
 0x274   :  { %v5258_v41 = vpop.f32.mrf.mxu0  ;;  %v5299_v42 = vpop.f32.mrf.mxu1  ;;  %7780 = vmatprep.subr.bf16.mxu0 %v11775_v30  ;;  %7821 = vmatprep.subr.bf16.mxu1 %v11778_v31  ;;  %v7857_v62 = vld [vmem:[%s15171_s0 + $0x8c] sm:$0x1]  ;;  %v11809_v31 = vld [vmem:[%s15172_s1 + $0x1400] ss:$16 sps:$4 sm:$0xff]  }
 0x275   :  { %v5305_v45 = vadd.f32 %v5258_v41, %v5109_v8  ;;  %v5307_v46 = vadd.f32 %v5299_v42, %v5111_v9  ;;  %7802 = vmatprep.mubr.bf16.mxu0 %v12029_v2  ;;  %7843 = vmatprep.mubr.bf16.mxu1 %v12029_v2  ;;  %v7859_v3 = vpack.c.bf16 %v7857_v62, %v7857_v62  ;;  %v11814_v30 = vld [vmem:[%s15172_s1 + $0x140c] ss:$16 sps:$4 sm:$0xff]   ;;  %v11823_v41 = vld [vmem:[%s15172_s1 + $0x14c4] ss:$16 sps:$4 sm:$0xff]  }
 0x276   :  { %v5260_v47 = vpop.f32.mrf.mxu0  ;;  %v5301_v48 = vpop.f32.mrf.mxu1  ;;  %v11826_v42 = vld [vmem:[%s15172_s1 + $0x14cc] ss:$16 sps:$4 sm:$0xff]  }
 0x277   :  { %7781 = vmatpush1.bf16.msra.mxu0 %v11773_v37  ;;  %7822 = vmatpush1.bf16.msra.mxu1 %v11776_v38  ;;  %v7879_v16 = vunpack.c.l.b16 %v7859_v3  ;;  %v11815_v38 = vld [vmem:[%s15172_s1 + $0x14e0] ss:$16 sps:$4 sm:$0xff]   ;;  %v11835_v3 = vld [vmem:[%s15172_s1 + $0x1484] ss:$16 sps:$4 sm:$0xff]  }
 0x278   :  { %v5261_v53 = vpop.f32.mrf.mxu0  ;;  %v5302_v54 = vpop.f32.mrf.mxu1  ;;  %7782 = vmatprep.subr.bf16.mxu0 %v11781_v43  ;;  %7823 = vmatprep.subr.bf16.mxu1 %v11784_v44  ;;  %v8052_v43 = vld [vmem:[%s15171_s0 + $0x3d] sm:$0x1]  ;;  %v11821_v48 = vld [vmem:[%s15172_s1 + $0x14c0] ss:$16 sps:$4 sm:$0xff]  }
 0x279   :  { %v7880_v26 = vrot.slane %v7879_v16, 7  ;;  %v11829_v54 = vld [vmem:[%s15172_s1 + $0x14a4] ss:$16 sps:$4 sm:$0xff]  }
 0x27b   :  { %7783 = vmatpush1.bf16.msra.mxu0 %v11779_v49  ;;  %7824 = vmatpush1.bf16.msra.mxu1 %v11782_v50  ;;  %v7881_v33 = vsel %vm67_vm0, %v7880_v26, %v7878_v25  ;;  %v11824_v49 = vld [vmem:[%s15172_s1 + $0x14c8] ss:$16 sps:$4 sm:$0xff]   ;;  %v8054_v50 = vpack.c.bf16 %v8052_v43, %v8052_v43 }
 0x27c   :  { %7784 = vmatprep.subr.bf16.mxu0 %v11787_v55  ;;  %7825 = vmatprep.subr.bf16.mxu1 %v11790_v56  ;;  %v7882_v37 = vpack.c.b16 %v7881_v33, %v7881_v33  ;;  %v11832_v55 = vld [vmem:[%s15172_s1 + $0x14ac] ss:$16 sps:$4 sm:$0xff]   ;;  %v11860_v43 = vld [vmem:[%s15172_s1 + $0x1508] ss:$16 sps:$4 sm:$0xff]  }
 0x27d   :  { %v8074_v62 = vunpack.c.l.b16 %v8054_v50  ;;  %v11866_v50 = vld [vmem:[%s15172_s1 + $0x15e8] ss:$16 sps:$4 sm:$0xff]  }
 0x27f   :  { %7785 = vmatpush1.bf16.msra.mxu0 %v11785_v57  ;;  %7826 = vmatpush1.bf16.msra.mxu1 %v11788_v58 }
 0x280   :  { %7974 = vmatprep.subr.bf16.mxu0 %v11793_v60  ;;  %8015 = vmatprep.subr.bf16.mxu1 %v11796_v61  ;;  %v11827_v60 = vld [vmem:[%s15172_s1 + $0x14a0] ss:$16 sps:$4 sm:$0xff]   ;;  %v11830_v61 = vld [vmem:[%s15172_s1 + $0x14a8] ss:$16 sps:$4 sm:$0xff]  }
 0x282   :  { %v5452_v7 = vpop.f32.mrf.mxu0  ;;  %v5493_v8 = vpop.f32.mrf.mxu1  ;;  %10594 = vmatmul.mubr.msk.bf16.vlgmr.msra.gmra.mxu0 %vm150_vm1, %v7686_v63  ;;  %10595 = vmatmul.mubr.msk.bf16.vlgmr.msra.gmra.mxu1 %vm150_vm1, %v7686_v63 }
 0x283   :  { %v5500_v9 = vadd.f32 %v5452_v7, %v5304_v35  ;;  %v5502_v10 = vadd.f32 %v5493_v8, %v5306_v36  ;;  %7975 = vmatpush1.bf16.msra.mxu0 %v11791_v0  ;;  %8016 = vmatpush1.bf16.msra.mxu1 %v11794_v1  ;;  %v11820_v35 = vld [vmem:[%s15172_s1 + $0x14ec] ss:$16 sps:$4 sm:$0xff]   ;;  %v11841_v8 = vld [vmem:[%s15172_s1 + $0x1564] ss:$16 sps:$4 sm:$0xff]  }
 0x284   :  { %v5454_v17 = vpop.f32.mrf.mxu0  ;;  %v5495_v18 = vpop.f32.mrf.mxu1  ;;  %7976 = vmatprep.subr.bf16.mxu0 %v11799_v4  ;;  %8017 = vmatprep.subr.bf16.mxu1 %v11802_v5  ;;  %v8053_v36 = vld [vmem:[%s15171_s0 + $0x8d] sm:$0x1]  ;;  %v11833_v5 = vld [vmem:[%s15172_s1 + $0x1480] ss:$16 sps:$4 sm:$0xff]  }
 0x285   :  { %v5501_v20 = vadd.f32 %v5454_v17, %v5305_v45  ;;  %v5503_v21 = vadd.f32 %v5495_v18, %v5307_v46  ;;  %7998 = vmatprep.mubr.bf16.mxu0 %v12029_v2  ;;  %8039 = vmatprep.mubr.bf16.mxu1 %v12029_v2  ;;  %v8055_v40 = vpack.c.bf16 %v8053_v36, %v8053_v36  ;;  %v11838_v4 = vld [vmem:[%s15172_s1 + $0x148c] ss:$16 sps:$4 sm:$0xff]   ;;  %v11847_v17 = vld [vmem:[%s15172_s1 + $0x1544] ss:$16 sps:$4 sm:$0xff]  }
 0x286   :  { %v5456_v13 = vpop.f32.mrf.mxu0  ;;  %v5497_v22 = vpop.f32.mrf.mxu1  ;;  %v11850_v18 = vld [vmem:[%s15172_s1 + $0x154c] ss:$16 sps:$4 sm:$0xff]  }
 0x287   :  { %7977 = vmatpush1.bf16.msra.mxu0 %v11797_v11  ;;  %8018 = vmatpush1.bf16.msra.mxu1 %v11800_v14  ;;  %v8075_v51 = vunpack.c.l.b16 %v8055_v40  ;;  %v11839_v14 = vld [vmem:[%s15172_s1 + $0x1560] ss:$16 sps:$4 sm:$0xff]   ;;  %v11859_v40 = vld [vmem:[%s15172_s1 + $0x1504] ss:$16 sps:$4 sm:$0xff]  }
 0x288   :  { %v5457_v27 = vpop.f32.mrf.mxu0  ;;  %v5498_v28 = vpop.f32.mrf.mxu1  ;;  %7978 = vmatprep.subr.bf16.mxu0 %v11805_v12  ;;  %8019 = vmatprep.subr.bf16.mxu1 %v11808_v19  ;;  %v8248_v12 = vld [vmem:[%s15171_s0 + $0x42] sm:$0x1] }
 0x289   :  { %v8076_v63 = vrot.slane %v8075_v51, 7  ;;  %v11845_v22 = vld [vmem:[%s15172_s1 + $0x1540] ss:$16 sps:$4 sm:$0xff]   ;;  %v11853_v28 = vld [vmem:[%s15172_s1 + $0x1524] ss:$16 sps:$4 sm:$0xff]  }
 0x28b   :  { %7979 = vmatpush1.bf16.msra.mxu0 %v11803_v23  ;;  %8020 = vmatpush1.bf16.msra.mxu1 %v11806_v24  ;;  %v8077_v7 = vsel %vm67_vm0, %v8076_v63, %v8074_v62  ;;  %v11848_v23 = vld [vmem:[%s15172_s1 + $0x1548] ss:$16 sps:$4 sm:$0xff]   ;;  %v8250_v24 = vpack.c.bf16 %v8248_v12, %v8248_v12 }
 0x28c   :  { %7980 = vmatprep.subr.bf16.mxu0 %v11811_v29  ;;  %8021 = vmatprep.subr.bf16.mxu1 %v11814_v30  ;;  %v8078_v11 = vpack.c.b16 %v8077_v7, %v8077_v7  ;;  %v11856_v29 = vld [vmem:[%s15172_s1 + $0x152c] ss:$16 sps:$4 sm:$0xff]   ;;  %v11884_v12 = vld [vmem:[%s15172_s1 + $0x1588] ss:$16 sps:$4 sm:$0xff]  }
 0x28d   :  { %v8270_v36 = vunpack.c.l.b16 %v8250_v24  ;;  %v11890_v24 = vld [vmem:[%s15172_s1 + $0x1668] ss:$16 sps:$4 sm:$0xff]  }
 0x28f   :  { %7981 = vmatpush1.bf16.msra.mxu0 %v11809_v31  ;;  %8022 = vmatpush1.bf16.msra.mxu1 %v11812_v32 }
 0x290   :  { %8170 = vmatprep.subr.bf16.mxu0 %v11817_v34  ;;  %8211 = vmatprep.subr.bf16.mxu1 %v11820_v35  ;;  %v11851_v34 = vld [vmem:[%s15172_s1 + $0x1520] ss:$16 sps:$4 sm:$0xff]   ;;  %v11854_v35 = vld [vmem:[%s15172_s1 + $0x1528] ss:$16 sps:$4 sm:$0xff]  }
 0x292   :  { %v5648_v44 = vpop.f32.mrf.mxu0  ;;  %v5689_v45 = vpop.f32.mrf.mxu1  ;;  %10612 = vmatmul.mubr.msk.bf16.vlgmr.msra.gmra.mxu0 %vm150_vm1, %v7882_v37  ;;  %10613 = vmatmul.mubr.msk.bf16.vlgmr.msra.gmra.mxu1 %vm150_vm1, %v7882_v37 }
 0x293   :  { %v5696_v46 = vadd.f32 %v5648_v44, %v5500_v9  ;;  %v5698_v47 = vadd.f32 %v5689_v45, %v5502_v10  ;;  %8171 = vmatpush1.bf16.msra.mxu0 %v11815_v38  ;;  %8212 = vmatpush1.bf16.msra.mxu1 %v11818_v39  ;;  %v11844_v9 = vld [vmem:[%s15172_s1 + $0x156c] ss:$16 sps:$4 sm:$0xff]   ;;  %v8249_v10 = vld [vmem:[%s15171_s0 + $0x92] sm:$0x1]  ;;  %v11865_v45 = vld [vmem:[%s15172_s1 + $0x15e4] ss:$16 sps:$4 sm:$0xff]  }
 0x294   :  { %v5650_v52 = vpop.f32.mrf.mxu0  ;;  %v5691_v53 = vpop.f32.mrf.mxu1  ;;  %8172 = vmatprep.subr.bf16.mxu0 %v11823_v41  ;;  %8213 = vmatprep.subr.bf16.mxu1 %v11826_v42  ;;  %v8251_v16 = vpack.c.bf16 %v8249_v10, %v8249_v10  ;;  %v11862_v41 = vld [vmem:[%s15172_s1 + $0x150c] ss:$16 sps:$4 sm:$0xff]   ;;  %v11857_v42 = vld [vmem:[%s15172_s1 + $0x1500] ss:$16 sps:$4 sm:$0xff]  }
 0x295   :  { %v5697_v56 = vadd.f32 %v5650_v52, %v5501_v20  ;;  %v5699_v57 = vadd.f32 %v5691_v53, %v5503_v21  ;;  %8194 = vmatprep.mubr.bf16.mxu0 %v12029_v2  ;;  %8235 = vmatprep.mubr.bf16.mxu1 %v12029_v2  ;;  %v11871_v52 = vld [vmem:[%s15172_s1 + $0x15c4] ss:$16 sps:$4 sm:$0xff]   ;;  %v11874_v53 = vld [vmem:[%s15172_s1 + $0x15cc] ss:$16 sps:$4 sm:$0xff]  }
 0x296   :  { %v5652_v58 = vpop.f32.mrf.mxu0  ;;  %v5693_v59 = vpop.f32.mrf.mxu1  ;;  %v8271_v25 = vunpack.c.l.b16 %v8251_v16  ;;  %v11883_v16 = vld [vmem:[%s15172_s1 + $0x1584] ss:$16 sps:$4 sm:$0xff]  }
 0x297   :  { %8173 = vmatpush1.bf16.msra.mxu0 %v11821_v48  ;;  %8214 = vmatpush1.bf16.msra.mxu1 %v11824_v49  ;;  %v11863_v49 = vld [vmem:[%s15172_s1 + $0x15e0] ss:$16 sps:$4 sm:$0xff]  }
 0x298   :  { %v5653_v0 = vpop.f32.mrf.mxu0  ;;  %v5694_v1 = vpop.f32.mrf.mxu1  ;;  %8174 = vmatprep.subr.bf16.mxu0 %v11829_v54  ;;  %8215 = vmatprep.subr.bf16.mxu1 %v11832_v55  ;;  %v8272_v37 = vrot.slane %v8271_v25, 7  ;;  %v8444_v54 = vld [vmem:[%s15171_s0 + $0x43] sm:$0x1] }
 0x299   :  { %v11869_v59 = vld [vmem:[%s15172_s1 + $0x15c0] ss:$16 sps:$4 sm:$0xff]   ;;  %v11877_v1 = vld [vmem:[%s15172_s1 + $0x15a4] ss:$16 sps:$4 sm:$0xff]  }
 0x29a   :  { %v8273_v44 = vsel %vm67_vm0, %v8272_v37, %v8270_v36 }
 0x29b   :  { %8175 = vmatpush1.bf16.msra.mxu0 %v11827_v60  ;;  %8216 = vmatpush1.bf16.msra.mxu1 %v11830_v61  ;;  %v8274_v48 = vpack.c.b16 %v8273_v44, %v8273_v44  ;;  %v11872_v60 = vld [vmem:[%s15172_s1 + $0x15c8] ss:$16 sps:$4 sm:$0xff]   ;;  %v8446_v61 = vpack.c.bf16 %v8444_v54, %v8444_v54 }
 0x29c   :  { %8176 = vmatprep.subr.bf16.mxu0 %v11835_v3  ;;  %8217 = vmatprep.subr.bf16.mxu1 %v11838_v4  ;;  %v11880_v3 = vld [vmem:[%s15172_s1 + $0x15ac] ss:$16 sps:$4 sm:$0xff]   ;;  %v11908_v54 = vld [vmem:[%s15172_s1 + $0x1608] ss:$16 sps:$4 sm:$0xff]  }
 0x29d   :  { %v8466_v10 = vunpack.c.l.b16 %v8446_v61  ;;  %v11914_v61 = vld [vmem:[%s15172_s1 + $0x16e8] ss:$16 sps:$4 sm:$0xff]  }
 0x29f   :  { %8177 = vmatpush1.bf16.msra.mxu0 %v11833_v5  ;;  %8218 = vmatpush1.bf16.msra.mxu1 %v11836_v6 }
 0x2a0   :  { %8366 = vmatprep.subr.bf16.mxu0 %v11841_v8  ;;  %8407 = vmatprep.subr.bf16.mxu1 %v11844_v9  ;;  %v11875_v8 = vld [vmem:[%s15172_s1 + $0x15a0] ss:$16 sps:$4 sm:$0xff]   ;;  %v11878_v9 = vld [vmem:[%s15172_s1 + $0x15a8] ss:$16 sps:$4 sm:$0xff]  }
 0x2a2   :  { %v5844_v19 = vpop.f32.mrf.mxu0  ;;  %v5885_v20 = vpop.f32.mrf.mxu1  ;;  %10630 = vmatmul.mubr.msk.bf16.vlgmr.msra.gmra.mxu0 %vm150_vm1, %v8078_v11  ;;  %10631 = vmatmul.mubr.msk.bf16.vlgmr.msra.gmra.mxu1 %vm150_vm1, %v8078_v11 }
 0x2a3   :  { %v5892_v21 = vadd.f32 %v5844_v19, %v5696_v46  ;;  %v5894_v13 = vadd.f32 %v5885_v20, %v5698_v47  ;;  %8367 = vmatpush1.bf16.msra.mxu0 %v11839_v14  ;;  %8408 = vmatpush1.bf16.msra.mxu1 %v11842_v15  ;;  %v11868_v46 = vld [vmem:[%s15172_s1 + $0x15ec] ss:$16 sps:$4 sm:$0xff]   ;;  %v8445_v47 = vld [vmem:[%s15171_s0 + $0x93] sm:$0x1]  ;;  %v11889_v20 = vld [vmem:[%s15172_s1 + $0x1664] ss:$16 sps:$4 sm:$0xff]  }
 0x2a4   :  { %v5846_v26 = vpop.f32.mrf.mxu0  ;;  %v5887_v27 = vpop.f32.mrf.mxu1  ;;  %8368 = vmatprep.subr.bf16.mxu0 %v11847_v17  ;;  %8409 = vmatprep.subr.bf16.mxu1 %v11850_v18  ;;  %v8447_v51 = vpack.c.bf16 %v8445_v47, %v8445_v47  ;;  %v11886_v17 = vld [vmem:[%s15172_s1 + $0x158c] ss:$16 sps:$4 sm:$0xff]   ;;  %v11881_v18 = vld [vmem:[%s15172_s1 + $0x1580] ss:$16 sps:$4 sm:$0xff]  }
 0x2a5   :  { %v5893_v30 = vadd.f32 %v5846_v26, %v5697_v56  ;;  %v5895_v31 = vadd.f32 %v5887_v27, %v5699_v57  ;;  %8390 = vmatprep.mubr.bf16.mxu0 %v12029_v2  ;;  %8431 = vmatprep.mubr.bf16.mxu1 %v12029_v2  ;;  %v11895_v26 = vld [vmem:[%s15172_s1 + $0x1644] ss:$16 sps:$4 sm:$0xff]   ;;  %v11898_v27 = vld [vmem:[%s15172_s1 + $0x164c] ss:$16 sps:$4 sm:$0xff]  }
 0x2a6   :  { %v5848_v32 = vpop.f32.mrf.mxu0  ;;  %v5889_v33 = vpop.f32.mrf.mxu1  ;;  %v8467_v62 = vunpack.c.l.b16 %v8447_v51  ;;  %v11907_v51 = vld [vmem:[%s15172_s1 + $0x1604] ss:$16 sps:$4 sm:$0xff]  }
 0x2a7   :  { %8369 = vmatpush1.bf16.msra.mxu0 %v11845_v22  ;;  %8410 = vmatpush1.bf16.msra.mxu1 %v11848_v23  ;;  %v11887_v23 = vld [vmem:[%s15172_s1 + $0x1660] ss:$16 sps:$4 sm:$0xff]  }
 0x2a8   :  { %v5849_v38 = vpop.f32.mrf.mxu0  ;;  %v5890_v39 = vpop.f32.mrf.mxu1  ;;  %8370 = vmatprep.subr.bf16.mxu0 %v11853_v28  ;;  %8411 = vmatprep.subr.bf16.mxu1 %v11856_v29  ;;  %v8468_v11 = vrot.slane %v8467_v62, 7  ;;  %v8640_v28 = vld [vmem:[%s15171_s0 + $0x44] sm:$0x1]  ;;  %v11893_v33 = vld [vmem:[%s15172_s1 + $0x1640] ss:$16 sps:$4 sm:$0xff]  }
 0x2a9   :  { %v11901_v39 = vld [vmem:[%s15172_s1 + $0x1624] ss:$16 sps:$4 sm:$0xff]  }
 0x2aa   :  { %v8469_v19 = vsel %vm67_vm0, %v8468_v11, %v8466_v10 }
 0x2ab   :  { %8371 = vmatpush1.bf16.msra.mxu0 %v11851_v34  ;;  %8412 = vmatpush1.bf16.msra.mxu1 %v11854_v35  ;;  %v8470_v22 = vpack.c.b16 %v8469_v19, %v8469_v19  ;;  %v11896_v34 = vld [vmem:[%s15172_s1 + $0x1648] ss:$16 sps:$4 sm:$0xff]   ;;  %v8642_v35 = vpack.c.bf16 %v8640_v28, %v8640_v28 }
 0x2ac   :  { %8372 = vmatprep.subr.bf16.mxu0 %v11859_v40  ;;  %8413 = vmatprep.subr.bf16.mxu1 %v11862_v41  ;;  %v11904_v40 = vld [vmem:[%s15172_s1 + $0x162c] ss:$16 sps:$4 sm:$0xff]   ;;  %v11932_v28 = vld [vmem:[%s15172_s1 + $0x1688] ss:$16 sps:$4 sm:$0xff]  }
 0x2ad   :  { %v8662_v47 = vunpack.c.l.b16 %v8642_v35  ;;  %v11938_v35 = vld [vmem:[%s15172_s1 + $0x1768] ss:$16 sps:$4 sm:$0xff]  }
 0x2af   :  { %8373 = vmatpush1.bf16.msra.mxu0 %v11857_v42  ;;  %8414 = vmatpush1.bf16.msra.mxu1 %v11860_v43 }
 0x2b0   :  { %8562 = vmatprep.subr.bf16.mxu0 %v11865_v45  ;;  %8603 = vmatprep.subr.bf16.mxu1 %v11868_v46  ;;  %v11899_v45 = vld [vmem:[%s15172_s1 + $0x1620] ss:$16 sps:$4 sm:$0xff]   ;;  %v11902_v46 = vld [vmem:[%s15172_s1 + $0x1628] ss:$16 sps:$4 sm:$0xff]  }
 0x2b2   :  { %v6040_v55 = vpop.f32.mrf.mxu0  ;;  %v6081_v56 = vpop.f32.mrf.mxu1  ;;  %10648 = vmatmul.mubr.msk.bf16.vlgmr.msra.gmra.mxu0 %vm150_vm1, %v8274_v48  ;;  %10649 = vmatmul.mubr.msk.bf16.vlgmr.msra.gmra.mxu1 %vm150_vm1, %v8274_v48 }
 0x2b3   :  { %v6088_v57 = vadd.f32 %v6040_v55, %v5892_v21  ;;  %v6090_v58 = vadd.f32 %v6081_v56, %v5894_v13  ;;  %8563 = vmatpush1.bf16.msra.mxu0 %v11863_v49  ;;  %8604 = vmatpush1.bf16.msra.mxu1 %v11866_v50  ;;  %v11892_v21 = vld [vmem:[%s15172_s1 + $0x166c] ss:$16 sps:$4 sm:$0xff]   ;;  %v8641_v13 = vld [vmem:[%s15171_s0 + $0x94] sm:$0x1] }
 0x2b4   :  { %v6042_v63 = vpop.f32.mrf.mxu0  ;;  %v6083_v0 = vpop.f32.mrf.mxu1  ;;  %8564 = vmatprep.subr.bf16.mxu0 %v11871_v52  ;;  %8605 = vmatprep.subr.bf16.mxu1 %v11874_v53  ;;  %v8643_v25 = vpack.c.bf16 %v8641_v13, %v8641_v13  ;;  %v11910_v52 = vld [vmem:[%s15172_s1 + $0x160c] ss:$16 sps:$4 sm:$0xff]   ;;  %v11905_v53 = vld [vmem:[%s15172_s1 + $0x1600] ss:$16 sps:$4 sm:$0xff]   ;;  %v11913_v56 = vld [vmem:[%s15172_s1 + $0x16e4] ss:$16 sps:$4 sm:$0xff]  }
 0x2b5   :  { %v6089_v4 = vadd.f32 %v6042_v63, %v5893_v30  ;;  %v6091_v5 = vadd.f32 %v6083_v0, %v5895_v31  ;;  %8586 = vmatprep.mubr.bf16.mxu0 %v12029_v2  ;;  %8627 = vmatprep.mubr.bf16.mxu1 %v12029_v2  ;;  %v11919_v63 = vld [vmem:[%s15172_s1 + $0x16c4] ss:$16 sps:$4 sm:$0xff]   ;;  %v11922_v0 = vld [vmem:[%s15172_s1 + $0x16cc] ss:$16 sps:$4 sm:$0xff]  }
 0x2b6   :  { %v6044_v6 = vpop.f32.mrf.mxu0  ;;  %v6085_v7 = vpop.f32.mrf.mxu1  ;;  %v8663_v36 = vunpack.c.l.b16 %v8643_v25  ;;  %v11931_v25 = vld [vmem:[%s15172_s1 + $0x1684] ss:$16 sps:$4 sm:$0xff]  }
 0x2b7   :  { %8565 = vmatpush1.bf16.msra.mxu0 %v11869_v59  ;;  %8606 = vmatpush1.bf16.msra.mxu1 %v11872_v60  ;;  %v11911_v60 = vld [vmem:[%s15172_s1 + $0x16e0] ss:$16 sps:$4 sm:$0xff]  }
 0x2b8   :  { %v6045_v14 = vpop.f32.mrf.mxu0  ;;  %v6086_v15 = vpop.f32.mrf.mxu1  ;;  %8566 = vmatprep.subr.bf16.mxu0 %v11877_v1  ;;  %8607 = vmatprep.subr.bf16.mxu1 %v11880_v3  ;;  %v8664_v48 = vrot.slane %v8663_v36, 7  ;;  %v8836_v1 = vld [vmem:[%s15171_s0 + $0x45] sm:$0x1]  ;;  %v11917_v7 = vld [vmem:[%s15172_s1 + $0x16c0] ss:$16 sps:$4 sm:$0xff]  }
 0x2b9   :  { %v11925_v15 = vld [vmem:[%s15172_s1 + $0x16a4] ss:$16 sps:$4 sm:$0xff]  }
 0x2ba   :  { %v8665_v55 = vsel %vm67_vm0, %v8664_v48, %v8662_v47 }
 0x2bb   :  { %8567 = vmatpush1.bf16.msra.mxu0 %v11875_v8  ;;  %8608 = vmatpush1.bf16.msra.mxu1 %v11878_v9  ;;  %v8666_v59 = vpack.c.b16 %v8665_v55, %v8665_v55  ;;  %v11920_v8 = vld [vmem:[%s15172_s1 + $0x16c8] ss:$16 sps:$4 sm:$0xff]   ;;  %v8838_v9 = vpack.c.bf16 %v8836_v1, %v8836_v1 }
 0x2bc   :  { %8568 = vmatprep.subr.bf16.mxu0 %v11883_v16  ;;  %8609 = vmatprep.subr.bf16.mxu1 %v11886_v17  ;;  %v11928_v16 = vld [vmem:[%s15172_s1 + $0x16ac] ss:$16 sps:$4 sm:$0xff]   ;;  %v11956_v1 = vld [vmem:[%s15172_s1 + $0x1708] ss:$16 sps:$4 sm:$0xff]  }
 0x2bd   :  { %v8858_v13 = vunpack.c.l.b16 %v8838_v9  ;;  %v11962_v9 = vld [vmem:[%s15172_s1 + $0x17e8] ss:$16 sps:$4 sm:$0xff]  }
 0x2bf   :  { %8569 = vmatpush1.bf16.msra.mxu0 %v11881_v18  ;;  %8610 = vmatpush1.bf16.msra.mxu1 %v11884_v12 }
 0x2c0   :  { %8758 = vmatprep.subr.bf16.mxu0 %v11889_v20  ;;  %8799 = vmatprep.subr.bf16.mxu1 %v11892_v21  ;;  %v11923_v20 = vld [vmem:[%s15172_s1 + $0x16a0] ss:$16 sps:$4 sm:$0xff]   ;;  %v11926_v21 = vld [vmem:[%s15172_s1 + $0x16a8] ss:$16 sps:$4 sm:$0xff]  }
 0x2c2   :  { %v6236_v29 = vpop.f32.mrf.mxu0  ;;  %v6277_v30 = vpop.f32.mrf.mxu1  ;;  %10666 = vmatmul.mubr.msk.bf16.vlgmr.msra.gmra.mxu0 %vm150_vm1, %v8470_v22  ;;  %10667 = vmatmul.mubr.msk.bf16.vlgmr.msra.gmra.mxu1 %vm150_vm1, %v8470_v22 }
 0x2c3   :  { %v6284_v31 = vadd.f32 %v6236_v29, %v6088_v57  ;;  %v6286_v32 = vadd.f32 %v6277_v30, %v6090_v58  ;;  %8759 = vmatpush1.bf16.msra.mxu0 %v11887_v23  ;;  %8800 = vmatpush1.bf16.msra.mxu1 %v11890_v24  ;;  %v11916_v57 = vld [vmem:[%s15172_s1 + $0x16ec] ss:$16 sps:$4 sm:$0xff]   ;;  %v8837_v58 = vld [vmem:[%s15171_s0 + $0x95] sm:$0x1] }
 0x2c4   :  { %v6238_v37 = vpop.f32.mrf.mxu0  ;;  %v6279_v38 = vpop.f32.mrf.mxu1  ;;  %8760 = vmatprep.subr.bf16.mxu0 %v11895_v26  ;;  %8801 = vmatprep.subr.bf16.mxu1 %v11898_v27  ;;  %v8839_v62 = vpack.c.bf16 %v8837_v58, %v8837_v58  ;;  %v11934_v26 = vld [vmem:[%s15172_s1 + $0x168c] ss:$16 sps:$4 sm:$0xff]   ;;  %v11929_v27 = vld [vmem:[%s15172_s1 + $0x1680] ss:$16 sps:$4 sm:$0xff]   ;;  %v11937_v30 = vld [vmem:[%s15172_s1 + $0x1764] ss:$16 sps:$4 sm:$0xff]  }
 0x2c5   :  { %v6285_v41 = vadd.f32 %v6238_v37, %v6089_v4  ;;  %v6287_v42 = vadd.f32 %v6279_v38, %v6091_v5  ;;  %8782 = vmatprep.mubr.bf16.mxu0 %v12029_v2  ;;  %8823 = vmatprep.mubr.bf16.mxu1 %v12029_v2  ;;  %v11943_v37 = vld [vmem:[%s15172_s1 + $0x1744] ss:$16 sps:$4 sm:$0xff]   ;;  %v11946_v38 = vld [vmem:[%s15172_s1 + $0x174c] ss:$16 sps:$4 sm:$0xff]  }
 0x2c6   :  { %v6240_v43 = vpop.f32.mrf.mxu0  ;;  %v6281_v44 = vpop.f32.mrf.mxu1  ;;  %v8859_v10 = vunpack.c.l.b16 %v8839_v62  ;;  %v11955_v62 = vld [vmem:[%s15172_s1 + $0x1704] ss:$16 sps:$4 sm:$0xff]  }
 0x2c7   :  { %8761 = vmatpush1.bf16.msra.mxu0 %v11893_v33  ;;  %8802 = vmatpush1.bf16.msra.mxu1 %v11896_v34  ;;  %v11935_v34 = vld [vmem:[%s15172_s1 + $0x1760] ss:$16 sps:$4 sm:$0xff]  }
 0x2c8   :  { %v6241_v49 = vpop.f32.mrf.mxu0  ;;  %v6282_v50 = vpop.f32.mrf.mxu1  ;;  %8762 = vmatprep.subr.bf16.mxu0 %v11901_v39  ;;  %8803 = vmatprep.subr.bf16.mxu1 %v11904_v40  ;;  %v8860_v22 = vrot.slane %v8859_v10, 7  ;;  %v9032_v39 = vld [vmem:[%s15171_s0 + $0x46] sm:$0x1]  ;;  %v11941_v44 = vld [vmem:[%s15172_s1 + $0x1740] ss:$16 sps:$4 sm:$0xff]  }
 0x2c9   :  { %v11949_v50 = vld [vmem:[%s15172_s1 + $0x1724] ss:$16 sps:$4 sm:$0xff]  }
 0x2ca   :  { %v8861_v29 = vsel %vm67_vm0, %v8860_v22, %v8858_v13 }
 0x2cb   :  { %8763 = vmatpush1.bf16.msra.mxu0 %v11899_v45  ;;  %8804 = vmatpush1.bf16.msra.mxu1 %v11902_v46  ;;  %v8862_v33 = vpack.c.b16 %v8861_v29, %v8861_v29  ;;  %v11944_v45 = vld [vmem:[%s15172_s1 + $0x1748] ss:$16 sps:$4 sm:$0xff]   ;;  %v9034_v46 = vpack.c.bf16 %v9032_v39, %v9032_v39 }
 0x2cc   :  { %8764 = vmatprep.subr.bf16.mxu0 %v11907_v51  ;;  %8805 = vmatprep.subr.bf16.mxu1 %v11910_v52  ;;  %v11952_v51 = vld [vmem:[%s15172_s1 + $0x172c] ss:$16 sps:$4 sm:$0xff]   ;;  %v11980_v39 = vld [vmem:[%s15172_s1 + $0x1788] ss:$16 sps:$4 sm:$0xff]  }
 0x2cd   :  { %v9054_v58 = vunpack.c.l.b16 %v9034_v46  ;;  %v11986_v46 = vld [vmem:[%s15172_s1 + $0x1868] ss:$16 sps:$4 sm:$0xff]  }
 0x2cf   :  { %8765 = vmatpush1.bf16.msra.mxu0 %v11905_v53  ;;  %8806 = vmatpush1.bf16.msra.mxu1 %v11908_v54 }
 0x2d0   :  { %8954 = vmatprep.subr.bf16.mxu0 %v11913_v56  ;;  %8995 = vmatprep.subr.bf16.mxu1 %v11916_v57  ;;  %v11947_v56 = vld [vmem:[%s15172_s1 + $0x1720] ss:$16 sps:$4 sm:$0xff]   ;;  %v11950_v57 = vld [vmem:[%s15172_s1 + $0x1728] ss:$16 sps:$4 sm:$0xff]  }
 0x2d2   :  { %v6432_v3 = vpop.f32.mrf.mxu0  ;;  %v6473_v4 = vpop.f32.mrf.mxu1  ;;  %10684 = vmatmul.mubr.msk.bf16.vlgmr.msra.gmra.mxu0 %vm150_vm1, %v8666_v59  ;;  %10685 = vmatmul.mubr.msk.bf16.vlgmr.msra.gmra.mxu1 %vm150_vm1, %v8666_v59 }
 0x2d3   :  { %v6480_v5 = vadd.f32 %v6432_v3, %v6284_v31  ;;  %v6482_v6 = vadd.f32 %v6473_v4, %v6286_v32  ;;  %8955 = vmatpush1.bf16.msra.mxu0 %v11911_v60  ;;  %8996 = vmatpush1.bf16.msra.mxu1 %v11914_v61  ;;  %v11940_v31 = vld [vmem:[%s15172_s1 + $0x176c] ss:$16 sps:$4 sm:$0xff]   ;;  %v9033_v32 = vld [vmem:[%s15171_s0 + $0x96] sm:$0x1] }
 0x2d4   :  { %v6434_v11 = vpop.f32.mrf.mxu0  ;;  %v6475_v14 = vpop.f32.mrf.mxu1  ;;  %8956 = vmatprep.subr.bf16.mxu0 %v11919_v63  ;;  %8997 = vmatprep.subr.bf16.mxu1 %v11922_v0  ;;  %v9035_v36 = vpack.c.bf16 %v9033_v32, %v9033_v32  ;;  %v11958_v63 = vld [vmem:[%s15172_s1 + $0x170c] ss:$16 sps:$4 sm:$0xff]   ;;  %v11953_v0 = vld [vmem:[%s15172_s1 + $0x1700] ss:$16 sps:$4 sm:$0xff]   ;;  %v11961_v4 = vld [vmem:[%s15172_s1 + $0x17e4] ss:$16 sps:$4 sm:$0xff]  }
 0x2d5   :  { %v6481_v17 = vadd.f32 %v6434_v11, %v6285_v41  ;;  %v6483_v18 = vadd.f32 %v6475_v14, %v6287_v42  ;;  %8978 = vmatprep.mubr.bf16.mxu0 %v12029_v2  ;;  %9019 = vmatprep.mubr.bf16.mxu1 %v12029_v2  ;;  %v11967_v11 = vld [vmem:[%s15172_s1 + $0x17c4] ss:$16 sps:$4 sm:$0xff]   ;;  %v11970_v14 = vld [vmem:[%s15172_s1 + $0x17cc] ss:$16 sps:$4 sm:$0xff]  }
 0x2d6   :  { %v6436_v12 = vpop.f32.mrf.mxu0  ;;  %v6477_v19 = vpop.f32.mrf.mxu1  ;;  %v9055_v47 = vunpack.c.l.b16 %v9035_v36  ;;  %v11979_v36 = vld [vmem:[%s15172_s1 + $0x1784] ss:$16 sps:$4 sm:$0xff]  }
 0x2d7   :  { %8957 = vmatpush1.bf16.msra.mxu0 %v11917_v7  ;;  %8998 = vmatpush1.bf16.msra.mxu1 %v11920_v8  ;;  %v11959_v8 = vld [vmem:[%s15172_s1 + $0x17e0] ss:$16 sps:$4 sm:$0xff]  }
 0x2d8   :  { %v6437_v23 = vpop.f32.mrf.mxu0  ;;  %v6478_v24 = vpop.f32.mrf.mxu1  ;;  %8958 = vmatprep.subr.bf16.mxu0 %v11925_v15  ;;  %8999 = vmatprep.subr.bf16.mxu1 %v11928_v16  ;;  %v9056_v59 = vrot.slane %v9055_v47, 7  ;;  %v9228_v15 = vld [vmem:[%s15171_s0 + $0x47] sm:$0x1]  ;;  %v11965_v19 = vld [vmem:[%s15172_s1 + $0x17c0] ss:$16 sps:$4 sm:$0xff]  }
 0x2d9   :  { %v11973_v24 = vld [vmem:[%s15172_s1 + $0x17a4] ss:$16 sps:$4 sm:$0xff]  }
 0x2da   :  { %v9057_v3 = vsel %vm67_vm0, %v9056_v59, %v9054_v58 }
 0x2db   :  { %8959 = vmatpush1.bf16.msra.mxu0 %v11923_v20  ;;  %9000 = vmatpush1.bf16.msra.mxu1 %v11926_v21  ;;  %v9058_v7 = vpack.c.b16 %v9057_v3, %v9057_v3  ;;  %v11968_v20 = vld [vmem:[%s15172_s1 + $0x17c8] ss:$16 sps:$4 sm:$0xff]   ;;  %v9230_v21 = vpack.c.bf16 %v9228_v15, %v9228_v15 }
 0x2dc   :  { %8960 = vmatprep.subr.bf16.mxu0 %v11931_v25  ;;  %9001 = vmatprep.subr.bf16.mxu1 %v11934_v26  ;;  %v11976_v25 = vld [vmem:[%s15172_s1 + $0x17ac] ss:$16 sps:$4 sm:$0xff]  }
 0x2dd   :  { %v9250_v32 = vunpack.c.l.b16 %v9230_v21 }
 0x2df   :  { %8961 = vmatpush1.bf16.msra.mxu0 %v11929_v27  ;;  %9002 = vmatpush1.bf16.msra.mxu1 %v11932_v28 }
 0x2e0   :  { %9150 = vmatprep.subr.bf16.mxu0 %v11937_v30  ;;  %9191 = vmatprep.subr.bf16.mxu1 %v11940_v31  ;;  %v11971_v30 = vld [vmem:[%s15172_s1 + $0x17a0] ss:$16 sps:$4 sm:$0xff]   ;;  %v11974_v31 = vld [vmem:[%s15172_s1 + $0x17a8] ss:$16 sps:$4 sm:$0xff]  }
 0x2e2   :  { %v6628_v40 = vpop.f32.mrf.mxu0  ;;  %v6669_v41 = vpop.f32.mrf.mxu1  ;;  %10702 = vmatmul.mubr.msk.bf16.vlgmr.msra.gmra.mxu0 %vm150_vm1, %v8862_v33  ;;  %10703 = vmatmul.mubr.msk.bf16.vlgmr.msra.gmra.mxu1 %vm150_vm1, %v8862_v33 }
 0x2e3   :  { %v6676_v42 = vadd.f32 %v6628_v40, %v6480_v5  ;;  %v6678_v43 = vadd.f32 %v6669_v41, %v6482_v6  ;;  %9151 = vmatpush1.bf16.msra.mxu0 %v11935_v34  ;;  %9192 = vmatpush1.bf16.msra.mxu1 %v11938_v35  ;;  %v11964_v5 = vld [vmem:[%s15172_s1 + $0x17ec] ss:$16 sps:$4 sm:$0xff]   ;;  %v9229_v6 = vld [vmem:[%s15171_s0 + $0x97] sm:$0x1] }
 0x2e4   :  { %v6630_v48 = vpop.f32.mrf.mxu0  ;;  %v6671_v49 = vpop.f32.mrf.mxu1  ;;  %9152 = vmatprep.subr.bf16.mxu0 %v11943_v37  ;;  %9193 = vmatprep.subr.bf16.mxu1 %v11946_v38  ;;  %v9231_v10 = vpack.c.bf16 %v9229_v6, %v9229_v6  ;;  %v11982_v37 = vld [vmem:[%s15172_s1 + $0x178c] ss:$16 sps:$4 sm:$0xff]   ;;  %v11977_v38 = vld [vmem:[%s15172_s1 + $0x1780] ss:$16 sps:$4 sm:$0xff]   ;;  %v11985_v41 = vld [vmem:[%s15172_s1 + $0x1864] ss:$16 sps:$4 sm:$0xff]  }
 0x2e5   :  { %v6677_v52 = vadd.f32 %v6630_v48, %v6481_v17  ;;  %v6679_v53 = vadd.f32 %v6671_v49, %v6483_v18  ;;  %9174 = vmatprep.mubr.bf16.mxu0 %v12029_v2  ;;  %9215 = vmatprep.mubr.bf16.mxu1 %v12029_v2  ;;  %v11991_v48 = vld [vmem:[%s15172_s1 + $0x1844] ss:$16 sps:$4 sm:$0xff]   ;;  %v11994_v49 = vld [vmem:[%s15172_s1 + $0x184c] ss:$16 sps:$4 sm:$0xff]  }
 0x2e6   :  { %v6632_v54 = vpop.f32.mrf.mxu0  ;;  %v6673_v55 = vpop.f32.mrf.mxu1  ;;  %v9251_v13 = vunpack.c.l.b16 %v9231_v10  ;;  %v12006_v10 = vld [vmem:[%s15172_s1 + $0x180c] ss:$16 sps:$4 sm:$0xff]  }
 0x2e7   :  { %9153 = vmatpush1.bf16.msra.mxu0 %v11941_v44  ;;  %9194 = vmatpush1.bf16.msra.mxu1 %v11944_v45  ;;  %v11983_v45 = vld [vmem:[%s15172_s1 + $0x1860] ss:$16 sps:$4 sm:$0xff]  }
 0x2e8   :  { %v6633_v60 = vpop.f32.mrf.mxu0  ;;  %v6674_v61 = vpop.f32.mrf.mxu1  ;;  %9154 = vmatprep.subr.bf16.mxu0 %v11949_v50  ;;  %9195 = vmatprep.subr.bf16.mxu1 %v11952_v51  ;;  %v9252_v33 = vrot.slane %v9251_v13, 7  ;;  %v9424_v50 = vld [vmem:[%s15171_s0 + $0x48] sm:$0x1]  ;;  %v11989_v55 = vld [vmem:[%s15172_s1 + $0x1840] ss:$16 sps:$4 sm:$0xff]  }
 0x2e9   :  { %v11997_v61 = vld [vmem:[%s15172_s1 + $0x1824] ss:$16 sps:$4 sm:$0xff]  }
 0x2ea   :  { %v9253_v40 = vsel %vm67_vm0, %v9252_v33, %v9250_v32 }
 0x2eb   :  { %9155 = vmatpush1.bf16.msra.mxu0 %v11947_v56  ;;  %9196 = vmatpush1.bf16.msra.mxu1 %v11950_v57  ;;  %v9254_v44 = vpack.c.b16 %v9253_v40, %v9253_v40  ;;  %v11992_v56 = vld [vmem:[%s15172_s1 + $0x1848] ss:$16 sps:$4 sm:$0xff]   ;;  %v9426_v57 = vpack.c.bf16 %v9424_v50, %v9424_v50 }
 0x2ec   :  { %9156 = vmatprep.subr.bf16.mxu0 %v11955_v62  ;;  %9197 = vmatprep.subr.bf16.mxu1 %v11958_v63  ;;  %v12000_v62 = vld [vmem:[%s15172_s1 + $0x182c] ss:$16 sps:$4 sm:$0xff]  }
 0x2ed   :  { %v9446_v6 = vunpack.c.l.b16 %v9426_v57  ;;  %v9664_v57 = vld [vmem:[%s15174_s3 + $0x70] sm:$0xff] }
 0x2ef   :  { %9157 = vmatpush1.bf16.msra.mxu0 %v11953_v0  ;;  %9198 = vmatpush1.bf16.msra.mxu1 %v11956_v1 }
 0x2f0   :  { %9346 = vmatprep.subr.bf16.mxu0 %v11961_v4  ;;  %9387 = vmatprep.subr.bf16.mxu1 %v11964_v5  ;;  %v11995_v4 = vld [vmem:[%s15172_s1 + $0x1820] ss:$16 sps:$4 sm:$0xff]   ;;  %v11998_v5 = vld [vmem:[%s15172_s1 + $0x1828] ss:$16 sps:$4 sm:$0xff]  }
 0x2f2   :  { %v6824_v16 = vpop.f32.mrf.mxu0  ;;  %v6865_v17 = vpop.f32.mrf.mxu1  ;;  %10720 = vmatmul.mubr.msk.bf16.vlgmr.msra.gmra.mxu0 %vm150_vm1, %v9058_v7  ;;  %10721 = vmatmul.mubr.msk.bf16.vlgmr.msra.gmra.mxu1 %vm150_vm1, %v9058_v7 }
 0x2f3   :  { %v6872_v18 = vadd.f32 %v6824_v16, %v6676_v42  ;;  %v6874_v12 = vadd.f32 %v6865_v17, %v6678_v43  ;;  %9347 = vmatpush1.bf16.msra.mxu0 %v11959_v8  ;;  %9388 = vmatpush1.bf16.msra.mxu1 %v11962_v9  ;;  %v11988_v42 = vld [vmem:[%s15172_s1 + $0x186c] ss:$16 sps:$4 sm:$0xff]   ;;  %v9425_v43 = vld [vmem:[%s15171_s0 + $0x98] sm:$0x1] }
 0x2f4   :  { %v6826_v22 = vpop.f32.mrf.mxu0  ;;  %v6867_v23 = vpop.f32.mrf.mxu1  ;;  %9348 = vmatprep.subr.bf16.mxu0 %v11967_v11  ;;  %9389 = vmatprep.subr.bf16.mxu1 %v11970_v14  ;;  %v9427_v47 = vpack.c.bf16 %v9425_v43, %v9425_v43  ;;  %v12001_v11 = vld [vmem:[%s15172_s1 + $0x1800] ss:$16 sps:$4 sm:$0xff]   ;;  %v12004_v14 = vld [vmem:[%s15172_s1 + $0x1808] ss:$16 sps:$4 sm:$0xff]  }
 0x2f5   :  { %v6873_v26 = vadd.f32 %v6826_v22, %v6677_v52  ;;  %v6875_v27 = vadd.f32 %v6867_v23, %v6679_v53  ;;  %9370 = vmatprep.mubr.bf16.mxu0 %v12029_v2  ;;  %9411 = vmatprep.mubr.bf16.mxu1 %v12029_v2 }
 0x2f6   :  { %v6828_v28 = vpop.f32.mrf.mxu0  ;;  %v6869_v29 = vpop.f32.mrf.mxu1  ;;  %v9447_v58 = vunpack.c.l.b16 %v9427_v47 }
 0x2f7   :  { %9349 = vmatpush1.bf16.msra.mxu0 %v11965_v19  ;;  %9390 = vmatpush1.bf16.msra.mxu1 %v11968_v20 }
 0x2f8   :  { %v6829_v34 = vpop.f32.mrf.mxu0  ;;  %v6870_v35 = vpop.f32.mrf.mxu1  ;;  %9350 = vmatprep.subr.bf16.mxu0 %v11973_v24  ;;  %9391 = vmatprep.subr.bf16.mxu1 %v11976_v25  ;;  %v9448_v7 = vrot.slane %v9447_v58, 7  ;;  %v9696_v58 = vld [vmem:[%s15174_s3 + $0x170] sm:$0xff] }
 0x2fa   :  { %v9449_v15 = vsel %vm67_vm0, %v9448_v7, %v9446_v6 }
 0x2fb   :  { %9351 = vmatpush1.bf16.msra.mxu0 %v11971_v30  ;;  %9392 = vmatpush1.bf16.msra.mxu1 %v11974_v31  ;;  %v9450_v16 = vpack.c.b16 %v9449_v15, %v9449_v15 }
 0x2fc   :  { %9352 = vmatprep.subr.bf16.mxu0 %v11979_v36  ;;  %9393 = vmatprep.subr.bf16.mxu1 %v11982_v37 }
 0x2ff   :  { %9353 = vmatpush1.bf16.msra.mxu0 %v11977_v38  ;;  %9394 = vmatpush1.bf16.msra.mxu1 %v11980_v39 }
 0x300   :  { %9542 = vmatprep.subr.bf16.mxu0 %v11985_v41  ;;  %9583 = vmatprep.subr.bf16.mxu1 %v11988_v42 }
 0x302   :  { %v7020_v51 = vpop.f32.mrf.mxu0  ;;  %v7061_v52 = vpop.f32.mrf.mxu1  ;;  %10738 = vmatmul.mubr.msk.bf16.vlgmr.msra.gmra.mxu0 %vm150_vm1, %v9254_v44  ;;  %10739 = vmatmul.mubr.msk.bf16.vlgmr.msra.gmra.mxu1 %vm150_vm1, %v9254_v44 }
 0x303   :  { %v7068_v53 = vadd.f32 %v7020_v51, %v6872_v18  ;;  %v7070_v54 = vadd.f32 %v7061_v52, %v6874_v12  ;;  %9543 = vmatpush1.bf16.msra.mxu0 %v11983_v45  ;;  %9584 = vmatpush1.bf16.msra.mxu1 %v11986_v46  ;;  %v9681_v51 = vld [vmem:[%s15174_s3 + $0xf8] sm:$0xff] }
 0x304   :  { %v7022_v59 = vpop.f32.mrf.mxu0  ;;  %v7063_v60 = vpop.f32.mrf.mxu1  ;;  %9544 = vmatprep.subr.bf16.mxu0 %v11991_v48  ;;  %9585 = vmatprep.subr.bf16.mxu1 %v11994_v49  ;;  %v9713_v52 = vld [vmem:[%s15174_s3 + $0x1f8] sm:$0xff] }
 0x305   :  { %v7069_v63 = vadd.f32 %v7022_v59, %v6873_v26  ;;  %v7071_v0 = vadd.f32 %v7063_v60, %v6875_v27  ;;  %9566 = vmatprep.mubr.bf16.mxu0 %v12029_v2  ;;  %9607 = vmatprep.mubr.bf16.mxu1 %v12029_v2  ;;  %v12003_v2 = vld [vmem:[%s15172_s1 + $0x1804] ss:$16 sps:$4 sm:$0xff]   ;;  %v9679_v59 = vld [vmem:[%s15174_s3 + $0xe8] sm:$0xff] }
 0x306   :  { %v7024_v1 = vpop.f32.mrf.mxu0  ;;  %v7065_v3 = vpop.f32.mrf.mxu1  ;;  %v9711_v60 = vld [vmem:[%s15174_s3 + $0x1e8] sm:$0xff] }
 0x307   :  { %9545 = vmatpush1.bf16.msra.mxu0 %v11989_v55  ;;  %9586 = vmatpush1.bf16.msra.mxu1 %v11992_v56  ;;  %v9680_v55 = vld [vmem:[%s15174_s3 + $0xf0] sm:$0xff] }
 0x308   :  { %v7025_v8 = vpop.f32.mrf.mxu0  ;;  %v7066_v9 = vpop.f32.mrf.mxu1  ;;  %9546 = vmatprep.subr.bf16.mxu0 %v11997_v61  ;;  %9587 = vmatprep.subr.bf16.mxu1 %v12000_v62  ;;  %v9712_v56 = vld [vmem:[%s15174_s3 + $0x1f0] sm:$0xff]  ;;  %v9663_v61 = vld [vmem:[%s15174_s3 + $0x68] sm:$0xff] }
 0x309   :  { %v9695_v62 = vld [vmem:[%s15174_s3 + $0x168] sm:$0xff]  ;;  %v9677_v8 = vld [vmem:[%s15174_s3 + $0xd8] sm:$0xff] }
 0x30a   :  { %v9709_v9 = vld [vmem:[%s15174_s3 + $0x1d8] sm:$0xff] }
 0x30b   :  { %9547 = vmatpush1.bf16.msra.mxu0 %v11995_v4  ;;  %9588 = vmatpush1.bf16.msra.mxu1 %v11998_v5  ;;  %v9662_v4 = vld [vmem:[%s15174_s3 + $0x60] sm:$0xff] }
 0x30c   :  { %9548 = vmatprep.subr.bf16.mxu0 %v12003_v2  ;;  %9589 = vmatprep.subr.bf16.mxu1 %v12006_v10  ;;  %v9694_v5 = vld [vmem:[%s15174_s3 + $0x160] sm:$0xff] }
 0x30f   :  { %9549 = vmatpush1.bf16.msra.mxu0 %v12001_v11  ;;  %9590 = vmatpush1.bf16.msra.mxu1 %v12004_v14  ;;  %v9661_v11 = vld [vmem:[%s15174_s3 + $0x58] sm:$0xff] }
 0x310   :  { %10759 = vmatprep.subr.mxu0 %v9681_v51  ;;  %10794 = vmatprep.subr.mxu1 %v9713_v52  ;;  %v9693_v14 = vld [vmem:[%s15174_s3 + $0x158] sm:$0xff] }
 0x311   :  { %v9669_v51 = vld [vmem:[%s15174_s3 + $0x98] sm:$0xff] }
 0x312   :  { %v7216_v17 = vpop.f32.mrf.mxu0  ;;  %v7257_v18 = vpop.f32.mrf.mxu1  ;;  %10756 = vmatmul.mubr.msk.bf16.vlgmr.msra.gmra.mxu0 %vm150_vm1, %v9450_v16  ;;  %10757 = vmatmul.mubr.msk.bf16.vlgmr.msra.gmra.mxu1 %vm150_vm1, %v9450_v16  ;;  %v9701_v52 = vld [vmem:[%s15174_s3 + $0x198] sm:$0xff] }
 0x313   :  { %v7264_v12 = vadd.f32 %v7216_v17, %v7068_v53  ;;  %v7266_v19 = vadd.f32 %v7257_v18, %v7070_v54  ;;  %v9665_v53 = vld [vmem:[%s15174_s3 + $0x78] sm:$0xff]  ;;  %v9676_v17 = vld [vmem:[%s15174_s3 + $0xd0] sm:$0xff] }
 0x314   :  { %v7218_v20 = vpop.f32.mrf.mxu0  ;;  %v7259_v21 = vpop.f32.mrf.mxu1  ;;  %v9697_v54 = vld [vmem:[%s15174_s3 + $0x178] sm:$0xff]  ;;  %10760 = vmatpush3.msra.mxu0 %v9665_v53  ;;  %v9708_v18 = vld [vmem:[%s15174_s3 + $0x1d0] sm:$0xff] }
 0x315   :  { %v7265_v13 = vadd.f32 %v7218_v20, %v7069_v63  ;;  %v7267_v22 = vadd.f32 %v7259_v21, %v7071_v0  ;;  %10795 = vmatpush3.msra.mxu1 %v9697_v54  ;;  %10761 = vmatprep.subr.mxu0 %v9680_v55  ;;  %v9678_v63 = vld [vmem:[%s15174_s3 + $0xe0] sm:$0xff]  ;;  %v9660_v20 = vld [vmem:[%s15174_s3 + $0x50] sm:$0xff]  ;;  %v9653_v55 = vld [vmem:[%s15174_s3 + $0x18] sm:$0xff] }
 0x316   :  { %v7220_v23 = vpop.f32.mrf.mxu0  ;;  %v7261_v24 = vpop.f32.mrf.mxu1  ;;  %10796 = vmatprep.subr.mxu1 %v9712_v56  ;;  %10762 = vmatpush3.msra.mxu0 %v9664_v57  ;;  %v9710_v0 = vld [vmem:[%s15174_s3 + $0x1e0] sm:$0xff]  ;;  %v9692_v21 = vld [vmem:[%s15174_s3 + $0x150] sm:$0xff]  ;;  %v9685_v56 = vld [vmem:[%s15174_s3 + $0x118] sm:$0xff] }
 0x317   :  { %10797 = vmatpush3.msra.mxu1 %v9696_v58  ;;  %10763 = vmatprep.subr.mxu0 %v9679_v59  ;;  %v9668_v59 = vld [vmem:[%s15174_s3 + $0x90] sm:$0xff] }
 0x318   :  { %v7221_v25 = vpop.f32.mrf.mxu0  ;;  %v7262_v26 = vpop.f32.mrf.mxu1  ;;  %10798 = vmatprep.subr.mxu1 %v9711_v60  ;;  %10764 = vmatpush3.msra.mxu0 %v9663_v61  ;;  %v9700_v60 = vld [vmem:[%s15174_s3 + $0x190] sm:$0xff] }
 0x319   :  { %10799 = vmatpush3.msra.mxu1 %v9695_v62  ;;  %10765 = vmatprep.subr.mxu0 %v9678_v63  ;;  %v9659_v25 = vld [vmem:[%s15174_s3 + $0x48] sm:$0xff]  ;;  %v9652_v63 = vld [vmem:[%s15174_s3 + $0x10] sm:$0xff] }
 0x31a   :  { %10800 = vmatprep.subr.mxu1 %v9710_v0  ;;  %10766 = vmatpush3.msra.mxu0 %v9662_v4  ;;  %v9691_v26 = vld [vmem:[%s15174_s3 + $0x148] sm:$0xff]  ;;  %v9684_v0 = vld [vmem:[%s15174_s3 + $0x110] sm:$0xff] }
 0x31b   :  { %10801 = vmatpush3.msra.mxu1 %v9694_v5  ;;  %10767 = vmatprep.subr.mxu0 %v9677_v8  ;;  %v9666_v8 = vld [vmem:[%s15174_s3 + $0x80] sm:$0xff] }
 0x31c   :  { %10802 = vmatprep.subr.mxu1 %v9709_v9  ;;  %10768 = vmatpush3.msra.mxu0 %v9661_v11  ;;  %v9698_v9 = vld [vmem:[%s15174_s3 + $0x180] sm:$0xff] }
 0x31d   :  { %10803 = vmatpush3.msra.mxu1 %v9693_v14  ;;  %10769 = vmatprep.subr.mxu0 %v9676_v17 }
 0x31e   :  { %10804 = vmatprep.subr.mxu1 %v9708_v18  ;;  %10770 = vmatpush3.msra.mxu0 %v9660_v20 }
 0x31f   :  { %10805 = vmatpush3.msra.mxu1 %v9692_v21 }
 0x322   :  { %v7412_v27 = vpop.f32.mrf.mxu0  ;;  %v7453_v28 = vpop.f32.mrf.mxu1 }
 0x323   :  { %v7460_v29 = vadd.f32 %v7412_v27, %v7264_v12  ;;  %v7462_v30 = vadd.f32 %v7453_v28, %v7266_v19  ;;  %v9674_v27 = vld [vmem:[%s15174_s3 + $0xc0] sm:$0xff] }
 0x324   :  { %v7414_v31 = vpop.f32.mrf.mxu0  ;;  %v7455_v32 = vpop.f32.mrf.mxu1  ;;  %v9706_v28 = vld [vmem:[%s15174_s3 + $0x1c0] sm:$0xff] }
 0x325   :  { %v7461_v33 = vadd.f32 %v7414_v31, %v7265_v13  ;;  %v7463_v34 = vadd.f32 %v7455_v32, %v7267_v22  ;;  %v9675_v13 = vld [vmem:[%s15174_s3 + $0xc8] sm:$0xff]  ;;  %v9673_v31 = vld [vmem:[%s15174_s3 + $0xb8] sm:$0xff] }
 0x326   :  { %v7416_v35 = vpop.f32.mrf.mxu0  ;;  %v7457_v36 = vpop.f32.mrf.mxu1  ;;  %v9707_v22 = vld [vmem:[%s15174_s3 + $0x1c8] sm:$0xff]  ;;  %10771 = vmatprep.subr.mxu0 %v9675_v13  ;;  %v9705_v32 = vld [vmem:[%s15174_s3 + $0x1b8] sm:$0xff] }
 0x327   :  { %10806 = vmatprep.subr.mxu1 %v9707_v22  ;;  %10772 = vmatpush3.msra.mxu0 %v9659_v25  ;;  %v9672_v35 = vld [vmem:[%s15174_s3 + $0xb0] sm:$0xff] }
 0x328   :  { %v7417_v37 = vpop.f32.mrf.mxu0  ;;  %v7458_v38 = vpop.f32.mrf.mxu1  ;;  %10807 = vmatpush3.msra.mxu1 %v9691_v26  ;;  %10773 = vmatprep.subr.mxu0 %v9674_v27  ;;  %v9704_v36 = vld [vmem:[%s15174_s3 + $0x1b0] sm:$0xff] }
 0x329   :  { %10808 = vmatprep.subr.mxu1 %v9706_v28  ;;  %v9656_v37 = vld [vmem:[%s15174_s3 + $0x30] sm:$0xff] }
 0x32a   :  { %v9688_v38 = vld [vmem:[%s15174_s3 + $0x130] sm:$0xff] }
 0x332   :  { %v7608_v39 = vpop.f32.mrf.mxu0  ;;  %v7649_v40 = vpop.f32.mrf.mxu1 }
 0x333   :  { %v7656_v41 = vadd.f32 %v7608_v39, %v7460_v29  ;;  %v7658_v42 = vadd.f32 %v7649_v40, %v7462_v30  ;;  %v9658_v29 = vld [vmem:[%s15174_s3 + $0x40] sm:$0xff]  ;;  %v9671_v39 = vld [vmem:[%s15174_s3 + $0xa8] sm:$0xff] }
 0x334   :  { %v7610_v43 = vpop.f32.mrf.mxu0  ;;  %v7651_v44 = vpop.f32.mrf.mxu1  ;;  %v9690_v30 = vld [vmem:[%s15174_s3 + $0x140] sm:$0xff]  ;;  %10774 = vmatpush3.msra.mxu0 %v9658_v29  ;;  %v9703_v40 = vld [vmem:[%s15174_s3 + $0x1a8] sm:$0xff] }
 0x335   :  { %v7657_v45 = vadd.f32 %v7610_v43, %v7461_v33  ;;  %v7659_v46 = vadd.f32 %v7651_v44, %v7463_v34  ;;  %v9657_v33 = vld [vmem:[%s15174_s3 + $0x38] sm:$0xff]  ;;  %10809 = vmatpush3.msra.mxu1 %v9690_v30  ;;  %10775 = vmatprep.subr.mxu0 %v9673_v31  ;;  %v9670_v43 = vld [vmem:[%s15174_s3 + $0xa0] sm:$0xff] }
 0x336   :  { %v7612_v47 = vpop.f32.mrf.mxu0  ;;  %v7653_v48 = vpop.f32.mrf.mxu1  ;;  %v9689_v34 = vld [vmem:[%s15174_s3 + $0x138] sm:$0xff]  ;;  %10810 = vmatprep.subr.mxu1 %v9705_v32  ;;  %10776 = vmatpush3.msra.mxu0 %v9657_v33  ;;  %v9702_v44 = vld [vmem:[%s15174_s3 + $0x1a0] sm:$0xff] }
 0x337   :  { %10811 = vmatpush3.msra.mxu1 %v9689_v34  ;;  %10777 = vmatprep.subr.mxu0 %v9672_v35  ;;  %v9654_v47 = vld [vmem:[%s15174_s3 + $0x20] sm:$0xff] }
 0x338   :  { %v7613_v49 = vpop.f32.mrf.mxu0  ;;  %v7654_v50 = vpop.f32.mrf.mxu1  ;;  %10812 = vmatprep.subr.mxu1 %v9704_v36  ;;  %10778 = vmatpush3.msra.mxu0 %v9656_v37  ;;  %v9686_v48 = vld [vmem:[%s15174_s3 + $0x120] sm:$0xff] }
 0x339   :  { %10813 = vmatpush3.msra.mxu1 %v9688_v38  ;;  %10779 = vmatprep.subr.mxu0 %v9671_v39 }
 0x33a   :  { %10814 = vmatprep.subr.mxu1 %v9703_v40 }
 0x342   :  { %v7804_v1 = vpop.f32.mrf.mxu0  ;;  %v7845_v3 = vpop.f32.mrf.mxu1 }
 0x343   :  { %v15006_v6 = vadd.f32 %v7804_v1, %v7656_v41  ;;  %v15008_v7 = vadd.f32 %v7845_v3, %v7658_v42  ;;  %v9655_v41 = vld [vmem:[%s15174_s3 + $0x28] sm:$0xff] }
 0x344   :  { %v7806_v2 = vpop.f32.mrf.mxu0  ;;  %v7847_v10 = vpop.f32.mrf.mxu1  ;;  %v9687_v42 = vld [vmem:[%s15174_s3 + $0x128] sm:$0xff]  ;;  %10780 = vmatpush3.msra.mxu0 %v9655_v41 }
 0x345   :  { %v15022_v15 = vadd.f32 %v7806_v2, %v7657_v45  ;;  %v15024_v16 = vadd.f32 %v7847_v10, %v7659_v46  ;;  %10815 = vmatpush3.msra.mxu1 %v9687_v42  ;;  %10781 = vmatprep.subr.mxu0 %v9670_v43  ;;  %v9667_v1 = vld [vmem:[%s15174_s3 + $0x88] sm:$0xff]  ;;  %v9650_v2 = vld [vmem:[%s15174_s3] sm:$0xff] }
 0x346   :  { %v7808_v12 = vpop.f32.mrf.mxu0  ;;  %v7849_v19 = vpop.f32.mrf.mxu1  ;;  %10816 = vmatprep.subr.mxu1 %v9702_v44  ;;  %10782 = vmatpush3.msra.mxu0 %v9654_v47  ;;  %v9699_v3 = vld [vmem:[%s15174_s3 + $0x188] sm:$0xff]  ;;  %v9682_v10 = vld [vmem:[%s15174_s3 + $0x100] sm:$0xff] }
 0x347   :  { %10817 = vmatpush3.msra.mxu1 %v9686_v48  ;;  %10783 = vmatprep.subr.mxu0 %v9669_v51 }
 0x348   :  { %v7809_v23 = vpop.f32.mrf.mxu0  ;;  %v7850_v24 = vpop.f32.mrf.mxu1  ;;  %10818 = vmatprep.subr.mxu1 %v9701_v52  ;;  %10784 = vmatpush3.msra.mxu0 %v9653_v55 }
 0x349   :  { %10819 = vmatpush3.msra.mxu1 %v9685_v56  ;;  %10785 = vmatprep.subr.mxu0 %v9668_v59 }
 0x34a   :  { %10820 = vmatprep.subr.mxu1 %v9700_v60  ;;  %10786 = vmatpush3.msra.mxu0 %v9652_v63 }
 0x34b   :  { %10821 = vmatpush3.msra.mxu1 %v9684_v0  ;;  %10787 = vmatprep.subr.mxu0 %v9667_v1 }
 0x34c   :  { %10822 = vmatprep.subr.mxu1 %v9699_v3 }
 0x352   :  { %v8000_v45 = vpop.f32.mrf.mxu0  ;;  %v8041_v46 = vpop.f32.mrf.mxu1 }
 0x353   :  { %v8048_v49 = vadd.f32 %v8000_v45, %v15006_v6  ;;  %v8050_v50 = vadd.f32 %v8041_v46, %v15008_v7  ;;  %v9651_v6 = vld [vmem:[%s15174_s3 + $0x8] sm:$0xff] }
 0x354   :  { %v8002_v53 = vpop.f32.mrf.mxu0  ;;  %v8043_v54 = vpop.f32.mrf.mxu1  ;;  %v9683_v7 = vld [vmem:[%s15174_s3 + $0x108] sm:$0xff]  ;;  %10788 = vmatpush3.msra.mxu0 %v9651_v6 }
 0x355   :  { %v8049_v57 = vadd.f32 %v8002_v53, %v15022_v15  ;;  %v8051_v58 = vadd.f32 %v8043_v54, %v15024_v16  ;;  %10823 = vmatpush3.msra.mxu1 %v9683_v7  ;;  %10789 = vmatprep.subr.mxu0 %v9666_v8 }
 0x356   :  { %v8004_v61 = vpop.f32.mrf.mxu0  ;;  %v8045_v62 = vpop.f32.mrf.mxu1  ;;  %10824 = vmatprep.subr.mxu1 %v9698_v9  ;;  %10790 = vmatpush3.msra.mxu0 %v9650_v2 }
 0x357   :  { %10825 = vmatpush3.msra.mxu1 %v9682_v10 }
 0x358   :  { %v8005_v4 = vpop.f32.mrf.mxu0  ;;  %v8046_v5 = vpop.f32.mrf.mxu1 }
 0x362   :  { %v8196_v11 = vpop.f32.mrf.mxu0  ;;  %v8237_v14 = vpop.f32.mrf.mxu1 }
 0x363   :  { %v8244_v15 = vadd.f32 %v8196_v11, %v8048_v49  ;;  %v8246_v16 = vadd.f32 %v8237_v14, %v8050_v50 }
 0x364   :  { %v8198_v17 = vpop.f32.mrf.mxu0  ;;  %v8239_v18 = vpop.f32.mrf.mxu1 }
 0x365   :  { %v8245_v12 = vadd.f32 %v8198_v17, %v8049_v57  ;;  %v8247_v19 = vadd.f32 %v8239_v18, %v8051_v58 }
 0x366   :  { %v8200_v20 = vpop.f32.mrf.mxu0  ;;  %v8241_v21 = vpop.f32.mrf.mxu1 }
 0x368   :  { %v8201_v13 = vpop.f32.mrf.mxu0  ;;  %v8242_v22 = vpop.f32.mrf.mxu1 }
 0x372   :  { %v8392_v23 = vpop.f32.mrf.mxu0  ;;  %v8433_v24 = vpop.f32.mrf.mxu1 }
 0x373   :  { %v8440_v25 = vadd.f32 %v8392_v23, %v8244_v15  ;;  %v8442_v26 = vadd.f32 %v8433_v24, %v8246_v16  ;;  %v9622_v15 = vlaneseq }
 0x374   :  { %v8394_v27 = vpop.f32.mrf.mxu0  ;;  %v8435_v28 = vpop.f32.mrf.mxu1 }
 0x375   :  { %v8441_v29 = vadd.f32 %v8394_v27, %v8245_v12  ;;  %v8443_v30 = vadd.f32 %v8435_v28, %v8247_v19  ;;  %v9623_v18 = vshrl.u32 %v9622_v15, 7 }
 0x376   :  { %v8396_v31 = vpop.f32.mrf.mxu0  ;;  %v8437_v32 = vpop.f32.mrf.mxu1 }
 0x377   :  { %v9624_v23 = vsub.s32 0, %v9623_v18  ;;  %v9632_v24 = vsub.s32 2, %v9623_v18  ;;  %v9620_v31 = vld [vmem:[%s15173_s2] sm:$0xf] }
 0x378   :  { %v8397_v33 = vpop.f32.mrf.mxu0  ;;  %v8438_v34 = vpop.f32.mrf.mxu1 }
 0x382   :  { %v8588_v35 = vpop.f32.mrf.mxu0  ;;  %v8629_v36 = vpop.f32.mrf.mxu1 }
 0x383   :  { %v8636_v37 = vadd.f32 %v8588_v35, %v8440_v25  ;;  %v8638_v38 = vadd.f32 %v8629_v36, %v8442_v26  ;;  %v9628_v25 = vsub.s32 1, %v9623_v18  ;;  %v9636_v26 = vsub.s32 3, %v9623_v18 }
 0x384   :  { %v8590_v39 = vpop.f32.mrf.mxu0  ;;  %v8631_v40 = vpop.f32.mrf.mxu1 }
 0x385   :  { %v8637_v41 = vadd.f32 %v8590_v39, %v8441_v29  ;;  %v8639_v42 = vadd.f32 %v8631_v40, %v8443_v30  ;;  %v9633_v39 = vrot.slane %v9620_v31, %v9632_v24  ;;  %v9629_v40 = vrot.slane %v9620_v31, %v9628_v25 }
 0x386   :  { %v8592_v43 = vpop.f32.mrf.mxu0  ;;  %v8633_v44 = vpop.f32.mrf.mxu1 }
 0x388   :  { %v8593_v45 = vpop.f32.mrf.mxu0  ;;  %v8634_v46 = vpop.f32.mrf.mxu1 }
 0x392   :  { %v8784_v47 = vpop.f32.mrf.mxu0  ;;  %v8825_v48 = vpop.f32.mrf.mxu1 }
 0x393   :  { %v8832_v12 = vadd.f32 %v8784_v47, %v8636_v37  ;;  %v8834_v19 = vadd.f32 %v8825_v48, %v8638_v38  ;;  %v9625_v37 = vrot.slane %v9620_v31, %v9624_v23 }
 0x394   :  { %v8786_v49 = vpop.f32.mrf.mxu0  ;;  %v8827_v50 = vpop.f32.mrf.mxu1 }
 0x395   :  { %v8833_v20 = vadd.f32 %v8786_v49, %v8637_v41  ;;  %v8835_v21 = vadd.f32 %v8827_v50, %v8639_v42  ;;  %v9637_v41 = vrot.slane %v9620_v31, %v9636_v26 }
 0x396   :  { %v8788_v51 = vpop.f32.mrf.mxu0  ;;  %v8829_v52 = vpop.f32.mrf.mxu1 }
 0x398   :  { %v8789_v53 = vpop.f32.mrf.mxu0  ;;  %v8830_v54 = vpop.f32.mrf.mxu1 }
 0x3a2   :  { %v8980_v55 = vpop.f32.mrf.mxu0  ;;  %v9021_v56 = vpop.f32.mrf.mxu1 }
 0x3a3   :  { %v9028_v13 = vadd.f32 %v8980_v55, %v8832_v12  ;;  %v9030_v22 = vadd.f32 %v9021_v56, %v8834_v19 }
 0x3a4   :  { %v8982_v57 = vpop.f32.mrf.mxu0  ;;  %v9023_v58 = vpop.f32.mrf.mxu1 }
 0x3a5   :  { %v9029_v27 = vadd.f32 %v8982_v57, %v8833_v20  ;;  %v9031_v28 = vadd.f32 %v9023_v58, %v8835_v21 }
 0x3a6   :  { %v8984_v59 = vpop.f32.mrf.mxu0  ;;  %v9025_v60 = vpop.f32.mrf.mxu1 }
 0x3a8   :  { %v8985_v61 = vpop.f32.mrf.mxu0  ;;  %v9026_v62 = vpop.f32.mrf.mxu1 }
 0x3b2   :  { %v9176_v63 = vpop.f32.mrf.mxu0  ;;  %v9217_v0 = vpop.f32.mrf.mxu1 }
 0x3b3   :  { %v9224_v29 = vadd.f32 %v9176_v63, %v9028_v13  ;;  %v9226_v30 = vadd.f32 %v9217_v0, %v9030_v22  ;;  %v10758_v0 = vld [vmem:[%s15175_s4] ss:$0 sm:$0xff] }
 0x3b4   :  { %v9178_v1 = vpop.f32.mrf.mxu0  ;;  %v9219_v3 = vpop.f32.mrf.mxu1 }
 0x3b5   :  { %v9225_v32 = vadd.f32 %v9178_v1, %v9029_v27  ;;  %v9227_v33 = vadd.f32 %v9219_v3, %v9031_v28 }
 0x3b6   :  { %v9180_v4 = vpop.f32.mrf.mxu0  ;;  %v9221_v5 = vpop.f32.mrf.mxu1 }
 0x3b8   :  { %v9181_v6 = vpop.f32.mrf.mxu0  ;;  %v9222_v7 = vpop.f32.mrf.mxu1 }
 0x3c2   :  { %v9372_v8 = vpop.f32.mrf.mxu0  ;;  %v9413_v9 = vpop.f32.mrf.mxu1 }
 0x3c3   :  { %v9420_v34 = vadd.f32 %v9372_v8, %v9224_v29  ;;  %v9422_v35 = vadd.f32 %v9413_v9, %v9226_v30 }
 0x3c4   :  { %v9374_v2 = vpop.f32.mrf.mxu0  ;;  %v9415_v10 = vpop.f32.mrf.mxu1 }
 0x3c5   :  { %v9421_v42 = vadd.f32 %v9374_v2, %v9225_v32  ;;  %v9423_v43 = vadd.f32 %v9415_v10, %v9227_v33 }
 0x3c6   :  { %v9376_v11 = vpop.f32.mrf.mxu0  ;;  %v9417_v14 = vpop.f32.mrf.mxu1 }
 0x3c8   :  { %v9377_v16 = vpop.f32.mrf.mxu0  ;;  %v9418_v17 = vpop.f32.mrf.mxu1 }
 0x3d2   :  { %v9568_v36 = vpop.f32.mrf.mxu0  ;;  %v9609_v38 = vpop.f32.mrf.mxu1 }
 0x3d3   :  { %v9616_v44 = vadd.f32 %v9568_v36, %v9420_v34  ;;  %v9618_v45 = vadd.f32 %v9609_v38, %v9422_v35 }
 0x3d4   :  { %v9570_v46 = vpop.f32.mrf.mxu0  ;;  %v9611_v47 = vpop.f32.mrf.mxu1 }
 0x3d5   :  { %v9617_v48 = vadd.f32 %v9570_v46, %v9421_v42  ;;  %v9619_v49 = vadd.f32 %v9611_v47, %v9423_v43  ;;  %v9642_v50 = vadd.f32 %v9625_v37, %v9616_v44  ;;  %v9644_v51 = vadd.f32 %v9633_v39, %v9618_v45 }
 0x3d6   :  { %v9572_v52 = vpop.f32.mrf.mxu0  ;;  %v9613_v53 = vpop.f32.mrf.mxu1 }
 0x3d7   :  { %v9643_v54 = vadd.f32 %v9629_v40, %v9617_v48  ;;  %v9645_v55 = vadd.f32 %v9637_v41, %v9619_v49  ;;  %v9646_v60 = vmax.f32 %v9642_v50, 0.0  ;;  %v9648_v61 = vmax.f32 %v9644_v51, 0.0 }
 0x3d8   :  { %v9573_v56 = vpop.f32.mrf.mxu0  ;;  %v9614_v57 = vpop.f32.mrf.mxu1 }
 0x3d9   :  { %v9647_v58 = vmax.f32 %v9643_v54, 0.0  ;;  %v9649_v59 = vmax.f32 %v9645_v55, 0.0 }
 0x3db   :  { %9785 = vmatprep.mubr.f32.mxu0 %v9647_v58  ;;  %9855 = vmatprep.mubr.f32.mxu1 %v9649_v59 }
 0x3dc   :  { %9786 = vmatmul.mubr.f32.vlgmr.msra.gmra.mxu0 %v9646_v60  ;;  %9856 = vmatmul.mubr.f32.vlgmr.msra.gmra.mxu1 %v9648_v61 }
 0x49c   :  { %v10791_v62 = vpop.f32.mrf.mxu0  ;;  %v10826_v63 = vpop.f32.mrf.mxu1 }
 0x49e   :  { %v10792_v1 = vpop.f32.mrf.mxu0  ;;  %v10827_v3 = vpop.f32.mrf.mxu1 }
 0x49f   :  { %v10793_v4 = vadd.f32 %v10792_v1, %v10791_v62  ;;  %v10828_v6 = vadd.f32 %v10827_v3, %v10826_v63 }
 0x4a1   :  { %v9788_v5 = vadd.f32 %v10793_v4, %v10758_v0 }
 0x4a3   :  { %v9858_v7 = vadd.f32 %v10828_v6, %v9788_v5 }
 0x4a5   :  { %9861 = vst [vmem:[#allocation2] sm:$0x3] %v9858_v7 }
 0x4a6   :  { %12018 = shalt.err (!%p12015_p4)
}
 0x4a7   :  { %9871 = dma.vmem_to_hbm [thread:$0]  %s9869_s27, 32, %s15176_s5, [#allocation3]  }
 0x4a8   :  { %12027 = dma.done.wait [#allocation3], 32  }
 0x4a9   :  { %12028 = vsyncadd [#allocation3], 4294967264 }
 0x4aa   :  { %9875 = vsyncpa [#allocation3], 1 }

</bundles_post_ra>
